<compile_context>
chip_gen: v7x
topology: tpu7x:2x2x1
jax: 0.10.0
libtpu: 0.0.40
codegen_flags: <defaults>
</compile_context>

<pallas_src>
import math

import numpy as np

import jax
import jax.numpy as jnp
from jax.experimental import pallas as pl
from jax.experimental.pallas import tpu as pltpu

EPS = 1e-5


def _round_up(x, m):
    return (x + m - 1) // m * m


# ----------------------------------------------------------------------------
# Trace-time constants (numpy -> baked into the executable, zero per-call cost)
# ----------------------------------------------------------------------------
def _upsample_axis_matrix(size):
    """1-D bilinear x2 (align_corners=False) as a dense (size, 2*size) matrix."""
    dst = np.arange(2 * size, dtype=np.float64)
    src = np.maximum((dst + 0.5) * 0.5 - 0.5, 0.0)
    i0 = np.minimum(np.floor(src).astype(np.int64), size - 1)
    i1 = np.minimum(i0 + 1, size - 1)
    w1 = src - i0
    w0 = 1.0 - w1
    a = np.zeros((size, 2 * size), dtype=np.float64)
    a[i0, np.arange(2 * size)] += w0
    a[i1, np.arange(2 * size)] += w1
    return a


def _upsample_pixel_matrix(h, w):
    """(H*W, 4*H*W): per-image bilinear x2 upsample as a right-matmul."""
    ah = _upsample_axis_matrix(h)                     # (h, 2h)
    aw = _upsample_axis_matrix(w)                     # (w, 2w)
    u = np.einsum("ho,wp->hwop", ah, aw).reshape(h * w, 4 * h * w)
    return u.astype(np.float32)


def _tap_valid_masks(n_img, ho, wo):
    """(9, N*Ho*Wo) {0,1} masks: tap (dy,dx) is in-bounds at each output pixel."""
    q = np.arange(n_img * ho * wo) % (ho * wo)
    y, x = q // wo, q % wo
    rows = []
    for dy in (-1, 0, 1):
        for dx in (-1, 0, 1):
            ok = (y + dy >= 0) & (y + dy < ho) & (x + dx >= 0) & (x + dx < wo)
            rows.append(ok.astype(np.float32))
    return np.stack(rows, axis=0)


# ----------------------------------------------------------------------------
# The fused G_Block kernel
# ----------------------------------------------------------------------------
def make_g_block_kernel(n_img, cin, h_ch, out_ch, h, w):
    hw = h * w
    ho, wo = 2 * h, 2 * w
    howo = ho * wo
    m_in = n_img * hw
    m_out = n_img * howo
    s1 = _round_up(cin, 8)      # per-tap row stride in the conv1 LHS scratch
    s2 = _round_up(h_ch, 8)     # per-tap row stride in the conv2 LHS scratch
    pad = 128                   # lane-tile-aligned zero margins for tap slices
    offs = [dy * wo + dx for dy in (-1, 0, 1) for dx in (-1, 0, 1)]

    def stage_taps(act, msk_ref, lhs_ref, c, stride):
        """Write the 9 shifted, boundary-masked taps of `act` (c, m_out) into
        lhs_ref at sublane-aligned row offsets t*stride."""
        zeros = jnp.zeros((c, pad), jnp.float32)
        slab = jnp.concatenate([zeros, act, zeros], axis=1)   # (c, m_out+2*pad)
        for t, d in enumerate(offs):
            valid = msk_ref[t:t + 1, :]                        # (1, m_out)
            lhs_ref[t * stride:t * stride + c, :] = (
                slab[:, pad + d:pad + d + m_out] * valid)

    def kernel(x_ref, u_ref, msk_ref, g1_ref, b1_ref, wsc_ref, bsc_ref,
               w1_ref, cb1_ref, g2_ref, b2_ref, w2_ref, cb2_ref,
               o_ref, lhs1_ref, lhs2_ref):
        # ---- BN1 (training-mode batch stats, two-pass) + ReLU ---------------
        x = jnp.concatenate([x_ref[n] for n in range(n_img)], axis=1)  # (cin, m_in)
        mean1 = jnp.sum(x, axis=1, keepdims=True) * (1.0 / m_in)
        xc = x - mean1
        var1 = jnp.sum(xc * xc, axis=1, keepdims=True) * (1.0 / m_in)
        hact = jnp.maximum(
            xc * (g1_ref[...] * jax.lax.rsqrt(var1 + EPS)) + b1_ref[...], 0.0)

        # ---- 1x1 shortcut conv on pre-upsample pixels (commutes w/ upsample)
        sc = jnp.dot(wsc_ref[...], x, preferred_element_type=jnp.float32)

        # ---- bilinear x2 upsample of both paths: per-image GEMM with U ------
        hup_parts = []
        for n in range(n_img):
            lo, hi = n * hw, (n + 1) * hw
            hup_parts.append(jnp.dot(hact[:, lo:hi], u_ref[...],
                                     preferred_element_type=jnp.float32))
            # Shortcut goes straight to the output slab; residual added later.
            o_ref[n] = (jnp.dot(sc[:, lo:hi], u_ref[...],
                                preferred_element_type=jnp.float32)
                        + bsc_ref[...])
        hup = jnp.concatenate(hup_parts, axis=1)               # (cin, m_out)

        # ---- conv1 3x3: stage 9 taps in VMEM, one GEMM (K = 9*s1) -----------
        if cin % 8:
            lhs1_ref[...] = jnp.zeros((9 * s1, m_out), jnp.float32)
        stage_taps(hup, msk_ref, lhs1_ref, cin, s1)
        c1 = (jnp.dot(w1_ref[...], lhs1_ref[...],
                      preferred_element_type=jnp.float32) + cb1_ref[...])

        # ---- BN2 (batch stats) + ReLU ----------------------------------------
        mean2 = jnp.sum(c1, axis=1, keepdims=True) * (1.0 / m_out)
        cc = c1 - mean2
        var2 = jnp.sum(cc * cc, axis=1, keepdims=True) * (1.0 / m_out)
        h2 = jnp.maximum(
            cc * (g2_ref[...] * jax.lax.rsqrt(var2 + EPS)) + b2_ref[...], 0.0)

        # ---- conv2 3x3: same staging, one GEMM (K = 9*s2) --------------------
        if h_ch % 8:
            lhs2_ref[...] = jnp.zeros((9 * s2, m_out), jnp.float32)
        stage_taps(h2, msk_ref, lhs2_ref, h_ch, s2)
        res = (jnp.dot(w2_ref[...], lhs2_ref[...],
                       preferred_element_type=jnp.float32) + cb2_ref[...])

        # ---- fused residual + shortcut add ------------------------------------
        for n in range(n_img):
            o_ref[n] = o_ref[n] + res[:, n * howo:(n + 1) * howo]

    return kernel


def _pack_conv_weight(w_hwio, stride):
    """(3,3,Cin,Cout) HWIO -> (Cout, 9*stride): tap-major, channels zero-padded
    to `stride` so the kernel's LHS scratch rows stay sublane-aligned."""
    kh, kw, cin, cout = w_hwio.shape
    wt = jnp.transpose(w_hwio, (3, 0, 1, 2)).reshape(cout, kh * kw, cin)
    wt = jnp.pad(wt, ((0, 0), (0, 0), (0, stride - cin)))
    return wt.reshape(cout, kh * kw * stride)


# ----------------------------------------------------------------------------
# G_Block forward (upsample=True, num_classes=0, activation=ReLU)
# ----------------------------------------------------------------------------
def g_block_forward(x_nchw, params):
    x = x_nchw.astype(jnp.float32)
    n, cin, h, w = x.shape
    ho, wo = 2 * h, 2 * w
    hw, howo = h * w, ho * wo
    m_out = n * howo
    h_ch = params["w1"].shape[-1]
    out_ch = params["w2"].shape[-1]
    s1, s2 = _round_up(cin, 8), _round_up(h_ch, 8)

    # Layout-only glue: NCHW -> (N, C, H*W) is a free reshape (no transpose).
    x3d = x.reshape(n, cin, hw)

    # Trace-time constants.
    u = jnp.asarray(_upsample_pixel_matrix(h, w))          # (H*W, Ho*Wo)
    masks = jnp.asarray(_tap_valid_masks(n, ho, wo))       # (9, N*Ho*Wo)

    w1p = _pack_conv_weight(params["w1"], s1)              # (h_ch, 9*s1)
    w2p = _pack_conv_weight(params["w2"], s2)              # (out_ch, 9*s2)

    def full(shape):
        return pl.BlockSpec(shape, lambda i: (0,) * len(shape))

    out3d = pl.pallas_call(
        make_g_block_kernel(n, cin, h_ch, out_ch, h, w),
        out_shape=jax.ShapeDtypeStruct((n, out_ch, howo), jnp.float32),
        grid=(1,),   # single block: BN1/BN2 need global batch statistics
        in_specs=[full((n, cin, hw)),               # x
                  full((hw, howo)),                 # upsample matrix U
                  full((9, m_out)),                 # tap boundary masks
                  full((cin, 1)), full((cin, 1)),              # gamma1, beta1
                  full((out_ch, cin)), full((out_ch, 1)),      # wsc, bsc
                  full((h_ch, 9 * s1)), full((h_ch, 1)),       # w1, b1
                  full((h_ch, 1)), full((h_ch, 1)),            # gamma2, beta2
                  full((out_ch, 9 * s2)), full((out_ch, 1))],  # w2, b2
        out_specs=full((n, out_ch, howo)),
        scratch_shapes=[pltpu.VMEM((9 * s1, m_out), jnp.float32),
                        pltpu.VMEM((9 * s2, m_out), jnp.float32)],
        compiler_params=pltpu.CompilerParams(
            dimension_semantics=("arbitrary",),
            vmem_limit_bytes=32 * 1024 * 1024),   # explicit; <=2 MiB actually used
    )(x3d, u, masks,
      params["gamma1"].reshape(cin, 1), params["beta1"].reshape(cin, 1),
      params["wsc"].T, params["bsc"].reshape(out_ch, 1),
      w1p, params["b1"].reshape(h_ch, 1),
      params["gamma2"].reshape(h_ch, 1), params["beta2"].reshape(h_ch, 1),
      w2p, params["b2"].reshape(out_ch, 1))

    # (N, Cout, Ho*Wo) -> NCHW is another free reshape.
    return out3d.reshape(n, out_ch, ho, wo)


# ----------------------------------------------------------------------------
# Pure-JAX reference (for correctness check)
# ----------------------------------------------------------------------------
def _upsample_1d_indices(size):
    dst = jnp.arange(2 * size, dtype=jnp.float32)
    src = jnp.maximum((dst + 0.5) * 0.5 - 0.5, 0.0)
    i0 = jnp.minimum(jnp.floor(src).astype(jnp.int32), size - 1)
    i1 = jnp.minimum(i0 + 1, size - 1)
    w1 = src - i0.astype(jnp.float32)
    return i0, i1, 1.0 - w1, w1


def upsample_bilinear_x2_nhwc(x):
    n, h, w, c = x.shape
    i0, i1, w0, w1 = _upsample_1d_indices(h)
    xh = (x[:, i0, :, :] * w0[None, :, None, None]
          + x[:, i1, :, :] * w1[None, :, None, None])
    j0, j1, v0, v1 = _upsample_1d_indices(w)
    return (xh[:, :, j0, :] * v0[None, None, :, None]
            + xh[:, :, j1, :] * v1[None, None, :, None])


def reference_forward(x_nchw, params):
    x = jnp.transpose(x_nchw, (0, 2, 3, 1)).astype(jnp.float32)

    def bn_relu(a, g, b):
        m = jnp.mean(a, axis=(0, 1, 2))
        v = jnp.mean((a - m) ** 2, axis=(0, 1, 2))
        return jnp.maximum((a - m) * jax.lax.rsqrt(v + EPS) * g + b, 0.0)

    def conv3x3(a, w_hwio, b):
        y = jax.lax.conv_general_dilated(
            a, w_hwio, (1, 1), "SAME",
            dimension_numbers=("NHWC", "HWIO", "NHWC"),
            precision=jax.lax.Precision.HIGHEST)
        return y + b

    hid = bn_relu(x, params["gamma1"], params["beta1"])
    hid = upsample_bilinear_x2_nhwc(hid)
    hid = conv3x3(hid, params["w1"], params["b1"])
    hid = bn_relu(hid, params["gamma2"], params["beta2"])
    res = conv3x3(hid, params["w2"], params["b2"])

    xs = upsample_bilinear_x2_nhwc(x)
    sc = jnp.einsum("nhwc,co->nhwo", xs, params["wsc"],
                    precision=jax.lax.Precision.HIGHEST) + params["bsc"]
    return jnp.transpose(sc + res, (0, 3, 1, 2))


# ----------------------------------------------------------------------------
# Deterministic parameter init + driver
# ----------------------------------------------------------------------------
def make_params(key, in_ch, h_ch, out_ch):
    ks = jax.random.split(key, 8)

    def xavier(k, shape, fan_in, fan_out, gain):
        std = gain * math.sqrt(2.0 / (fan_in + fan_out))
        return std * jax.random.normal(k, shape, jnp.float32)

    return {
        # conv weights stored HWIO; packed to the tap-major GEMM layout in the
        # forward pass.
        "w1": xavier(ks[0], (3, 3, in_ch, h_ch), 9 * in_ch, 9 * h_ch, math.sqrt(2.0)),
        "b1": 0.05 * jax.random.normal(ks[1], (h_ch,), jnp.float32),
        "w2": xavier(ks[2], (3, 3, h_ch, out_ch), 9 * h_ch, 9 * out_ch, math.sqrt(2.0)),
        "b2": 0.05 * jax.random.normal(ks[3], (out_ch,), jnp.float32),
        "wsc": xavier(ks[4], (in_ch, out_ch), in_ch, out_ch, 1.0),
        "bsc": 0.05 * jax.random.normal(ks[5], (out_ch,), jnp.float32),
        "gamma1": 1.0 + 0.1 * jax.random.normal(ks[6], (in_ch,), jnp.float32),
        "beta1": jnp.linspace(-0.1, 0.1, in_ch, dtype=jnp.float32),
        "gamma2": 1.0 + 0.1 * jax.random.normal(ks[7], (h_ch,), jnp.float32),
        "beta2": jnp.linspace(-0.1, 0.1, h_ch, dtype=jnp.float32),
    }


if __name__ == "__main__":
    # G_Block(in_ch=4, out_ch=8, upsample=True, num_classes=0)
    in_ch, h_ch, out_ch = 4, 8, 8
    key = jax.random.PRNGKey(0)
    k_x, k_p = jax.random.split(key)

    x = jax.random.normal(k_x, (2, in_ch, 16, 16), jnp.float32)  # NCHW like PyTorch
    params = make_params(k_p, in_ch, h_ch, out_ch)

    fwd = jax.jit(g_block_forward)
    out = jax.block_until_ready(fwd(x, params))
    assert out.shape == (2, out_ch, 32, 32), out.shape

    ref = reference_forward(x, params)
    err = float(jnp.max(jnp.abs(out - ref)))
    if not (err < 5e-2):
        raise AssertionError(f"mismatch vs reference, max abs err = {err}")

    print("KERNEL_OK")
</pallas_src>

<mosaic_0001>
module attributes {stable_mosaic.version = 11 : i64} {
  func.func @kernel(%arg0: i32, %arg1: memref<2x4x256xf32, #tpu.memory_space<vmem>>, %arg2: memref<256x1024xf32, #tpu.memory_space<vmem>>, %arg3: memref<9x2048xf32, #tpu.memory_space<vmem>>, %arg4: memref<4x1xf32, #tpu.memory_space<vmem>>, %arg5: memref<4x1xf32, #tpu.memory_space<vmem>>, %arg6: memref<8x4xf32, #tpu.memory_space<vmem>>, %arg7: memref<8x1xf32, #tpu.memory_space<vmem>>, %arg8: memref<8x72xf32, #tpu.memory_space<vmem>>, %arg9: memref<8x1xf32, #tpu.memory_space<vmem>>, %arg10: memref<8x1xf32, #tpu.memory_space<vmem>>, %arg11: memref<8x1xf32, #tpu.memory_space<vmem>>, %arg12: memref<8x72xf32, #tpu.memory_space<vmem>>, %arg13: memref<8x1xf32, #tpu.memory_space<vmem>>, %arg14: memref<2x8x1024xf32, #tpu.memory_space<vmem>>, %arg15: memref<72x2048xf32, #tpu.memory_space<vmem>>, %arg16: memref<72x2048xf32, #tpu.memory_space<vmem>>) attributes {dimension_semantics = [#tpu.dimension_semantics<arbitrary>], iteration_bounds = array<i64: 1>, scalar_prefetch = 0 : i64, scratch_operands = 2 : i64, tpu.core_type = #tpu.core_type<tc>, window_params = [{pipeline_mode = #tpu.pipeline_mode<synchronous>, transform_indices = @transform_0, window_bounds = array<i64: 2, 4, 256>}, {pipeline_mode = #tpu.pipeline_mode<synchronous>, transform_indices = @transform_1, window_bounds = array<i64: 256, 1024>}, {pipeline_mode = #tpu.pipeline_mode<synchronous>, transform_indices = @transform_2, window_bounds = array<i64: 9, 2048>}, {pipeline_mode = #tpu.pipeline_mode<synchronous>, transform_indices = @transform_3, window_bounds = array<i64: 4, 1>}, {pipeline_mode = #tpu.pipeline_mode<synchronous>, transform_indices = @transform_4, window_bounds = array<i64: 4, 1>}, {pipeline_mode = #tpu.pipeline_mode<synchronous>, transform_indices = @transform_5, window_bounds = array<i64: 8, 4>}, {pipeline_mode = #tpu.pipeline_mode<synchronous>, transform_indices = @transform_6, window_bounds = array<i64: 8, 1>}, {pipeline_mode = #tpu.pipeline_mode<synchronous>, transform_indices = @transform_7, window_bounds = array<i64: 8, 72>}, {pipeline_mode = #tpu.pipeline_mode<synchronous>, transform_indices = @transform_8, window_bounds = array<i64: 8, 1>}, {pipeline_mode = #tpu.pipeline_mode<synchronous>, transform_indices = @transform_9, window_bounds = array<i64: 8, 1>}, {pipeline_mode = #tpu.pipeline_mode<synchronous>, transform_indices = @transform_10, window_bounds = array<i64: 8, 1>}, {pipeline_mode = #tpu.pipeline_mode<synchronous>, transform_indices = @transform_11, window_bounds = array<i64: 8, 72>}, {pipeline_mode = #tpu.pipeline_mode<synchronous>, transform_indices = @transform_12, window_bounds = array<i64: 8, 1>}, {pipeline_mode = #tpu.pipeline_mode<synchronous>, transform_indices = @transform_13, window_bounds = array<i64: 2, 8, 1024>}]} {
    %c0 = arith.constant 0 : index
    %c0_0 = arith.constant 0 : index
    %c0_1 = arith.constant 0 : index
    %0 = vector.load %arg1[%c0, %c0_0, %c0_1] : memref<2x4x256xf32, #tpu.memory_space<vmem>>, vector<1x4x256xf32>
    %1 = vector.shape_cast %0 : vector<1x4x256xf32> to vector<4x256xf32>
    %c1 = arith.constant 1 : index
    %c0_2 = arith.constant 0 : index
    %c0_3 = arith.constant 0 : index
    %2 = vector.load %arg1[%c1, %c0_2, %c0_3] : memref<2x4x256xf32, #tpu.memory_space<vmem>>, vector<1x4x256xf32>
    %3 = vector.shape_cast %2 : vector<1x4x256xf32> to vector<4x256xf32>
    %4 = tpu.concatenate %1, %3 in 1 : vector<4x256xf32>, vector<4x256xf32> -> vector<4x512xf32>
    %cst = arith.constant dense<0.000000e+00> : vector<4xf32>
    %5 = vector.multi_reduction <add>, %4, %cst [1] : vector<4x512xf32> to vector<4xf32>
    %6 = vector.shape_cast %5 : vector<4xf32> to vector<4x1xf32>
    %cst_4 = arith.constant 0.001953125 : f32
    %7 = vector.broadcast %cst_4 : f32 to vector<4x1xf32>
    %8 = arith.mulf %6, %7 : vector<4x1xf32>
    %9 = vector.broadcast %8 : vector<4x1xf32> to vector<4x512xf32>
    %10 = arith.subf %4, %9 : vector<4x512xf32>
    %11 = arith.mulf %10, %10 : vector<4x512xf32>
    %cst_5 = arith.constant dense<0.000000e+00> : vector<4xf32>
    %12 = vector.multi_reduction <add>, %11, %cst_5 [1] : vector<4x512xf32> to vector<4xf32>
    %13 = vector.shape_cast %12 : vector<4xf32> to vector<4x1xf32>
    %cst_6 = arith.constant 0.001953125 : f32
    %14 = vector.broadcast %cst_6 : f32 to vector<4x1xf32>
    %15 = arith.mulf %13, %14 : vector<4x1xf32>
    %c0_7 = arith.constant 0 : index
    %c0_8 = arith.constant 0 : index
    %16 = vector.load %arg4[%c0_7, %c0_8] : memref<4x1xf32, #tpu.memory_space<vmem>>, vector<4x1xf32>
    %cst_9 = arith.constant 9.99999974E-6 : f32
    %17 = vector.broadcast %cst_9 : f32 to vector<4x1xf32>
    %18 = arith.addf %15, %17 : vector<4x1xf32>
    %19 = math.rsqrt %18 : vector<4x1xf32>
    %20 = arith.mulf %16, %19 : vector<4x1xf32>
    %21 = vector.broadcast %20 : vector<4x1xf32> to vector<4x512xf32>
    %22 = arith.mulf %10, %21 : vector<4x512xf32>
    %c0_10 = arith.constant 0 : index
    %c0_11 = arith.constant 0 : index
    %23 = vector.load %arg5[%c0_10, %c0_11] : memref<4x1xf32, #tpu.memory_space<vmem>>, vector<4x1xf32>
    %24 = vector.broadcast %23 : vector<4x1xf32> to vector<4x512xf32>
    %25 = arith.addf %22, %24 : vector<4x512xf32>
    %cst_12 = arith.constant 0.000000e+00 : f32
    %26 = vector.broadcast %cst_12 : f32 to vector<4x512xf32>
    %27 = arith.maximumf %25, %26 : vector<4x512xf32>
    %c0_13 = arith.constant 0 : index
    %c0_14 = arith.constant 0 : index
    %28 = vector.load %arg6[%c0_13, %c0_14] : memref<8x4xf32, #tpu.memory_space<vmem>>, vector<8x4xf32>
    %cst_15 = arith.constant dense<0.000000e+00> : vector<8x512xf32>
    %29 = tpu.matmul %28, %4, %cst_15 {dimension_numbers = #tpu.dot_dimension_numbers<[1], [0], [0], [1], [0, 0, 1, 1], [], []>} : vector<8x4xf32>, vector<4x512xf32>, vector<8x512xf32> -> vector<8x512xf32>
    %30 = vector.extract_strided_slice %27 {offsets = [0, 0], sizes = [4, 256], strides = [1, 1]} : vector<4x512xf32> to vector<4x256xf32>
    %c0_16 = arith.constant 0 : index
    %c0_17 = arith.constant 0 : index
    %31 = vector.load %arg2[%c0_16, %c0_17] : memref<256x1024xf32, #tpu.memory_space<vmem>>, vector<256x1024xf32>
    %cst_18 = arith.constant dense<0.000000e+00> : vector<4x1024xf32>
    %32 = tpu.matmul %30, %31, %cst_18 {dimension_numbers = #tpu.dot_dimension_numbers<[1], [0], [0], [1], [0, 0, 1, 1], [], []>} : vector<4x256xf32>, vector<256x1024xf32>, vector<4x1024xf32> -> vector<4x1024xf32>
    %33 = vector.extract_strided_slice %29 {offsets = [0, 0], sizes = [8, 256], strides = [1, 1]} : vector<8x512xf32> to vector<8x256xf32>
    %c0_19 = arith.constant 0 : index
    %c0_20 = arith.constant 0 : index
    %34 = vector.load %arg2[%c0_19, %c0_20] : memref<256x1024xf32, #tpu.memory_space<vmem>>, vector<256x1024xf32>
    %cst_21 = arith.constant dense<0.000000e+00> : vector<8x1024xf32>
    %35 = tpu.matmul %33, %34, %cst_21 {dimension_numbers = #tpu.dot_dimension_numbers<[1], [0], [0], [1], [0, 0, 1, 1], [], []>} : vector<8x256xf32>, vector<256x1024xf32>, vector<8x1024xf32> -> vector<8x1024xf32>
    %c0_22 = arith.constant 0 : index
    %c0_23 = arith.constant 0 : index
    %36 = vector.load %arg7[%c0_22, %c0_23] : memref<8x1xf32, #tpu.memory_space<vmem>>, vector<8x1xf32>
    %37 = vector.broadcast %36 : vector<8x1xf32> to vector<8x1024xf32>
    %38 = arith.addf %35, %37 : vector<8x1024xf32>
    %c0_24 = arith.constant 0 : index
    %c0_25 = arith.constant 0 : index
    %c0_26 = arith.constant 0 : index
    %39 = vector.load %arg14[%c0_24, %c0_25, %c0_26] : memref<2x8x1024xf32, #tpu.memory_space<vmem>>, vector<1x8x1024xf32>
    %40 = vector.shape_cast %39 : vector<1x8x1024xf32> to vector<8x1024xf32>
    %41 = vector.shape_cast %38 : vector<8x1024xf32> to vector<1x8x1024xf32>
    tpu.vector_store %arg14[%c0_24, %c0_25, %c0_26], %41 {strides = array<i32>} : memref<2x8x1024xf32, #tpu.memory_space<vmem>>, vector<1x8x1024xf32>,
    %42 = vector.extract_strided_slice %27 {offsets = [0, 256], sizes = [4, 256], strides = [1, 1]} : vector<4x512xf32> to vector<4x256xf32>
    %c0_27 = arith.constant 0 : index
    %c0_28 = arith.constant 0 : index
    %43 = vector.load %arg2[%c0_27, %c0_28] : memref<256x1024xf32, #tpu.memory_space<vmem>>, vector<256x1024xf32>
    %cst_29 = arith.constant dense<0.000000e+00> : vector<4x1024xf32>
    %44 = tpu.matmul %42, %43, %cst_29 {dimension_numbers = #tpu.dot_dimension_numbers<[1], [0], [0], [1], [0, 0, 1, 1], [], []>} : vector<4x256xf32>, vector<256x1024xf32>, vector<4x1024xf32> -> vector<4x1024xf32>
    %45 = vector.extract_strided_slice %29 {offsets = [0, 256], sizes = [8, 256], strides = [1, 1]} : vector<8x512xf32> to vector<8x256xf32>
    %c0_30 = arith.constant 0 : index
    %c0_31 = arith.constant 0 : index
    %46 = vector.load %arg2[%c0_30, %c0_31] : memref<256x1024xf32, #tpu.memory_space<vmem>>, vector<256x1024xf32>
    %cst_32 = arith.constant dense<0.000000e+00> : vector<8x1024xf32>
    %47 = tpu.matmul %45, %46, %cst_32 {dimension_numbers = #tpu.dot_dimension_numbers<[1], [0], [0], [1], [0, 0, 1, 1], [], []>} : vector<8x256xf32>, vector<256x1024xf32>, vector<8x1024xf32> -> vector<8x1024xf32>
    %c0_33 = arith.constant 0 : index
    %c0_34 = arith.constant 0 : index
    %48 = vector.load %arg7[%c0_33, %c0_34] : memref<8x1xf32, #tpu.memory_space<vmem>>, vector<8x1xf32>
    %49 = vector.broadcast %48 : vector<8x1xf32> to vector<8x1024xf32>
    %50 = arith.addf %47, %49 : vector<8x1024xf32>
    %c1_35 = arith.constant 1 : index
    %c0_36 = arith.constant 0 : index
    %c0_37 = arith.constant 0 : index
    %51 = vector.load %arg14[%c1_35, %c0_36, %c0_37] : memref<2x8x1024xf32, #tpu.memory_space<vmem>>, vector<1x8x1024xf32>
    %52 = vector.shape_cast %51 : vector<1x8x1024xf32> to vector<8x1024xf32>
    %53 = vector.shape_cast %50 : vector<8x1024xf32> to vector<1x8x1024xf32>
    tpu.vector_store %arg14[%c1_35, %c0_36, %c0_37], %53 {strides = array<i32>} : memref<2x8x1024xf32, #tpu.memory_space<vmem>>, vector<1x8x1024xf32>,
    %54 = tpu.concatenate %32, %44 in 1 : vector<4x1024xf32>, vector<4x1024xf32> -> vector<4x2048xf32>
    %cst_38 = arith.constant 0.000000e+00 : f32
    %55 = vector.broadcast %cst_38 : f32 to vector<72x2048xf32>
    %c0_39 = arith.constant 0 : index
    %c0_40 = arith.constant 0 : index
    %56 = vector.load %arg15[%c0_39, %c0_40] : memref<72x2048xf32, #tpu.memory_space<vmem>>, vector<72x2048xf32>
    tpu.vector_store %arg15[%c0_39, %c0_40], %55 {strides = array<i32>} : memref<72x2048xf32, #tpu.memory_space<vmem>>, vector<72x2048xf32>,
    %cst_41 = arith.constant 0.000000e+00 : f32
    %57 = vector.broadcast %cst_41 : f32 to vector<4x128xf32>
    %58 = tpu.concatenate %57, %54, %57 in 1 : vector<4x128xf32>, vector<4x2048xf32>, vector<4x128xf32> -> vector<4x2304xf32>
    %c0_42 = arith.constant 0 : index
    %c0_43 = arith.constant 0 : index
    %59 = vector.load %arg3[%c0_42, %c0_43] : memref<9x2048xf32, #tpu.memory_space<vmem>>, vector<1x2048xf32>
    %60 = vector.extract_strided_slice %58 {offsets = [0, 95], sizes = [4, 2048], strides = [1, 1]} : vector<4x2304xf32> to vector<4x2048xf32>
    %61 = vector.broadcast %59 : vector<1x2048xf32> to vector<4x2048xf32>
    %62 = arith.mulf %60, %61 : vector<4x2048xf32>
    %c0_44 = arith.constant 0 : index
    %c0_45 = arith.constant 0 : index
    %63 = vector.load %arg15[%c0_44, %c0_45] : memref<72x2048xf32, #tpu.memory_space<vmem>>, vector<4x2048xf32>
    tpu.vector_store %arg15[%c0_44, %c0_45], %62 {strides = array<i32>} : memref<72x2048xf32, #tpu.memory_space<vmem>>, vector<4x2048xf32>,
    %c1_46 = arith.constant 1 : index
    %c0_47 = arith.constant 0 : index
    %64 = vector.load %arg3[%c1_46, %c0_47] : memref<9x2048xf32, #tpu.memory_space<vmem>>, vector<1x2048xf32>
    %65 = vector.extract_strided_slice %58 {offsets = [0, 96], sizes = [4, 2048], strides = [1, 1]} : vector<4x2304xf32> to vector<4x2048xf32>
    %66 = vector.broadcast %64 : vector<1x2048xf32> to vector<4x2048xf32>
    %67 = arith.mulf %65, %66 : vector<4x2048xf32>
    %c8 = arith.constant 8 : index
    %c0_48 = arith.constant 0 : index
    %68 = vector.load %arg15[%c8, %c0_48] : memref<72x2048xf32, #tpu.memory_space<vmem>>, vector<4x2048xf32>
    tpu.vector_store %arg15[%c8, %c0_48], %67 {strides = array<i32>} : memref<72x2048xf32, #tpu.memory_space<vmem>>, vector<4x2048xf32>,
    %c2 = arith.constant 2 : index
    %c0_49 = arith.constant 0 : index
    %69 = vector.load %arg3[%c2, %c0_49] : memref<9x2048xf32, #tpu.memory_space<vmem>>, vector<1x2048xf32>
    %70 = vector.extract_strided_slice %58 {offsets = [0, 97], sizes = [4, 2048], strides = [1, 1]} : vector<4x2304xf32> to vector<4x2048xf32>
    %71 = vector.broadcast %69 : vector<1x2048xf32> to vector<4x2048xf32>
    %72 = arith.mulf %70, %71 : vector<4x2048xf32>
    %c16 = arith.constant 16 : index
    %c0_50 = arith.constant 0 : index
    %73 = vector.load %arg15[%c16, %c0_50] : memref<72x2048xf32, #tpu.memory_space<vmem>>, vector<4x2048xf32>
    tpu.vector_store %arg15[%c16, %c0_50], %72 {strides = array<i32>} : memref<72x2048xf32, #tpu.memory_space<vmem>>, vector<4x2048xf32>,
    %c3 = arith.constant 3 : index
    %c0_51 = arith.constant 0 : index
    %74 = vector.load %arg3[%c3, %c0_51] : memref<9x2048xf32, #tpu.memory_space<vmem>>, vector<1x2048xf32>
    %75 = vector.extract_strided_slice %58 {offsets = [0, 127], sizes = [4, 2048], strides = [1, 1]} : vector<4x2304xf32> to vector<4x2048xf32>
    %76 = vector.broadcast %74 : vector<1x2048xf32> to vector<4x2048xf32>
    %77 = arith.mulf %75, %76 : vector<4x2048xf32>
    %c24 = arith.constant 24 : index
    %c0_52 = arith.constant 0 : index
    %78 = vector.load %arg15[%c24, %c0_52] : memref<72x2048xf32, #tpu.memory_space<vmem>>, vector<4x2048xf32>
    tpu.vector_store %arg15[%c24, %c0_52], %77 {strides = array<i32>} : memref<72x2048xf32, #tpu.memory_space<vmem>>, vector<4x2048xf32>,
    %c4 = arith.constant 4 : index
    %c0_53 = arith.constant 0 : index
    %79 = vector.load %arg3[%c4, %c0_53] : memref<9x2048xf32, #tpu.memory_space<vmem>>, vector<1x2048xf32>
    %80 = vector.extract_strided_slice %58 {offsets = [0, 128], sizes = [4, 2048], strides = [1, 1]} : vector<4x2304xf32> to vector<4x2048xf32>
    %81 = vector.broadcast %79 : vector<1x2048xf32> to vector<4x2048xf32>
    %82 = arith.mulf %80, %81 : vector<4x2048xf32>
    %c32 = arith.constant 32 : index
    %c0_54 = arith.constant 0 : index
    %83 = vector.load %arg15[%c32, %c0_54] : memref<72x2048xf32, #tpu.memory_space<vmem>>, vector<4x2048xf32>
    tpu.vector_store %arg15[%c32, %c0_54], %82 {strides = array<i32>} : memref<72x2048xf32, #tpu.memory_space<vmem>>, vector<4x2048xf32>,
    %c5 = arith.constant 5 : index
    %c0_55 = arith.constant 0 : index
    %84 = vector.load %arg3[%c5, %c0_55] : memref<9x2048xf32, #tpu.memory_space<vmem>>, vector<1x2048xf32>
    %85 = vector.extract_strided_slice %58 {offsets = [0, 129], sizes = [4, 2048], strides = [1, 1]} : vector<4x2304xf32> to vector<4x2048xf32>
    %86 = vector.broadcast %84 : vector<1x2048xf32> to vector<4x2048xf32>
    %87 = arith.mulf %85, %86 : vector<4x2048xf32>
    %c40 = arith.constant 40 : index
    %c0_56 = arith.constant 0 : index
    %88 = vector.load %arg15[%c40, %c0_56] : memref<72x2048xf32, #tpu.memory_space<vmem>>, vector<4x2048xf32>
    tpu.vector_store %arg15[%c40, %c0_56], %87 {strides = array<i32>} : memref<72x2048xf32, #tpu.memory_space<vmem>>, vector<4x2048xf32>,
    %c6 = arith.constant 6 : index
    %c0_57 = arith.constant 0 : index
    %89 = vector.load %arg3[%c6, %c0_57] : memref<9x2048xf32, #tpu.memory_space<vmem>>, vector<1x2048xf32>
    %90 = vector.extract_strided_slice %58 {offsets = [0, 159], sizes = [4, 2048], strides = [1, 1]} : vector<4x2304xf32> to vector<4x2048xf32>
    %91 = vector.broadcast %89 : vector<1x2048xf32> to vector<4x2048xf32>
    %92 = arith.mulf %90, %91 : vector<4x2048xf32>
    %c48 = arith.constant 48 : index
    %c0_58 = arith.constant 0 : index
    %93 = vector.load %arg15[%c48, %c0_58] : memref<72x2048xf32, #tpu.memory_space<vmem>>, vector<4x2048xf32>
    tpu.vector_store %arg15[%c48, %c0_58], %92 {strides = array<i32>} : memref<72x2048xf32, #tpu.memory_space<vmem>>, vector<4x2048xf32>,
    %c7 = arith.constant 7 : index
    %c0_59 = arith.constant 0 : index
    %94 = vector.load %arg3[%c7, %c0_59] : memref<9x2048xf32, #tpu.memory_space<vmem>>, vector<1x2048xf32>
    %95 = vector.extract_strided_slice %58 {offsets = [0, 160], sizes = [4, 2048], strides = [1, 1]} : vector<4x2304xf32> to vector<4x2048xf32>
    %96 = vector.broadcast %94 : vector<1x2048xf32> to vector<4x2048xf32>
    %97 = arith.mulf %95, %96 : vector<4x2048xf32>
    %c56 = arith.constant 56 : index
    %c0_60 = arith.constant 0 : index
    %98 = vector.load %arg15[%c56, %c0_60] : memref<72x2048xf32, #tpu.memory_space<vmem>>, vector<4x2048xf32>
    tpu.vector_store %arg15[%c56, %c0_60], %97 {strides = array<i32>} : memref<72x2048xf32, #tpu.memory_space<vmem>>, vector<4x2048xf32>,
    %c8_61 = arith.constant 8 : index
    %c0_62 = arith.constant 0 : index
    %99 = vector.load %arg3[%c8_61, %c0_62] : memref<9x2048xf32, #tpu.memory_space<vmem>>, vector<1x2048xf32>
    %100 = vector.extract_strided_slice %58 {offsets = [0, 161], sizes = [4, 2048], strides = [1, 1]} : vector<4x2304xf32> to vector<4x2048xf32>
    %101 = vector.broadcast %99 : vector<1x2048xf32> to vector<4x2048xf32>
    %102 = arith.mulf %100, %101 : vector<4x2048xf32>
    %c64 = arith.constant 64 : index
    %c0_63 = arith.constant 0 : index
    %103 = vector.load %arg15[%c64, %c0_63] : memref<72x2048xf32, #tpu.memory_space<vmem>>, vector<4x2048xf32>
    tpu.vector_store %arg15[%c64, %c0_63], %102 {strides = array<i32>} : memref<72x2048xf32, #tpu.memory_space<vmem>>, vector<4x2048xf32>,
    %c0_64 = arith.constant 0 : index
    %c0_65 = arith.constant 0 : index
    %104 = vector.load %arg8[%c0_64, %c0_65] : memref<8x72xf32, #tpu.memory_space<vmem>>, vector<8x72xf32>
    %c0_66 = arith.constant 0 : index
    %c0_67 = arith.constant 0 : index
    %105 = vector.load %arg15[%c0_66, %c0_67] : memref<72x2048xf32, #tpu.memory_space<vmem>>, vector<72x2048xf32>
    %cst_68 = arith.constant dense<0.000000e+00> : vector<8x2048xf32>
    %106 = tpu.matmul %104, %105, %cst_68 {dimension_numbers = #tpu.dot_dimension_numbers<[1], [0], [0], [1], [0, 0, 1, 1], [], []>} : vector<8x72xf32>, vector<72x2048xf32>, vector<8x2048xf32> -> vector<8x2048xf32>
    %c0_69 = arith.constant 0 : index
    %c0_70 = arith.constant 0 : index
    %107 = vector.load %arg9[%c0_69, %c0_70] : memref<8x1xf32, #tpu.memory_space<vmem>>, vector<8x1xf32>
    %108 = vector.broadcast %107 : vector<8x1xf32> to vector<8x2048xf32>
    %109 = arith.addf %106, %108 : vector<8x2048xf32>
    %cst_71 = arith.constant dense<0.000000e+00> : vector<8xf32>
    %110 = vector.multi_reduction <add>, %109, %cst_71 [1] : vector<8x2048xf32> to vector<8xf32>
    %111 = vector.shape_cast %110 : vector<8xf32> to vector<8x1xf32>
    %cst_72 = arith.constant 4.8828125E-4 : f32
    %112 = vector.broadcast %cst_72 : f32 to vector<8x1xf32>
    %113 = arith.mulf %111, %112 : vector<8x1xf32>
    %114 = vector.broadcast %113 : vector<8x1xf32> to vector<8x2048xf32>
    %115 = arith.subf %109, %114 : vector<8x2048xf32>
    %116 = arith.mulf %115, %115 : vector<8x2048xf32>
    %cst_73 = arith.constant dense<0.000000e+00> : vector<8xf32>
    %117 = vector.multi_reduction <add>, %116, %cst_73 [1] : vector<8x2048xf32> to vector<8xf32>
    %118 = vector.shape_cast %117 : vector<8xf32> to vector<8x1xf32>
    %cst_74 = arith.constant 4.8828125E-4 : f32
    %119 = vector.broadcast %cst_74 : f32 to vector<8x1xf32>
    %120 = arith.mulf %118, %119 : vector<8x1xf32>
    %c0_75 = arith.constant 0 : index
    %c0_76 = arith.constant 0 : index
    %121 = vector.load %arg10[%c0_75, %c0_76] : memref<8x1xf32, #tpu.memory_space<vmem>>, vector<8x1xf32>
    %cst_77 = arith.constant 9.99999974E-6 : f32
    %122 = vector.broadcast %cst_77 : f32 to vector<8x1xf32>
    %123 = arith.addf %120, %122 : vector<8x1xf32>
    %124 = math.rsqrt %123 : vector<8x1xf32>
    %125 = arith.mulf %121, %124 : vector<8x1xf32>
    %126 = vector.broadcast %125 : vector<8x1xf32> to vector<8x2048xf32>
    %127 = arith.mulf %115, %126 : vector<8x2048xf32>
    %c0_78 = arith.constant 0 : index
    %c0_79 = arith.constant 0 : index
    %128 = vector.load %arg11[%c0_78, %c0_79] : memref<8x1xf32, #tpu.memory_space<vmem>>, vector<8x1xf32>
    %129 = vector.broadcast %128 : vector<8x1xf32> to vector<8x2048xf32>
    %130 = arith.addf %127, %129 : vector<8x2048xf32>
    %cst_80 = arith.constant 0.000000e+00 : f32
    %131 = vector.broadcast %cst_80 : f32 to vector<8x2048xf32>
    %132 = arith.maximumf %130, %131 : vector<8x2048xf32>
    %cst_81 = arith.constant 0.000000e+00 : f32
    %133 = vector.broadcast %cst_81 : f32 to vector<8x128xf32>
    %134 = tpu.concatenate %133, %132, %133 in 1 : vector<8x128xf32>, vector<8x2048xf32>, vector<8x128xf32> -> vector<8x2304xf32>
    %c0_82 = arith.constant 0 : index
    %c0_83 = arith.constant 0 : index
    %135 = vector.load %arg3[%c0_82, %c0_83] : memref<9x2048xf32, #tpu.memory_space<vmem>>, vector<1x2048xf32>
    %136 = vector.extract_strided_slice %134 {offsets = [0, 95], sizes = [8, 2048], strides = [1, 1]} : vector<8x2304xf32> to vector<8x2048xf32>
    %137 = vector.broadcast %135 : vector<1x2048xf32> to vector<8x2048xf32>
    %138 = arith.mulf %136, %137 : vector<8x2048xf32>
    %c0_84 = arith.constant 0 : index
    %c0_85 = arith.constant 0 : index
    %139 = vector.load %arg16[%c0_84, %c0_85] : memref<72x2048xf32, #tpu.memory_space<vmem>>, vector<8x2048xf32>
    tpu.vector_store %arg16[%c0_84, %c0_85], %138 {strides = array<i32>} : memref<72x2048xf32, #tpu.memory_space<vmem>>, vector<8x2048xf32>,
    %c1_86 = arith.constant 1 : index
    %c0_87 = arith.constant 0 : index
    %140 = vector.load %arg3[%c1_86, %c0_87] : memref<9x2048xf32, #tpu.memory_space<vmem>>, vector<1x2048xf32>
    %141 = vector.extract_strided_slice %134 {offsets = [0, 96], sizes = [8, 2048], strides = [1, 1]} : vector<8x2304xf32> to vector<8x2048xf32>
    %142 = vector.broadcast %140 : vector<1x2048xf32> to vector<8x2048xf32>
    %143 = arith.mulf %141, %142 : vector<8x2048xf32>
    %c8_88 = arith.constant 8 : index
    %c0_89 = arith.constant 0 : index
    %144 = vector.load %arg16[%c8_88, %c0_89] : memref<72x2048xf32, #tpu.memory_space<vmem>>, vector<8x2048xf32>
    tpu.vector_store %arg16[%c8_88, %c0_89], %143 {strides = array<i32>} : memref<72x2048xf32, #tpu.memory_space<vmem>>, vector<8x2048xf32>,
    %c2_90 = arith.constant 2 : index
    %c0_91 = arith.constant 0 : index
    %145 = vector.load %arg3[%c2_90, %c0_91] : memref<9x2048xf32, #tpu.memory_space<vmem>>, vector<1x2048xf32>
    %146 = vector.extract_strided_slice %134 {offsets = [0, 97], sizes = [8, 2048], strides = [1, 1]} : vector<8x2304xf32> to vector<8x2048xf32>
    %147 = vector.broadcast %145 : vector<1x2048xf32> to vector<8x2048xf32>
    %148 = arith.mulf %146, %147 : vector<8x2048xf32>
    %c16_92 = arith.constant 16 : index
    %c0_93 = arith.constant 0 : index
    %149 = vector.load %arg16[%c16_92, %c0_93] : memref<72x2048xf32, #tpu.memory_space<vmem>>, vector<8x2048xf32>
    tpu.vector_store %arg16[%c16_92, %c0_93], %148 {strides = array<i32>} : memref<72x2048xf32, #tpu.memory_space<vmem>>, vector<8x2048xf32>,
    %c3_94 = arith.constant 3 : index
    %c0_95 = arith.constant 0 : index
    %150 = vector.load %arg3[%c3_94, %c0_95] : memref<9x2048xf32, #tpu.memory_space<vmem>>, vector<1x2048xf32>
    %151 = vector.extract_strided_slice %134 {offsets = [0, 127], sizes = [8, 2048], strides = [1, 1]} : vector<8x2304xf32> to vector<8x2048xf32>
    %152 = vector.broadcast %150 : vector<1x2048xf32> to vector<8x2048xf32>
    %153 = arith.mulf %151, %152 : vector<8x2048xf32>
    %c24_96 = arith.constant 24 : index
    %c0_97 = arith.constant 0 : index
    %154 = vector.load %arg16[%c24_96, %c0_97] : memref<72x2048xf32, #tpu.memory_space<vmem>>, vector<8x2048xf32>
    tpu.vector_store %arg16[%c24_96, %c0_97], %153 {strides = array<i32>} : memref<72x2048xf32, #tpu.memory_space<vmem>>, vector<8x2048xf32>,
    %c4_98 = arith.constant 4 : index
    %c0_99 = arith.constant 0 : index
    %155 = vector.load %arg3[%c4_98, %c0_99] : memref<9x2048xf32, #tpu.memory_space<vmem>>, vector<1x2048xf32>
    %156 = vector.extract_strided_slice %134 {offsets = [0, 128], sizes = [8, 2048], strides = [1, 1]} : vector<8x2304xf32> to vector<8x2048xf32>
    %157 = vector.broadcast %155 : vector<1x2048xf32> to vector<8x2048xf32>
    %158 = arith.mulf %156, %157 : vector<8x2048xf32>
    %c32_100 = arith.constant 32 : index
    %c0_101 = arith.constant 0 : index
    %159 = vector.load %arg16[%c32_100, %c0_101] : memref<72x2048xf32, #tpu.memory_space<vmem>>, vector<8x2048xf32>
    tpu.vector_store %arg16[%c32_100, %c0_101], %158 {strides = array<i32>} : memref<72x2048xf32, #tpu.memory_space<vmem>>, vector<8x2048xf32>,
    %c5_102 = arith.constant 5 : index
    %c0_103 = arith.constant 0 : index
    %160 = vector.load %arg3[%c5_102, %c0_103] : memref<9x2048xf32, #tpu.memory_space<vmem>>, vector<1x2048xf32>
    %161 = vector.extract_strided_slice %134 {offsets = [0, 129], sizes = [8, 2048], strides = [1, 1]} : vector<8x2304xf32> to vector<8x2048xf32>
    %162 = vector.broadcast %160 : vector<1x2048xf32> to vector<8x2048xf32>
    %163 = arith.mulf %161, %162 : vector<8x2048xf32>
    %c40_104 = arith.constant 40 : index
    %c0_105 = arith.constant 0 : index
    %164 = vector.load %arg16[%c40_104, %c0_105] : memref<72x2048xf32, #tpu.memory_space<vmem>>, vector<8x2048xf32>
    tpu.vector_store %arg16[%c40_104, %c0_105], %163 {strides = array<i32>} : memref<72x2048xf32, #tpu.memory_space<vmem>>, vector<8x2048xf32>,
    %c6_106 = arith.constant 6 : index
    %c0_107 = arith.constant 0 : index
    %165 = vector.load %arg3[%c6_106, %c0_107] : memref<9x2048xf32, #tpu.memory_space<vmem>>, vector<1x2048xf32>
    %166 = vector.extract_strided_slice %134 {offsets = [0, 159], sizes = [8, 2048], strides = [1, 1]} : vector<8x2304xf32> to vector<8x2048xf32>
    %167 = vector.broadcast %165 : vector<1x2048xf32> to vector<8x2048xf32>
    %168 = arith.mulf %166, %167 : vector<8x2048xf32>
    %c48_108 = arith.constant 48 : index
    %c0_109 = arith.constant 0 : index
    %169 = vector.load %arg16[%c48_108, %c0_109] : memref<72x2048xf32, #tpu.memory_space<vmem>>, vector<8x2048xf32>
    tpu.vector_store %arg16[%c48_108, %c0_109], %168 {strides = array<i32>} : memref<72x2048xf32, #tpu.memory_space<vmem>>, vector<8x2048xf32>,
    %c7_110 = arith.constant 7 : index
    %c0_111 = arith.constant 0 : index
    %170 = vector.load %arg3[%c7_110, %c0_111] : memref<9x2048xf32, #tpu.memory_space<vmem>>, vector<1x2048xf32>
    %171 = vector.extract_strided_slice %134 {offsets = [0, 160], sizes = [8, 2048], strides = [1, 1]} : vector<8x2304xf32> to vector<8x2048xf32>
    %172 = vector.broadcast %170 : vector<1x2048xf32> to vector<8x2048xf32>
    %173 = arith.mulf %171, %172 : vector<8x2048xf32>
    %c56_112 = arith.constant 56 : index
    %c0_113 = arith.constant 0 : index
    %174 = vector.load %arg16[%c56_112, %c0_113] : memref<72x2048xf32, #tpu.memory_space<vmem>>, vector<8x2048xf32>
    tpu.vector_store %arg16[%c56_112, %c0_113], %173 {strides = array<i32>} : memref<72x2048xf32, #tpu.memory_space<vmem>>, vector<8x2048xf32>,
    %c8_114 = arith.constant 8 : index
    %c0_115 = arith.constant 0 : index
    %175 = vector.load %arg3[%c8_114, %c0_115] : memref<9x2048xf32, #tpu.memory_space<vmem>>, vector<1x2048xf32>
    %176 = vector.extract_strided_slice %134 {offsets = [0, 161], sizes = [8, 2048], strides = [1, 1]} : vector<8x2304xf32> to vector<8x2048xf32>
    %177 = vector.broadcast %175 : vector<1x2048xf32> to vector<8x2048xf32>
    %178 = arith.mulf %176, %177 : vector<8x2048xf32>
    %c64_116 = arith.constant 64 : index
    %c0_117 = arith.constant 0 : index
    %179 = vector.load %arg16[%c64_116, %c0_117] : memref<72x2048xf32, #tpu.memory_space<vmem>>, vector<8x2048xf32>
    tpu.vector_store %arg16[%c64_116, %c0_117], %178 {strides = array<i32>} : memref<72x2048xf32, #tpu.memory_space<vmem>>, vector<8x2048xf32>,
    %c0_118 = arith.constant 0 : index
    %c0_119 = arith.constant 0 : index
    %180 = vector.load %arg12[%c0_118, %c0_119] : memref<8x72xf32, #tpu.memory_space<vmem>>, vector<8x72xf32>
    %c0_120 = arith.constant 0 : index
    %c0_121 = arith.constant 0 : index
    %181 = vector.load %arg16[%c0_120, %c0_121] : memref<72x2048xf32, #tpu.memory_space<vmem>>, vector<72x2048xf32>
    %cst_122 = arith.constant dense<0.000000e+00> : vector<8x2048xf32>
    %182 = tpu.matmul %180, %181, %cst_122 {dimension_numbers = #tpu.dot_dimension_numbers<[1], [0], [0], [1], [0, 0, 1, 1], [], []>} : vector<8x72xf32>, vector<72x2048xf32>, vector<8x2048xf32> -> vector<8x2048xf32>
    %c0_123 = arith.constant 0 : index
    %c0_124 = arith.constant 0 : index
    %183 = vector.load %arg13[%c0_123, %c0_124] : memref<8x1xf32, #tpu.memory_space<vmem>>, vector<8x1xf32>
    %184 = vector.broadcast %183 : vector<8x1xf32> to vector<8x2048xf32>
    %185 = arith.addf %182, %184 : vector<8x2048xf32>
    %c0_125 = arith.constant 0 : index
    %c0_126 = arith.constant 0 : index
    %c0_127 = arith.constant 0 : index
    %186 = vector.load %arg14[%c0_125, %c0_126, %c0_127] : memref<2x8x1024xf32, #tpu.memory_space<vmem>>, vector<1x8x1024xf32>
    %187 = vector.shape_cast %186 : vector<1x8x1024xf32> to vector<8x1024xf32>
    %188 = vector.extract_strided_slice %185 {offsets = [0, 0], sizes = [8, 1024], strides = [1, 1]} : vector<8x2048xf32> to vector<8x1024xf32>
    %189 = arith.addf %187, %188 : vector<8x1024xf32>
    %c0_128 = arith.constant 0 : index
    %c0_129 = arith.constant 0 : index
    %c0_130 = arith.constant 0 : index
    %190 = vector.load %arg14[%c0_128, %c0_129, %c0_130] : memref<2x8x1024xf32, #tpu.memory_space<vmem>>, vector<1x8x1024xf32>
    %191 = vector.shape_cast %190 : vector<1x8x1024xf32> to vector<8x1024xf32>
    %192 = vector.shape_cast %189 : vector<8x1024xf32> to vector<1x8x1024xf32>
    tpu.vector_store %arg14[%c0_128, %c0_129, %c0_130], %192 {strides = array<i32>} : memref<2x8x1024xf32, #tpu.memory_space<vmem>>, vector<1x8x1024xf32>,
    %c1_131 = arith.constant 1 : index
    %c0_132 = arith.constant 0 : index
    %c0_133 = arith.constant 0 : index
    %193 = vector.load %arg14[%c1_131, %c0_132, %c0_133] : memref<2x8x1024xf32, #tpu.memory_space<vmem>>, vector<1x8x1024xf32>
    %194 = vector.shape_cast %193 : vector<1x8x1024xf32> to vector<8x1024xf32>
    %195 = vector.extract_strided_slice %185 {offsets = [0, 1024], sizes = [8, 1024], strides = [1, 1]} : vector<8x2048xf32> to vector<8x1024xf32>
    %196 = arith.addf %194, %195 : vector<8x1024xf32>
    %c1_134 = arith.constant 1 : index
    %c0_135 = arith.constant 0 : index
    %c0_136 = arith.constant 0 : index
    %197 = vector.load %arg14[%c1_134, %c0_135, %c0_136] : memref<2x8x1024xf32, #tpu.memory_space<vmem>>, vector<1x8x1024xf32>
    %198 = vector.shape_cast %197 : vector<1x8x1024xf32> to vector<8x1024xf32>
    %199 = vector.shape_cast %196 : vector<8x1024xf32> to vector<1x8x1024xf32>
    tpu.vector_store %arg14[%c1_134, %c0_135, %c0_136], %199 {strides = array<i32>} : memref<2x8x1024xf32, #tpu.memory_space<vmem>>, vector<1x8x1024xf32>,
    return
  }
  func.func @transform_0(%arg0: i32) -> (i32, i32, i32) {
    %c0_i32 = arith.constant 0 : i32
    %c0_i32_0 = arith.constant 0 : i32
    %c0_i32_1 = arith.constant 0 : i32
    %c0_i32_2 = arith.constant 0 : i32
    return %c0_i32, %c0_i32_0, %c0_i32_1 : i32, i32, i32
  }
  func.func @transform_1(%arg0: i32) -> (i32, i32) {
    %c0_i32 = arith.constant 0 : i32
    %c0_i32_0 = arith.constant 0 : i32
    %c0_i32_1 = arith.constant 0 : i32
    return %c0_i32, %c0_i32_0 : i32, i32
  }
  func.func @transform_2(%arg0: i32) -> (i32, i32) {
    %c0_i32 = arith.constant 0 : i32
    %c0_i32_0 = arith.constant 0 : i32
    %c0_i32_1 = arith.constant 0 : i32
    return %c0_i32, %c0_i32_0 : i32, i32
  }
  func.func @transform_3(%arg0: i32) -> (i32, i32) {
    %c0_i32 = arith.constant 0 : i32
    %c0_i32_0 = arith.constant 0 : i32
    %c0_i32_1 = arith.constant 0 : i32
    return %c0_i32, %c0_i32_0 : i32, i32
  }
  func.func @transform_4(%arg0: i32) -> (i32, i32) {
    %c0_i32 = arith.constant 0 : i32
    %c0_i32_0 = arith.constant 0 : i32
    %c0_i32_1 = arith.constant 0 : i32
    return %c0_i32, %c0_i32_0 : i32, i32
  }
  func.func @transform_5(%arg0: i32) -> (i32, i32) {
    %c0_i32 = arith.constant 0 : i32
    %c0_i32_0 = arith.constant 0 : i32
    %c0_i32_1 = arith.constant 0 : i32
    return %c0_i32, %c0_i32_0 : i32, i32
  }
  func.func @transform_6(%arg0: i32) -> (i32, i32) {
    %c0_i32 = arith.constant 0 : i32
    %c0_i32_0 = arith.constant 0 : i32
    %c0_i32_1 = arith.constant 0 : i32
    return %c0_i32, %c0_i32_0 : i32, i32
  }
  func.func @transform_7(%arg0: i32) -> (i32, i32) {
    %c0_i32 = arith.constant 0 : i32
    %c0_i32_0 = arith.constant 0 : i32
    %c0_i32_1 = arith.constant 0 : i32
    return %c0_i32, %c0_i32_0 : i32, i32
  }
  func.func @transform_8(%arg0: i32) -> (i32, i32) {
    %c0_i32 = arith.constant 0 : i32
    %c0_i32_0 = arith.constant 0 : i32
    %c0_i32_1 = arith.constant 0 : i32
    return %c0_i32, %c0_i32_0 : i32, i32
  }
  func.func @transform_9(%arg0: i32) -> (i32, i32) {
    %c0_i32 = arith.constant 0 : i32
    %c0_i32_0 = arith.constant 0 : i32
    %c0_i32_1 = arith.constant 0 : i32
    return %c0_i32, %c0_i32_0 : i32, i32
  }
  func.func @transform_10(%arg0: i32) -> (i32, i32) {
    %c0_i32 = arith.constant 0 : i32
    %c0_i32_0 = arith.constant 0 : i32
    %c0_i32_1 = arith.constant 0 : i32
    return %c0_i32, %c0_i32_0 : i32, i32
  }
  func.func @transform_11(%arg0: i32) -> (i32, i32) {
    %c0_i32 = arith.constant 0 : i32
    %c0_i32_0 = arith.constant 0 : i32
    %c0_i32_1 = arith.constant 0 : i32
    return %c0_i32, %c0_i32_0 : i32, i32
  }
  func.func @transform_12(%arg0: i32) -> (i32, i32) {
    %c0_i32 = arith.constant 0 : i32
    %c0_i32_0 = arith.constant 0 : i32
    %c0_i32_1 = arith.constant 0 : i32
    return %c0_i32, %c0_i32_0 : i32, i32
  }
  func.func @transform_13(%arg0: i32) -> (i32, i32, i32) {
    %c0_i32 = arith.constant 0 : i32
    %c0_i32_0 = arith.constant 0 : i32
    %c0_i32_1 = arith.constant 0 : i32
    %c0_i32_2 = arith.constant 0 : i32
    return %c0_i32, %c0_i32_0, %c0_i32_1 : i32, i32, i32
  }
}

</mosaic_0001>

<bundles_post_ra>
// kernel: g_block_forward.1
= control target key start
LH: loop header
LB: loop body
LE: loop exit
PB: predicated region body
PF: predicated region fallthrough
CT: control target
= control target key end

     0   :  { %18 = vsyncpa [#allocation5], 0  ;;  %s9860_s25 = smov [#allocation4]   ;;  %s16167_s0 = inlined_call_operand.vmem [shape: f32[2,4,256], index: 0, kind: input, shape index: {}]   ;;  %s16168_s1 = inlined_call_operand.hbm [shape: f32[256,1024], index: 1, kind: input, shape index: {}]   ;;  %s16169_s2 = inlined_call_operand.vmem [shape: f32[9,2048], index: 2, kind: input, shape index: {}]   ;;  %s16170_s3 = inlined_call_operand.vmem [shape: f32[4,1], index: 3, kind: input, shape index: {}]   ;;  %s16171_s4 = inlined_call_operand.vmem [shape: f32[4,1], index: 4, kind: input, shape index: {}]   ;;  %s16172_s5 = inlined_call_operand.vmem [shape: f32[8,4], index: 5, kind: input, shape index: {}]   ;;  %s16173_s6 = inlined_call_operand.vmem [shape: f32[8,1], index: 6, kind: input, shape index: {}]   ;;  %s16174_s7 = inlined_call_operand.vmem [shape: f32[8,72], index: 7, kind: input, shape index: {}]   ;;  %s16175_s8 = inlined_call_operand.vmem [shape: f32[8,1], index: 8, kind: input, shape index: {}]   ;;  %s16176_s9 = inlined_call_operand.vmem [shape: f32[8,1], index: 9, kind: input, shape index: {}]   ;;  %s16177_s10 = inlined_call_operand.vmem [shape: f32[8,1], index: 10, kind: input, shape index: {}]   ;;  %s16178_s11 = inlined_call_operand.vmem [shape: f32[8,72], index: 11, kind: input, shape index: {}]   ;;  %s16179_s12 = inlined_call_operand.vmem [shape: f32[8,1], index: 12, kind: input, shape index: {}]   ;;  %s16180_s13 = inlined_call_operand.vmem [shape: f32[2,8,1024], index: 13, kind: output, shape index: {}]  }
   0x1   :  { %s26_s26 = sshll.u32 %s9860_s25, 4  ;;  %s9836_s29 = scalar_lea.hbm %s16168_s1, 32768  ;;  %s27_s26 = int_to_ptr.vmem [resolvable:$true] %s26_s26 }
   0x2   :  { %p9837_p0 = scmp.ne.s32.totalorder %s16168_s1, %s9836_s29  ;;  %p9840_p1 = scmp.lt.u32.totalorder %s9836_s29, %s16168_s1 }
   0x4   :  { %p9842_p2 = pnand %p9840_p1, %p9837_p0 }
   0x6   :  { %9845 = shalt.err (!%p9842_p2)
}
   0x7   :  { %s9846_s17 = scalar_lea.vmem %s27_s26, 32768  ;;  %p9851_p4 = scmp.lt.s32.totalorder %s27_s26, %s27_s26 }
   0x8   :  { %p9847_p3 = scmp.ne.s32.totalorder %s27_s26, %s9846_s17  ;;  %p9852_p5 = scmp.lt.s32.totalorder %s9846_s17, %s9846_s17 }
   0xa   :  { %p9853_p6 = por %p9852_p5, %p9851_p4 }
   0xc   :  { %p9854_p7 = pnand %p9853_p6, %p9847_p3 }
   0xe   :  { %9857 = shalt.err (!%p9854_p7)
}
   0xf   :  { %s9861_s18 = smov 1024   ;;  %s9862_s19 = smov 64  }
  0x10   :  { %32 = dma.hbm_to_vmem [thread:$0]  %s16168_s1, 32768, %s27_s26, [#allocation5], %s9861_s18, %s9861_s18, %s9862_s19  }
  0x11   :  { %9858 = dma.done.wait [#allocation5], 32768  }
  0x12   :  { %9859 = vsyncadd [#allocation5], 4294934528  ;;  %vm67_vm0 = vcmask 1043456   ;;  %v58_v0 = vld [vmem:[%s16167_s0] sm:$0xff]  ;;  %v8025_v1 = vld [vmem:[%s16167_s0 + $0x8] sm:$0xff]  ;;  %v9863_v28 = vmov 0  }
  0x13   :  { %v62_v2 = vcombine.high %v58_v0, %v58_v0  ;;  %v65_v3 = vcombine.high %v8025_v1, %v8025_v1  ;;  %v68_v4 = vsel %vm67_vm0, %v58_v0, 0.0  ;;  %v71_v6 = vsel %vm67_vm0, %v8025_v1, 0.0  ;;  %9545 = vset.pattern.permute.xlu1 %v9863_v28  ;;  %9546 = vset.pattern.permute.xlu0 %v9863_v28  ;;  %v9992_v29 = vld [vmem:[%s16173_s6] sm:$0xff]  ;;  %v10000_v31 = vld [vmem:[#allocation4 + $0x8] sm:$0xff]  ;;  %v281_v35 = vld [vmem:[#allocation4 + $0x18] sm:$0xff]  ;;  %s9866_s24 = smov 96  }
  0x14   :  { %v9998_v30 = vld [vmem:[%s16172_s5] sm:$0xff]  ;;  %vm124_vm1 = vcmask 31744   ;;  %v10002_v32 = vld [vmem:[#allocation4 + $0x48] sm:$0xff]  ;;  %v9864_v33 = vmov 0.0   ;;  %v289_v36 = vld [vmem:[#allocation4 + $0x58] sm:$0xff]  ;;  %s9867_s29 = smov 97  }
  0x15   :  { %v69_v5 = vsel %vm67_vm0, %v62_v2, 0.0  ;;  %8026 = vmatprep.subr.msk.mxu0 %vm67_vm0, %v62_v2  ;;  %8029 = vmatprep.subr.msk.mxu1 %vm67_vm0, %v65_v3  ;;  %v73_v8 = vsel %vm67_vm0, %v65_v3, 0.0  ;;  %1955 = vst [vmem:[#allocation2] sm:$0xff] %v9864_v33  ;;  %1956 = vst [vmem:[#allocation2 + $0x8] sm:$0xff] %v9864_v33  ;;  %v10152_v34 = vpack.c.bf16 %v10002_v32, %v10000_v31  ;;  %v278_v37 = vld [vmem:[#allocation4] sm:$0xff]  ;;  %v280_v40 = vld [vmem:[#allocation4 + $0x10] sm:$0xff] }
  0x16   :  { %v70_v7 = vadd.f32 %v69_v5, %v68_v4  ;;  %8027 = vmatpush1.msk.msra.mxu0 %vm67_vm0, %v58_v0  ;;  %8030 = vmatpush1.msk.msra.mxu1 %vm67_vm0, %v8025_v1  ;;  %1957 = vst [vmem:[#allocation2 + $0x10] sm:$0xff] %v9864_v33  ;;  %1958 = vst [vmem:[#allocation2 + $0x18] sm:$0xff] %v9864_v33  ;;  %v10156_v38 = vpack.c.bf16 %v289_v36, %v281_v35  ;;  %v286_v39 = vld [vmem:[#allocation4 + $0x40] sm:$0xff]  ;;  %v288_v41 = vld [vmem:[#allocation4 + $0x50] sm:$0xff]  ;;  %s9868_s30 = smov 127   ;;  %s9869_s21 = smov 1  }
  0x17   :  { %200 = vmatprep.mubr.f32.mxu0 %v9864_v33  ;;  %1959 = vst [vmem:[#allocation2 + $0x20] sm:$0xff] %v9864_v33  ;;  %1960 = vst [vmem:[#allocation2 + $0x28] sm:$0xff] %v9864_v33  ;;  %271 = vmatprep.mubr.f32.mxu1 %v9864_v33  ;;  %v10161_v42 = vpack.c.bf16 %v286_v39, %v278_v37  ;;  %v10163_v43 = vpack.c.bf16 %v288_v41, %v280_v40  ;;  %v295_v44 = vld [vmem:[#allocation4 + $0x88] sm:$0xff]  ;;  %v297_v46 = vld [vmem:[#allocation4 + $0x98] sm:$0xff]  ;;  %s9870_s1 = smov 31   ;;  %s9871_s26 = smov 32  }
  0x18   :  { %v72_v9 = vadd.f32 %v71_v6, %v70_v7  ;;  %1961 = vst [vmem:[#allocation2 + $0x30] sm:$0xff] %v9864_v33  ;;  %1962 = vst [vmem:[#allocation2 + $0x38] sm:$0xff] %v9864_v33  ;;  %8028 = vmatmul.mubr.msk.f32.vlgmr.msra.gmra.mrb[0].mxu0 %vm124_vm1, %v9998_v30  ;;  %8031 = vmatmul.mubr.msk.f32.vlgmr.msra.gmra.mrb[0].mxu1 %vm124_vm1, %v9998_v30  ;;  %v303_v45 = vld [vmem:[#allocation4 + $0xc8] sm:$0xff]  ;;  %v305_v48 = vld [vmem:[#allocation4 + $0xd8] sm:$0xff]  ;;  %s9872_s14 = smov 33   ;;  %vm2460_vm2 = vcmask 785408  }
  0x19   :  { %1963 = vst [vmem:[#allocation2 + $0x40] sm:$0xff] %v9864_v33  ;;  %1964 = vst [vmem:[#allocation2 + $0x48] sm:$0xff] %v9864_v33  ;;  %8141 = vmatprep.subr.bf16.mxu0 %v10152_v34  ;;  %8205 = vmatprep.subr.bf16.mxu1 %v10156_v38  ;;  %v10166_v47 = vpack.c.bf16 %v303_v45, %v295_v44  ;;  %v294_v49 = vld [vmem:[#allocation4 + $0x80] sm:$0xff]  ;;  %v10170_v51 = vpack.c.bf16 %v305_v48, %v297_v46  ;;  %v296_v53 = vld [vmem:[#allocation4 + $0x90] sm:$0xff]  ;;  %vm2716_vm3 = vcmask 793600   ;;  %vm2972_vm4 = vcmask 1039360  }
  0x1a   :  { %v74_v10 = vadd.f32 %v73_v8, %v72_v9  ;;  %1965 = vst [vmem:[#allocation2 + $0x50] sm:$0xff] %v9864_v33  ;;  %1966 = vst [vmem:[#allocation2 + $0x58] sm:$0xff] %v9864_v33  ;;  %v302_v50 = vld [vmem:[#allocation4 + $0xc0] sm:$0xff]  ;;  %8143 = vmatpush1.bf16.msra.mxu0 %v10161_v42  ;;  %8207 = vmatpush1.bf16.msra.mxu1 %v10163_v43  ;;  %v304_v54 = vld [vmem:[#allocation4 + $0xd0] sm:$0xff]  ;;  %vm3073_vm5 = vcmask 7168   ;;  %vm2305_vm6 = vcmask 269312  }
  0x1b   :  { %1967 = vst [vmem:[#allocation2 + $0x60] sm:$0xff] %v9864_v33  ;;  %1968 = vst [vmem:[#allocation2 + $0x68] sm:$0xff] %v9864_v33  ;;  %v10172_v52 = vpack.c.bf16 %v302_v50, %v294_v49  ;;  %v311_v55 = vld [vmem:[#allocation4 + $0x108] sm:$0xff]  ;;  %8145 = vmatprep.subr.bf16.mxu0 %v10166_v47  ;;  %v10175_v56 = vpack.c.bf16 %v304_v54, %v296_v53  ;;  %v313_v58 = vld [vmem:[#allocation4 + $0x118] sm:$0xff]  ;;  %8209 = vmatprep.subr.bf16.mxu1 %v10170_v51  ;;  %vm2204_vm7 = vcmask 777216   ;;  %vm2817_vm8 = vcmask 252928  }
  0x1c   :  { %75 = vadd.xlane.f32.xlu0 %v74_v10  ;;  %1969 = vst [vmem:[#allocation2 + $0x70] sm:$0xff] %v9864_v33  ;;  %1970 = vst [vmem:[#allocation2 + $0x78] sm:$0xff] %v9864_v33  ;;  %v319_v57 = vld [vmem:[#allocation4 + $0x148] sm:$0xff]  ;;  %v321_v59 = vld [vmem:[#allocation4 + $0x158] sm:$0xff]  ;;  %vm2561_vm9 = vcmask 261120   ;;  %vm4411_vm10 = vcmask 588800  }
  0x1d   :  { %1971 = vst [vmem:[#allocation2 + $0x80] sm:$0xff] %v9864_v33  ;;  %1972 = vst [vmem:[#allocation2 + $0x88] sm:$0xff] %v9864_v33  ;;  %v10178_v60 = vpack.c.bf16 %v319_v57, %v311_v55  ;;  %v10180_v61 = vpack.c.bf16 %v321_v59, %v313_v58  ;;  %v310_v62 = vld [vmem:[#allocation4 + $0x100] sm:$0xff]  ;;  %v329_v6 = vld [vmem:[#allocation4 + $0x198] sm:$0xff] }
  0x1e   :  { %1973 = vst [vmem:[#allocation2 + $0x90] sm:$0xff] %v9864_v33  ;;  %1974 = vst [vmem:[#allocation2 + $0x98] sm:$0xff] %v9864_v33  ;;  %v318_v63 = vld [vmem:[#allocation4 + $0x140] sm:$0xff]  ;;  %8147 = vmatpush1.bf16.msra.mxu0 %v10172_v52  ;;  %8211 = vmatpush1.bf16.msra.mxu1 %v10175_v56  ;;  %v337_v7 = vld [vmem:[#allocation4 + $0x1d8] sm:$0xff] }
  0x1f   :  { %1975 = vst [vmem:[#allocation2 + $0xa0] sm:$0xff] %v9864_v33  ;;  %1976 = vst [vmem:[#allocation2 + $0xa8] sm:$0xff] %v9864_v33  ;;  %v10184_v4 = vpack.c.bf16 %v318_v63, %v310_v62  ;;  %v326_v8 = vld [vmem:[#allocation4 + $0x180] sm:$0xff]  ;;  %8149 = vmatprep.subr.bf16.mxu0 %v10178_v60  ;;  %8213 = vmatprep.subr.bf16.mxu1 %v10180_v61  ;;  %v10192_v10 = vpack.c.bf16 %v337_v7, %v329_v6  ;;  %v344_v28 = vld [vmem:[#allocation4 + $0x210] sm:$0xff] }
  0x20   :  { %1977 = vst [vmem:[#allocation2 + $0xb0] sm:$0xff] %v9864_v33  ;;  %1978 = vst [vmem:[#allocation2 + $0xb8] sm:$0xff] %v9864_v33  ;;  %v352_v30 = vld [vmem:[#allocation4 + $0x250] sm:$0xff]  ;;  %v359_v31 = vld [vmem:[#allocation4 + $0x288] sm:$0xff] }
  0x21   :  { %1979 = vst [vmem:[#allocation2 + $0xc0] sm:$0xff] %v9864_v33  ;;  %1980 = vst [vmem:[#allocation2 + $0xc8] sm:$0xff] %v9864_v33  ;;  %v367_v32 = vld [vmem:[#allocation4 + $0x2c8] sm:$0xff]  ;;  %v369_v35 = vld [vmem:[#allocation4 + $0x2d8] sm:$0xff]  ;;  %v10210_v37 = vpack.c.bf16 %v352_v30, %v344_v28 }
  0x22   :  { %1981 = vst [vmem:[#allocation2 + $0xd0] sm:$0xff] %v9864_v33  ;;  %1982 = vst [vmem:[#allocation2 + $0xd8] sm:$0xff] %v9864_v33  ;;  %8151 = vmatpush1.bf16.msra.mxu0 %v10184_v4  ;;  %v358_v39 = vld [vmem:[#allocation4 + $0x280] sm:$0xff]  ;;  %v10214_v41 = vpack.c.bf16 %v367_v32, %v359_v31  ;;  %v360_v45 = vld [vmem:[#allocation4 + $0x290] sm:$0xff] }
  0x23   :  { %1983 = vst [vmem:[#allocation2 + $0xe0] sm:$0xff] %v9864_v33  ;;  %1984 = vst [vmem:[#allocation2 + $0xe8] sm:$0xff] %v9864_v33  ;;  %v366_v40 = vld [vmem:[#allocation4 + $0x2c0] sm:$0xff]  ;;  %v368_v46 = vld [vmem:[#allocation4 + $0x2d0] sm:$0xff] }
  0x24   :  { %1985 = vst [vmem:[#allocation2 + $0xf0] sm:$0xff] %v9864_v33  ;;  %1986 = vst [vmem:[#allocation2 + $0xf8] sm:$0xff] %v9864_v33  ;;  %v375_v48 = vld [vmem:[#allocation4 + $0x308] sm:$0xff]  ;;  %v377_v50 = vld [vmem:[#allocation4 + $0x318] sm:$0xff]  ;;  %v10220_v54 = vpack.c.bf16 %v366_v40, %v358_v39  ;;  %v10222_v55 = vpack.c.bf16 %v368_v46, %v360_v45 }
  0x25   :  { %1987 = vst [vmem:[#allocation2 + $0x100] sm:$0xff] %v9864_v33  ;;  %1988 = vst [vmem:[#allocation2 + $0x108] sm:$0xff] %v9864_v33  ;;  %v383_v49 = vld [vmem:[#allocation4 + $0x348] sm:$0xff]  ;;  %v385_v53 = vld [vmem:[#allocation4 + $0x358] sm:$0xff] }
  0x26   :  { %1989 = vst [vmem:[#allocation2 + $0x110] sm:$0xff] %v9864_v33  ;;  %1990 = vst [vmem:[#allocation2 + $0x118] sm:$0xff] %v9864_v33  ;;  %v374_v57 = vld [vmem:[#allocation4 + $0x300] sm:$0xff]  ;;  %v10226_v59 = vpack.c.bf16 %v383_v49, %v375_v48  ;;  %v10228_v62 = vpack.c.bf16 %v385_v53, %v377_v50  ;;  %v376_v63 = vld [vmem:[#allocation4 + $0x310] sm:$0xff] }
  0x27   :  { %1991 = vst [vmem:[#allocation2 + $0x120] sm:$0xff] %v9864_v33  ;;  %1992 = vst [vmem:[#allocation2 + $0x128] sm:$0xff] %v9864_v33  ;;  %v382_v58 = vld [vmem:[#allocation4 + $0x340] sm:$0xff]  ;;  %v401_v6 = vld [vmem:[#allocation4 + $0x3d8] sm:$0xff] }
  0x28   :  { %1993 = vst [vmem:[#allocation2 + $0x130] sm:$0xff] %v9864_v33  ;;  %1994 = vst [vmem:[#allocation2 + $0x138] sm:$0xff] %v9864_v33  ;;  %v10232_v7 = vpack.c.bf16 %v382_v58, %v374_v57  ;;  %v417_v28 = vld [vmem:[#allocation4 + $0x458] sm:$0xff]  ;;  %v406_v32 = vld [vmem:[#allocation4 + $0x400] sm:$0xff] }
  0x29   :  { %1995 = vst [vmem:[#allocation2 + $0x140] sm:$0xff] %v9864_v33  ;;  %1996 = vst [vmem:[#allocation2 + $0x148] sm:$0xff] %v9864_v33  ;;  %v408_v40 = vld [vmem:[#allocation4 + $0x410] sm:$0xff]  ;;  %v423_v46 = vld [vmem:[#allocation4 + $0x488] sm:$0xff] }
  0x2a   :  { %1997 = vst [vmem:[#allocation2 + $0x150] sm:$0xff] %v9864_v33  ;;  %1998 = vst [vmem:[#allocation2 + $0x158] sm:$0xff] %v9864_v33  ;;  %v416_v45 = vld [vmem:[#allocation4 + $0x450] sm:$0xff]  ;;  %v431_v48 = vld [vmem:[#allocation4 + $0x4c8] sm:$0xff] }
  0x2b   :  { %1999 = vst [vmem:[#allocation2 + $0x160] sm:$0xff] %v9864_v33  ;;  %2000 = vst [vmem:[#allocation2 + $0x168] sm:$0xff] %v9864_v33  ;;  %v425_v49 = vld [vmem:[#allocation4 + $0x498] sm:$0xff]  ;;  %v10258_v57 = vpack.c.bf16 %v416_v45, %v408_v40  ;;  %v422_v58 = vld [vmem:[#allocation4 + $0x480] sm:$0xff] }
  0x2c   :  { %2001 = vst [vmem:[#allocation2 + $0x170] sm:$0xff] %v9864_v33  ;;  %2002 = vst [vmem:[#allocation2 + $0x178] sm:$0xff] %v9864_v33  ;;  %v433_v50 = vld [vmem:[#allocation4 + $0x4d8] sm:$0xff]  ;;  %v448_v40 = vld [vmem:[#allocation4 + $0x550] sm:$0xff] }
  0x2d   :  { %2003 = vst [vmem:[#allocation2 + $0x180] sm:$0xff] %v9864_v33  ;;  %2004 = vst [vmem:[#allocation2 + $0x188] sm:$0xff] %v9864_v33  ;;  %v455_v45 = vld [vmem:[#allocation4 + $0x588] sm:$0xff] }
  0x2e   :  { %2005 = vst [vmem:[#allocation2 + $0x190] sm:$0xff] %v9864_v33  ;;  %2006 = vst [vmem:[#allocation2 + $0x198] sm:$0xff] %v9864_v33 }
  0x2f   :  { %2007 = vst [vmem:[#allocation2 + $0x1a0] sm:$0xff] %v9864_v33  ;;  %2008 = vst [vmem:[#allocation2 + $0x1a8] sm:$0xff] %v9864_v33 }
  0x30   :  { %2009 = vst [vmem:[#allocation2 + $0x1b0] sm:$0xff] %v9864_v33  ;;  %2010 = vst [vmem:[#allocation2 + $0x1b8] sm:$0xff] %v9864_v33 }
  0x31   :  { %2011 = vst [vmem:[#allocation2 + $0x1c0] sm:$0xff] %v9864_v33  ;;  %2012 = vst [vmem:[#allocation2 + $0x1c8] sm:$0xff] %v9864_v33 }
  0x32   :  { %2013 = vst [vmem:[#allocation2 + $0x1d0] sm:$0xff] %v9864_v33  ;;  %2014 = vst [vmem:[#allocation2 + $0x1d8] sm:$0xff] %v9864_v33 }
  0x33   :  { %2015 = vst [vmem:[#allocation2 + $0x1e0] sm:$0xff] %v9864_v33  ;;  %2016 = vst [vmem:[#allocation2 + $0x1e8] sm:$0xff] %v9864_v33 }
  0x34   :  { %2017 = vst [vmem:[#allocation2 + $0x1f0] sm:$0xff] %v9864_v33  ;;  %2018 = vst [vmem:[#allocation2 + $0x1f8] sm:$0xff] %v9864_v33 }
  0x35   :  { %2019 = vst [vmem:[#allocation2 + $0x200] sm:$0xff] %v9864_v33  ;;  %2020 = vst [vmem:[#allocation2 + $0x208] sm:$0xff] %v9864_v33 }
  0x36   :  { %2021 = vst [vmem:[#allocation2 + $0x210] sm:$0xff] %v9864_v33  ;;  %2022 = vst [vmem:[#allocation2 + $0x218] sm:$0xff] %v9864_v33 }
  0x37   :  { %2023 = vst [vmem:[#allocation2 + $0x220] sm:$0xff] %v9864_v33  ;;  %2024 = vst [vmem:[#allocation2 + $0x228] sm:$0xff] %v9864_v33 }
  0x38   :  { %2025 = vst [vmem:[#allocation2 + $0x230] sm:$0xff] %v9864_v33  ;;  %2026 = vst [vmem:[#allocation2 + $0x238] sm:$0xff] %v9864_v33 }
  0x39   :  { %2027 = vst [vmem:[#allocation2 + $0x240] sm:$0xff] %v9864_v33  ;;  %2028 = vst [vmem:[#allocation2 + $0x248] sm:$0xff] %v9864_v33 }
  0x3a   :  { %2029 = vst [vmem:[#allocation2 + $0x250] sm:$0xff] %v9864_v33  ;;  %2030 = vst [vmem:[#allocation2 + $0x258] sm:$0xff] %v9864_v33 }
  0x3b   :  { %2031 = vst [vmem:[#allocation2 + $0x260] sm:$0xff] %v9864_v33  ;;  %2032 = vst [vmem:[#allocation2 + $0x268] sm:$0xff] %v9864_v33 }
  0x3c   :  { %2033 = vst [vmem:[#allocation2 + $0x270] sm:$0xff] %v9864_v33  ;;  %2034 = vst [vmem:[#allocation2 + $0x278] sm:$0xff] %v9864_v33 }
  0x3d   :  { %2035 = vst [vmem:[#allocation2 + $0x280] sm:$0xff] %v9864_v33  ;;  %2036 = vst [vmem:[#allocation2 + $0x288] sm:$0xff] %v9864_v33 }
  0x3e   :  { %2037 = vst [vmem:[#allocation2 + $0x290] sm:$0xff] %v9864_v33  ;;  %2038 = vst [vmem:[#allocation2 + $0x298] sm:$0xff] %v9864_v33 }
  0x3f   :  { %2039 = vst [vmem:[#allocation2 + $0x2a0] sm:$0xff] %v9864_v33  ;;  %2040 = vst [vmem:[#allocation2 + $0x2a8] sm:$0xff] %v9864_v33 }
  0x40   :  { %2041 = vst [vmem:[#allocation2 + $0x2b0] sm:$0xff] %v9864_v33  ;;  %2042 = vst [vmem:[#allocation2 + $0x2b8] sm:$0xff] %v9864_v33 }
  0x41   :  { %2043 = vst [vmem:[#allocation2 + $0x2c0] sm:$0xff] %v9864_v33  ;;  %2044 = vst [vmem:[#allocation2 + $0x2c8] sm:$0xff] %v9864_v33 }
  0x42   :  { %2045 = vst [vmem:[#allocation2 + $0x2d0] sm:$0xff] %v9864_v33  ;;  %2046 = vst [vmem:[#allocation2 + $0x2d8] sm:$0xff] %v9864_v33 }
  0x43   :  { %2047 = vst [vmem:[#allocation2 + $0x2e0] sm:$0xff] %v9864_v33  ;;  %2048 = vst [vmem:[#allocation2 + $0x2e8] sm:$0xff] %v9864_v33 }
  0x44   :  { %2049 = vst [vmem:[#allocation2 + $0x2f0] sm:$0xff] %v9864_v33  ;;  %2050 = vst [vmem:[#allocation2 + $0x2f8] sm:$0xff] %v9864_v33 }
  0x45   :  { %2051 = vst [vmem:[#allocation2 + $0x300] sm:$0xff] %v9864_v33  ;;  %2052 = vst [vmem:[#allocation2 + $0x308] sm:$0xff] %v9864_v33 }
  0x46   :  { %2053 = vst [vmem:[#allocation2 + $0x310] sm:$0xff] %v9864_v33  ;;  %2054 = vst [vmem:[#allocation2 + $0x318] sm:$0xff] %v9864_v33 }
  0x47   :  { %2055 = vst [vmem:[#allocation2 + $0x320] sm:$0xff] %v9864_v33  ;;  %2056 = vst [vmem:[#allocation2 + $0x328] sm:$0xff] %v9864_v33 }
  0x48   :  { %2057 = vst [vmem:[#allocation2 + $0x330] sm:$0xff] %v9864_v33  ;;  %2058 = vst [vmem:[#allocation2 + $0x338] sm:$0xff] %v9864_v33 }
  0x49   :  { %2059 = vst [vmem:[#allocation2 + $0x340] sm:$0xff] %v9864_v33  ;;  %2060 = vst [vmem:[#allocation2 + $0x348] sm:$0xff] %v9864_v33 }
  0x4a   :  { %2061 = vst [vmem:[#allocation2 + $0x350] sm:$0xff] %v9864_v33  ;;  %2062 = vst [vmem:[#allocation2 + $0x358] sm:$0xff] %v9864_v33 }
  0x4b   :  { %2063 = vst [vmem:[#allocation2 + $0x360] sm:$0xff] %v9864_v33  ;;  %2064 = vst [vmem:[#allocation2 + $0x368] sm:$0xff] %v9864_v33 }
  0x4c   :  { %2065 = vst [vmem:[#allocation2 + $0x370] sm:$0xff] %v9864_v33  ;;  %2066 = vst [vmem:[#allocation2 + $0x378] sm:$0xff] %v9864_v33 }
  0x4d   :  { %2067 = vst [vmem:[#allocation2 + $0x380] sm:$0xff] %v9864_v33  ;;  %2068 = vst [vmem:[#allocation2 + $0x388] sm:$0xff] %v9864_v33 }
  0x4e   :  { %2069 = vst [vmem:[#allocation2 + $0x390] sm:$0xff] %v9864_v33  ;;  %2070 = vst [vmem:[#allocation2 + $0x398] sm:$0xff] %v9864_v33 }
  0x4f   :  { %2071 = vst [vmem:[#allocation2 + $0x3a0] sm:$0xff] %v9864_v33  ;;  %2072 = vst [vmem:[#allocation2 + $0x3a8] sm:$0xff] %v9864_v33 }
  0x50   :  { %2073 = vst [vmem:[#allocation2 + $0x3b0] sm:$0xff] %v9864_v33  ;;  %2074 = vst [vmem:[#allocation2 + $0x3b8] sm:$0xff] %v9864_v33 }
  0x51   :  { %2075 = vst [vmem:[#allocation2 + $0x3c0] sm:$0xff] %v9864_v33  ;;  %2076 = vst [vmem:[#allocation2 + $0x3c8] sm:$0xff] %v9864_v33 }
  0x52   :  { %2077 = vst [vmem:[#allocation2 + $0x3d0] sm:$0xff] %v9864_v33  ;;  %2078 = vst [vmem:[#allocation2 + $0x3d8] sm:$0xff] %v9864_v33 }
  0x53   :  { %2079 = vst [vmem:[#allocation2 + $0x3e0] sm:$0xff] %v9864_v33  ;;  %2080 = vst [vmem:[#allocation2 + $0x3e8] sm:$0xff] %v9864_v33 }
  0x54   :  { %2081 = vst [vmem:[#allocation2 + $0x3f0] sm:$0xff] %v9864_v33  ;;  %2082 = vst [vmem:[#allocation2 + $0x3f8] sm:$0xff] %v9864_v33 }
  0x55   :  { %2083 = vst [vmem:[#allocation2 + $0x400] sm:$0xff] %v9864_v33  ;;  %2084 = vst [vmem:[#allocation2 + $0x408] sm:$0xff] %v9864_v33 }
  0x56   :  { %2085 = vst [vmem:[#allocation2 + $0x410] sm:$0xff] %v9864_v33  ;;  %2086 = vst [vmem:[#allocation2 + $0x418] sm:$0xff] %v9864_v33 }
  0x57   :  { %2087 = vst [vmem:[#allocation2 + $0x420] sm:$0xff] %v9864_v33  ;;  %2088 = vst [vmem:[#allocation2 + $0x428] sm:$0xff] %v9864_v33 }
  0x58   :  { %2089 = vst [vmem:[#allocation2 + $0x430] sm:$0xff] %v9864_v33  ;;  %2090 = vst [vmem:[#allocation2 + $0x438] sm:$0xff] %v9864_v33 }
  0x59   :  { %2091 = vst [vmem:[#allocation2 + $0x440] sm:$0xff] %v9864_v33  ;;  %2092 = vst [vmem:[#allocation2 + $0x448] sm:$0xff] %v9864_v33 }
  0x5a   :  { %2093 = vst [vmem:[#allocation2 + $0x450] sm:$0xff] %v9864_v33  ;;  %2094 = vst [vmem:[#allocation2 + $0x458] sm:$0xff] %v9864_v33 }
  0x5b   :  { %2095 = vst [vmem:[#allocation2 + $0x460] sm:$0xff] %v9864_v33  ;;  %2096 = vst [vmem:[#allocation2 + $0x468] sm:$0xff] %v9864_v33 }
  0x5c   :  { %2097 = vst [vmem:[#allocation2 + $0x470] sm:$0xff] %v9864_v33  ;;  %2098 = vst [vmem:[#allocation2 + $0x478] sm:$0xff] %v9864_v33  ;;  %v361_v33 = vld [vmem:[#allocation4 + $0x298] sm:$0xff] }
  0x5d   :  { %16669 = vst [vmem:[#allocation9_spill] sm:$0xff] %v10214_v41  ;;  %v10216_v44 = vpack.c.bf16 %v369_v35, %v361_v33  ;;  %16671 = vst [vmem:[#allocation11_spill] sm:$0xff] %v10220_v54  ;;  %v414_v33 = vld [vmem:[#allocation4 + $0x440] sm:$0xff] }
  0x5e   :  { %16672 = vst [vmem:[#allocation12_spill] sm:$0xff] %v10222_v55  ;;  %16673 = vst [vmem:[#allocation13_spill] sm:$0xff] %v10226_v59  ;;  %v10256_v53 = vpack.c.bf16 %v414_v33, %v406_v32  ;;  %v440_v33 = vld [vmem:[#allocation4 + $0x510] sm:$0xff] }
  0x5f   :  { %16670 = vst [vmem:[#allocation10_spill] sm:$0xff] %v10216_v44  ;;  %16674 = vst [vmem:[#allocation14_spill] sm:$0xff] %v10228_v62 }
  0x60   :  { %16675 = vst [vmem:[#allocation15_spill] sm:$0xff] %v10232_v7  ;;  %16683 = vst [vmem:[#allocation23_spill] sm:$0xff] %v10256_v53 }
  0x61   :  { %16684 = vst [vmem:[#allocation24_spill] sm:$0xff] %v10258_v57 }
  0xa9   :  { %v76_v11 = vpop.xlane.xlu0 %75 }
  0xaa   :  { %v77_v12 = vmul.f32 0.001953125, %v76_v11  ;;  %v334_v11 = vld [vmem:[#allocation4 + $0x1c0] sm:$0xff] }
  0xac   :  { %v9969_v13 = vsub.f32 %v58_v0, %v77_v12  ;;  %v9971_v14 = vsub.f32 %v62_v2, %v77_v12  ;;  %v9973_v15 = vsub.f32 %v8025_v1, %v77_v12  ;;  %v9975_v16 = vsub.f32 %v65_v3, %v77_v12  ;;  %v312_v0 = vld [vmem:[#allocation4 + $0x110] sm:$0xff]  ;;  %v327_v2 = vld [vmem:[#allocation4 + $0x188] sm:$0xff] }
  0xad   :  { %v320_v1 = vld [vmem:[#allocation4 + $0x150] sm:$0xff]  ;;  %v335_v3 = vld [vmem:[#allocation4 + $0x1c8] sm:$0xff] }
  0xae   :  { %16667 = vst [vmem:[#allocation7_spill] sm:$0xff] %v9973_v15  ;;  %16668 = vst [vmem:[#allocation8_spill] sm:$0xff] %v9975_v16  ;;  %v82_v17 = vmul.f32 %v9969_v13, %v9969_v13  ;;  %v83_v18 = vmul.f32 %v9971_v14, %v9971_v14  ;;  %v84_v19 = vmul.f32 %v9973_v15, %v9973_v15  ;;  %v328_v12 = vld [vmem:[#allocation4 + $0x190] sm:$0xff]  ;;  %v479_v15 = vld [vmem:[#allocation4 + $0x648] sm:$0xff] }
  0xaf   :  { %v85_v20 = vmul.f32 %v9975_v16, %v9975_v16  ;;  %v10186_v5 = vpack.c.bf16 %v320_v1, %v312_v0  ;;  %v10190_v9 = vpack.c.bf16 %v335_v3, %v327_v2  ;;  %v384_v0 = vld [vmem:[#allocation4 + $0x350] sm:$0xff]  ;;  %v391_v1 = vld [vmem:[#allocation4 + $0x388] sm:$0xff]  ;;  %v393_v3 = vld [vmem:[#allocation4 + $0x398] sm:$0xff] }
  0xb0   :  { %v86_v21 = vsel %vm67_vm0, %v82_v17, 0.0  ;;  %v87_v22 = vsel %vm67_vm0, %v83_v18, 0.0  ;;  %v89_v24 = vsel %vm67_vm0, %v84_v19, 0.0  ;;  %v336_v17 = vld [vmem:[#allocation4 + $0x1d0] sm:$0xff]  ;;  %v343_v18 = vld [vmem:[#allocation4 + $0x208] sm:$0xff]  ;;  %v473_v16 = vld [vmem:[#allocation4 + $0x618] sm:$0xff] }
  0xb1   :  { %v88_v23 = vadd.f32 %v87_v22, %v86_v21  ;;  %v91_v26 = vsel %vm67_vm0, %v85_v20, 0.0  ;;  %v351_v19 = vld [vmem:[#allocation4 + $0x248] sm:$0xff]  ;;  %v345_v20 = vld [vmem:[#allocation4 + $0x218] sm:$0xff]  ;;  %8215 = vmatpush1.bf16.msra.mxu1 %v10186_v5  ;;  %v10196_v22 = vpack.c.bf16 %v334_v11, %v326_v8  ;;  %8153 = vmatprep.subr.bf16.mxu0 %v10190_v9  ;;  %v10234_v8 = vpack.c.bf16 %v384_v0, %v376_v63  ;;  %v390_v11 = vld [vmem:[#allocation4 + $0x380] sm:$0xff] }
  0xb2   :  { %v353_v21 = vld [vmem:[#allocation4 + $0x258] sm:$0xff]  ;;  %8217 = vmatprep.subr.bf16.mxu1 %v10192_v10  ;;  %v399_v2 = vld [vmem:[#allocation4 + $0x3c8] sm:$0xff]  ;;  %v430_v63 = vld [vmem:[#allocation4 + $0x4c0] sm:$0xff]  ;;  %v10262_v0 = vpack.c.bf16 %v431_v48, %v423_v46 }
  0xb3   :  { %v90_v25 = vadd.f32 %v89_v24, %v88_v23  ;;  %v10198_v23 = vpack.c.bf16 %v336_v17, %v328_v12  ;;  %v342_v24 = vld [vmem:[#allocation4 + $0x200] sm:$0xff]  ;;  %8155 = vmatpush1.bf16.msra.mxu0 %v10196_v22  ;;  %16676 = vst [vmem:[#allocation16_spill] sm:$0xff] %v10234_v8  ;;  %v10238_v17 = vpack.c.bf16 %v399_v2, %v391_v1  ;;  %v424_v2 = vld [vmem:[#allocation4 + $0x490] sm:$0xff]  ;;  %v463_v46 = vld [vmem:[#allocation4 + $0x5c8] sm:$0xff] }
  0xb4   :  { %v398_v12 = vld [vmem:[#allocation4 + $0x3c0] sm:$0xff]  ;;  %16685 = vst [vmem:[#allocation25_spill] sm:$0xff] %v10262_v0  ;;  %v10264_v1 = vpack.c.bf16 %v433_v50, %v425_v49  ;;  %v457_v48 = vld [vmem:[#allocation4 + $0x598] sm:$0xff] }
  0xb5   :  { %v92_v27 = vadd.f32 %v91_v26, %v90_v25  ;;  %v350_v25 = vld [vmem:[#allocation4 + $0x240] sm:$0xff]  ;;  %v10202_v26 = vpack.c.bf16 %v351_v19, %v343_v18  ;;  %8219 = vmatpush1.bf16.msra.mxu1 %v10198_v23  ;;  %16677 = vst [vmem:[#allocation17_spill] sm:$0xff] %v10238_v17  ;;  %v10240_v18 = vpack.c.bf16 %v401_v6, %v393_v3  ;;  %v392_v19 = vld [vmem:[#allocation4 + $0x390] sm:$0xff]  ;;  %v439_v6 = vld [vmem:[#allocation4 + $0x508] sm:$0xff] }
  0xb6   :  { %v10208_v36 = vpack.c.bf16 %v350_v25, %v342_v24  ;;  %v415_v24 = vld [vmem:[#allocation4 + $0x448] sm:$0xff]  ;;  %v409_v25 = vld [vmem:[#allocation4 + $0x418] sm:$0xff]  ;;  %v10244_v30 = vpack.c.bf16 %v398_v12, %v390_v11  ;;  %16686 = vst [vmem:[#allocation26_spill] sm:$0xff] %v10264_v1  ;;  %v432_v3 = vld [vmem:[#allocation4 + $0x4d0] sm:$0xff] }
  0xb7   :  { %93 = vadd.xlane.f32.xlu0 %v92_v27  ;;  %v10204_v27 = vpack.c.bf16 %v353_v21, %v345_v20  ;;  %8157 = vmatprep.subr.bf16.mxu0 %v10202_v26  ;;  %16678 = vst [vmem:[#allocation18_spill] sm:$0xff] %v10240_v18  ;;  %v400_v20 = vld [vmem:[#allocation4 + $0x3d0] sm:$0xff]  ;;  %v407_v21 = vld [vmem:[#allocation4 + $0x408] sm:$0xff]  ;;  %v10252_v39 = vpack.c.bf16 %v417_v28, %v409_v25  ;;  %v441_v12 = vld [vmem:[#allocation4 + $0x518] sm:$0xff] }
  0xb8   :  { %8159 = vmatpush1.bf16.msra.mxu0 %v10208_v36  ;;  %16679 = vst [vmem:[#allocation19_spill] sm:$0xff] %v10244_v30  ;;  %v10246_v31 = vpack.c.bf16 %v400_v20, %v392_v19  ;;  %v10250_v35 = vpack.c.bf16 %v415_v24, %v407_v21  ;;  %v447_v11 = vld [vmem:[#allocation4 + $0x548] sm:$0xff]  ;;  %v449_v19 = vld [vmem:[#allocation4 + $0x558] sm:$0xff]  ;;  %v10268_v20 = vpack.c.bf16 %v430_v63, %v422_v58  ;;  %v438_v24 = vld [vmem:[#allocation4 + $0x500] sm:$0xff] }
  0xb9   :  { %8221 = vmatprep.subr.bf16.mxu1 %v10204_v27  ;;  %8161 = vmatprep.subr.bf16.mxu0 %v10214_v41  ;;  %16682 = vst [vmem:[#allocation22_spill] sm:$0xff] %v10252_v39  ;;  %v10270_v21 = vpack.c.bf16 %v432_v3, %v424_v2  ;;  %v446_v25 = vld [vmem:[#allocation4 + $0x540] sm:$0xff]  ;;  %v10274_v28 = vpack.c.bf16 %v447_v11, %v439_v6  ;;  %v465_v49 = vld [vmem:[#allocation4 + $0x5d8] sm:$0xff]  ;;  %v456_v11 = vld [vmem:[#allocation4 + $0x590] sm:$0xff] }
  0xba   :  { %8223 = vmatpush1.bf16.msra.mxu1 %v10210_v37  ;;  %16680 = vst [vmem:[#allocation20_spill] sm:$0xff] %v10246_v31  ;;  %16681 = vst [vmem:[#allocation21_spill] sm:$0xff] %v10250_v35  ;;  %v10276_v32 = vpack.c.bf16 %v449_v19, %v441_v12  ;;  %v10280_v50 = vpack.c.bf16 %v446_v25, %v438_v24  ;;  %v10282_v58 = vpack.c.bf16 %v448_v40, %v440_v33  ;;  %v454_v63 = vld [vmem:[#allocation4 + $0x580] sm:$0xff]  ;;  %v464_v12 = vld [vmem:[#allocation4 + $0x5d0] sm:$0xff] }
  0xbb   :  { %8225 = vmatprep.subr.bf16.mxu1 %v10216_v44  ;;  %16687 = vst [vmem:[#allocation27_spill] sm:$0xff] %v10268_v20  ;;  %16688 = vst [vmem:[#allocation28_spill] sm:$0xff] %v10270_v21  ;;  %v462_v2 = vld [vmem:[#allocation4 + $0x5c0] sm:$0xff]  ;;  %v10286_v3 = vpack.c.bf16 %v463_v46, %v455_v45  ;;  %v10288_v6 = vpack.c.bf16 %v465_v49, %v457_v48  ;;  %v471_v19 = vld [vmem:[#allocation4 + $0x608] sm:$0xff]  ;;  %v10294_v25 = vpack.c.bf16 %v464_v12, %v456_v11 }
  0xbc   :  { %8163 = vmatpush1.bf16.msra.mxu0 %v10220_v54  ;;  %16689 = vst [vmem:[#allocation29_spill] sm:$0xff] %v10274_v28  ;;  %16690 = vst [vmem:[#allocation30_spill] sm:$0xff] %v10276_v32  ;;  %v10292_v24 = vpack.c.bf16 %v462_v2, %v454_v63  ;;  %v470_v33 = vld [vmem:[#allocation4 + $0x600] sm:$0xff]  ;;  %v10298_v45 = vpack.c.bf16 %v479_v15, %v471_v19  ;;  %v472_v48 = vld [vmem:[#allocation4 + $0x610] sm:$0xff] }
  0xbd   :  { %8165 = vmatprep.subr.bf16.mxu0 %v10226_v59  ;;  %16691 = vst [vmem:[#allocation31_spill] sm:$0xff] %v10280_v50  ;;  %16692 = vst [vmem:[#allocation32_spill] sm:$0xff] %v10282_v58  ;;  %v478_v40 = vld [vmem:[#allocation4 + $0x640] sm:$0xff]  ;;  %v480_v49 = vld [vmem:[#allocation4 + $0x650] sm:$0xff] }
  0xbe   :  { %8227 = vmatpush1.bf16.msra.mxu1 %v10222_v55  ;;  %16693 = vst [vmem:[#allocation33_spill] sm:$0xff] %v10286_v3  ;;  %16694 = vst [vmem:[#allocation34_spill] sm:$0xff] %v10288_v6  ;;  %v10304_v63 = vpack.c.bf16 %v478_v40, %v470_v33  ;;  %v10306_v2 = vpack.c.bf16 %v480_v49, %v472_v48  ;;  %v486_v11 = vld [vmem:[#allocation4 + $0x680] sm:$0xff]  ;;  %v488_v12 = vld [vmem:[#allocation4 + $0x690] sm:$0xff] }
  0xbf   :  { %8229 = vmatprep.subr.bf16.mxu1 %v10228_v62  ;;  %16695 = vst [vmem:[#allocation35_spill] sm:$0xff] %v10292_v24  ;;  %16696 = vst [vmem:[#allocation36_spill] sm:$0xff] %v10294_v25  ;;  %v496_v19 = vld [vmem:[#allocation4 + $0x6d0] sm:$0xff]  ;;  %v96_v48 = vld [vmem:[%s16170_s3] sm:$0xf] }
  0xc0   :  { %8167 = vmatpush1.bf16.msra.mxu0 %v10232_v7  ;;  %16697 = vst [vmem:[#allocation37_spill] sm:$0xff] %v10298_v45  ;;  %16699 = vst [vmem:[#allocation39_spill] sm:$0xff] %v10304_v63  ;;  %v10318_v40 = vpack.c.bf16 %v496_v19, %v488_v12  ;;  %v8040_v49 = vld [vmem:[%s16169_s2 + $0x40] ss:$8 sm:$0xf] }
  0xc1   :  { %8169 = vmatprep.subr.bf16.mxu0 %v10238_v17  ;;  %16700 = vst [vmem:[#allocation40_spill] sm:$0xff] %v10306_v2  ;;  %v503_v19 = vld [vmem:[#allocation4 + $0x708] sm:$0xff]  ;;  %v308_v62 = vld [vmem:[#allocation4 + $0xf0] sm:$0xff]  ;;  %v362_v54 = vld [vmem:[#allocation4 + $0x2a0] sm:$0xff] }
  0xc2   :  { %8231 = vmatpush1.bf16.msra.mxu1 %v10234_v8  ;;  %16704 = vst [vmem:[#allocation44_spill] sm:$0xff] %v10318_v40  ;;  %v298_v8 = vld [vmem:[#allocation4 + $0xa0] sm:$0xff]  ;;  %v324_v59 = vld [vmem:[#allocation4 + $0x170] sm:$0xff] }
  0xc3   :  { %8233 = vmatprep.subr.bf16.mxu1 %v10240_v18 }
  0xc4   :  { %8171 = vmatpush1.bf16.msra.mxu0 %v10244_v30 }
  0xc5   :  { %8173 = vmatprep.subr.bf16.mxu0 %v10250_v35 }
  0xc6   :  { %8235 = vmatpush1.bf16.msra.mxu1 %v10246_v31 }
  0xc7   :  { %8237 = vmatprep.subr.bf16.mxu1 %v10252_v39  ;;  %v309_v39 = vld [vmem:[#allocation4 + $0xf8] sm:$0xff] }
  0xc8   :  { %8175 = vmatpush1.bf16.msra.mxu0 %v10256_v53  ;;  %v299_v53 = vld [vmem:[#allocation4 + $0xa8] sm:$0xff] }
  0xc9   :  { %8177 = vmatprep.subr.bf16.mxu0 %v10262_v0  ;;  %v292_v0 = vld [vmem:[#allocation4 + $0x70] sm:$0xff] }
  0xca   :  { %8239 = vmatpush1.bf16.msra.mxu1 %v10258_v57 }
  0xcb   :  { %8241 = vmatprep.subr.bf16.mxu1 %v10264_v1  ;;  %v284_v1 = vld [vmem:[#allocation4 + $0x30] sm:$0xff] }
  0xcc   :  { %8179 = vmatpush1.bf16.msra.mxu0 %v10268_v20  ;;  %v10597_v17 = vpack.c.bf16 %v292_v0, %v284_v1  ;;  %v315_v1 = vld [vmem:[#allocation4 + $0x128] sm:$0xff] }
  0xcd   :  { %821 = vperm.xlu0 %9546, %v9992_v29   ;;  %8181 = vmatprep.subr.bf16.mxu0 %v10274_v28  ;;  %v489_v28 = vld [vmem:[#allocation4 + $0x698] sm:$0xff] }
  0xce   :  { %8243 = vmatpush1.bf16.msra.mxu1 %v10270_v21  ;;  %v481_v21 = vld [vmem:[#allocation4 + $0x658] sm:$0xff]  ;;  %16726 = vst [vmem:[#allocation66_spill] sm:$0xff] %v10597_v17 }
  0xcf   :  { %8245 = vmatprep.subr.bf16.mxu1 %v10276_v32  ;;  %v10300_v46 = vpack.c.bf16 %v481_v21, %v473_v16  ;;  %v487_v32 = vld [vmem:[#allocation4 + $0x688] sm:$0xff]  ;;  %v494_v21 = vld [vmem:[#allocation4 + $0x6c0] sm:$0xff] }
  0xd0   :  { %8183 = vmatpush1.bf16.msra.mxu0 %v10280_v50  ;;  %v495_v50 = vld [vmem:[#allocation4 + $0x6c8] sm:$0xff]  ;;  %v10316_v33 = vpack.c.bf16 %v494_v21, %v486_v11 }
  0xd1   :  { %8185 = vmatprep.subr.bf16.mxu0 %v10286_v3  ;;  %16698 = vst [vmem:[#allocation38_spill] sm:$0xff] %v10300_v46  ;;  %v10310_v15 = vpack.c.bf16 %v495_v50, %v487_v32  ;;  %v8041_v11 = vld [vmem:[%s16169_s2 + $0x40] ss:$8 sm:$0xf0] }
  0xd2   :  { %8247 = vmatpush1.bf16.msra.mxu1 %v10282_v58  ;;  %v497_v58 = vld [vmem:[#allocation4 + $0x6d8] sm:$0xff]  ;;  %16703 = vst [vmem:[#allocation43_spill] sm:$0xff] %v10316_v33 }
  0xd3   :  { %8249 = vmatprep.subr.bf16.mxu1 %v10288_v6  ;;  %16701 = vst [vmem:[#allocation41_spill] sm:$0xff] %v10310_v15  ;;  %v10312_v16 = vpack.c.bf16 %v497_v58, %v489_v28  ;;  %v2108_v58 = vlaneseq  ;;  %v528_v6 = vld [vmem:[#allocation4 + $0x7d0] sm:$0xff] }
  0xd4   :  { %8187 = vmatpush1.bf16.msra.mxu0 %v10292_v24 }
  0xd5   :  { %8189 = vmatprep.subr.bf16.mxu0 %v10298_v45  ;;  %16702 = vst [vmem:[#allocation42_spill] sm:$0xff] %v10312_v16  ;;  %v10333_v21 = vshrl.u32 %v2108_v58, 7  ;;  %v109_v58 = vld [vmem:[%s16171_s4] sm:$0xf]  ;;  %s9865_s4 = smov 95  }
  0xd6   :  { %8251 = vmatpush1.bf16.msra.mxu1 %v10294_v25  ;;  %v504_v25 = vld [vmem:[#allocation4 + $0x710] sm:$0xff] }
  0xd7   :  { %8253 = vmatprep.subr.bf16.mxu1 %v10300_v46 }
  0xd8   :  { %8191 = vmatpush1.bf16.msra.mxu0 %v10304_v63  ;;  %v510_v63 = vld [vmem:[#allocation4 + $0x740] sm:$0xff] }
  0xd9   :  { %8193 = vmatprep.subr.bf16.mxu0 %v10310_v15  ;;  %v513_v15 = vld [vmem:[#allocation4 + $0x758] sm:$0xff] }
  0xda   :  { %8255 = vmatpush1.bf16.msra.mxu1 %v10306_v2  ;;  %v502_v2 = vld [vmem:[#allocation4 + $0x700] sm:$0xff] }
  0xdb   :  { %8257 = vmatprep.subr.bf16.mxu1 %v10312_v16  ;;  %v10347_v45 = vpack.c.bf16 %v510_v63, %v502_v2  ;;  %v10361_v63 = vsub.s32 4, %v10333_v21  ;;  %v519_v2 = vld [vmem:[#allocation4 + $0x788] sm:$0xff] }
  0xdc   :  { %8195 = vmatpush1.bf16.msra.mxu0 %v10316_v33  ;;  %v10338_v33 = vor.u32 %v8041_v11, %v8040_v49  ;;  %v2099_v49 = vld [vmem:[%s16169_s2] ss:$8 sm:$0xf] }
  0xdd   :  { %16708 = vst [vmem:[#allocation48_spill] sm:$0xff] %v10347_v45  ;;  %v2100_v11 = vld [vmem:[%s16169_s2] ss:$8 sm:$0xf0]  ;;  %16710 = vst [vmem:[#allocation50_spill] sm:$0xff] %v10361_v63 }
  0xde   :  { %8259 = vmatpush1.bf16.msra.mxu1 %v10318_v40  ;;  %v10336_v40 = vsub.s32 2, %v10333_v21  ;;  %v2101_v3 = vor.u32 %v2100_v11, %v2099_v49  ;;  %v293_v49 = vld [vmem:[#allocation4 + $0x78] sm:$0xff]  ;;  %v10388_v11 = vsub.s32 6, %v10333_v21 }
  0xe0   :  { %16705 = vst [vmem:[#allocation45_spill] sm:$0xff] %v10336_v40  ;;  %16717 = vst [vmem:[#allocation57_spill] sm:$0xff] %v10388_v11 }
  0xeb   :  { %v10599_v7 = vpop.f32.mrb[0].mxu0  ;;  %v10772_v44 = vpop.f32.mrb[0].mxu1 }
  0xec   :  { %16727 = vst [vmem:[#allocation67_spill] sm:$0xff] %v10599_v7  ;;  %v316_v7 = vld [vmem:[#allocation4 + $0x130] sm:$0xff]  ;;  %16760 = vst [vmem:[#allocation100_spill] sm:$0xff] %v10772_v44  ;;  %v10779_v41 = vpop.f32.mrb[1].mxu1  ;;  %v410_v44 = vld [vmem:[#allocation4 + $0x420] sm:$0xff] }
  0xed   :  { %16761 = vst [vmem:[#allocation101_spill] sm:$0xff] %v10779_v41  ;;  %v420_v41 = vld [vmem:[#allocation4 + $0x470] sm:$0xff] }
 0x144   :  { %v94_v28 = vpop.xlane.xlu0 %93 }
 0x145   :  { %v95_v32 = vmul.f32 0.001953125, %v94_v28  ;;  %v511_v28 = vld [vmem:[#allocation4 + $0x748] sm:$0xff] }
 0x146   :  { %v10340_v16 = vpack.c.bf16 %v511_v28, %v503_v19  ;;  %v527_v19 = vld [vmem:[#allocation4 + $0x7c8] sm:$0xff]  ;;  %v521_v28 = vld [vmem:[#allocation4 + $0x798] sm:$0xff] }
 0x147   :  { %v97_v50 = vadd.f32 1e-05, %v95_v32  ;;  %v505_v32 = vld [vmem:[#allocation4 + $0x718] sm:$0xff] }
 0x148   :  { %16706 = vst [vmem:[#allocation46_spill] sm:$0xff] %v10340_v16  ;;  %v10345_v46 = vpack.c.bf16 %v513_v15, %v505_v32  ;;  %8197 = vmatprep.subr.bf16.mxu0 %v10340_v16  ;;  %v2151_v15 = vrot.slane %v10338_v33, %v10336_v40  ;;  %v529_v32 = vld [vmem:[#allocation4 + $0x7d8] sm:$0xff] }
 0x149   :  { %9829 = vrsqrt.f32 %v97_v50  ;;  %8199 = vmatpush1.bf16.msra.mxu0 %v10347_v45  ;;  %v10369_v16 = vpack.c.bf16 %v529_v32, %v521_v28  ;;  %v2159_v45 = vrot.slane %v10338_v33, %v10361_v63  ;;  %v285_v28 = vld [vmem:[#allocation4 + $0x38] sm:$0xff] }
 0x14a   :  { %16707 = vst [vmem:[#allocation47_spill] sm:$0xff] %v10345_v46  ;;  %8261 = vmatprep.subr.bf16.mxu1 %v10345_v46  ;;  %2192 = vrot.lane.b32.xlu0 %v2151_v15, %s9865_s4  ;;  %v520_v46 = vld [vmem:[#allocation4 + $0x790] sm:$0xff]  ;;  %v10390_v32 = vpack.c.bf16 %v293_v49, %v285_v28  ;;  %v10414_v28 = vsub.s32 5, %v10333_v21 }
 0x14b   :  { %16712 = vst [vmem:[#allocation52_spill] sm:$0xff] %v10369_v16  ;;  %v10379_v15 = vpack.c.bf16 %v528_v6, %v520_v46  ;;  %v10395_v46 = vsub.s32 1, %v10333_v21 }
 0x14c   :  { %16718 = vst [vmem:[#allocation58_spill] sm:$0xff] %v10390_v32  ;;  %16721 = vst [vmem:[#allocation61_spill] sm:$0xff] %v10414_v28  ;;  %v2131_v49 = vrot.slane %v2101_v3, %v10414_v28 }
 0x14d   :  { %16715 = vst [vmem:[#allocation55_spill] sm:$0xff] %v10379_v15  ;;  %16719 = vst [vmem:[#allocation59_spill] sm:$0xff] %v10395_v46 }
 0x14e   :  { %2196 = vrot.lane.b32.xlu0 %v2159_v45, %s9865_s4  ;;  %v2167_v45 = vrot.slane %v10338_v33, %v10388_v11 }
 0x152   :  { %2200 = vrot.lane.b32.xlu0 %v2167_v45, %s9865_s4  ;;  %v10421_v45 = vsub.s32 7, %v10333_v21 }
 0x153   :  { %v9830_v12 = vpop.eup %9829 }
 0x154   :  { %v99_v50 = vmul.f32 %v9830_v12, %v96_v48  ;;  %v512_v48 = vld [vmem:[#allocation4 + $0x750] sm:$0xff]  ;;  %16722 = vst [vmem:[#allocation62_spill] sm:$0xff] %v10421_v45 }
 0x155   :  { %v10356_v12 = vpack.c.bf16 %v512_v48, %v504_v25  ;;  %v10367_v25 = vpack.c.bf16 %v527_v19, %v519_v2  ;;  %v526_v48 = vld [vmem:[#allocation4 + $0x7c0] sm:$0xff]  ;;  %v283_v2 = vld [vmem:[#allocation4 + $0x28] sm:$0xff] }
 0x156   :  { %102 = vperm.xlu1 %9545, %v99_v50   ;;  %v518_v50 = vld [vmem:[#allocation4 + $0x780] sm:$0xff]  ;;  %v291_v19 = vld [vmem:[#allocation4 + $0x68] sm:$0xff] }
 0x157   :  { %16709 = vst [vmem:[#allocation49_spill] sm:$0xff] %v10356_v12  ;;  %8263 = vmatpush1.bf16.msra.mxu1 %v10356_v12  ;;  %16711 = vst [vmem:[#allocation51_spill] sm:$0xff] %v10367_v25  ;;  %v10371_v24 = vpack.c.bf16 %v526_v48, %v518_v50  ;;  %v10376_v12 = vsub.s32 0, %v10333_v21  ;;  %8201 = vmatprep.subr.bf16.mxu0 %v10367_v25  ;;  %v2115_v50 = vrot.slane %v2101_v3, %v10395_v46  ;;  %v282_v25 = vld [vmem:[#allocation4 + $0x20] sm:$0xff] }
 0x158   :  { %8265 = vmatprep.subr.bf16.mxu1 %v10369_v16  ;;  %v10407_v48 = vsub.s32 3, %v10333_v21 }
 0x159   :  { %16713 = vst [vmem:[#allocation53_spill] sm:$0xff] %v10371_v24  ;;  %16714 = vst [vmem:[#allocation54_spill] sm:$0xff] %v10376_v12  ;;  %8203 = vmatpush1.bf16.msra.mxu0 %v10371_v24  ;;  %v2111_v6 = vrot.slane %v2101_v3, %v10376_v12  ;;  %v822_v24 = vpop.permute.xlu0 %821 }
 0x15a   :  { %112 = vperm.xlu1 %9545, %v109_v58   ;;  %v10385_v58 = vpack.c.bf16 %v291_v19, %v283_v2  ;;  %16720 = vst [vmem:[#allocation60_spill] sm:$0xff] %v10407_v48  ;;  %v2123_v2 = vrot.slane %v2101_v3, %v10407_v48  ;;  %v2127_v19 = vrot.slane %v2101_v3, %v10361_v63  ;;  %9420 = vst [vmem:[%s16180_s13] sm:$0xff] %v822_v24 }
 0x15b   :  { %8267 = vmatpush1.bf16.msra.mxu1 %v10379_v15  ;;  %v2155_v21 = vrot.slane %v10338_v33, %v10407_v48  ;;  %v8067_v15 = vld [vmem:[%s16169_s2 + $0x7] ss:$8 sm:$0xf0]  ;;  %9426 = vst [vmem:[%s16180_s13 + $0x8] sm:$0xff] %v822_v24  ;;  %9432 = vst [vmem:[%s16180_s13 + $0x10] sm:$0xff] %v822_v24 }
 0x15c   :  { %16716 = vst [vmem:[#allocation56_spill] sm:$0xff] %v10385_v58  ;;  %8269 = vmatprep.subr.bf16.mxu0 %v10385_v58  ;;  %8333 = vmatprep.subr.bf16.mxu1 %v10390_v32  ;;  %v8063_v58 = vld [vmem:[%s16169_s2 + $0x6] ss:$8 sm:$0xf0]  ;;  %9438 = vst [vmem:[%s16180_s13 + $0x18] sm:$0xff] %v822_v24 }
 0x15d   :  { %9444 = vst [vmem:[%s16180_s13 + $0x20] sm:$0xff] %v822_v24  ;;  %9450 = vst [vmem:[%s16180_s13 + $0x28] sm:$0xff] %v822_v24 }
 0x15e   :  { %1659 = vperm.xlu1 %9545, %v9992_v29   ;;  %v2119_v29 = vrot.slane %v2101_v3, %v10336_v40  ;;  %9456 = vst [vmem:[%s16180_s13 + $0x30] sm:$0xff] %v822_v24  ;;  %9462 = vst [vmem:[%s16180_s13 + $0x38] sm:$0xff] %v822_v24 }
 0x162   :  { %2172 = vrot.lane.b32.xlu1 %v2111_v6, %s9865_s4  ;;  %v2135_v6 = vrot.slane %v2101_v3, %v10388_v11 }
 0x166   :  { %2174 = vrot.lane.b32.xlu1 %v2115_v50, %s9865_s4  ;;  %v2139_v50 = vrot.slane %v2101_v3, %v10421_v45  ;;  %v2163_v3 = vrot.slane %v10338_v33, %v10414_v28 }
 0x16a   :  { %2176 = vrot.lane.b32.xlu1 %v2119_v29, %s9865_s4  ;;  %v2143_v29 = vrot.slane %v10338_v33, %v10376_v12 }
 0x16e   :  { %2178 = vrot.lane.b32.xlu1 %v2123_v2, %s9865_s4  ;;  %v2147_v2 = vrot.slane %v10338_v33, %v10395_v46 }
 0x172   :  { %2180 = vrot.lane.b32.xlu1 %v2127_v19, %s9865_s4  ;;  %v8042_v19 = vld [vmem:[%s16169_s2 + $0x1] ss:$8 sm:$0xf] }
 0x176   :  { %2182 = vrot.lane.b32.xlu1 %v2131_v49, %s9865_s4  ;;  %v8043_v49 = vld [vmem:[%s16169_s2 + $0x1] ss:$8 sm:$0xf0] }
 0x17a   :  { %2184 = vrot.lane.b32.xlu1 %v2135_v6, %s9865_s4  ;;  %v2171_v6 = vrot.slane %v10338_v33, %v10421_v45  ;;  %v8047_v33 = vld [vmem:[%s16169_s2 + $0x2] ss:$8 sm:$0xf0] }
 0x17e   :  { %2186 = vrot.lane.b32.xlu1 %v2139_v50, %s9865_s4  ;;  %v10446_v50 = vor.u32 %v8043_v49, %v8042_v19  ;;  %v8050_v49 = vld [vmem:[%s16169_s2 + $0x3] ss:$8 sm:$0xf] }
 0x182   :  { %2188 = vrot.lane.b32.xlu1 %v2143_v29, %s9865_s4  ;;  %v2367_v29 = vrot.slane %v10446_v50, %v10376_v12 }
 0x186   :  { %2190 = vrot.lane.b32.xlu1 %v2147_v2, %s9865_s4  ;;  %v2375_v2 = vrot.slane %v10446_v50, %v10336_v40 }
 0x18a   :  { %2194 = vrot.lane.b32.xlu1 %v2155_v21, %s9865_s4  ;;  %v8046_v21 = vld [vmem:[%s16169_s2 + $0x2] ss:$8 sm:$0xf] }
 0x18b   :  { %v10463_v19 = vor.u32 %v8047_v33, %v8046_v21 }
 0x18d   :  { %v2639_v33 = vrot.slane %v10463_v19, %v10361_v63 }
 0x18e   :  { %2198 = vrot.lane.b32.xlu1 %v2163_v3, %s9865_s4  ;;  %v2383_v3 = vrot.slane %v10446_v50, %v10361_v63 }
 0x192   :  { %2202 = vrot.lane.b32.xlu1 %v2171_v6, %s9865_s4  ;;  %v8051_v6 = vld [vmem:[%s16169_s2 + $0x3] ss:$8 sm:$0xf0] }
 0x193   :  { %v10474_v32 = vor.u32 %v8051_v6, %v8050_v49  ;;  %v8059_v49 = vld [vmem:[%s16169_s2 + $0x5] ss:$8 sm:$0xf0] }
 0x195   :  { %v2887_v21 = vrot.slane %v10474_v32, %v10336_v40  ;;  %v2895_v6 = vrot.slane %v10474_v32, %v10361_v63 }
 0x196   :  { %2428 = vrot.lane.b32.xlu1 %v2367_v29, %s9866_s24  ;;  %v2627_v29 = vrot.slane %v10463_v19, %v10395_v46 }
 0x19a   :  { %2432 = vrot.lane.b32.xlu1 %v2375_v2, %s9866_s24  ;;  %v2879_v2 = vrot.slane %v10474_v32, %v10376_v12 }
 0x19e   :  { %2436 = vrot.lane.b32.xlu1 %v2383_v3, %s9866_s24  ;;  %v8058_v3 = vld [vmem:[%s16169_s2 + $0x5] ss:$8 sm:$0xf] }
 0x1a2   :  { %2686 = vrot.lane.b32.xlu1 %v2627_v29, %s9867_s29  ;;  %v10494_v29 = vor.u32 %v8059_v49, %v8058_v3 }
 0x1a6   :  { %2940 = vrot.lane.b32.xlu1 %v2879_v2, %s9868_s30  ;;  %v3261_v2 = vrot.slane %v10494_v29, %v10395_v46 }
 0x1aa   :  { %2944 = vrot.lane.b32.xlu1 %v2887_v21, %s9868_s30  ;;  %v8062_v21 = vld [vmem:[%s16169_s2 + $0x6] ss:$8 sm:$0xf] }
 0x1ab   :  { %v10508_v3 = vor.u32 %v8063_v58, %v8062_v21 }
 0x1ad   :  { %v3511_v49 = vrot.slane %v10508_v3, %v10376_v12  ;;  %v3519_v58 = vrot.slane %v10508_v3, %v10336_v40 }
 0x1ae   :  { %2692 = vrot.lane.b32.xlu1 %v2639_v33, %s9867_s29  ;;  %v3269_v33 = vrot.slane %v10494_v29, %v10407_v48 }
 0x1b2   :  { %2948 = vrot.lane.b32.xlu1 %v2895_v6, %s9868_s30  ;;  %v8066_v6 = vld [vmem:[%s16169_s2 + $0x7] ss:$8 sm:$0xf] }
 0x1b6   :  { %3320 = vrot.lane.b32.xlu1 %v3261_v2, %s9869_s21  ;;  %v10522_v2 = vor.u32 %v8067_v15, %v8066_v6  ;;  %v8071_v6 = vld [vmem:[%s16169_s2 + $0x80] ss:$8 sm:$0xf0] }
 0x1b8   :  { %v3769_v21 = vrot.slane %v10522_v2, %v10395_v46  ;;  %v3777_v15 = vrot.slane %v10522_v2, %v10407_v48 }
 0x1ba   :  { %3324 = vrot.lane.b32.xlu1 %v3269_v33, %s9869_s21  ;;  %v3523_v33 = vrot.slane %v10508_v3, %v10407_v48 }
 0x1be   :  { %3572 = vrot.lane.b32.xlu1 %v3511_v49, %s9870_s1  ;;  %v8070_v49 = vld [vmem:[%s16169_s2 + $0x80] ss:$8 sm:$0xf] }
 0x1c2   :  { %3576 = vrot.lane.b32.xlu1 %v3519_v58, %s9870_s1  ;;  %v2387_v58 = vrot.slane %v10446_v50, %v10414_v28 }
 0x1c6   :  { %3828 = vrot.lane.b32.xlu1 %v3769_v21, %s9871_s26  ;;  %v10566_v21 = vor.u32 %v8071_v6, %v8070_v49  ;;  %v8044_v6 = vld [vmem:[%s16169_s2 + $0x41] ss:$8 sm:$0xf] }
 0x1c8   :  { %v4019_v24 = vrot.slane %v10566_v21, %v10376_v12  ;;  %v4027_v16 = vrot.slane %v10566_v21, %v10336_v40 }
 0x1ca   :  { %3578 = vrot.lane.b32.xlu1 %v3523_v33, %s9870_s1 }
 0x1ce   :  { %3832 = vrot.lane.b32.xlu1 %v3777_v15, %s9871_s26 }
 0x1d2   :  { %2438 = vrot.lane.b32.xlu1 %v2387_v58, %s9866_s24  ;;  %v8045_v58 = vld [vmem:[%s16169_s2 + $0x41] ss:$8 sm:$0xf0] }
 0x1d3   :  { %v10591_v35 = vor.u32 %v8045_v58, %v8044_v6  ;;  %v317_v6 = vld [vmem:[#allocation4 + $0x138] sm:$0xff] }
 0x1d4   :  { %v325_v58 = vld [vmem:[#allocation4 + $0x178] sm:$0xff] }
 0x1d5   :  { %v10571_v33 = vpop.permute.xlu1 %102 }
 0x1d6   :  { %16723 = vst [vmem:[#allocation63_spill] sm:$0xff] %v10571_v33  ;;  %4080 = vrot.lane.b32.xlu1 %v4019_v24, %s9872_s14  ;;  %v105_v15 = vmul.f32 %v10571_v33, %v9969_v13  ;;  %v106_v49 = vmul.f32 %v10571_v33, %v9971_v14  ;;  %v290_v24 = vld [vmem:[#allocation4 + $0x60] sm:$0xff]  ;;  %v307_v14 = vld [vmem:[#allocation4 + $0xe8] sm:$0xff]  ;;  %v301_v33 = vld [vmem:[#allocation4 + $0xb8] sm:$0xff] }
 0x1d7   :  { %v10595_v18 = vpack.c.bf16 %v290_v24, %v282_v25  ;;  %v10629_v0 = vpack.c.bf16 %v309_v39, %v301_v33  ;;  %v323_v25 = vld [vmem:[#allocation4 + $0x168] sm:$0xff]  ;;  %v2399_v24 = vrot.slane %v10591_v35, %v10376_v12  ;;  %v314_v39 = vld [vmem:[#allocation4 + $0x120] sm:$0xff] }
 0x1d9   :  { %v10586_v20 = vpop.permute.xlu1 %112  ;;  %16725 = vst [vmem:[#allocation65_spill] sm:$0xff] %v10595_v18  ;;  %16729 = vst [vmem:[#allocation69_spill] sm:$0xff] %v10629_v0 }
 0x1da   :  { %16724 = vst [vmem:[#allocation64_spill] sm:$0xff] %v10586_v20  ;;  %v116_v57 = vadd.f32 %v10586_v20, %v106_v49  ;;  %v115_v13 = vadd.f32 %v10586_v20, %v105_v15  ;;  %4084 = vrot.lane.b32.xlu1 %v4027_v16, %s9872_s14  ;;  %v306_v15 = vld [vmem:[#allocation4 + $0xe0] sm:$0xff]  ;;  %v300_v20 = vld [vmem:[#allocation4 + $0xb0] sm:$0xff]  ;;  %v10601_v16 = vpop.f32.mrb[1].mxu0 }
 0x1dc   :  { %v120_v31 = vmax.f32 %v116_v57, 0.0  ;;  %v10593_v30 = vmax.f32 %v115_v13, 0.0  ;;  %v10627_v57 = vpack.c.bf16 %v307_v14, %v299_v53  ;;  %v10637_v13 = vpack.c.bf16 %v306_v15, %v298_v8  ;;  %v333_v15 = vld [vmem:[#allocation4 + $0x1b8] sm:$0xff] }
 0x1dd   :  { %v1660_v49 = vpop.permute.xlu1 %1659  ;;  %v10639_v53 = vpack.c.bf16 %v308_v62, %v300_v20  ;;  %v10643_v14 = vpack.c.bf16 %v323_v25, %v315_v1  ;;  %v10648_v8 = vpack.c.bf16 %v325_v58, %v317_v6  ;;  %v331_v62 = vld [vmem:[#allocation4 + $0x1a8] sm:$0xff]  ;;  %v10657_v25 = vpack.c.bf16 %v324_v59, %v316_v7 }
 0x1de   :  { %9468 = vst [vmem:[%s16180_s13 + $0x40] sm:$0xff] %v1660_v49  ;;  %9474 = vst [vmem:[%s16180_s13 + $0x48] sm:$0xff] %v1660_v49  ;;  %598 = vmatprep.mubr.f32.mxu0 %v120_v31  ;;  %669 = vmatprep.mubr.f32.mxu1 %v120_v31  ;;  %v339_v20 = vld [vmem:[#allocation4 + $0x1e8] sm:$0xff]  ;;  %v2371_v6 = vrot.slane %v10446_v50, %v10395_v46 }
 0x1df   :  { %9480 = vst [vmem:[%s16180_s13 + $0x50] sm:$0xff] %v1660_v49  ;;  %9486 = vst [vmem:[%s16180_s13 + $0x58] sm:$0xff] %v1660_v49  ;;  %599 = vmatmul.mubr.f32.vlgmr.msra.gmra.mrb[2].mxu0 %v10593_v30  ;;  %670 = vmatmul.mubr.f32.vlgmr.msra.gmra.mrb[2].mxu1 %v10593_v30  ;;  %v347_v59 = vld [vmem:[#allocation4 + $0x228] sm:$0xff] }
 0x1e0   :  { %9492 = vst [vmem:[%s16180_s13 + $0x60] sm:$0xff] %v1660_v49  ;;  %9498 = vst [vmem:[%s16180_s13 + $0x68] sm:$0xff] %v1660_v49  ;;  %8271 = vmatpush1.bf16.msra.mxu0 %v10595_v18  ;;  %8335 = vmatpush1.bf16.msra.mxu1 %v10597_v17  ;;  %v341_v17 = vld [vmem:[#allocation4 + $0x1f8] sm:$0xff]  ;;  %v355_v7 = vld [vmem:[#allocation4 + $0x268] sm:$0xff] }
 0x1e1   :  { %9504 = vst [vmem:[%s16180_s13 + $0x70] sm:$0xff] %v1660_v49  ;;  %9510 = vst [vmem:[%s16180_s13 + $0x78] sm:$0xff] %v1660_v49  ;;  %740 = vmatprep.mubr.f32.mxu0 %v120_v31  ;;  %811 = vmatprep.mubr.f32.mxu1 %v120_v31  ;;  %v10641_v33 = vpop.permute.xlu1 %2172  ;;  %v322_v49 = vld [vmem:[#allocation4 + $0x160] sm:$0xff]  ;;  %v2647_v31 = vrot.slane %v10463_v19, %v10388_v11  ;;  %v365_v18 = vld [vmem:[#allocation4 + $0x2b8] sm:$0xff] }
 0x1e2   :  { %16728 = vst [vmem:[#allocation68_spill] sm:$0xff] %v10627_v57  ;;  %16730 = vst [vmem:[#allocation70_spill] sm:$0xff] %v10637_v13  ;;  %v2237_v55 = vmul.f32 0.0, %v10641_v33  ;;  %8273 = vmatprep.subr.bf16.mxu0 %v10627_v57  ;;  %8337 = vmatprep.subr.bf16.mxu1 %v10629_v0  ;;  %v10655_v1 = vpack.c.bf16 %v322_v49, %v314_v39  ;;  %v338_v0 = vld [vmem:[#allocation4 + $0x1e0] sm:$0xff]  ;;  %v340_v57 = vld [vmem:[#allocation4 + $0x1f0] sm:$0xff]  ;;  %v10668_v39 = vpack.c.bf16 %v341_v17, %v333_v15 }
 0x1e3   :  { %16731 = vst [vmem:[#allocation71_spill] sm:$0xff] %v10639_v53  ;;  %16732 = vst [vmem:[#allocation72_spill] sm:$0xff] %v10641_v33  ;;  %2444 = vrot.lane.b32.xlu1 %v2399_v24, %s9866_s24  ;;  %v330_v33 = vld [vmem:[#allocation4 + $0x1a0] sm:$0xff]  ;;  %v10665_v24 = vpack.c.bf16 %v339_v20, %v331_v62  ;;  %v349_v49 = vld [vmem:[#allocation4 + $0x238] sm:$0xff] }
 0x1e4   :  { %16733 = vst [vmem:[#allocation73_spill] sm:$0xff] %v10643_v14  ;;  %16734 = vst [vmem:[#allocation74_spill] sm:$0xff] %v10648_v8  ;;  %8275 = vmatpush1.bf16.msra.mxu0 %v10637_v13  ;;  %8339 = vmatpush1.bf16.msra.mxu1 %v10639_v53  ;;  %v332_v13 = vld [vmem:[#allocation4 + $0x1b0] sm:$0xff]  ;;  %v346_v53 = vld [vmem:[#allocation4 + $0x220] sm:$0xff]  ;;  %v10675_v62 = vpack.c.bf16 %v338_v0, %v330_v33 }
 0x1e5   :  { %16735 = vst [vmem:[#allocation75_spill] sm:$0xff] %v10655_v1  ;;  %16736 = vst [vmem:[#allocation76_spill] sm:$0xff] %v10657_v25  ;;  %2271 = vrot.lane.b32.xlu0 %v2237_v55, %s9872_s14  ;;  %8277 = vmatprep.subr.bf16.mxu0 %v10643_v14  ;;  %v10663_v58 = vpop.permute.xlu1 %2174  ;;  %v357_v55 = vld [vmem:[#allocation4 + $0x278] sm:$0xff]  ;;  %v2903_v14 = vrot.slane %v10474_v32, %v10388_v11  ;;  %v10677_v20 = vpack.c.bf16 %v340_v57, %v332_v13  ;;  %v354_v0 = vld [vmem:[#allocation4 + $0x260] sm:$0xff] }
 0x1e6   :  { %16737 = vst [vmem:[#allocation77_spill] sm:$0xff] %v10663_v58  ;;  %16738 = vst [vmem:[#allocation78_spill] sm:$0xff] %v10665_v24  ;;  %8341 = vmatprep.subr.bf16.mxu1 %v10648_v8  ;;  %v8048_v17 = vld [vmem:[%s16169_s2 + $0x42] ss:$8 sm:$0xf]  ;;  %v10689_v58 = vpack.c.bf16 %v355_v7, %v347_v59  ;;  %v4035_v59 = vrot.slane %v10566_v21, %v10361_v63 }
 0x1e7   :  { %16739 = vst [vmem:[#allocation79_spill] sm:$0xff] %v10668_v39  ;;  %2696 = vrot.lane.b32.xlu1 %v2647_v31, %s9867_s29  ;;  %16740 = vst [vmem:[#allocation80_spill] sm:$0xff] %v10675_v62  ;;  %v8049_v15 = vld [vmem:[%s16169_s2 + $0x42] ss:$8 sm:$0xf0]  ;;  %v2379_v31 = vrot.slane %v10446_v50, %v10407_v48 }
 0x1e8   :  { %8279 = vmatpush1.bf16.msra.mxu0 %v10655_v1  ;;  %8343 = vmatpush1.bf16.msra.mxu1 %v10657_v25  ;;  %16741 = vst [vmem:[#allocation81_spill] sm:$0xff] %v10677_v20  ;;  %16742 = vst [vmem:[#allocation82_spill] sm:$0xff] %v10689_v58  ;;  %v348_v57 = vld [vmem:[#allocation4 + $0x230] sm:$0xff]  ;;  %v10694_v25 = vpack.c.bf16 %v357_v55, %v349_v49  ;;  %v363_v1 = vld [vmem:[#allocation4 + $0x2a8] sm:$0xff]  ;;  %v10699_v7 = vor.u32 %v8049_v15, %v8048_v17 }
 0x1e9   :  { %2430 = vrot.lane.b32.xlu0 %v2371_v6, %s9866_s24  ;;  %8281 = vmatprep.subr.bf16.mxu0 %v10665_v24  ;;  %v356_v13 = vld [vmem:[#allocation4 + $0x270] sm:$0xff]  ;;  %v10691_v33 = vpop.permute.xlu1 %2176  ;;  %v371_v8 = vld [vmem:[#allocation4 + $0x2e8] sm:$0xff]  ;;  %v373_v6 = vld [vmem:[#allocation4 + $0x2f8] sm:$0xff]  ;;  %v2623_v17 = vrot.slane %v10463_v19, %v10376_v12 }
 0x1ea   :  { %16743 = vst [vmem:[#allocation83_spill] sm:$0xff] %v10691_v33  ;;  %8345 = vmatprep.subr.bf16.mxu1 %v10668_v39  ;;  %16744 = vst [vmem:[#allocation84_spill] sm:$0xff] %v10694_v25  ;;  %v10703_v33 = vpack.c.bf16 %v354_v0, %v346_v53  ;;  %v10705_v49 = vpack.c.bf16 %v356_v13, %v348_v57  ;;  %v8052_v55 = vld [vmem:[%s16169_s2 + $0x43] ss:$8 sm:$0xf]  ;;  %v10717_v15 = vpack.c.bf16 %v371_v8, %v363_v1 }
 0x1eb   :  { %2952 = vrot.lane.b32.xlu1 %v2903_v14, %s9868_s30  ;;  %v8053_v14 = vld [vmem:[%s16169_s2 + $0x43] ss:$8 sm:$0xf0] }
 0x1ec   :  { %8283 = vmatpush1.bf16.msra.mxu0 %v10675_v62  ;;  %8347 = vmatpush1.bf16.msra.mxu1 %v10677_v20  ;;  %16745 = vst [vmem:[#allocation85_spill] sm:$0xff] %v10703_v33  ;;  %16746 = vst [vmem:[#allocation86_spill] sm:$0xff] %v10705_v49  ;;  %v370_v53 = vld [vmem:[#allocation4 + $0x2e0] sm:$0xff]  ;;  %v364_v0 = vld [vmem:[#allocation4 + $0x2b0] sm:$0xff]  ;;  %v10722_v20 = vpack.c.bf16 %v373_v6, %v365_v18  ;;  %v10727_v8 = vor.u32 %v8053_v14, %v8052_v55 }
 0x1ed   :  { %2434 = vrot.lane.b32.xlu0 %v2379_v31, %s9866_s24  ;;  %8285 = vmatprep.subr.bf16.mxu0 %v10689_v58  ;;  %16747 = vst [vmem:[#allocation87_spill] sm:$0xff] %v10717_v15  ;;  %v372_v57 = vld [vmem:[#allocation4 + $0x2f0] sm:$0xff]  ;;  %v10719_v13 = vpop.permute.xlu1 %2178  ;;  %v379_v62 = vld [vmem:[#allocation4 + $0x328] sm:$0xff]  ;;  %v381_v24 = vld [vmem:[#allocation4 + $0x338] sm:$0xff]  ;;  %v2655_v58 = vrot.slane %v10699_v7, %v10376_v12  ;;  %v10731_v1 = vpack.c.bf16 %v370_v53, %v362_v54 }
 0x1ee   :  { %16748 = vst [vmem:[#allocation88_spill] sm:$0xff] %v10719_v13  ;;  %8349 = vmatprep.subr.bf16.mxu1 %v10694_v25  ;;  %16749 = vst [vmem:[#allocation89_spill] sm:$0xff] %v10722_v20  ;;  %v387_v39 = vld [vmem:[#allocation4 + $0x368] sm:$0xff]  ;;  %v389_v31 = vld [vmem:[#allocation4 + $0x378] sm:$0xff]  ;;  %v10733_v13 = vpack.c.bf16 %v372_v57, %v364_v0  ;;  %v2631_v6 = vrot.slane %v10463_v19, %v10336_v40 }
 0x1ef   :  { %4088 = vrot.lane.b32.xlu1 %v4035_v59, %s9872_s14  ;;  %16750 = vst [vmem:[#allocation90_spill] sm:$0xff] %v10731_v1  ;;  %v378_v18 = vld [vmem:[#allocation4 + $0x320] sm:$0xff]  ;;  %v10739_v59 = vpack.c.bf16 %v387_v39, %v379_v62  ;;  %v380_v14 = vld [vmem:[#allocation4 + $0x330] sm:$0xff]  ;;  %v10744_v54 = vpack.c.bf16 %v389_v31, %v381_v24  ;;  %v395_v53 = vld [vmem:[#allocation4 + $0x3a8] sm:$0xff]  ;;  %v2911_v39 = vrot.slane %v10727_v8, %v10376_v12 }
 0x1f0   :  { %8287 = vmatpush1.bf16.msra.mxu0 %v10703_v33  ;;  %8351 = vmatpush1.bf16.msra.mxu1 %v10705_v49  ;;  %16751 = vst [vmem:[#allocation91_spill] sm:$0xff] %v10733_v13  ;;  %v386_v55 = vld [vmem:[#allocation4 + $0x360] sm:$0xff]  ;;  %v388_v25 = vld [vmem:[#allocation4 + $0x370] sm:$0xff]  ;;  %v403_v0 = vld [vmem:[#allocation4 + $0x3e8] sm:$0xff] }
 0x1f1   :  { %2684 = vrot.lane.b32.xlu0 %v2623_v17, %s9867_s29  ;;  %8289 = vmatprep.subr.bf16.mxu0 %v10717_v15  ;;  %16752 = vst [vmem:[#allocation92_spill] sm:$0xff] %v10739_v59  ;;  %v10741_v33 = vpop.permute.xlu1 %2180  ;;  %16754 = vst [vmem:[#allocation94_spill] sm:$0xff] %v10744_v54  ;;  %v397_v57 = vld [vmem:[#allocation4 + $0x3b8] sm:$0xff]  ;;  %v394_v49 = vld [vmem:[#allocation4 + $0x3a0] sm:$0xff]  ;;  %v10751_v62 = vpack.c.bf16 %v386_v55, %v378_v18 }
 0x1f2   :  { %16753 = vst [vmem:[#allocation93_spill] sm:$0xff] %v10741_v33  ;;  %8353 = vmatprep.subr.bf16.mxu1 %v10722_v20  ;;  %v405_v17 = vld [vmem:[#allocation4 + $0x3f8] sm:$0xff]  ;;  %v10753_v33 = vpack.c.bf16 %v388_v25, %v380_v14  ;;  %v402_v18 = vld [vmem:[#allocation4 + $0x3e0] sm:$0xff]  ;;  %v396_v25 = vld [vmem:[#allocation4 + $0x3b0] sm:$0xff] }
 0x1f3   :  { %2700 = vrot.lane.b32.xlu1 %v2655_v58, %s9867_s29  ;;  %16755 = vst [vmem:[#allocation95_spill] sm:$0xff] %v10751_v62  ;;  %v8060_v24 = vld [vmem:[%s16169_s2 + $0x45] ss:$8 sm:$0xf]  ;;  %v2883_v58 = vrot.slane %v10474_v32, %v10395_v46 }
 0x1f4   :  { %8291 = vmatpush1.bf16.msra.mxu0 %v10731_v1  ;;  %8355 = vmatpush1.bf16.msra.mxu1 %v10733_v13  ;;  %16756 = vst [vmem:[#allocation96_spill] sm:$0xff] %v10753_v33  ;;  %v8061_v31 = vld [vmem:[%s16169_s2 + $0x45] ss:$8 sm:$0xf0]  ;;  %v10765_v13 = vpack.c.bf16 %v403_v0, %v395_v53  ;;  %v10770_v1 = vpack.c.bf16 %v405_v17, %v397_v57 }
 0x1f5   :  { %2688 = vrot.lane.b32.xlu0 %v2631_v6, %s9867_s29  ;;  %8293 = vmatprep.subr.bf16.mxu0 %v10739_v59  ;;  %v404_v55 = vld [vmem:[#allocation4 + $0x3f0] sm:$0xff]  ;;  %v10767_v14 = vpop.permute.xlu1 %2182  ;;  %v411_v20 = vld [vmem:[#allocation4 + $0x428] sm:$0xff]  ;;  %v413_v6 = vld [vmem:[#allocation4 + $0x438] sm:$0xff]  ;;  %v3281_v53 = vrot.slane %v10494_v29, %v10388_v11  ;;  %v10777_v0 = vor.u32 %v8061_v31, %v8060_v24  ;;  %v10783_v57 = vpack.c.bf16 %v402_v18, %v394_v49 }
 0x1f6   :  { %16757 = vst [vmem:[#allocation97_spill] sm:$0xff] %v10765_v13  ;;  %16758 = vst [vmem:[#allocation98_spill] sm:$0xff] %v10767_v14  ;;  %8357 = vmatprep.subr.bf16.mxu1 %v10744_v54  ;;  %v419_v15 = vld [vmem:[#allocation4 + $0x468] sm:$0xff]  ;;  %v421_v59 = vld [vmem:[#allocation4 + $0x478] sm:$0xff]  ;;  %v10785_v17 = vpack.c.bf16 %v404_v55, %v396_v25 }
 0x1f7   :  { %16759 = vst [vmem:[#allocation99_spill] sm:$0xff] %v10770_v1  ;;  %2956 = vrot.lane.b32.xlu1 %v2911_v39, %s9868_s30  ;;  %16762 = vst [vmem:[#allocation102_spill] sm:$0xff] %v10783_v57  ;;  %v2635_v39 = vrot.slane %v10463_v19, %v10407_v48  ;;  %v10791_v24 = vpack.c.bf16 %v419_v15, %v411_v20  ;;  %v418_v31 = vld [vmem:[#allocation4 + $0x460] sm:$0xff]  ;;  %v412_v14 = vld [vmem:[#allocation4 + $0x430] sm:$0xff]  ;;  %v10796_v49 = vpack.c.bf16 %v421_v59, %v413_v6 }
 0x1f8   :  { %8295 = vmatpush1.bf16.msra.mxu0 %v10751_v62  ;;  %8359 = vmatpush1.bf16.msra.mxu1 %v10753_v33  ;;  %16763 = vst [vmem:[#allocation103_spill] sm:$0xff] %v10785_v17  ;;  %v427_v18 = vld [vmem:[#allocation4 + $0x4a8] sm:$0xff]  ;;  %v429_v55 = vld [vmem:[#allocation4 + $0x4b8] sm:$0xff]  ;;  %v10803_v20 = vpack.c.bf16 %v418_v31, %v410_v44  ;;  %v10805_v15 = vpack.c.bf16 %v420_v41, %v412_v14  ;;  %v436_v33 = vld [vmem:[#allocation4 + $0x4f0] sm:$0xff] }
 0x1f9   :  { %2942 = vrot.lane.b32.xlu0 %v2883_v58, %s9868_s30  ;;  %8297 = vmatprep.subr.bf16.mxu0 %v10765_v13  ;;  %16764 = vst [vmem:[#allocation104_spill] sm:$0xff] %v10791_v24  ;;  %v10793_v62 = vpop.permute.xlu1 %2184  ;;  %16766 = vst [vmem:[#allocation106_spill] sm:$0xff] %v10796_v49  ;;  %v435_v25 = vld [vmem:[#allocation4 + $0x4e8] sm:$0xff]  ;;  %v437_v58 = vld [vmem:[#allocation4 + $0x4f8] sm:$0xff]  ;;  %v3289_v13 = vrot.slane %v10777_v0, %v10376_v12  ;;  %v2891_v59 = vrot.slane %v10474_v32, %v10407_v48 }
 0x1fa   :  { %16765 = vst [vmem:[#allocation105_spill] sm:$0xff] %v10793_v62  ;;  %8361 = vmatprep.subr.bf16.mxu1 %v10770_v1  ;;  %16767 = vst [vmem:[#allocation107_spill] sm:$0xff] %v10803_v20  ;;  %v426_v62 = vld [vmem:[#allocation4 + $0x4a0] sm:$0xff]  ;;  %v10811_v6 = vpack.c.bf16 %v435_v25, %v427_v18  ;;  %v428_v1 = vld [vmem:[#allocation4 + $0x4b0] sm:$0xff]  ;;  %v10816_v44 = vpack.c.bf16 %v437_v58, %v429_v55  ;;  %v3535_v18 = vrot.slane %v10508_v3, %v10388_v11 }
 0x1fb   :  { %3330 = vrot.lane.b32.xlu1 %v3281_v53, %s9869_s21  ;;  %16768 = vst [vmem:[#allocation108_spill] sm:$0xff] %v10805_v15  ;;  %v434_v53 = vld [vmem:[#allocation4 + $0x4e0] sm:$0xff]  ;;  %v443_v41 = vld [vmem:[#allocation4 + $0x528] sm:$0xff]  ;;  %v445_v31 = vld [vmem:[#allocation4 + $0x538] sm:$0xff] }
 0x1fc   :  { %8299 = vmatpush1.bf16.msra.mxu0 %v10783_v57  ;;  %8363 = vmatpush1.bf16.msra.mxu1 %v10785_v17  ;;  %16769 = vst [vmem:[#allocation109_spill] sm:$0xff] %v10811_v6  ;;  %16771 = vst [vmem:[#allocation111_spill] sm:$0xff] %v10816_v44  ;;  %v451_v14 = vld [vmem:[#allocation4 + $0x568] sm:$0xff]  ;;  %v442_v17 = vld [vmem:[#allocation4 + $0x520] sm:$0xff]  ;;  %v10823_v25 = vpack.c.bf16 %v434_v53, %v426_v62 }
 0x1fd   :  { %2690 = vrot.lane.b32.xlu0 %v2635_v39, %s9867_s29  ;;  %8301 = vmatprep.subr.bf16.mxu0 %v10791_v24  ;;  %v10813_v57 = vpop.permute.xlu1 %2186  ;;  %v453_v39 = vld [vmem:[#allocation4 + $0x578] sm:$0xff]  ;;  %v450_v62 = vld [vmem:[#allocation4 + $0x560] sm:$0xff]  ;;  %v467_v24 = vld [vmem:[#allocation4 + $0x5e8] sm:$0xff] }
 0x1fe   :  { %16770 = vst [vmem:[#allocation110_spill] sm:$0xff] %v10813_v57  ;;  %8365 = vmatprep.subr.bf16.mxu1 %v10796_v49  ;;  %16772 = vst [vmem:[#allocation112_spill] sm:$0xff] %v10823_v25  ;;  %v10825_v57 = vpack.c.bf16 %v436_v33, %v428_v1  ;;  %v8064_v55 = vld [vmem:[%s16169_s2 + $0x46] ss:$8 sm:$0xf] }
 0x1ff   :  { %3334 = vrot.lane.b32.xlu1 %v3289_v13, %s9869_s21  ;;  %v8065_v58 = vld [vmem:[%s16169_s2 + $0x46] ss:$8 sm:$0xf0]  ;;  %v3257_v13 = vrot.slane %v10494_v29, %v10376_v12 }
 0x200   :  { %8303 = vmatpush1.bf16.msra.mxu0 %v10803_v20  ;;  %8367 = vmatpush1.bf16.msra.mxu1 %v10805_v15  ;;  %16773 = vst [vmem:[#allocation113_spill] sm:$0xff] %v10825_v57  ;;  %v10837_v15 = vpack.c.bf16 %v451_v14, %v443_v41  ;;  %v444_v33 = vld [vmem:[#allocation4 + $0x530] sm:$0xff]  ;;  %v10842_v20 = vpack.c.bf16 %v453_v39, %v445_v31  ;;  %v459_v49 = vld [vmem:[#allocation4 + $0x5a8] sm:$0xff]  ;;  %v461_v54 = vld [vmem:[#allocation4 + $0x5b8] sm:$0xff] }
 0x201   :  { %2946 = vrot.lane.b32.xlu0 %v2891_v59, %s9868_s30  ;;  %8305 = vmatprep.subr.bf16.mxu0 %v10811_v6  ;;  %v452_v1 = vld [vmem:[#allocation4 + $0x570] sm:$0xff]  ;;  %v10839_v53 = vpop.permute.xlu1 %2188  ;;  %v469_v59 = vld [vmem:[#allocation4 + $0x5f8] sm:$0xff]  ;;  %v458_v48 = vld [vmem:[#allocation4 + $0x5a0] sm:$0xff]  ;;  %v3789_v41 = vrot.slane %v10522_v2, %v10388_v11  ;;  %v10847_v14 = vor.u32 %v8065_v58, %v8064_v55  ;;  %v3265_v55 = vrot.slane %v10494_v29, %v10336_v40 }
 0x202   :  { %16774 = vst [vmem:[#allocation114_spill] sm:$0xff] %v10837_v15  ;;  %16775 = vst [vmem:[#allocation115_spill] sm:$0xff] %v10839_v53  ;;  %8369 = vmatprep.subr.bf16.mxu1 %v10816_v44  ;;  %v10851_v53 = vpack.c.bf16 %v450_v62, %v442_v17  ;;  %v10853_v31 = vpack.c.bf16 %v452_v1, %v444_v33  ;;  %v8068_v39 = vld [vmem:[%s16169_s2 + $0x47] ss:$8 sm:$0xf]  ;;  %v10865_v58 = vpack.c.bf16 %v467_v24, %v459_v49 }
 0x203   :  { %16776 = vst [vmem:[#allocation116_spill] sm:$0xff] %v10842_v20  ;;  %3584 = vrot.lane.b32.xlu1 %v3535_v18, %s9870_s1  ;;  %v8069_v18 = vld [vmem:[%s16169_s2 + $0x47] ss:$8 sm:$0xf0] }
 0x204   :  { %8307 = vmatpush1.bf16.msra.mxu0 %v10823_v25  ;;  %8371 = vmatpush1.bf16.msra.mxu1 %v10825_v57  ;;  %16777 = vst [vmem:[#allocation117_spill] sm:$0xff] %v10851_v53  ;;  %16778 = vst [vmem:[#allocation118_spill] sm:$0xff] %v10853_v31  ;;  %v466_v17 = vld [vmem:[#allocation4 + $0x5e0] sm:$0xff]  ;;  %v460_v62 = vld [vmem:[#allocation4 + $0x5b0] sm:$0xff]  ;;  %v10870_v57 = vpack.c.bf16 %v469_v59, %v461_v54  ;;  %v10875_v24 = vor.u32 %v8069_v18, %v8068_v39 }
 0x205   :  { %3318 = vrot.lane.b32.xlu0 %v3257_v13, %s9869_s21  ;;  %8309 = vmatprep.subr.bf16.mxu0 %v10837_v15  ;;  %16779 = vst [vmem:[#allocation119_spill] sm:$0xff] %v10865_v58  ;;  %v468_v33 = vld [vmem:[#allocation4 + $0x5f0] sm:$0xff]  ;;  %v10867_v1 = vpop.permute.xlu1 %2190  ;;  %v475_v25 = vld [vmem:[#allocation4 + $0x628] sm:$0xff]  ;;  %v477_v6 = vld [vmem:[#allocation4 + $0x638] sm:$0xff]  ;;  %v3543_v15 = vrot.slane %v10847_v14, %v10376_v12  ;;  %v10879_v49 = vpack.c.bf16 %v466_v17, %v458_v48 }
 0x206   :  { %16780 = vst [vmem:[#allocation120_spill] sm:$0xff] %v10867_v1  ;;  %8373 = vmatprep.subr.bf16.mxu1 %v10842_v20  ;;  %16781 = vst [vmem:[#allocation121_spill] sm:$0xff] %v10870_v57  ;;  %v483_v44 = vld [vmem:[#allocation4 + $0x668] sm:$0xff]  ;;  %v485_v13 = vld [vmem:[#allocation4 + $0x678] sm:$0xff]  ;;  %v10881_v1 = vpack.c.bf16 %v468_v33, %v460_v62  ;;  %v3273_v59 = vrot.slane %v10494_v29, %v10361_v63 }
 0x207   :  { %3838 = vrot.lane.b32.xlu1 %v3789_v41, %s9871_s26  ;;  %16782 = vst [vmem:[#allocation122_spill] sm:$0xff] %v10879_v49  ;;  %v474_v54 = vld [vmem:[#allocation4 + $0x620] sm:$0xff]  ;;  %v10887_v41 = vpack.c.bf16 %v483_v44, %v475_v25  ;;  %v476_v18 = vld [vmem:[#allocation4 + $0x630] sm:$0xff]  ;;  %v10892_v48 = vpack.c.bf16 %v485_v13, %v477_v6  ;;  %v491_v17 = vld [vmem:[#allocation4 + $0x6a8] sm:$0xff]  ;;  %v3515_v6 = vrot.slane %v10508_v3, %v10395_v46 }
 0x208   :  { %8311 = vmatpush1.bf16.msra.mxu0 %v10851_v53  ;;  %8375 = vmatpush1.bf16.msra.mxu1 %v10853_v31  ;;  %16783 = vst [vmem:[#allocation123_spill] sm:$0xff] %v10881_v1  ;;  %v482_v39 = vld [vmem:[#allocation4 + $0x660] sm:$0xff]  ;;  %v484_v20 = vld [vmem:[#allocation4 + $0x670] sm:$0xff]  ;;  %v499_v62 = vld [vmem:[#allocation4 + $0x6e8] sm:$0xff] }
 0x209   :  { %3322 = vrot.lane.b32.xlu0 %v3265_v55, %s9869_s21  ;;  %8313 = vmatprep.subr.bf16.mxu0 %v10865_v58  ;;  %16784 = vst [vmem:[#allocation124_spill] sm:$0xff] %v10887_v41  ;;  %v10889_v53 = vpop.permute.xlu1 %2194  ;;  %16786 = vst [vmem:[#allocation126_spill] sm:$0xff] %v10892_v48  ;;  %v493_v33 = vld [vmem:[#allocation4 + $0x6b8] sm:$0xff]  ;;  %v3797_v58 = vrot.slane %v10875_v24, %v10376_v12  ;;  %v10899_v44 = vpack.c.bf16 %v482_v39, %v474_v54  ;;  %v498_v13 = vld [vmem:[#allocation4 + $0x6e0] sm:$0xff] }
 0x20a   :  { %16785 = vst [vmem:[#allocation125_spill] sm:$0xff] %v10889_v53  ;;  %8377 = vmatprep.subr.bf16.mxu1 %v10870_v57  ;;  %v501_v55 = vld [vmem:[#allocation4 + $0x6f8] sm:$0xff]  ;;  %v10901_v25 = vpack.c.bf16 %v484_v20, %v476_v18  ;;  %v490_v53 = vld [vmem:[#allocation4 + $0x6a0] sm:$0xff]  ;;  %v492_v57 = vld [vmem:[#allocation4 + $0x6b0] sm:$0xff] }
 0x20b   :  { %3588 = vrot.lane.b32.xlu1 %v3543_v15, %s9870_s1  ;;  %16787 = vst [vmem:[#allocation127_spill] sm:$0xff] %v10899_v44  ;;  %v10907_v15 = vpack.c.bf16 %v499_v62, %v491_v17  ;;  %v500_v31 = vld [vmem:[#allocation4 + $0x6f0] sm:$0xff]  ;;  %v10912_v54 = vpack.c.bf16 %v501_v55, %v493_v33  ;;  %v507_v20 = vld [vmem:[#allocation4 + $0x728] sm:$0xff]  ;;  %v509_v18 = vld [vmem:[#allocation4 + $0x738] sm:$0xff]  ;;  %v10919_v17 = vpack.c.bf16 %v498_v13, %v490_v53 }
 0x20c   :  { %8315 = vmatpush1.bf16.msra.mxu0 %v10879_v49  ;;  %8379 = vmatpush1.bf16.msra.mxu1 %v10881_v1  ;;  %16788 = vst [vmem:[#allocation128_spill] sm:$0xff] %v10901_v25  ;;  %v515_v39 = vld [vmem:[#allocation4 + $0x768] sm:$0xff]  ;;  %v10921_v62 = vpack.c.bf16 %v500_v31, %v492_v57  ;;  %v3765_v33 = vrot.slane %v10522_v2, %v10376_v12  ;;  %v514_v55 = vld [vmem:[#allocation4 + $0x760] sm:$0xff]  ;;  %v516_v1 = vld [vmem:[#allocation4 + $0x770] sm:$0xff] }
 0x20d   :  { %3326 = vrot.lane.b32.xlu0 %v3273_v59, %s9869_s21  ;;  %8317 = vmatprep.subr.bf16.mxu0 %v10887_v41  ;;  %16789 = vst [vmem:[#allocation129_spill] sm:$0xff] %v10907_v15  ;;  %v10909_v49 = vpop.permute.xlu1 %2198  ;;  %16791 = vst [vmem:[#allocation131_spill] sm:$0xff] %v10912_v54  ;;  %v517_v59 = vld [vmem:[#allocation4 + $0x778] sm:$0xff]  ;;  %v2407_v41 = vrot.slane %v10591_v35, %v10336_v40  ;;  %v523_v53 = vld [vmem:[#allocation4 + $0x7a8] sm:$0xff] }
 0x20e   :  { %16790 = vst [vmem:[#allocation130_spill] sm:$0xff] %v10909_v49  ;;  %8381 = vmatprep.subr.bf16.mxu1 %v10892_v48  ;;  %16792 = vst [vmem:[#allocation132_spill] sm:$0xff] %v10921_v62  ;;  %v506_v49 = vld [vmem:[#allocation4 + $0x720] sm:$0xff]  ;;  %v508_v48 = vld [vmem:[#allocation4 + $0x730] sm:$0xff] }
 0x20f   :  { %3842 = vrot.lane.b32.xlu1 %v3797_v58, %s9871_s26  ;;  %v10927_v58 = vpack.c.bf16 %v515_v39, %v507_v20  ;;  %v531_v57 = vld [vmem:[#allocation4 + $0x7e8] sm:$0xff]  ;;  %v525_v13 = vld [vmem:[#allocation4 + $0x7b8] sm:$0xff]  ;;  %v10939_v20 = vpack.c.bf16 %v514_v55, %v506_v49  ;;  %v10941_v39 = vpack.c.bf16 %v516_v1, %v508_v48  ;;  %v2415_v1 = vrot.slane %v10591_v35, %v10361_v63 }
 0x210   :  { %8319 = vmatpush1.bf16.msra.mxu0 %v10899_v44  ;;  %8383 = vmatpush1.bf16.msra.mxu1 %v10901_v25  ;;  %v10930_v25 = vpack.c.bf16 %v517_v59, %v509_v18  ;;  %v522_v18 = vld [vmem:[#allocation4 + $0x7a0] sm:$0xff]  ;;  %v3773_v59 = vrot.slane %v10522_v2, %v10336_v40  ;;  %v532_v44 = vld [vmem:[#allocation4 + $0x7f0] sm:$0xff]  ;;  %v2663_v55 = vrot.slane %v10699_v7, %v10336_v40 }
 0x211   :  { %3574 = vrot.lane.b32.xlu0 %v3515_v6, %s9870_s1  ;;  %8321 = vmatprep.subr.bf16.mxu0 %v10907_v15  ;;  %v10932_v31 = vpop.permute.xlu1 %2202  ;;  %v533_v6 = vld [vmem:[#allocation4 + $0x7f8] sm:$0xff]  ;;  %v4043_v15 = vrot.slane %v10566_v21, %v10388_v11 }
 0x212   :  { %8385 = vmatprep.subr.bf16.mxu1 %v10912_v54  ;;  %16793 = vst [vmem:[#allocation133_spill] sm:$0xff] %v10932_v31  ;;  %v530_v31 = vld [vmem:[#allocation4 + $0x7e0] sm:$0xff]  ;;  %v524_v54 = vld [vmem:[#allocation4 + $0x7b0] sm:$0xff] }
 0x213   :  { %2448 = vrot.lane.b32.xlu1 %v2407_v41, %s9866_s24  ;;  %v10947_v41 = vpack.c.bf16 %v531_v57, %v523_v53  ;;  %v10957_v49 = vpack.c.bf16 %v530_v31, %v522_v18  ;;  %v10959_v48 = vpack.c.bf16 %v532_v44, %v524_v54  ;;  %v3781_v44 = vrot.slane %v10522_v2, %v10361_v63  ;;  %v16803_v57 = vld [vmem:[#allocation14_spill] sm:$0xff]  ;;  %v16806_v18 = vld [vmem:[#allocation16_spill] sm:$0xff] }
 0x214   :  { %8323 = vmatpush1.bf16.msra.mxu0 %v10919_v17  ;;  %8387 = vmatpush1.bf16.msra.mxu1 %v10921_v62  ;;  %v10950_v62 = vpack.c.bf16 %v533_v6, %v525_v13  ;;  %v3305_v13 = vrot.slane %v10777_v0, %v10361_v63  ;;  %v16805_v6 = vld [vmem:[#allocation15_spill] sm:$0xff] }
 0x215   :  { %3826 = vrot.lane.b32.xlu0 %v3765_v33, %s9871_s26  ;;  %8325 = vmatprep.subr.bf16.mxu0 %v10927_v58  ;;  %v10961_v33 = vpop.permute.xlu1 %2428 }
 0x216   :  { %8389 = vmatprep.subr.bf16.mxu1 %v10930_v25  ;;  %16794 = vst [vmem:[#allocation134_spill] sm:$0xff] %v10961_v33 }
 0x217   :  { %4092 = vrot.lane.b32.xlu1 %v4043_v15, %s9872_s14  ;;  %v3527_v15 = vrot.slane %v10508_v3, %v10361_v63 }
 0x218   :  { %8327 = vmatpush1.bf16.msra.mxu0 %v10939_v20  ;;  %8391 = vmatpush1.bf16.msra.mxu1 %v10941_v39 }
 0x219   :  { %3830 = vrot.lane.b32.xlu0 %v3773_v59, %s9871_s26  ;;  %8329 = vmatprep.subr.bf16.mxu0 %v10947_v41  ;;  %v10976_v54 = vpop.permute.xlu1 %2432  ;;  %v16807_v59 = vld [vmem:[#allocation17_spill] sm:$0xff] }
 0x21a   :  { %8393 = vmatprep.subr.bf16.mxu1 %v10950_v62 }
 0x21b   :  { %2452 = vrot.lane.b32.xlu1 %v2415_v1, %s9866_s24  ;;  %v2651_v1 = vrot.slane %v10463_v19, %v10421_v45 }
 0x21c   :  { %8331 = vmatpush1.bf16.msra.mxu0 %v10957_v49  ;;  %8395 = vmatpush1.bf16.msra.mxu1 %v10959_v48 }
 0x21d   :  { %3580 = vrot.lane.b32.xlu0 %v3527_v15, %s9870_s1  ;;  %8397 = vmatprep.subr.bf16.mxu0 %v10152_v34  ;;  %v8072_v34 = vld [vmem:[%s16169_s2 + $0xc0] ss:$8 sm:$0xf] }
 0x21e   :  { %8461 = vmatprep.subr.bf16.mxu1 %v10156_v38  ;;  %v8073_v38 = vld [vmem:[%s16169_s2 + $0xc0] ss:$8 sm:$0xf0] }
 0x21f   :  { %741 = vmatmul.mubr.f32.vlgmr.msra.gmra.mrb[4].mxu0 %v10593_v30  ;;  %812 = vmatmul.mubr.f32.vlgmr.msra.gmra.mrb[4].mxu1 %v10593_v30  ;;  %v2391_v30 = vrot.slane %v10446_v50, %v10388_v11  ;;  %v16808_v15 = vld [vmem:[#allocation18_spill] sm:$0xff] }
 0x220   :  { %8399 = vmatpush1.bf16.msra.mxu0 %v10161_v42  ;;  %8463 = vmatpush1.bf16.msra.mxu1 %v10163_v43  ;;  %v2919_v42 = vrot.slane %v10727_v8, %v10336_v40  ;;  %v11000_v43 = vor.u32 %v8073_v38, %v8072_v34  ;;  %v16810_v34 = vld [vmem:[#allocation20_spill] sm:$0xff] }
 0x221   :  { %3834 = vrot.lane.b32.xlu0 %v3781_v44, %s9871_s26  ;;  %8401 = vmatprep.subr.bf16.mxu0 %v10166_v47  ;;  %v11004_v47 = vpop.permute.xlu1 %2436  ;;  %v3551_v44 = vrot.slane %v10847_v14, %v10336_v40 }
 0x222   :  { %8465 = vmatprep.subr.bf16.mxu1 %v10170_v51  ;;  %888 = vmatprep.mubr.f32.mxu0 %v10601_v16  ;;  %16795 = vst [vmem:[#allocation135_spill] sm:$0xff] %v11004_v47  ;;  %v4023_v51 = vrot.slane %v10566_v21, %v10395_v46  ;;  %v4051_v53 = vrot.slane %v11000_v43, %v10376_v12  ;;  %v16909_v47 = vld [vmem:[#allocation123_spill] sm:$0xff] }
 0x223   :  { %959 = vmatprep.mubr.f32.mxu1 %v10601_v16  ;;  %2704 = vrot.lane.b32.xlu1 %v2663_v55, %s9867_s29  ;;  %v16809_v55 = vld [vmem:[#allocation19_spill] sm:$0xff] }
 0x224   :  { %8403 = vmatpush1.bf16.msra.mxu0 %v10172_v52  ;;  %8467 = vmatpush1.bf16.msra.mxu1 %v10175_v56  ;;  %v2395_v52 = vrot.slane %v10446_v50, %v10421_v45 }
 0x225   :  { %2440 = vrot.lane.b32.xlu0 %v2391_v30, %s9866_s24  ;;  %8405 = vmatprep.subr.bf16.mxu0 %v10178_v60  ;;  %v11021_v56 = vpop.permute.xlu1 %2686  ;;  %v2671_v60 = vrot.slane %v10699_v7, %v10361_v63  ;;  %v16811_v30 = vld [vmem:[#allocation21_spill] sm:$0xff] }
 0x226   :  { %8469 = vmatprep.subr.bf16.mxu1 %v10180_v61  ;;  %16796 = vst [vmem:[#allocation136_spill] sm:$0xff] %v11021_v56  ;;  %v2643_v61 = vrot.slane %v10463_v19, %v10414_v28  ;;  %v2907_v19 = vrot.slane %v10474_v32, %v10421_v45 }
 0x227   :  { %2960 = vrot.lane.b32.xlu1 %v2919_v42, %s9868_s30  ;;  %v16812_v42 = vld [vmem:[#allocation22_spill] sm:$0xff] }
 0x228   :  { %8407 = vmatpush1.bf16.msra.mxu0 %v10184_v4  ;;  %8471 = vmatpush1.bf16.msra.mxu1 %v10186_v5  ;;  %v2927_v4 = vrot.slane %v10727_v8, %v10361_v63 }
 0x229   :  { %4082 = vrot.lane.b32.xlu0 %v4023_v51, %s9872_s14  ;;  %8409 = vmatprep.subr.bf16.mxu0 %v10190_v9  ;;  %v11038_v5 = vpop.permute.xlu1 %2940  ;;  %v16797_v9 = vld [vmem:[#allocation9_spill] sm:$0xff]  ;;  %v3805_v51 = vrot.slane %v10875_v24, %v10336_v40 }
 0x22a   :  { %8473 = vmatprep.subr.bf16.mxu1 %v10192_v10  ;;  %v2899_v10 = vrot.slane %v10474_v32, %v10414_v28 }
 0x22b   :  { %4096 = vrot.lane.b32.xlu1 %v4051_v53, %s9872_s14  ;;  %v16813_v53 = vld [vmem:[#allocation23_spill] sm:$0xff] }
 0x22c   :  { %8411 = vmatpush1.bf16.msra.mxu0 %v10196_v22  ;;  %8475 = vmatpush1.bf16.msra.mxu1 %v10198_v23  ;;  %v16798_v22 = vld [vmem:[#allocation10_spill] sm:$0xff]  ;;  %v3297_v23 = vrot.slane %v10777_v0, %v10336_v40 }
 0x22d   :  { %2442 = vrot.lane.b32.xlu0 %v2395_v52, %s9866_s24  ;;  %8413 = vmatprep.subr.bf16.mxu0 %v10202_v26  ;;  %v16799_v26 = vld [vmem:[#allocation11_spill] sm:$0xff]  ;;  %v11055_v31 = vpop.permute.xlu1 %2944  ;;  %v16814_v52 = vld [vmem:[#allocation24_spill] sm:$0xff] }
 0x22e   :  { %8477 = vmatprep.subr.bf16.mxu1 %v10204_v27  ;;  %v16800_v27 = vld [vmem:[#allocation12_spill] sm:$0xff]  ;;  %16804 = vst [vmem:[#allocation9_spill] sm:$0xff] %v11055_v31  ;;  %v1124_v31 = vld [vmem:[#allocation4 + $0x40] sm:$0xff] }
 0x22f   :  { %2708 = vrot.lane.b32.xlu1 %v2671_v60, %s9867_s29  ;;  %v16815_v60 = vld [vmem:[#allocation25_spill] sm:$0xff] }
 0x230   :  { %8415 = vmatpush1.bf16.msra.mxu0 %v10208_v36  ;;  %8479 = vmatpush1.bf16.msra.mxu1 %v10210_v37  ;;  %v16801_v36 = vld [vmem:[#allocation13_spill] sm:$0xff]  ;;  %v16802_v37 = vld [vmem:[#allocation60_spill] sm:$0xff] }
 0x231   :  { %2694 = vrot.lane.b32.xlu0 %v2643_v61, %s9867_s29  ;;  %8417 = vmatprep.subr.bf16.mxu0 %v16797_v9  ;;  %v4031_v50 = vrot.slane %v10566_v21, %v16802_v37  ;;  %v11072_v38 = vpop.permute.xlu1 %2692  ;;  %v3277_v61 = vrot.slane %v10494_v29, %v10414_v28  ;;  %v3559_v9 = vrot.slane %v10847_v14, %v10361_v63 }
 0x232   :  { %8481 = vmatprep.subr.bf16.mxu1 %v16798_v22  ;;  %v16818_v22 = vld [vmem:[#allocation28_spill] sm:$0xff] }
 0x233   :  { %2964 = vrot.lane.b32.xlu1 %v2927_v4, %s9868_s30  ;;  %v16816_v4 = vld [vmem:[#allocation26_spill] sm:$0xff] }
 0x234   :  { %8419 = vmatpush1.bf16.msra.mxu0 %v16799_v26  ;;  %8483 = vmatpush1.bf16.msra.mxu1 %v16800_v27  ;;  %v3285_v26 = vrot.slane %v10494_v29, %v10421_v45  ;;  %v11100_v27 = vpop.permute.xlu0 %2192  ;;  %v3531_v29 = vrot.slane %v10508_v3, %v10414_v28 }
 0x235   :  { %2950 = vrot.lane.b32.xlu0 %v2899_v10, %s9868_s30  ;;  %8421 = vmatprep.subr.bf16.mxu0 %v16801_v36  ;;  %v11089_v32 = vpop.permute.xlu1 %2948  ;;  %v16817_v10 = vld [vmem:[#allocation27_spill] sm:$0xff]  ;;  %16820 = vst [vmem:[#allocation10_spill] sm:$0xff] %v11100_v27  ;;  %v16821_v36 = vld [vmem:[#allocation30_spill] sm:$0xff] }
 0x236   :  { %8485 = vmatprep.subr.bf16.mxu1 %v16803_v57  ;;  %v16822_v57 = vld [vmem:[#allocation31_spill] sm:$0xff] }
 0x237   :  { %3338 = vrot.lane.b32.xlu1 %v3297_v23, %s9869_s21  ;;  %v16819_v23 = vld [vmem:[#allocation29_spill] sm:$0xff] }
 0x238   :  { %8423 = vmatpush1.bf16.msra.mxu0 %v16805_v6  ;;  %8487 = vmatpush1.bf16.msra.mxu1 %v16806_v18  ;;  %v16825_v18 = vld [vmem:[#allocation33_spill] sm:$0xff] }
 0x239   :  { %4086 = vrot.lane.b32.xlu0 %v4031_v50, %s9872_s14  ;;  %8425 = vmatprep.subr.bf16.mxu0 %v16807_v59  ;;  %v3813_v50 = vrot.slane %v10875_v24, %v10361_v63  ;;  %v11108_v6 = vpop.permute.xlu1 %3320  ;;  %v16826_v59 = vld [vmem:[#allocation34_spill] sm:$0xff] }
 0x23a   :  { %8489 = vmatprep.subr.bf16.mxu1 %v16808_v15  ;;  %16824 = vst [vmem:[#allocation11_spill] sm:$0xff] %v11108_v6  ;;  %v2423_v15 = vrot.slane %v10591_v35, %v10388_v11 }
 0x23b   :  { %3342 = vrot.lane.b32.xlu1 %v3305_v13, %s9869_s21  ;;  %v16823_v13 = vld [vmem:[#allocation32_spill] sm:$0xff] }
 0x23c   :  { %8427 = vmatpush1.bf16.msra.mxu0 %v16809_v55  ;;  %8491 = vmatpush1.bf16.msra.mxu1 %v16810_v34  ;;  %v16829_v55 = vld [vmem:[#allocation36_spill] sm:$0xff]  ;;  %v16830_v34 = vld [vmem:[#allocation37_spill] sm:$0xff] }
 0x23d   :  { %2698 = vrot.lane.b32.xlu0 %v2651_v1, %s9867_s29  ;;  %8429 = vmatprep.subr.bf16.mxu0 %v16811_v30  ;;  %v11115_v1 = vpop.permute.xlu0 %2196  ;;  %v3785_v30 = vrot.slane %v10522_v2, %v10414_v28 }
 0x23e   :  { %8493 = vmatprep.subr.bf16.mxu1 %v16812_v42  ;;  %16827 = vst [vmem:[#allocation12_spill] sm:$0xff] %v11115_v1  ;;  %v11127_v42 = vpop.permute.xlu1 %3324  ;;  %v16897_v1 = vld [vmem:[#allocation112_spill] sm:$0xff] }
 0x23f   :  { %3592 = vrot.lane.b32.xlu1 %v3551_v44, %s9870_s1  ;;  %v16828_v44 = vld [vmem:[#allocation35_spill] sm:$0xff]  ;;  %16832 = vst [vmem:[#allocation13_spill] sm:$0xff] %v11127_v42 }
 0x240   :  { %8431 = vmatpush1.bf16.msra.mxu0 %v16813_v53  ;;  %8495 = vmatpush1.bf16.msra.mxu1 %v16814_v52  ;;  %v16833_v53 = vld [vmem:[#allocation39_spill] sm:$0xff]  ;;  %v16834_v52 = vld [vmem:[#allocation40_spill] sm:$0xff] }
 0x241   :  { %2954 = vrot.lane.b32.xlu0 %v2907_v19, %s9868_s30  ;;  %8433 = vmatprep.subr.bf16.mxu0 %v16815_v60  ;;  %v16831_v19 = vld [vmem:[#allocation38_spill] sm:$0xff]  ;;  %v16835_v60 = vld [vmem:[#allocation41_spill] sm:$0xff] }
 0x242   :  { %8497 = vmatprep.subr.bf16.mxu1 %v16816_v4  ;;  %v3539_v4 = vrot.slane %v10508_v3, %v10421_v45  ;;  %v3793_v3 = vrot.slane %v10522_v2, %v10421_v45  ;;  %v2403_v2 = vrot.slane %v10591_v35, %v10395_v46 }
 0x243   :  { %3846 = vrot.lane.b32.xlu1 %v3805_v51, %s9871_s26  ;;  %v4059_v51 = vrot.slane %v11000_v43, %v10336_v40 }
 0x244   :  { %8435 = vmatpush1.bf16.msra.mxu0 %v16817_v10  ;;  %8499 = vmatpush1.bf16.msra.mxu1 %v16818_v22  ;;  %v2675_v10 = vrot.slane %v10699_v7, %v10414_v28  ;;  %v16838_v22 = vld [vmem:[#allocation43_spill] sm:$0xff] }
 0x245   :  { %3328 = vrot.lane.b32.xlu0 %v3277_v61, %s9869_s21  ;;  %8437 = vmatprep.subr.bf16.mxu0 %v16819_v23  ;;  %v11136_v61 = vpop.permute.xlu0 %2200  ;;  %v16839_v23 = vld [vmem:[#allocation44_spill] sm:$0xff] }
 0x246   :  { %8501 = vmatprep.subr.bf16.mxu1 %v16821_v36  ;;  %16836 = vst [vmem:[#allocation14_spill] sm:$0xff] %v11136_v61  ;;  %v16840_v36 = vld [vmem:[#allocation46_spill] sm:$0xff] }
 0x247   :  { %3596 = vrot.lane.b32.xlu1 %v3559_v9, %s9870_s1  ;;  %v16837_v9 = vld [vmem:[#allocation42_spill] sm:$0xff] }
 0x248   :  { %8439 = vmatpush1.bf16.msra.mxu0 %v16822_v57  ;;  %8503 = vmatpush1.bf16.msra.mxu1 %v16823_v13  ;;  %v2931_v13 = vrot.slane %v10727_v8, %v10414_v28 }
 0x249   :  { %3332 = vrot.lane.b32.xlu0 %v3285_v26, %s9869_s21  ;;  %8441 = vmatprep.subr.bf16.mxu0 %v16825_v18  ;;  %v11146_v26 = vpop.permute.xlu1 %3572  ;;  %v16843_v18 = vld [vmem:[#allocation48_spill] sm:$0xff] }
 0x24a   :  { %8505 = vmatprep.subr.bf16.mxu1 %v16826_v59  ;;  %v16845_v59 = vld [vmem:[#allocation51_spill] sm:$0xff] }
 0x24b   :  { %3850 = vrot.lane.b32.xlu1 %v3813_v50, %s9871_s26  ;;  %v16841_v50 = vld [vmem:[#allocation47_spill] sm:$0xff] }
 0x24c   :  { %8443 = vmatpush1.bf16.msra.mxu0 %v16828_v44  ;;  %8507 = vmatpush1.bf16.msra.mxu1 %v16829_v55 }
 0x24d   :  { %3582 = vrot.lane.b32.xlu0 %v3531_v29, %s9870_s1  ;;  %8445 = vmatprep.subr.bf16.mxu0 %v16830_v34  ;;  %v16844_v29 = vld [vmem:[#allocation49_spill] sm:$0xff]  ;;  %v11165_v44 = vpop.permute.xlu1 %3576 }
 0x24e   :  { %8509 = vmatprep.subr.bf16.mxu1 %v16831_v19  ;;  %16847 = vst [vmem:[#allocation16_spill] sm:$0xff] %v11165_v44  ;;  %v16848_v34 = vld [vmem:[#allocation53_spill] sm:$0xff]  ;;  %v16850_v19 = vld [vmem:[#allocation56_spill] sm:$0xff]  ;;  %v1119_v44 = vld [vmem:[#allocation4 + $0x18] sm:$0xff] }
 0x24f   :  { %2456 = vrot.lane.b32.xlu1 %v2423_v15, %s9866_s24  ;;  %v16846_v15 = vld [vmem:[#allocation52_spill] sm:$0xff] }
 0x250   :  { %8447 = vmatpush1.bf16.msra.mxu0 %v16833_v53  ;;  %8511 = vmatpush1.bf16.msra.mxu1 %v16834_v52  ;;  %v4039_v53 = vrot.slane %v10566_v21, %v10414_v28  ;;  %v16852_v52 = vld [vmem:[#allocation67_spill] sm:$0xff] }
 0x251   :  { %3836 = vrot.lane.b32.xlu0 %v3785_v30, %s9871_s26  ;;  %8449 = vmatprep.subr.bf16.mxu0 %v16835_v60  ;;  %v16849_v30 = vld [vmem:[#allocation55_spill] sm:$0xff] }
 0x252   :  { %8513 = vmatprep.subr.bf16.mxu1 %v16837_v9  ;;  %v16854_v9 = vld [vmem:[#allocation65_spill] sm:$0xff] }
 0x253   :  { %4100 = vrot.lane.b32.xlu1 %v4059_v51, %s9872_s14  ;;  %v16851_v51 = vld [vmem:[#allocation58_spill] sm:$0xff] }
 0x254   :  { %8451 = vmatpush1.bf16.msra.mxu0 %v16838_v22  ;;  %8515 = vmatpush1.bf16.msra.mxu1 %v16839_v23  ;;  %v16855_v22 = vld [vmem:[#allocation66_spill] sm:$0xff]  ;;  %v16856_v23 = vld [vmem:[#allocation68_spill] sm:$0xff] }
 0x255   :  { %3586 = vrot.lane.b32.xlu0 %v3539_v4, %s9870_s1  ;;  %8453 = vmatprep.subr.bf16.mxu0 %v16840_v36  ;;  %v4063_v4 = vrot.slane %v11000_v43, %v16802_v37  ;;  %v2411_v36 = vrot.slane %v10591_v35, %v16802_v37 }
 0x256   :  { %8517 = vmatprep.subr.bf16.mxu1 %v16841_v50  ;;  %v16857_v50 = vld [vmem:[#allocation69_spill] sm:$0xff] }
 0x257   :  { %v11153_v57 = vpop.permute.xlu0 %2271  ;;  %2710 = vrot.lane.b32.xlu1 %v2675_v10, %s9867_s29  ;;  %v11185_v10 = vpop.permute.xlu1 %3828 }
 0x258   :  { %16842 = vst [vmem:[#allocation15_spill] sm:$0xff] %v11153_v57  ;;  %8455 = vmatpush1.bf16.msra.mxu0 %v16843_v18  ;;  %8519 = vmatpush1.bf16.msra.mxu1 %v16844_v29  ;;  %v16858_v18 = vld [vmem:[#allocation70_spill] sm:$0xff]  ;;  %v16859_v29 = vld [vmem:[#allocation71_spill] sm:$0xff] }
 0x259   :  { %3840 = vrot.lane.b32.xlu0 %v3793_v3, %s9871_s26  ;;  %8457 = vmatprep.subr.bf16.mxu0 %v16845_v59  ;;  %v2493_v3 = vmul.f32 0.0, %v10961_v33  ;;  %v16861_v59 = vld [vmem:[#allocation74_spill] sm:$0xff]  ;;  %v1126_v33 = vld [vmem:[#allocation4 + $0x50] sm:$0xff] }
 0x25a   :  { %8521 = vmatprep.subr.bf16.mxu1 %v16846_v15  ;;  %v16903_v57 = vld [vmem:[#allocation118_spill] sm:$0xff] }
 0x25b   :  { %v11167_v55 = vpop.permute.xlu0 %2430  ;;  %2966 = vrot.lane.b32.xlu1 %v2931_v13, %s9868_s30  ;;  %v11205_v15 = vpop.permute.xlu1 %3578 }
 0x25c   :  { %8459 = vmatpush1.bf16.msra.mxu0 %v16848_v34  ;;  %8523 = vmatpush1.bf16.msra.mxu1 %v16849_v30  ;;  %v2939_v30 = vrot.slane %v10727_v8, %v10421_v45 }
 0x25d   :  { %2446 = vrot.lane.b32.xlu0 %v2403_v2, %s9866_s24  ;;  %8525 = vmatprep.subr.bf16.mxu0 %v16850_v19  ;;  %v2659_v2 = vrot.slane %v10699_v7, %v10395_v46  ;;  %v16863_v19 = vld [vmem:[#allocation75_spill] sm:$0xff] }
 0x25e   :  { %8589 = vmatprep.subr.bf16.mxu1 %v16851_v51  ;;  %v16864_v51 = vld [vmem:[#allocation76_spill] sm:$0xff] }
 0x25f   :  { %889 = vmatmul.mubr.f32.vlgmr.msra.gmra.mrb[6].mxu0 %v16852_v52  ;;  %960 = vmatmul.mubr.f32.vlgmr.msra.gmra.mrb[6].mxu1 %v16852_v52  ;;  %v11179_v60 = vpop.permute.xlu0 %2434 }
 0x260   :  { %16853 = vst [vmem:[#allocation17_spill] sm:$0xff] %v11179_v60  ;;  %8527 = vmatpush1.bf16.msra.mxu0 %v16854_v9  ;;  %1030 = vmatprep.mubr.f32.mxu0 %v10601_v16  ;;  %v2915_v9 = vrot.slane %v10727_v8, %v10395_v46 }
 0x261   :  { %8591 = vmatpush1.bf16.msra.mxu1 %v16855_v22  ;;  %1101 = vmatprep.mubr.f32.mxu1 %v10601_v16  ;;  %v16860_v16 = vld [vmem:[#allocation73_spill] sm:$0xff] }
 0x262   :  { %4090 = vrot.lane.b32.xlu0 %v4039_v53, %s9872_s14  ;;  %8529 = vmatprep.subr.bf16.mxu0 %v16856_v23  ;;  %v16865_v53 = vld [vmem:[#allocation78_spill] sm:$0xff]  ;;  %v3313_v23 = vrot.slane %v10777_v0, %v10388_v11 }
 0x263   :  { %8593 = vmatprep.subr.bf16.mxu1 %v16857_v50  ;;  %v11195_v13 = vpop.permute.xlu0 %2684  ;;  %4102 = vrot.lane.b32.xlu1 %v4063_v4, %s9872_s14  ;;  %v16866_v4 = vld [vmem:[#allocation79_spill] sm:$0xff]  ;;  %v16870_v50 = vld [vmem:[#allocation81_spill] sm:$0xff] }
 0x264   :  { %8531 = vmatpush1.bf16.msra.mxu0 %v16858_v18  ;;  %v16871_v18 = vld [vmem:[#allocation82_spill] sm:$0xff] }
 0x265   :  { %8595 = vmatpush1.bf16.msra.mxu1 %v16859_v29  ;;  %8533 = vmatprep.subr.bf16.mxu0 %v16860_v16  ;;  %v16872_v29 = vld [vmem:[#allocation84_spill] sm:$0xff]  ;;  %v4047_v16 = vrot.slane %v10566_v21, %v10421_v45 }
 0x266   :  { %2450 = vrot.lane.b32.xlu0 %v2411_v36, %s9866_s24  ;;  %8597 = vmatprep.subr.bf16.mxu1 %v16861_v59  ;;  %v16868_v36 = vld [vmem:[#allocation80_spill] sm:$0xff]  ;;  %v3005_v59 = vmul.f32 0.0, %v11038_v5 }
 0x267   :  { %v11207_v34 = vpop.permute.xlu0 %2688  ;;  %2527 = vrot.lane.b32.xlu1 %v2493_v3, %s9871_s26  ;;  %v11225_v3 = vpop.permute.xlu1 %3832 }
 0x268   :  { %16862 = vst [vmem:[#allocation18_spill] sm:$0xff] %v11207_v34  ;;  %8535 = vmatpush1.bf16.msra.mxu0 %v16863_v19  ;;  %16869 = vst [vmem:[#allocation20_spill] sm:$0xff] %v11225_v3  ;;  %v16874_v19 = vld [vmem:[#allocation86_spill] sm:$0xff]  ;;  %v1236_v3 = vld [vmem:[#allocation4 + $0x3c0] sm:$0xff] }
 0x269   :  { %8599 = vmatpush1.bf16.msra.mxu1 %v16864_v51  ;;  %8537 = vmatprep.subr.bf16.mxu0 %v16865_v53  ;;  %v16875_v51 = vld [vmem:[#allocation87_spill] sm:$0xff]  ;;  %v16876_v53 = vld [vmem:[#allocation89_spill] sm:$0xff] }
 0x26a   :  { %2702 = vrot.lane.b32.xlu0 %v2659_v2, %s9867_s29  ;;  %8601 = vmatprep.subr.bf16.mxu1 %v16866_v4  ;;  %v2667_v4 = vrot.slane %v10699_v7, %v16802_v37 }
 0x26b   :  { %v11219_v22 = vpop.permute.xlu0 %2942  ;;  %2970 = vrot.lane.b32.xlu1 %v2939_v30, %s9868_s30  ;;  %v16873_v30 = vld [vmem:[#allocation85_spill] sm:$0xff]  ;;  %v11244_v21 = vpop.permute.xlu1 %2438 }
 0x26c   :  { %16867 = vst [vmem:[#allocation19_spill] sm:$0xff] %v11219_v22  ;;  %8539 = vmatpush1.bf16.msra.mxu0 %v16868_v36  ;;  %16877 = vst [vmem:[#allocation21_spill] sm:$0xff] %v11244_v21  ;;  %v16879_v36 = vld [vmem:[#allocation91_spill] sm:$0xff]  ;;  %v1143_v21 = vld [vmem:[#allocation4 + $0xd8] sm:$0xff] }
 0x26d   :  { %8603 = vmatpush1.bf16.msra.mxu1 %v16870_v50  ;;  %8541 = vmatprep.subr.bf16.mxu0 %v16871_v18  ;;  %v16880_v50 = vld [vmem:[#allocation92_spill] sm:$0xff]  ;;  %v16881_v18 = vld [vmem:[#allocation94_spill] sm:$0xff] }
 0x26e   :  { %2958 = vrot.lane.b32.xlu0 %v2915_v9, %s9868_s30  ;;  %8605 = vmatprep.subr.bf16.mxu1 %v16872_v29  ;;  %v2923_v29 = vrot.slane %v10727_v8, %v16802_v37 }
 0x26f   :  { %v11234_v2 = vpop.permute.xlu0 %2690  ;;  %3346 = vrot.lane.b32.xlu1 %v3313_v23, %s9869_s21  ;;  %v16878_v23 = vld [vmem:[#allocation90_spill] sm:$0xff] }
 0x270   :  { %8543 = vmatpush1.bf16.msra.mxu0 %v16873_v30  ;;  %v16883_v30 = vld [vmem:[#allocation95_spill] sm:$0xff] }
 0x271   :  { %8607 = vmatpush1.bf16.msra.mxu1 %v16874_v19  ;;  %8545 = vmatprep.subr.bf16.mxu0 %v16875_v51  ;;  %v11259_v19 = vpop.permute.xlu1 %4080  ;;  %v16886_v51 = vld [vmem:[#allocation97_spill] sm:$0xff] }
 0x272   :  { %4094 = vrot.lane.b32.xlu0 %v4047_v16, %s9872_s14  ;;  %8609 = vmatprep.subr.bf16.mxu1 %v16876_v53  ;;  %16884 = vst [vmem:[#allocation23_spill] sm:$0xff] %v11259_v19  ;;  %v3563_v53 = vrot.slane %v10847_v14, %v10414_v28 }
 0x273   :  { %v11246_v9 = vpop.permute.xlu0 %2946  ;;  %3039 = vrot.lane.b32.xlu1 %v3005_v59, %s9869_s21  ;;  %v16885_v59 = vld [vmem:[#allocation96_spill] sm:$0xff] }
 0x274   :  { %8547 = vmatpush1.bf16.msra.mxu0 %v16878_v23  ;;  %v3293_v23 = vrot.slane %v10777_v0, %v10395_v46 }
 0x275   :  { %8611 = vmatpush1.bf16.msra.mxu1 %v16879_v36  ;;  %8549 = vmatprep.subr.bf16.mxu0 %v16880_v50  ;;  %v16888_v50 = vld [vmem:[#allocation102_spill] sm:$0xff] }
 0x276   :  { %2706 = vrot.lane.b32.xlu0 %v2667_v4, %s9867_s29  ;;  %8613 = vmatprep.subr.bf16.mxu1 %v16881_v18  ;;  %v16887_v4 = vld [vmem:[#allocation99_spill] sm:$0xff] }
 0x277   :  { %v11256_v16 = vpop.permute.xlu0 %3318  ;;  %3598 = vrot.lane.b32.xlu1 %v3563_v53, %s9870_s1  ;;  %v16889_v18 = vld [vmem:[#allocation103_spill] sm:$0xff] }
 0x278   :  { %16882 = vst [vmem:[#allocation22_spill] sm:$0xff] %v11256_v16  ;;  %8551 = vmatpush1.bf16.msra.mxu0 %v16883_v30  ;;  %v16890_v30 = vld [vmem:[#allocation104_spill] sm:$0xff]  ;;  %v16893_v53 = vld [vmem:[#allocation107_spill] sm:$0xff]  ;;  %v1127_v16 = vld [vmem:[#allocation4 + $0x58] sm:$0xff] }
 0x279   :  { %8615 = vmatpush1.bf16.msra.mxu1 %v16885_v59  ;;  %8553 = vmatprep.subr.bf16.mxu0 %v16886_v51  ;;  %v3817_v59 = vrot.slane %v10875_v24, %v10414_v28  ;;  %v3301_v51 = vrot.slane %v10777_v0, %v16802_v37  ;;  %v11359_v34 = vpack.c.bf16 %v1127_v16, %v1119_v44  ;;  %v1132_v44 = vld [vmem:[#allocation4 + $0x80] sm:$0xff] }
 0x27a   :  { %2962 = vrot.lane.b32.xlu0 %v2923_v29, %s9868_s30  ;;  %8617 = vmatprep.subr.bf16.mxu1 %v16887_v4  ;;  %v16891_v29 = vld [vmem:[#allocation106_spill] sm:$0xff]  ;;  %v11281_v4 = vpop.permute.xlu1 %4084  ;;  %v1140_v16 = vld [vmem:[#allocation4 + $0xc0] sm:$0xff] }
 0x27b   :  { %v11269_v36 = vpop.permute.xlu0 %3322  ;;  %3852 = vrot.lane.b32.xlu1 %v3817_v59, %s9871_s26  ;;  %v16899_v59 = vld [vmem:[#allocation113_spill] sm:$0xff]  ;;  %16924 = vst [vmem:[#allocation33_spill] sm:$0xff] %v11359_v34 }
 0x27c   :  { %8555 = vmatpush1.bf16.msra.mxu0 %v16888_v50  ;;  %v16894_v50 = vld [vmem:[#allocation108_spill] sm:$0xff] }
 0x27d   :  { %8619 = vmatpush1.bf16.msra.mxu1 %v16889_v18  ;;  %8557 = vmatprep.subr.bf16.mxu0 %v16890_v30  ;;  %v16895_v18 = vld [vmem:[#allocation109_spill] sm:$0xff]  ;;  %v3547_v30 = vrot.slane %v10847_v14, %v10395_v46 }
 0x27e   :  { %3336 = vrot.lane.b32.xlu0 %v3293_v23, %s9869_s21  ;;  %8621 = vmatprep.subr.bf16.mxu1 %v16891_v29  ;;  %v16896_v23 = vld [vmem:[#allocation111_spill] sm:$0xff]  ;;  %v11296_v27 = vpop.permute.xlu1 %2444 }
 0x27f   :  { %v11283_v61 = vpop.permute.xlu0 %3326  ;;  %16898 = vst [vmem:[#allocation25_spill] sm:$0xff] %v11296_v27  ;;  %v16908_v27 = vld [vmem:[#allocation122_spill] sm:$0xff] }
 0x280   :  { %16892 = vst [vmem:[#allocation24_spill] sm:$0xff] %v11283_v61  ;;  %8559 = vmatpush1.bf16.msra.mxu0 %v16893_v53  ;;  %v16900_v53 = vld [vmem:[#allocation114_spill] sm:$0xff] }
 0x281   :  { %8623 = vmatpush1.bf16.msra.mxu1 %v16894_v50  ;;  %8561 = vmatprep.subr.bf16.mxu0 %v16895_v18  ;;  %v16901_v50 = vld [vmem:[#allocation116_spill] sm:$0xff] }
 0x282   :  { %3340 = vrot.lane.b32.xlu0 %v3301_v51, %s9869_s21  ;;  %8625 = vmatprep.subr.bf16.mxu1 %v16896_v23  ;;  %v3801_v51 = vrot.slane %v10875_v24, %v10395_v46  ;;  %v16902_v23 = vld [vmem:[#allocation117_spill] sm:$0xff] }
 0x283   :  { %v11293_v29 = vpop.permute.xlu0 %3574 }
 0x284   :  { %8563 = vmatpush1.bf16.msra.mxu0 %v16897_v1  ;;  %v16904_v1 = vld [vmem:[#allocation119_spill] sm:$0xff] }
 0x285   :  { %8627 = vmatpush1.bf16.msra.mxu1 %v16899_v59  ;;  %8565 = vmatprep.subr.bf16.mxu0 %v16900_v53  ;;  %v16905_v59 = vld [vmem:[#allocation121_spill] sm:$0xff]  ;;  %v11313_v53 = vpop.permute.xlu1 %2696 }
 0x286   :  { %3590 = vrot.lane.b32.xlu0 %v3547_v30, %s9870_s1  ;;  %8629 = vmatprep.subr.bf16.mxu1 %v16901_v50  ;;  %v3555_v30 = vrot.slane %v10847_v14, %v16802_v37  ;;  %16906 = vst [vmem:[#allocation26_spill] sm:$0xff] %v11313_v53  ;;  %v1151_v53 = vld [vmem:[#allocation4 + $0x118] sm:$0xff] }
 0x287   :  { %v11304_v18 = vpop.permute.xlu0 %3826 }
 0x288   :  { %8567 = vmatpush1.bf16.msra.mxu0 %v16902_v23  ;;  %v16910_v23 = vld [vmem:[#allocation124_spill] sm:$0xff] }
 0x289   :  { %8631 = vmatpush1.bf16.msra.mxu1 %v16903_v57  ;;  %8569 = vmatprep.subr.bf16.mxu0 %v16904_v1  ;;  %v16911_v57 = vld [vmem:[#allocation126_spill] sm:$0xff]  ;;  %v11327_v19 = vpop.permute.xlu1 %2952 }
 0x28a   :  { %3844 = vrot.lane.b32.xlu0 %v3801_v51, %s9871_s26  ;;  %8633 = vmatprep.subr.bf16.mxu1 %v16905_v59  ;;  %v3809_v51 = vrot.slane %v10875_v24, %v16802_v37  ;;  %v16912_v59 = vld [vmem:[#allocation127_spill] sm:$0xff]  ;;  %16913 = vst [vmem:[#allocation28_spill] sm:$0xff] %v11327_v19  ;;  %v1134_v19 = vld [vmem:[#allocation4 + $0x90] sm:$0xff] }
 0x28b   :  { %v11315_v50 = vpop.permute.xlu0 %3830 }
 0x28c   :  { %16907 = vst [vmem:[#allocation27_spill] sm:$0xff] %v11315_v50  ;;  %8571 = vmatpush1.bf16.msra.mxu0 %v16908_v27  ;;  %v16914_v50 = vld [vmem:[#allocation128_spill] sm:$0xff]  ;;  %v16915_v27 = vld [vmem:[#allocation129_spill] sm:$0xff] }
 0x28d   :  { %8635 = vmatpush1.bf16.msra.mxu1 %v16909_v47  ;;  %8573 = vmatprep.subr.bf16.mxu0 %v16910_v23  ;;  %v16916_v47 = vld [vmem:[#allocation131_spill] sm:$0xff] }
 0x28e   :  { %3594 = vrot.lane.b32.xlu0 %v3555_v30, %s9870_s1  ;;  %8637 = vmatprep.subr.bf16.mxu1 %v16911_v57  ;;  %v2419_v30 = vrot.slane %v10591_v35, %v10414_v28  ;;  %v16918_v57 = vld [vmem:[#allocation132_spill] sm:$0xff] }
 0x28f   :  { %v11324_v1 = vpop.permute.xlu0 %3580 }
 0x290   :  { %8575 = vmatpush1.bf16.msra.mxu0 %v16912_v59  ;;  %v1125_v59 = vld [vmem:[#allocation4 + $0x48] sm:$0xff] }
 0x291   :  { %8639 = vmatpush1.bf16.msra.mxu1 %v16914_v50  ;;  %8577 = vmatprep.subr.bf16.mxu0 %v16915_v27  ;;  %v4055_v50 = vrot.slane %v11000_v43, %v10395_v46  ;;  %v11344_v27 = vpop.permute.xlu1 %4088 }
 0x292   :  { %3848 = vrot.lane.b32.xlu0 %v3809_v51, %s9871_s26  ;;  %8641 = vmatprep.subr.bf16.mxu1 %v16916_v47  ;;  %v1117_v51 = vld [vmem:[#allocation4 + $0x8] sm:$0xff]  ;;  %16919 = vst [vmem:[#allocation30_spill] sm:$0xff] %v11344_v27  ;;  %v2427_v27 = vrot.slane %v10591_v35, %v10421_v45 }
 0x293   :  { %v11335_v23 = vpop.permute.xlu0 %3834 }
 0x294   :  { %16917 = vst [vmem:[#allocation29_spill] sm:$0xff] %v11335_v23  ;;  %8579 = vmatpush1.bf16.msra.mxu0 %v10919_v17  ;;  %v16921_v17 = vld [vmem:[#allocation8_spill] sm:$0xff]  ;;  %v1230_v23 = vld [vmem:[#allocation4 + $0x390] sm:$0xff] }
 0x295   :  { %8643 = vmatpush1.bf16.msra.mxu1 %v16918_v57  ;;  %8581 = vmatprep.subr.bf16.mxu0 %v10927_v58  ;;  %v16922_v57 = vld [vmem:[#allocation63_spill] sm:$0xff] }
 0x296   :  { %2454 = vrot.lane.b32.xlu0 %v2419_v30, %s9866_s24  ;;  %8645 = vmatprep.subr.bf16.mxu1 %v10930_v25  ;;  %v108_v58 = vmul.f32 %v16922_v57, %v16921_v17  ;;  %v11353_v25 = vpack.c.bf16 %v1125_v59, %v1117_v51  ;;  %v1116_v30 = vld [vmem:[#allocation4] sm:$0xff]  ;;  %v1141_v59 = vld [vmem:[#allocation4 + $0xc8] sm:$0xff] }
 0x297   :  { %v11346_v47 = vpop.permute.xlu0 %2440  ;;  %v11365_v51 = vpack.c.bf16 %v1124_v31, %v1116_v30  ;;  %v1142_v31 = vld [vmem:[#allocation4 + $0xd0] sm:$0xff]  ;;  %v1157_v30 = vld [vmem:[#allocation4 + $0x148] sm:$0xff] }
 0x298   :  { %16920 = vst [vmem:[#allocation31_spill] sm:$0xff] %v11346_v47  ;;  %8583 = vmatpush1.bf16.msra.mxu0 %v10939_v20  ;;  %16923 = vst [vmem:[#allocation32_spill] sm:$0xff] %v11353_v25  ;;  %v1118_v20 = vld [vmem:[#allocation4 + $0x10] sm:$0xff]  ;;  %v2749_v47 = vmul.f32 0.0, %v11195_v13 }
 0x299   :  { %8647 = vmatpush1.bf16.msra.mxu1 %v10941_v39  ;;  %8585 = vmatprep.subr.bf16.mxu0 %v10947_v41  ;;  %v16926_v39 = vld [vmem:[#allocation64_spill] sm:$0xff]  ;;  %16927 = vst [vmem:[#allocation35_spill] sm:$0xff] %v11365_v51  ;;  %v11371_v35 = vpack.c.bf16 %v1126_v33, %v1118_v20 }
 0x29a   :  { %4098 = vrot.lane.b32.xlu0 %v4055_v50, %s9872_s14  ;;  %8649 = vmatprep.subr.bf16.mxu1 %v10950_v62  ;;  %v118_v61 = vadd.f32 %v16926_v39, %v108_v58  ;;  %v1133_v41 = vld [vmem:[#allocation4 + $0x88] sm:$0xff]  ;;  %v1135_v50 = vld [vmem:[#allocation4 + $0x98] sm:$0xff]  ;;  %v11367_v62 = vpop.permute.xlu1 %2700 }
 0x29b   :  { %v11361_v17 = vpop.permute.xlu0 %4082  ;;  %16928 = vst [vmem:[#allocation36_spill] sm:$0xff] %v11367_v62  ;;  %16929 = vst [vmem:[#allocation37_spill] sm:$0xff] %v11371_v35  ;;  %v1149_v58 = vld [vmem:[#allocation4 + $0x108] sm:$0xff]  ;;  %v11382_v33 = vpack.c.bf16 %v1141_v59, %v1133_v41  ;;  %v11384_v20 = vpack.c.bf16 %v1143_v21, %v1135_v50  ;;  %v1148_v41 = vld [vmem:[#allocation4 + $0x100] sm:$0xff] }
 0x29c   :  { %16925 = vst [vmem:[#allocation34_spill] sm:$0xff] %v11361_v17  ;;  %8587 = vmatpush1.bf16.msra.mxu0 %v10957_v49  ;;  %v2679_v49 = vrot.slane %v10699_v7, %v10388_v11  ;;  %v11380_v62 = vmax.f32 %v118_v61, 0.0  ;;  %v11394_v61 = vpack.c.bf16 %v1157_v30, %v1149_v58  ;;  %v1156_v59 = vld [vmem:[#allocation4 + $0x140] sm:$0xff]  ;;  %v1150_v21 = vld [vmem:[#allocation4 + $0x110] sm:$0xff]  ;;  %v1175_v58 = vld [vmem:[#allocation4 + $0x1d8] sm:$0xff] }
 0x29d   :  { %8651 = vmatpush1.bf16.msra.mxu1 %v10959_v48  ;;  %8653 = vmatprep.subr.bf16.mxu0 %v11353_v25  ;;  %16931 = vst [vmem:[#allocation39_spill] sm:$0xff] %v11382_v33  ;;  %16932 = vst [vmem:[#allocation40_spill] sm:$0xff] %v11384_v20  ;;  %v11392_v25 = vpack.c.bf16 %v1142_v31, %v1134_v19  ;;  %v1167_v31 = vld [vmem:[#allocation4 + $0x198] sm:$0xff]  ;;  %v1164_v30 = vld [vmem:[#allocation4 + $0x180] sm:$0xff] }
 0x29e   :  { %2458 = vrot.lane.b32.xlu0 %v2427_v27, %s9866_s24  ;;  %8717 = vmatprep.subr.bf16.mxu1 %v11359_v34  ;;  %v1159_v27 = vld [vmem:[#allocation4 + $0x158] sm:$0xff]  ;;  %v11388_v34 = vpack.c.bf16 %v1140_v16, %v1132_v44  ;;  %16935 = vst [vmem:[#allocation43_spill] sm:$0xff] %v11394_v61  ;;  %v1158_v44 = vld [vmem:[#allocation4 + $0x150] sm:$0xff]  ;;  %v1165_v16 = vld [vmem:[#allocation4 + $0x188] sm:$0xff] }
 0x29f   :  { %1031 = vmatmul.mubr.f32.vlgmr.msra.gmra.mrb[8].mxu0 %v16852_v52  ;;  %v11378_v48 = vpop.permute.xlu0 %2442  ;;  %16934 = vst [vmem:[#allocation42_spill] sm:$0xff] %v11392_v25  ;;  %v11400_v50 = vpack.c.bf16 %v1159_v27, %v1151_v53  ;;  %v1172_v27 = vld [vmem:[#allocation4 + $0x1c0] sm:$0xff] }
 0x2a0   :  { %16930 = vst [vmem:[#allocation38_spill] sm:$0xff] %v11378_v48  ;;  %1102 = vmatmul.mubr.f32.vlgmr.msra.gmra.mrb[8].mxu1 %v16852_v52  ;;  %8655 = vmatpush1.bf16.msra.mxu0 %v11365_v51  ;;  %16933 = vst [vmem:[#allocation41_spill] sm:$0xff] %v11388_v34  ;;  %v2935_v52 = vrot.slane %v10727_v8, %v10388_v11  ;;  %v1173_v51 = vld [vmem:[#allocation4 + $0x1c8] sm:$0xff]  ;;  %v11413_v8 = vpack.c.bf16 %v1158_v44, %v1150_v21  ;;  %v1183_v44 = vld [vmem:[#allocation4 + $0x218] sm:$0xff] }
 0x2a1   :  { %1436 = vmatprep.mubr.f32.mxu0 %v11380_v62  ;;  %8719 = vmatpush1.bf16.msra.mxu1 %v11371_v35  ;;  %16936 = vst [vmem:[#allocation44_spill] sm:$0xff] %v11400_v50  ;;  %v11402_v35 = vpop.permute.xlu1 %2956  ;;  %v11415_v53 = vpack.c.bf16 %v1173_v51, %v1165_v16  ;;  %v3825_v21 = vrot.slane %v10875_v24, %v10421_v45  ;;  %v1191_v16 = vld [vmem:[#allocation4 + $0x258] sm:$0xff] }
 0x2a2   :  { %1507 = vmatprep.mubr.f32.mxu1 %v11380_v62  ;;  %2712 = vrot.lane.b32.xlu0 %v2679_v49, %s9867_s29  ;;  %16937 = vst [vmem:[#allocation46_spill] sm:$0xff] %v11402_v35  ;;  %v11409_v49 = vpack.c.bf16 %v1156_v59, %v1148_v41  ;;  %16940 = vst [vmem:[#allocation49_spill] sm:$0xff] %v11413_v8  ;;  %v1166_v35 = vld [vmem:[#allocation4 + $0x190] sm:$0xff]  ;;  %v11421_v41 = vpack.c.bf16 %v1175_v58, %v1167_v31 }
 0x2a3   :  { %8657 = vmatprep.subr.bf16.mxu0 %v11382_v33  ;;  %8721 = vmatprep.subr.bf16.mxu1 %v11384_v20  ;;  %v11406_v19 = vpop.permute.xlu0 %2694  ;;  %16941 = vst [vmem:[#allocation51_spill] sm:$0xff] %v11415_v53  ;;  %v1174_v59 = vld [vmem:[#allocation4 + $0x1d0] sm:$0xff]  ;;  %v1189_v20 = vld [vmem:[#allocation4 + $0x248] sm:$0xff] }
 0x2a4   :  { %16938 = vst [vmem:[#allocation47_spill] sm:$0xff] %v11406_v19  ;;  %8659 = vmatpush1.bf16.msra.mxu0 %v11388_v34  ;;  %16939 = vst [vmem:[#allocation48_spill] sm:$0xff] %v11409_v49  ;;  %v4067_v34 = vrot.slane %v11000_v43, %v10361_v63  ;;  %v8055_v31 = vld [vmem:[%s16169_s2 + $0x4] ss:$8 sm:$0xf0]  ;;  %3856 = vrot.lane.b32.xlu1 %v3825_v21, %s9871_s26 }
 0x2a5   :  { %8723 = vmatpush1.bf16.msra.mxu1 %v11392_v25  ;;  %8661 = vmatprep.subr.bf16.mxu0 %v11394_v61  ;;  %16942 = vst [vmem:[#allocation52_spill] sm:$0xff] %v11421_v41  ;;  %v1181_v25 = vld [vmem:[#allocation4 + $0x208] sm:$0xff]  ;;  %v11436_v58 = vpop.permute.xlu1 %3330  ;;  %v11441_v61 = vpack.c.bf16 %v1174_v59, %v1166_v35  ;;  %v1182_v33 = vld [vmem:[#allocation4 + $0x210] sm:$0xff]  ;;  %v4075_v35 = vrot.slane %v11000_v43, %v10388_v11  ;;  %v1199_v59 = vld [vmem:[#allocation4 + $0x298] sm:$0xff] }
 0x2a6   :  { %2968 = vrot.lane.b32.xlu0 %v2935_v52, %s9868_s30  ;;  %8725 = vmatprep.subr.bf16.mxu1 %v11400_v50  ;;  %v11428_v52 = vpack.c.bf16 %v1172_v27, %v1164_v30  ;;  %v8054_v50 = vld [vmem:[%s16169_s2 + $0x4] ss:$8 sm:$0xf]  ;;  %16945 = vst [vmem:[#allocation56_spill] sm:$0xff] %v11436_v58  ;;  %v11443_v30 = vpack.c.bf16 %v1189_v20, %v1181_v25 }
 0x2a7   :  { %v11425_v51 = vpop.permute.xlu0 %2950  ;;  %16946 = vst [vmem:[#allocation58_spill] sm:$0xff] %v11441_v61  ;;  %v1180_v27 = vld [vmem:[#allocation4 + $0x200] sm:$0xff]  ;;  %v2683_v58 = vrot.slane %v10699_v7, %v10421_v45  ;;  %v1190_v21 = vld [vmem:[#allocation4 + $0x250] sm:$0xff]  ;;  %v1205_v19 = vld [vmem:[#allocation4 + $0x2c8] sm:$0xff]  ;;  %v11455_v20 = vor.u32 %v8055_v31, %v8054_v50 }
 0x2a8   :  { %16943 = vst [vmem:[#allocation53_spill] sm:$0xff] %v11425_v51  ;;  %8663 = vmatpush1.bf16.msra.mxu0 %v11409_v49  ;;  %16944 = vst [vmem:[#allocation55_spill] sm:$0xff] %v11428_v52  ;;  %v1188_v49 = vld [vmem:[#allocation4 + $0x240] sm:$0xff]  ;;  %v11449_v51 = vpack.c.bf16 %v1191_v16, %v1183_v44  ;;  %4108 = vrot.lane.b32.xlu1 %v4075_v35, %s9872_s14  ;;  %v11463_v7 = vpack.c.bf16 %v1190_v21, %v1182_v33  ;;  %v1198_v50 = vld [vmem:[#allocation4 + $0x290] sm:$0xff] }
 0x2a9   :  { %8727 = vmatpush1.bf16.msra.mxu1 %v11413_v8  ;;  %8665 = vmatprep.subr.bf16.mxu0 %v11415_v53  ;;  %16947 = vst [vmem:[#allocation67_spill] sm:$0xff] %v11443_v30  ;;  %v1197_v8 = vld [vmem:[#allocation4 + $0x288] sm:$0xff]  ;;  %v1207_v53 = vld [vmem:[#allocation4 + $0x2d8] sm:$0xff]  ;;  %v1196_v16 = vld [vmem:[#allocation4 + $0x280] sm:$0xff] }
 0x2aa   :  { %4104 = vrot.lane.b32.xlu0 %v4067_v34, %s9872_s14  ;;  %8729 = vmatprep.subr.bf16.mxu1 %v11421_v41  ;;  %16948 = vst [vmem:[#allocation65_spill] sm:$0xff] %v11449_v51  ;;  %v11458_v34 = vpack.c.bf16 %v1188_v49, %v1180_v27  ;;  %16951 = vst [vmem:[#allocation69_spill] sm:$0xff] %v11463_v7  ;;  %v11465_v44 = vpack.c.bf16 %v1205_v19, %v1197_v8  ;;  %v1204_v41 = vld [vmem:[#allocation4 + $0x2c0] sm:$0xff]  ;;  %v1206_v27 = vld [vmem:[#allocation4 + $0x2d0] sm:$0xff] }
 0x2ab   :  { %v11453_v25 = vpop.permute.xlu0 %4086  ;;  %v3309_v49 = vrot.slane %v10777_v0, %v10414_v28  ;;  %v11471_v31 = vpack.c.bf16 %v1207_v53, %v1199_v59  ;;  %v1213_v35 = vld [vmem:[#allocation4 + $0x308] sm:$0xff]  ;;  %v3135_v19 = vrot.slane %v11455_v20, %v10376_v12  ;;  %v3143_v8 = vrot.slane %v11455_v20, %v10336_v40  ;;  %v1223_v21 = vld [vmem:[#allocation4 + $0x358] sm:$0xff]  ;;  %v1212_v40 = vld [vmem:[#allocation4 + $0x300] sm:$0xff] }
 0x2ac   :  { %16949 = vst [vmem:[#allocation66_spill] sm:$0xff] %v11453_v25  ;;  %8667 = vmatpush1.bf16.msra.mxu0 %v11428_v52  ;;  %16950 = vst [vmem:[#allocation68_spill] sm:$0xff] %v11458_v34  ;;  %v3139_v53 = vrot.slane %v11455_v20, %v10395_v46  ;;  %v11484_v59 = vpack.c.bf16 %v1204_v41, %v1196_v16  ;;  %v11490_v12 = vpack.c.bf16 %v1206_v27, %v1198_v50  ;;  %v1220_v52 = vld [vmem:[#allocation4 + $0x340] sm:$0xff]  ;;  %v1222_v46 = vld [vmem:[#allocation4 + $0x350] sm:$0xff] }
 0x2ad   :  { %8731 = vmatpush1.bf16.msra.mxu1 %v11441_v61  ;;  %8669 = vmatprep.subr.bf16.mxu0 %v11443_v30  ;;  %16952 = vst [vmem:[#allocation70_spill] sm:$0xff] %v11465_v44  ;;  %16953 = vst [vmem:[#allocation71_spill] sm:$0xff] %v11471_v31  ;;  %v1221_v61 = vld [vmem:[#allocation4 + $0x348] sm:$0xff]  ;;  %v11473_v30 = vpop.permute.xlu1 %3334 }
 0x2ae   :  { %2714 = vrot.lane.b32.xlu0 %v2683_v58, %s9867_s29  ;;  %8733 = vmatprep.subr.bf16.mxu1 %v11449_v51  ;;  %16954 = vst [vmem:[#allocation73_spill] sm:$0xff] %v11473_v30  ;;  %v1215_v58 = vld [vmem:[#allocation4 + $0x318] sm:$0xff]  ;;  %v3147_v30 = vrot.slane %v11455_v20, %v16802_v37  ;;  %v11492_v51 = vpack.c.bf16 %v1221_v61, %v1213_v35  ;;  %v1237_v37 = vld [vmem:[#allocation4 + $0x3c8] sm:$0xff] }
 0x2af   :  { %v11475_v33 = vpop.permute.xlu0 %2698  ;;  %v11500_v16 = vpack.c.bf16 %v1223_v21, %v1215_v58  ;;  %v11513_v58 = vpack.c.bf16 %v1220_v52, %v1212_v40  ;;  %v3317_v40 = vrot.slane %v10777_v0, %v10421_v45 }
 0x2b0   :  { %16955 = vst [vmem:[#allocation74_spill] sm:$0xff] %v11475_v33  ;;  %8671 = vmatpush1.bf16.msra.mxu0 %v11458_v34  ;;  %v1214_v33 = vld [vmem:[#allocation4 + $0x310] sm:$0xff] }
 0x2b1   :  { %8735 = vmatpush1.bf16.msra.mxu1 %v11463_v7  ;;  %8673 = vmatprep.subr.bf16.mxu0 %v11465_v44  ;;  %v1229_v44 = vld [vmem:[#allocation4 + $0x388] sm:$0xff]  ;;  %v1239_v7 = vld [vmem:[#allocation4 + $0x3d8] sm:$0xff]  ;;  %16957 = vst [vmem:[#allocation76_spill] sm:$0xff] %v11513_v58  ;;  %v11515_v21 = vpop.permute.xlu1 %3584 }
 0x2b2   :  { %3344 = vrot.lane.b32.xlu0 %v3309_v49, %s9869_s21  ;;  %v11495_v34 = vpop.f32.mrb[2].mxu0  ;;  %v11497_v41 = vpop.f32.mrb[2].mxu1  ;;  %8737 = vmatprep.subr.bf16.mxu1 %v11471_v31  ;;  %v1231_v49 = vld [vmem:[#allocation4 + $0x398] sm:$0xff]  ;;  %16958 = vst [vmem:[#allocation78_spill] sm:$0xff] %v11515_v21 }
 0x2b3   :  { %v3212_v50 = vmul.f32 %v3135_v19, %v11495_v34  ;;  %v3214_v61 = vmul.f32 %v3143_v8, %v11497_v41  ;;  %v11504_v27 = vpop.permute.xlu0 %2954  ;;  %v11506_v35 = vpop.f32.mrb[3].mxu0  ;;  %v11520_v8 = vpack.c.bf16 %v1222_v46, %v1214_v33  ;;  %v11528_v52 = vpack.c.bf16 %v1239_v7, %v1231_v49  ;;  %v1244_v7 = vld [vmem:[#allocation4 + $0x400] sm:$0xff]  ;;  %v1246_v49 = vld [vmem:[#allocation4 + $0x410] sm:$0xff] }
 0x2b4   :  { %16956 = vst [vmem:[#allocation75_spill] sm:$0xff] %v11504_v27  ;;  %v3213_v48 = vmul.f32 %v3139_v53, %v11506_v35  ;;  %v11510_v31 = vpop.f32.mrb[3].mxu1  ;;  %8675 = vmatpush1.bf16.msra.mxu0 %v11484_v59  ;;  %v11522_v27 = vpack.c.bf16 %v1237_v37, %v1229_v44  ;;  %v1228_v53 = vld [vmem:[#allocation4 + $0x380] sm:$0xff]  ;;  %v1247_v37 = vld [vmem:[#allocation4 + $0x418] sm:$0xff] }
 0x2b5   :  { %3228 = vst [vmem:[#allocation2 + $0x200] sm:$0xf] %v3212_v50  ;;  %3230 = vst [vmem:[#allocation2 + $0x210] sm:$0xf] %v3214_v61  ;;  %v3215_v19 = vmul.f32 %v3147_v30, %v11510_v31  ;;  %8739 = vmatpush1.bf16.msra.mxu1 %v11490_v12  ;;  %8677 = vmatprep.subr.bf16.mxu0 %v11492_v51  ;;  %v1238_v30 = vld [vmem:[#allocation4 + $0x3d0] sm:$0xff]  ;;  %v1245_v50 = vld [vmem:[#allocation4 + $0x408] sm:$0xff]  ;;  %v11547_v21 = vpop.permute.xlu1 %3838 }
 0x2b6   :  { %16959 = vst [vmem:[#allocation79_spill] sm:$0xff] %v11520_v8  ;;  %16960 = vst [vmem:[#allocation80_spill] sm:$0xff] %v11522_v27  ;;  %2783 = vrot.lane.b32.xlu0 %v2749_v47, %s9870_s1  ;;  %8741 = vmatprep.subr.bf16.mxu1 %v11500_v16  ;;  %v1253_v61 = vld [vmem:[#allocation4 + $0x448] sm:$0xff]  ;;  %v1255_v44 = vld [vmem:[#allocation4 + $0x458] sm:$0xff]  ;;  %v11537_v47 = vpack.c.bf16 %v1238_v30, %v1230_v23 }
 0x2b7   :  { %3229 = vst [vmem:[#allocation2 + $0x208] sm:$0xf] %v3213_v48  ;;  %16961 = vst [vmem:[#allocation81_spill] sm:$0xff] %v11528_v52  ;;  %v11530_v46 = vpop.permute.xlu0 %3328  ;;  %v11533_v48 = vpack.c.bf16 %v1236_v3, %v1228_v53  ;;  %v11539_v0 = vpack.c.bf16 %v1253_v61, %v1245_v50  ;;  %v1252_v33 = vld [vmem:[#allocation4 + $0x440] sm:$0xff]  ;;  %v11545_v3 = vpack.c.bf16 %v1255_v44, %v1247_v37  ;;  %v1254_v53 = vld [vmem:[#allocation4 + $0x450] sm:$0xff] }
 0x2b8   :  { %3231 = vst [vmem:[#allocation2 + $0x218] sm:$0xf] %v3215_v19  ;;  %8679 = vmatpush1.bf16.msra.mxu0 %v11513_v58  ;;  %16963 = vst [vmem:[#allocation84_spill] sm:$0xff] %v11537_v47  ;;  %v3567_v19 = vrot.slane %v10847_v14, %v10388_v11  ;;  %v1269_v23 = vld [vmem:[#allocation4 + $0x4c8] sm:$0xff]  ;;  %v1263_v50 = vld [vmem:[#allocation4 + $0x498] sm:$0xff] }
 0x2b9   :  { %16962 = vst [vmem:[#allocation82_spill] sm:$0xff] %v11533_v48  ;;  %8743 = vmatpush1.bf16.msra.mxu1 %v11520_v8  ;;  %8681 = vmatprep.subr.bf16.mxu0 %v11522_v27  ;;  %16964 = vst [vmem:[#allocation85_spill] sm:$0xff] %v11539_v0  ;;  %v1261_v27 = vld [vmem:[#allocation4 + $0x488] sm:$0xff]  ;;  %v1271_v61 = vld [vmem:[#allocation4 + $0x4d8] sm:$0xff]  ;;  %v11552_v8 = vpack.c.bf16 %v1252_v33, %v1244_v7 }
 0x2ba   :  { %3348 = vrot.lane.b32.xlu0 %v3317_v40, %s9869_s21  ;;  %8745 = vmatprep.subr.bf16.mxu1 %v11528_v52  ;;  %16965 = vst [vmem:[#allocation86_spill] sm:$0xff] %v11545_v3  ;;  %16966 = vst [vmem:[#allocation87_spill] sm:$0xff] %v11547_v21  ;;  %v11556_v40 = vpack.c.bf16 %v1254_v53, %v1246_v49  ;;  %v11558_v37 = vpack.c.bf16 %v1269_v23, %v1261_v27  ;;  %v1260_v44 = vld [vmem:[#allocation4 + $0x480] sm:$0xff]  ;;  %v1262_v52 = vld [vmem:[#allocation4 + $0x490] sm:$0xff]  ;;  %v11571_v23 = vpop.permute.xlu1 %3588 }
 0x2bb   :  { %v11549_v30 = vpop.permute.xlu0 %3332  ;;  %16967 = vst [vmem:[#allocation89_spill] sm:$0xff] %v11552_v8  ;;  %v1268_v21 = vld [vmem:[#allocation4 + $0x4c0] sm:$0xff]  ;;  %v11564_v7 = vpack.c.bf16 %v1271_v61, %v1263_v50  ;;  %v1270_v33 = vld [vmem:[#allocation4 + $0x4d0] sm:$0xff]  ;;  %v1285_v58 = vld [vmem:[#allocation4 + $0x548] sm:$0xff] }
 0x2bc   :  { %8683 = vmatpush1.bf16.msra.mxu0 %v11533_v48  ;;  %16968 = vst [vmem:[#allocation90_spill] sm:$0xff] %v11556_v40  ;;  %16969 = vst [vmem:[#allocation91_spill] sm:$0xff] %v11558_v37  ;;  %v3821_v48 = vrot.slane %v10875_v24, %v10388_v11  ;;  %v1279_v49 = vld [vmem:[#allocation4 + $0x518] sm:$0xff]  ;;  %v11569_v53 = vpack.c.bf16 %v1268_v21, %v1260_v44  ;;  %v11575_v24 = vpack.c.bf16 %v1270_v33, %v1262_v52  ;;  %v1276_v50 = vld [vmem:[#allocation4 + $0x500] sm:$0xff] }
 0x2bd   :  { %8747 = vmatpush1.bf16.msra.mxu1 %v11537_v47  ;;  %8685 = vmatprep.subr.bf16.mxu0 %v11539_v0  ;;  %16970 = vst [vmem:[#allocation92_spill] sm:$0xff] %v11564_v7  ;;  %v1277_v47 = vld [vmem:[#allocation4 + $0x508] sm:$0xff]  ;;  %v1287_v27 = vld [vmem:[#allocation4 + $0x558] sm:$0xff]  ;;  %16972 = vst [vmem:[#allocation95_spill] sm:$0xff] %v11571_v23  ;;  %v3571_v21 = vrot.slane %v10847_v14, %v10421_v45 }
 0x2be   :  { %3600 = vrot.lane.b32.xlu0 %v3567_v19, %s9870_s1  ;;  %8749 = vmatprep.subr.bf16.mxu1 %v11545_v3  ;;  %16971 = vst [vmem:[#allocation94_spill] sm:$0xff] %v11569_v53  ;;  %16973 = vst [vmem:[#allocation96_spill] sm:$0xff] %v11575_v24  ;;  %v11577_v19 = vpack.c.bf16 %v1285_v58, %v1277_v47  ;;  %v1284_v61 = vld [vmem:[#allocation4 + $0x540] sm:$0xff]  ;;  %v1278_v3 = vld [vmem:[#allocation4 + $0x510] sm:$0xff]  ;;  %v11583_v44 = vpack.c.bf16 %v1287_v27, %v1279_v49 }
 0x2bf   :  { %v11566_v0 = vpop.permute.xlu0 %3582  ;;  %v1286_v23 = vld [vmem:[#allocation4 + $0x550] sm:$0xff]  ;;  %v1295_v52 = vld [vmem:[#allocation4 + $0x598] sm:$0xff]  ;;  %v11588_v47 = vpack.c.bf16 %v1284_v61, %v1276_v50  ;;  %v1292_v33 = vld [vmem:[#allocation4 + $0x580] sm:$0xff]  ;;  %v11600_v50 = vpop.permute.xlu1 %3842 }
 0x2c0   :  { %8687 = vmatpush1.bf16.msra.mxu0 %v11552_v8  ;;  %16974 = vst [vmem:[#allocation97_spill] sm:$0xff] %v11577_v19  ;;  %16975 = vst [vmem:[#allocation99_spill] sm:$0xff] %v11583_v44  ;;  %v1301_v8 = vld [vmem:[#allocation4 + $0x5c8] sm:$0xff]  ;;  %v1303_v58 = vld [vmem:[#allocation4 + $0x5d8] sm:$0xff] }
 0x2c1   :  { %8751 = vmatpush1.bf16.msra.mxu1 %v11556_v40  ;;  %8689 = vmatprep.subr.bf16.mxu0 %v11558_v37  ;;  %v1293_v40 = vld [vmem:[#allocation4 + $0x588] sm:$0xff]  ;;  %16976 = vst [vmem:[#allocation102_spill] sm:$0xff] %v11588_v47  ;;  %v1300_v49 = vld [vmem:[#allocation4 + $0x5c0] sm:$0xff]  ;;  %v1294_v27 = vld [vmem:[#allocation4 + $0x590] sm:$0xff]  ;;  %v11602_v61 = vpack.c.bf16 %v1303_v58, %v1295_v52 }
 0x2c2   :  { %3854 = vrot.lane.b32.xlu0 %v3821_v48, %s9871_s26  ;;  %8753 = vmatprep.subr.bf16.mxu1 %v11564_v7  ;;  %v11592_v48 = vpack.c.bf16 %v1286_v23, %v1278_v3  ;;  %v11594_v14 = vpack.c.bf16 %v1301_v8, %v1293_v40  ;;  %16979 = vst [vmem:[#allocation106_spill] sm:$0xff] %v11600_v50  ;;  %v1317_v3 = vld [vmem:[#allocation4 + $0x648] sm:$0xff]  ;;  %v1311_v8 = vld [vmem:[#allocation4 + $0x618] sm:$0xff]  ;;  %v1308_v52 = vld [vmem:[#allocation4 + $0x600] sm:$0xff] }
 0x2c3   :  { %v11585_v37 = vpop.permute.xlu0 %3836  ;;  %16980 = vst [vmem:[#allocation107_spill] sm:$0xff] %v11602_v61  ;;  %v1319_v40 = vld [vmem:[#allocation4 + $0x658] sm:$0xff]  ;;  %v11607_v7 = vpack.c.bf16 %v1300_v49, %v1292_v33  ;;  %v1316_v58 = vld [vmem:[#allocation4 + $0x640] sm:$0xff]  ;;  %v1318_v49 = vld [vmem:[#allocation4 + $0x650] sm:$0xff] }
 0x2c4   :  { %8691 = vmatpush1.bf16.msra.mxu0 %v11569_v53  ;;  %16977 = vst [vmem:[#allocation103_spill] sm:$0xff] %v11592_v48  ;;  %16978 = vst [vmem:[#allocation104_spill] sm:$0xff] %v11594_v14  ;;  %v4071_v53 = vrot.slane %v11000_v43, %v10414_v28  ;;  %v11619_v33 = vpack.c.bf16 %v1319_v40, %v1311_v8  ;;  %v1324_v8 = vld [vmem:[#allocation4 + $0x680] sm:$0xff] }
 0x2c5   :  { %8755 = vmatpush1.bf16.msra.mxu1 %v11575_v24  ;;  %8693 = vmatprep.subr.bf16.mxu0 %v11577_v19  ;;  %v1302_v24 = vld [vmem:[#allocation4 + $0x5d0] sm:$0xff]  ;;  %v1309_v19 = vld [vmem:[#allocation4 + $0x608] sm:$0xff]  ;;  %16982 = vst [vmem:[#allocation109_spill] sm:$0xff] %v11607_v7  ;;  %v1332_v40 = vld [vmem:[#allocation4 + $0x6c0] sm:$0xff] }
 0x2c6   :  { %3602 = vrot.lane.b32.xlu0 %v3571_v21, %s9870_s1  ;;  %8757 = vmatprep.subr.bf16.mxu1 %v11583_v44  ;;  %v11611_v21 = vpack.c.bf16 %v1302_v24, %v1294_v27  ;;  %v11613_v50 = vpack.c.bf16 %v1317_v3, %v1309_v19  ;;  %v1310_v44 = vld [vmem:[#allocation4 + $0x610] sm:$0xff]  ;;  %16985 = vst [vmem:[#allocation113_spill] sm:$0xff] %v11619_v33  ;;  %v1327_v24 = vld [vmem:[#allocation4 + $0x698] sm:$0xff]  ;;  %v11624_v27 = vpop.permute.xlu1 %2448 }
 0x2c7   :  { %v11604_v23 = vpop.permute.xlu0 %3586  ;;  %v1335_v19 = vld [vmem:[#allocation4 + $0x6d8] sm:$0xff]  ;;  %16986 = vst [vmem:[#allocation114_spill] sm:$0xff] %v11624_v27  ;;  %v11626_v3 = vpack.c.bf16 %v1316_v58, %v1308_v52  ;;  %v1334_v52 = vld [vmem:[#allocation4 + $0x6d0] sm:$0xff]  ;;  %v1341_v58 = vld [vmem:[#allocation4 + $0x708] sm:$0xff] }
 0x2c8   :  { %16981 = vst [vmem:[#allocation108_spill] sm:$0xff] %v11604_v23  ;;  %8695 = vmatpush1.bf16.msra.mxu0 %v11588_v47  ;;  %16983 = vst [vmem:[#allocation111_spill] sm:$0xff] %v11611_v21  ;;  %v4079_v47 = vrot.slane %v11000_v43, %v10421_v45  ;;  %v1333_v23 = vld [vmem:[#allocation4 + $0x6c8] sm:$0xff]  ;;  %v11630_v43 = vpack.c.bf16 %v1318_v49, %v1310_v44  ;;  %v2463_v44 = vsel %vm2460_vm2, %v10976_v54, %v11179_v60  ;;  %v1340_v60 = vld [vmem:[#allocation4 + $0x700] sm:$0xff] }
 0x2c9   :  { %8759 = vmatpush1.bf16.msra.mxu1 %v11592_v48  ;;  %8697 = vmatprep.subr.bf16.mxu0 %v11594_v14  ;;  %16984 = vst [vmem:[#allocation112_spill] sm:$0xff] %v11613_v50  ;;  %v1325_v48 = vld [vmem:[#allocation4 + $0x688] sm:$0xff]  ;;  %16987 = vst [vmem:[#allocation116_spill] sm:$0xff] %v11626_v3 }
 0x2ca   :  { %4106 = vrot.lane.b32.xlu0 %v4071_v53, %s9872_s14  ;;  %8761 = vmatprep.subr.bf16.mxu1 %v11602_v61  ;;  %16988 = vst [vmem:[#allocation117_spill] sm:$0xff] %v11630_v43  ;;  %v11632_v53 = vpack.c.bf16 %v1333_v23, %v1325_v48  ;;  %v1326_v61 = vld [vmem:[#allocation4 + $0x690] sm:$0xff]  ;;  %v1349_v27 = vld [vmem:[#allocation4 + $0x748] sm:$0xff]  ;;  %v1343_v48 = vld [vmem:[#allocation4 + $0x718] sm:$0xff] }
 0x2cb   :  { %v11621_v14 = vpop.permute.xlu0 %3840  ;;  %v1351_v23 = vld [vmem:[#allocation4 + $0x758] sm:$0xff] }
 0x2cc   :  { %8699 = vmatpush1.bf16.msra.mxu0 %v11607_v7  ;;  %16989 = vst [vmem:[#allocation118_spill] sm:$0xff] %v11632_v53  ;;  %v11636_v7 = vpack.c.bf16 %v1335_v19, %v1327_v24  ;;  %v11649_v24 = vpack.c.bf16 %v1334_v52, %v1326_v61  ;;  %v11651_v19 = vpack.c.bf16 %v1349_v27, %v1341_v58  ;;  %v1359_v27 = vld [vmem:[#allocation4 + $0x798] sm:$0xff] }
 0x2cd   :  { %8763 = vmatpush1.bf16.msra.mxu1 %v11611_v21  ;;  %8701 = vmatprep.subr.bf16.mxu0 %v11613_v50  ;;  %v11645_v50 = vpack.c.bf16 %v1332_v40, %v1324_v8  ;;  %v11654_v21 = vpop.permute.xlu1 %4092  ;;  %v1350_v8 = vld [vmem:[#allocation4 + $0x750] sm:$0xff]  ;;  %v1357_v40 = vld [vmem:[#allocation4 + $0x788] sm:$0xff]  ;;  %v2717_v61 = vsel %vm2716_vm3, %v11195_v13, %v11021_v56  ;;  %v1367_v52 = vld [vmem:[#allocation4 + $0x7d8] sm:$0xff] }
 0x2ce   :  { %4110 = vrot.lane.b32.xlu0 %v4079_v47, %s9872_s14  ;;  %8765 = vmatprep.subr.bf16.mxu1 %v11619_v33  ;;  %16990 = vst [vmem:[#allocation119_spill] sm:$0xff] %v11636_v7  ;;  %v2496_v47 = vmul.f32 %v2463_v44, %v11497_v41  ;;  %16993 = vst [vmem:[#allocation123_spill] sm:$0xff] %v11649_v24  ;;  %v1348_v33 = vld [vmem:[#allocation4 + $0x740] sm:$0xff]  ;;  %v11657_v44 = vpack.c.bf16 %v1351_v23, %v1343_v48 }
 0x2cf   :  { %v11641_v49 = vpop.permute.xlu0 %2446  ;;  %16992 = vst [vmem:[#allocation122_spill] sm:$0xff] %v11645_v50  ;;  %16994 = vst [vmem:[#allocation124_spill] sm:$0xff] %v11651_v19  ;;  %v1356_v13 = vld [vmem:[#allocation4 + $0x780] sm:$0xff] }
 0x2d0   :  { %16991 = vst [vmem:[#allocation121_spill] sm:$0xff] %v11641_v49  ;;  %8703 = vmatpush1.bf16.msra.mxu0 %v11626_v3  ;;  %v1342_v49 = vld [vmem:[#allocation4 + $0x710] sm:$0xff]  ;;  %16995 = vst [vmem:[#allocation126_spill] sm:$0xff] %v11657_v44  ;;  %v1364_v56 = vld [vmem:[#allocation4 + $0x7c0] sm:$0xff] }
 0x2d1   :  { %8767 = vmatpush1.bf16.msra.mxu1 %v11630_v43  ;;  %8705 = vmatprep.subr.bf16.mxu0 %v11632_v53  ;;  %v1365_v43 = vld [vmem:[#allocation4 + $0x7c8] sm:$0xff]  ;;  %v11666_v53 = vpack.c.bf16 %v1348_v33, %v1340_v60  ;;  %v11670_v48 = vpack.c.bf16 %v1350_v8, %v1342_v49  ;;  %v17000_v3 = vld [vmem:[#allocation7_spill] sm:$0xff]  ;;  %v1123_v49 = vld [vmem:[#allocation4 + $0x38] sm:$0xff] }
 0x2d2   :  { %2533 = vrot.lane.b32.xlu0 %v2496_v47, %s9871_s26  ;;  %8769 = vmatprep.subr.bf16.mxu1 %v11636_v7  ;;  %v2750_v47 = vmul.f32 %v2717_v61, %v11495_v34  ;;  %v11672_v23 = vpack.c.bf16 %v1365_v43, %v1357_v40  ;;  %v1358_v7 = vld [vmem:[#allocation4 + $0x790] sm:$0xff]  ;;  %v1121_v60 = vld [vmem:[#allocation4 + $0x28] sm:$0xff]  ;;  %v2973_v43 = vsel %vm2972_vm4, %v11038_v5, %v11219_v22  ;;  %v1131_v8 = vld [vmem:[#allocation4 + $0x78] sm:$0xff]  ;;  %v11683_v40 = vpop.permute.xlu1 %2452 }
 0x2d3   :  { %16996 = vst [vmem:[#allocation127_spill] sm:$0xff] %v11666_v53  ;;  %16997 = vst [vmem:[#allocation128_spill] sm:$0xff] %v11670_v48  ;;  %v1366_v61 = vld [vmem:[#allocation4 + $0x7d0] sm:$0xff]  ;;  %v1129_v33 = vld [vmem:[#allocation4 + $0x68] sm:$0xff] }
 0x2d4   :  { %v11662_v58 = vpop.permute.xlu0 %4090  ;;  %8707 = vmatpush1.bf16.msra.mxu0 %v11645_v50  ;;  %16998 = vst [vmem:[#allocation129_spill] sm:$0xff] %v11672_v23  ;;  %v11676_v50 = vpack.c.bf16 %v1367_v52, %v1359_v27  ;;  %17001 = vst [vmem:[#allocation132_spill] sm:$0xff] %v11683_v40  ;;  %v3006_v27 = vmul.f32 %v2973_v43, %v11495_v34  ;;  %v11689_v52 = vpack.c.bf16 %v1364_v56, %v1356_v13  ;;  %v1128_v40 = vld [vmem:[#allocation4 + $0x60] sm:$0xff]  ;;  %v1122_v56 = vld [vmem:[#allocation4 + $0x30] sm:$0xff] }
 0x2d5   :  { %8771 = vmatpush1.bf16.msra.mxu1 %v11649_v24  ;;  %8709 = vmatprep.subr.bf16.mxu0 %v11651_v19  ;;  %v107_v24 = vmul.f32 %v16922_v57, %v17000_v3  ;;  %v11693_v57 = vpack.c.bf16 %v1366_v61, %v1358_v7  ;;  %v11696_v3 = vpack.c.bf16 %v1129_v33, %v1121_v60  ;;  %v1130_v13 = vld [vmem:[#allocation4 + $0x70] sm:$0xff]  ;;  %v1137_v61 = vld [vmem:[#allocation4 + $0xa8] sm:$0xff]  ;;  %v1139_v33 = vld [vmem:[#allocation4 + $0xb8] sm:$0xff] }
 0x2d6   :  { %2785 = vrot.lane.b32.xlu0 %v2750_v47, %s9870_s1  ;;  %8773 = vmatprep.subr.bf16.mxu1 %v11657_v44  ;;  %16999 = vst [vmem:[#allocation131_spill] sm:$0xff] %v11676_v50  ;;  %17003 = vst [vmem:[#allocation63_spill] sm:$0xff] %v11689_v52  ;;  %v1120_v47 = vld [vmem:[#allocation4 + $0x20] sm:$0xff]  ;;  %v11700_v43 = vpack.c.bf16 %v1131_v8, %v1123_v49  ;;  %v3351_v7 = vsel %vm3073_vm5, %v11108_v6, %v11269_v36  ;;  %v1145_v60 = vld [vmem:[#allocation4 + $0xe8] sm:$0xff] }
 0x2d7   :  { %17004 = vst [vmem:[#allocation64_spill] sm:$0xff] %v11693_v57  ;;  %v117_v5 = vadd.f32 %v16926_v39, %v107_v24  ;;  %17005 = vst [vmem:[#allocation7_spill] sm:$0xff] %v11696_v3  ;;  %v3384_v39 = vmul.f32 %v3351_v7, %v11497_v41  ;;  %v11709_v24 = vpack.c.bf16 %v1128_v40, %v1120_v47  ;;  %v1136_v6 = vld [vmem:[#allocation4 + $0xa0] sm:$0xff]  ;;  %v1146_v40 = vld [vmem:[#allocation4 + $0xf0] sm:$0xff] }
 0x2d8   :  { %v11685_v19 = vpop.permute.xlu0 %2450  ;;  %8711 = vmatpush1.bf16.msra.mxu0 %v11666_v53  ;;  %17006 = vst [vmem:[#allocation137_spill] sm:$0xff] %v11700_v43  ;;  %v11715_v8 = vpack.c.bf16 %v1130_v13, %v1122_v56  ;;  %v1144_v22 = vld [vmem:[#allocation4 + $0xe0] sm:$0xff]  ;;  %v1153_v47 = vld [vmem:[#allocation4 + $0x128] sm:$0xff]  ;;  %v1155_v56 = vld [vmem:[#allocation4 + $0x138] sm:$0xff] }
 0x2d9   :  { %17002 = vst [vmem:[#allocation8_spill] sm:$0xff] %v11685_v19  ;;  %8775 = vmatpush1.bf16.msra.mxu1 %v11670_v48  ;;  %8713 = vmatprep.subr.bf16.mxu0 %v11672_v23  ;;  %17008 = vst [vmem:[#allocation139_spill] sm:$0xff] %v11709_v24  ;;  %v11712_v49 = vmax.f32 %v117_v5, 0.0  ;;  %v1161_v7 = vld [vmem:[#allocation4 + $0x168] sm:$0xff]  ;;  %v11722_v5 = vpack.c.bf16 %v1145_v60, %v1137_v61  ;;  %v1163_v13 = vld [vmem:[#allocation4 + $0x178] sm:$0xff] }
 0x2da   :  { %3041 = vrot.lane.b32.xlu0 %v3006_v27, %s9869_s21  ;;  %8777 = vmatprep.subr.bf16.mxu1 %v11676_v50  ;;  %v1147_v27 = vld [vmem:[#allocation4 + $0xf8] sm:$0xff]  ;;  %17009 = vst [vmem:[#allocation140_spill] sm:$0xff] %v11715_v8  ;;  %v11717_v50 = vpop.permute.xlu1 %2704  ;;  %v11738_v60 = vpack.c.bf16 %v1161_v7, %v1153_v47  ;;  %v1186_v23 = vld [vmem:[#allocation4 + $0x230] sm:$0xff] }
 0x2db   :  { %17010 = vst [vmem:[#allocation141_spill] sm:$0xff] %v11717_v50  ;;  %17011 = vst [vmem:[#allocation142_spill] sm:$0xff] %v11722_v5  ;;  %v11732_v50 = vpack.c.bf16 %v1144_v22, %v1136_v6  ;;  %v1169_v6 = vld [vmem:[#allocation4 + $0x1a8] sm:$0xff]  ;;  %v1234_v44 = vld [vmem:[#allocation4 + $0x3b0] sm:$0xff] }
 0x2dc   :  { %v11705_v19 = vpop.permute.xlu0 %2702  ;;  %8715 = vmatpush1.bf16.msra.mxu0 %v11689_v52  ;;  %17016 = vst [vmem:[#allocation147_spill] sm:$0xff] %v11738_v60  ;;  %v1177_v22 = vld [vmem:[#allocation4 + $0x1e8] sm:$0xff]  ;;  %v1192_v52 = vld [vmem:[#allocation4 + $0x260] sm:$0xff] }
 0x2dd   :  { %17007 = vst [vmem:[#allocation138_spill] sm:$0xff] %v11705_v19  ;;  %8779 = vmatpush1.bf16.msra.mxu1 %v11693_v57  ;;  %8781 = vmatprep.subr.bf16.mxu0 %v11696_v3  ;;  %v1138_v19 = vld [vmem:[#allocation4 + $0xb0] sm:$0xff]  ;;  %v11724_v57 = vpack.c.bf16 %v1147_v27, %v1139_v33  ;;  %17014 = vst [vmem:[#allocation145_spill] sm:$0xff] %v11732_v50  ;;  %v1152_v33 = vld [vmem:[#allocation4 + $0x120] sm:$0xff] }
 0x2de   :  { %3420 = vrot.lane.b32.xlu0 %v3384_v39, %s9868_s30  ;;  %8845 = vmatprep.subr.bf16.mxu1 %v11700_v43  ;;  %v3636_v39 = vmul.f32 %v11146_v26, %v11495_v34  ;;  %v11736_v61 = vpack.c.bf16 %v1146_v40, %v1138_v19  ;;  %v1160_v27 = vld [vmem:[#allocation4 + $0x160] sm:$0xff]  ;;  %v1154_v43 = vld [vmem:[#allocation4 + $0x130] sm:$0xff]  ;;  %v1171_v19 = vld [vmem:[#allocation4 + $0x1b8] sm:$0xff]  ;;  %v11749_v47 = vpop.permute.xlu1 %2960 }
 0x2df   :  { %1437 = vmatmul.mubr.f32.vlgmr.msra.gmra.mrb[10].mxu0 %v11712_v49  ;;  %17012 = vst [vmem:[#allocation143_spill] sm:$0xff] %v11724_v57  ;;  %v1179_v40 = vld [vmem:[#allocation4 + $0x1f8] sm:$0xff]  ;;  %17018 = vst [vmem:[#allocation149_spill] sm:$0xff] %v11749_v47 }
 0x2e0   :  { %1508 = vmatmul.mubr.f32.vlgmr.msra.gmra.mrb[10].mxu1 %v11712_v49  ;;  %v11727_v3 = vpop.permute.xlu0 %2958  ;;  %8783 = vmatpush1.bf16.msra.mxu0 %v11709_v24  ;;  %17015 = vst [vmem:[#allocation146_spill] sm:$0xff] %v11736_v61  ;;  %v1162_v24 = vld [vmem:[#allocation4 + $0x170] sm:$0xff]  ;;  %v11765_v47 = vpack.c.bf16 %v1179_v40, %v1171_v19 }
 0x2e1   :  { %17013 = vst [vmem:[#allocation144_spill] sm:$0xff] %v11727_v3  ;;  %1578 = vmatprep.mubr.f32.mxu0 %v11380_v62  ;;  %8847 = vmatpush1.bf16.msra.mxu1 %v11715_v8  ;;  %v11742_v3 = vpack.c.bf16 %v1163_v13, %v1155_v56  ;;  %v4113_v8 = vsel %vm2305_vm6, %v11361_v17, %v11281_v4  ;;  %v1168_v17 = vld [vmem:[#allocation4 + $0x1a0] sm:$0xff] }
 0x2e2   :  { %1649 = vmatprep.mubr.f32.mxu1 %v11380_v62  ;;  %3670 = vrot.lane.b32.xlu0 %v3636_v39, %s9867_s29  ;;  %v4146_v7 = vmul.f32 %v4113_v8, %v11497_v41  ;;  %v11755_v56 = vpack.c.bf16 %v1160_v27, %v1152_v33  ;;  %v11759_v13 = vpack.c.bf16 %v1162_v24, %v1154_v43  ;;  %v1178_v8 = vld [vmem:[#allocation4 + $0x1f0] sm:$0xff]  ;;  %v1185_v33 = vld [vmem:[#allocation4 + $0x228] sm:$0xff]  ;;  %v1187_v24 = vld [vmem:[#allocation4 + $0x238] sm:$0xff]  ;;  %v11782_v48 = vpop.permute.xlu1 %4096 }
 0x2e3   :  { %17017 = vst [vmem:[#allocation148_spill] sm:$0xff] %v11742_v3  ;;  %8785 = vmatprep.subr.bf16.mxu0 %v11722_v5  ;;  %8849 = vmatprep.subr.bf16.mxu1 %v11724_v57  ;;  %v11761_v39 = vpack.c.bf16 %v1177_v22, %v1169_v6  ;;  %v1176_v57 = vld [vmem:[#allocation4 + $0x1e0] sm:$0xff]  ;;  %v1170_v5 = vld [vmem:[#allocation4 + $0x1b0] sm:$0xff]  ;;  %17022 = vst [vmem:[#allocation153_spill] sm:$0xff] %v11765_v47 }
 0x2e4   :  { %v11751_v62 = vpop.permute.xlu0 %4094  ;;  %8787 = vmatpush1.bf16.msra.mxu0 %v11732_v50  ;;  %17019 = vst [vmem:[#allocation150_spill] sm:$0xff] %v11755_v56  ;;  %17020 = vst [vmem:[#allocation151_spill] sm:$0xff] %v11759_v13  ;;  %v1193_v27 = vld [vmem:[#allocation4 + $0x268] sm:$0xff]  ;;  %v17024_v50 = vld [vmem:[#allocation77_spill] sm:$0xff]  ;;  %v11778_v19 = vpack.c.bf16 %v1178_v8, %v1170_v5 }
 0x2e5   :  { %8851 = vmatpush1.bf16.msra.mxu1 %v11736_v61  ;;  %8789 = vmatprep.subr.bf16.mxu0 %v11738_v60  ;;  %17021 = vst [vmem:[#allocation152_spill] sm:$0xff] %v11761_v39  ;;  %v17023_v61 = vld [vmem:[#allocation83_spill] sm:$0xff]  ;;  %v1195_v6 = vld [vmem:[#allocation4 + $0x278] sm:$0xff]  ;;  %v11780_v40 = vpack.c.bf16 %v1193_v27, %v1185_v33  ;;  %17029 = vst [vmem:[#allocation156_spill] sm:$0xff] %v11782_v48 }
 0x2e6   :  { %4182 = vrot.lane.b32.xlu0 %v4146_v7, %s9865_s4  ;;  %8853 = vmatprep.subr.bf16.mxu1 %v11742_v3  ;;  %v2206_v43 = vsel %vm2204_vm7, %v17024_v50, %v17023_v61  ;;  %v11774_v7 = vpack.c.bf16 %v1176_v57, %v1168_v17  ;;  %17027 = vst [vmem:[#allocation154_spill] sm:$0xff] %v11778_v19  ;;  %v1184_v3 = vld [vmem:[#allocation4 + $0x220] sm:$0xff]  ;;  %v1194_v17 = vld [vmem:[#allocation4 + $0x270] sm:$0xff]  ;;  %v1201_v57 = vld [vmem:[#allocation4 + $0x2a8] sm:$0xff] }
 0x2e7   :  { %v2239_v60 = vmul.f32 %v2206_v43, %v11506_v35  ;;  %17028 = vst [vmem:[#allocation155_spill] sm:$0xff] %v11780_v40  ;;  %v11786_v43 = vpack.c.bf16 %v1195_v6, %v1187_v24  ;;  %v1203_v8 = vld [vmem:[#allocation4 + $0x2b8] sm:$0xff]  ;;  %v11799_v24 = vpack.c.bf16 %v1194_v17, %v1186_v23  ;;  %v3151_v23 = vrot.slane %v11455_v20, %v10361_v63 }
 0x2e8   :  { %v11770_v22 = vpop.permute.xlu0 %2706  ;;  %8791 = vmatpush1.bf16.msra.mxu0 %v11755_v56  ;;  %17026 = vst [vmem:[#allocation77_spill] sm:$0xff] %v11774_v7  ;;  %v1211_v33 = vld [vmem:[#allocation4 + $0x2f8] sm:$0xff]  ;;  %v1202_v56 = vld [vmem:[#allocation4 + $0x2b0] sm:$0xff] }
 0x2e9   :  { %17025 = vst [vmem:[#allocation83_spill] sm:$0xff] %v11770_v22  ;;  %8855 = vmatpush1.bf16.msra.mxu1 %v11759_v13  ;;  %8793 = vmatprep.subr.bf16.mxu0 %v11761_v39  ;;  %17030 = vst [vmem:[#allocation157_spill] sm:$0xff] %v11786_v43  ;;  %v1209_v22 = vld [vmem:[#allocation4 + $0x2e8] sm:$0xff]  ;;  %v17031_v13 = vld [vmem:[#allocation93_spill] sm:$0xff] }
 0x2ea   :  { %2275 = vrot.lane.b32.xlu0 %v2239_v60, %s9872_s14  ;;  %8857 = vmatprep.subr.bf16.mxu1 %v11765_v47  ;;  %v17032_v39 = vld [vmem:[#allocation88_spill] sm:$0xff]  ;;  %v11795_v60 = vpack.c.bf16 %v1192_v52, %v1184_v3  ;;  %17035 = vst [vmem:[#allocation159_spill] sm:$0xff] %v11799_v24  ;;  %v11801_v6 = vpack.c.bf16 %v1209_v22, %v1201_v57  ;;  %v1200_v47 = vld [vmem:[#allocation4 + $0x2a0] sm:$0xff]  ;;  %v1219_v17 = vld [vmem:[#allocation4 + $0x338] sm:$0xff] }
 0x2eb   :  { %v2208_v5 = vsel %vm2204_vm7, %v17032_v39, %v17031_v13  ;;  %v1208_v13 = vld [vmem:[#allocation4 + $0x2e0] sm:$0xff]  ;;  %v1217_v52 = vld [vmem:[#allocation4 + $0x328] sm:$0xff]  ;;  %v3159_v22 = vrot.slane %v11455_v20, %v10388_v11  ;;  %v1227_v57 = vld [vmem:[#allocation4 + $0x378] sm:$0xff] }
 0x2ec   :  { %v11791_v27 = vpop.permute.xlu0 %2962  ;;  %8795 = vmatpush1.bf16.msra.mxu0 %v11774_v7  ;;  %v2241_v48 = vmul.f32 %v2208_v5, %v11510_v31  ;;  %17034 = vst [vmem:[#allocation158_spill] sm:$0xff] %v11795_v60  ;;  %17036 = vst [vmem:[#allocation160_spill] sm:$0xff] %v11801_v6  ;;  %v1210_v5 = vld [vmem:[#allocation4 + $0x2f0] sm:$0xff]  ;;  %v1225_v3 = vld [vmem:[#allocation4 + $0x368] sm:$0xff]  ;;  %v11824_v63 = vpack.c.bf16 %v1208_v13, %v1200_v47 }
 0x2ed   :  { %17033 = vst [vmem:[#allocation88_spill] sm:$0xff] %v11791_v27  ;;  %8859 = vmatpush1.bf16.msra.mxu1 %v11778_v19  ;;  %8797 = vmatprep.subr.bf16.mxu0 %v11780_v40  ;;  %v11805_v27 = vpack.c.bf16 %v1211_v33, %v1203_v8  ;;  %v2462_v40 = vsel %vm2460_vm2, %v11167_v55, %v10976_v54  ;;  %v1218_v19 = vld [vmem:[#allocation4 + $0x330] sm:$0xff]  ;;  %v1233_v13 = vld [vmem:[#allocation4 + $0x3a8] sm:$0xff] }
 0x2ee   :  { %2279 = vrot.lane.b32.xlu0 %v2241_v48, %s9872_s14  ;;  %8861 = vmatprep.subr.bf16.mxu1 %v11786_v43  ;;  %v11814_v48 = vpop.permute.xlu1 %2708  ;;  %v2495_v8 = vmul.f32 %v2462_v40, %v11506_v35  ;;  %v3155_v33 = vrot.slane %v11455_v20, %v10414_v28  ;;  %v3163_v54 = vrot.slane %v11455_v20, %v10421_v45  ;;  %v1226_v47 = vld [vmem:[#allocation4 + $0x370] sm:$0xff]  ;;  %v1241_v45 = vld [vmem:[#allocation4 + $0x3e8] sm:$0xff] }
 0x2ef   :  { %17037 = vst [vmem:[#allocation161_spill] sm:$0xff] %v11805_v27  ;;  %17038 = vst [vmem:[#allocation162_spill] sm:$0xff] %v11814_v48  ;;  %v11828_v11 = vpack.c.bf16 %v1210_v5, %v1202_v56  ;;  %v11830_v48 = vpack.c.bf16 %v1225_v3, %v1217_v52  ;;  %v11838_v20 = vpack.c.bf16 %v1227_v57, %v1219_v17 }
 0x2f0   :  { %v11816_v43 = vpop.permute.xlu0 %3336  ;;  %8799 = vmatpush1.bf16.msra.mxu0 %v11795_v60  ;;  %v1224_v60 = vld [vmem:[#allocation4 + $0x360] sm:$0xff]  ;;  %v2720_v56 = vsel %vm2716_vm3, %v11234_v2, %v11072_v38 }
 0x2f1   :  { %17039 = vst [vmem:[#allocation163_spill] sm:$0xff] %v11816_v43  ;;  %8863 = vmatpush1.bf16.msra.mxu1 %v11799_v24  ;;  %8801 = vmatprep.subr.bf16.mxu0 %v11801_v6  ;;  %v1216_v43 = vld [vmem:[#allocation4 + $0x320] sm:$0xff]  ;;  %v1235_v6 = vld [vmem:[#allocation4 + $0x3b8] sm:$0xff]  ;;  %v2753_v7 = vmul.f32 %v2720_v56, %v11510_v31  ;;  %v1249_v56 = vld [vmem:[#allocation4 + $0x428] sm:$0xff] }
 0x2f2   :  { %2531 = vrot.lane.b32.xlu0 %v2495_v8, %s9871_s26  ;;  %v11833_v40 = vpop.f32.mrb[4].mxu0  ;;  %v11835_v28 = vpop.f32.mrb[4].mxu1  ;;  %8865 = vmatprep.subr.bf16.mxu1 %v11805_v27  ;;  %v1243_v24 = vld [vmem:[#allocation4 + $0x3f8] sm:$0xff]  ;;  %v11855_v53 = vpack.c.bf16 %v1224_v60, %v1216_v43  ;;  %v1242_v60 = vld [vmem:[#allocation4 + $0x3f0] sm:$0xff] }
 0x2f3   :  { %v3216_v5 = vmul.f32 %v3151_v23, %v11833_v40  ;;  %v3218_v52 = vmul.f32 %v3159_v22, %v11835_v28  ;;  %v11845_v3 = vpop.f32.mrb[5].mxu0  ;;  %v11847_v8 = vpop.f32.mrb[5].mxu1  ;;  %v11859_v23 = vpack.c.bf16 %v1226_v47, %v1218_v19  ;;  %v11861_v22 = vpack.c.bf16 %v1241_v45, %v1233_v13  ;;  %v1251_v19 = vld [vmem:[#allocation4 + $0x438] sm:$0xff] }
 0x2f4   :  { %v3217_v17 = vmul.f32 %v3155_v33, %v11845_v3  ;;  %v3219_v57 = vmul.f32 %v3163_v54, %v11847_v8  ;;  %v11851_v27 = vpop.permute.xlu0 %3340  ;;  %8803 = vmatpush1.bf16.msra.mxu0 %v11824_v63  ;;  %v1232_v33 = vld [vmem:[#allocation4 + $0x3a0] sm:$0xff]  ;;  %v11867_v43 = vpack.c.bf16 %v1243_v24, %v1235_v6  ;;  %v2976_v45 = vsel %vm2972_vm4, %v11246_v9, %v11089_v32  ;;  %v1259_v47 = vld [vmem:[#allocation4 + $0x478] sm:$0xff] }
 0x2f5   :  { %17040 = vst [vmem:[#allocation164_spill] sm:$0xff] %v11851_v27  ;;  %3232 = vst [vmem:[#allocation2 + $0x220] sm:$0xf] %v3216_v5  ;;  %8867 = vmatpush1.bf16.msra.mxu1 %v11828_v11  ;;  %8805 = vmatprep.subr.bf16.mxu0 %v11830_v48  ;;  %v1240_v54 = vld [vmem:[#allocation4 + $0x3e0] sm:$0xff]  ;;  %v11863_v27 = vpop.permute.xlu1 %2964  ;;  %v1257_v5 = vld [vmem:[#allocation4 + $0x468] sm:$0xff]  ;;  %v11880_v24 = vpack.c.bf16 %v1242_v60, %v1234_v44 }
 0x2f6   :  { %3234 = vst [vmem:[#allocation2 + $0x230] sm:$0xf] %v3218_v52  ;;  %17041 = vst [vmem:[#allocation165_spill] sm:$0xff] %v11859_v23  ;;  %2791 = vrot.lane.b32.xlu0 %v2753_v7, %s9870_s1  ;;  %8869 = vmatprep.subr.bf16.mxu1 %v11838_v20  ;;  %v3009_v52 = vmul.f32 %v2976_v45, %v11510_v31  ;;  %v11876_v7 = vpack.c.bf16 %v1240_v54, %v1232_v33  ;;  %v1258_v45 = vld [vmem:[#allocation4 + $0x470] sm:$0xff]  ;;  %v1265_v33 = vld [vmem:[#allocation4 + $0x4a8] sm:$0xff] }
 0x2f7   :  { %17042 = vst [vmem:[#allocation166_spill] sm:$0xff] %v11861_v22  ;;  %17043 = vst [vmem:[#allocation167_spill] sm:$0xff] %v11863_v27  ;;  %v11882_v6 = vpack.c.bf16 %v1257_v5, %v1249_v56  ;;  %v1250_v27 = vld [vmem:[#allocation4 + $0x430] sm:$0xff]  ;;  %v1273_v54 = vld [vmem:[#allocation4 + $0x4e8] sm:$0xff] }
 0x2f8   :  { %3233 = vst [vmem:[#allocation2 + $0x228] sm:$0xf] %v3217_v17  ;;  %3235 = vst [vmem:[#allocation2 + $0x238] sm:$0xf] %v3219_v57  ;;  %v11872_v13 = vpop.permute.xlu0 %3590  ;;  %8807 = vmatpush1.bf16.msra.mxu0 %v11855_v53  ;;  %v1248_v17 = vld [vmem:[#allocation4 + $0x420] sm:$0xff]  ;;  %v1267_v44 = vld [vmem:[#allocation4 + $0x4b8] sm:$0xff] }
 0x2f9   :  { %17044 = vst [vmem:[#allocation168_spill] sm:$0xff] %v11867_v43  ;;  %17045 = vst [vmem:[#allocation169_spill] sm:$0xff] %v11872_v13  ;;  %8871 = vmatpush1.bf16.msra.mxu1 %v11859_v23  ;;  %8809 = vmatprep.subr.bf16.mxu0 %v11861_v22  ;;  %v1256_v57 = vld [vmem:[#allocation4 + $0x460] sm:$0xff]  ;;  %v11886_v13 = vpack.c.bf16 %v1259_v47, %v1251_v19  ;;  %v3352_v22 = vsel %vm3073_vm5, %v11269_v36, %v11127_v42  ;;  %v1275_v60 = vld [vmem:[#allocation4 + $0x4f8] sm:$0xff]  ;;  %v11891_v56 = vpop.permute.xlu1 %3338 }
 0x2fa   :  { %17046 = vst [vmem:[#allocation170_spill] sm:$0xff] %v11880_v24  ;;  %17047 = vst [vmem:[#allocation171_spill] sm:$0xff] %v11882_v6  ;;  %3047 = vrot.lane.b32.xlu0 %v3009_v52, %s9869_s21  ;;  %8873 = vmatprep.subr.bf16.mxu1 %v11867_v43  ;;  %v3385_v52 = vmul.f32 %v3352_v22, %v11510_v31  ;;  %v11897_v19 = vpack.c.bf16 %v1256_v57, %v1248_v17  ;;  %v1264_v42 = vld [vmem:[#allocation4 + $0x4a0] sm:$0xff]  ;;  %v1266_v23 = vld [vmem:[#allocation4 + $0x4b0] sm:$0xff] }
 0x2fb   :  { %17048 = vst [vmem:[#allocation172_spill] sm:$0xff] %v11886_v13  ;;  %17049 = vst [vmem:[#allocation173_spill] sm:$0xff] %v11891_v56  ;;  %v11901_v47 = vpack.c.bf16 %v1258_v45, %v1250_v27  ;;  %v11903_v36 = vpack.c.bf16 %v1273_v54, %v1265_v33  ;;  %v1272_v43 = vld [vmem:[#allocation4 + $0x4e0] sm:$0xff]  ;;  %v1274_v22 = vld [vmem:[#allocation4 + $0x4f0] sm:$0xff]  ;;  %v3604_v56 = vsel %vm2817_vm8, %v11146_v26, %v11293_v29 }
 0x2fc   :  { %v11893_v5 = vpop.permute.xlu0 %3844  ;;  %8811 = vmatpush1.bf16.msra.mxu0 %v11876_v7  ;;  %17051 = vst [vmem:[#allocation175_spill] sm:$0xff] %v11897_v19  ;;  %v1281_v17 = vld [vmem:[#allocation4 + $0x528] sm:$0xff]  ;;  %v1283_v27 = vld [vmem:[#allocation4 + $0x538] sm:$0xff]  ;;  %v3637_v54 = vmul.f32 %v3604_v56, %v11506_v35  ;;  %v1280_v26 = vld [vmem:[#allocation4 + $0x520] sm:$0xff] }
 0x2fd   :  { %17050 = vst [vmem:[#allocation174_spill] sm:$0xff] %v11893_v5  ;;  %8875 = vmatpush1.bf16.msra.mxu1 %v11880_v24  ;;  %8813 = vmatprep.subr.bf16.mxu0 %v11882_v6  ;;  %17052 = vst [vmem:[#allocation176_spill] sm:$0xff] %v11901_v47  ;;  %v11907_v5 = vpack.c.bf16 %v1275_v60, %v1267_v44  ;;  %v1289_v57 = vld [vmem:[#allocation4 + $0x568] sm:$0xff]  ;;  %v1291_v45 = vld [vmem:[#allocation4 + $0x578] sm:$0xff]  ;;  %v11920_v44 = vpack.c.bf16 %v1274_v22, %v1266_v23  ;;  %v11924_v24 = vpop.permute.xlu1 %3342 }
 0x2fe   :  { %17053 = vst [vmem:[#allocation177_spill] sm:$0xff] %v11903_v36  ;;  %3422 = vrot.lane.b32.xlu0 %v3385_v52, %s9868_s30  ;;  %8877 = vmatprep.subr.bf16.mxu1 %v11886_v13  ;;  %v11916_v52 = vpack.c.bf16 %v1272_v43, %v1264_v42  ;;  %v11922_v60 = vpack.c.bf16 %v1289_v57, %v1281_v17  ;;  %v1288_v13 = vld [vmem:[#allocation4 + $0x560] sm:$0xff]  ;;  %v1282_v6 = vld [vmem:[#allocation4 + $0x530] sm:$0xff]  ;;  %17059 = vst [vmem:[#allocation183_spill] sm:$0xff] %v11924_v24 }
 0x2ff   :  { %17054 = vst [vmem:[#allocation178_spill] sm:$0xff] %v11907_v5  ;;  %17057 = vst [vmem:[#allocation181_spill] sm:$0xff] %v11920_v44  ;;  %v11928_v56 = vpack.c.bf16 %v1291_v45, %v1283_v27  ;;  %v1290_v42 = vld [vmem:[#allocation4 + $0x570] sm:$0xff]  ;;  %v1297_v43 = vld [vmem:[#allocation4 + $0x5a8] sm:$0xff]  ;;  %v3858_v23 = vsel %vm2561_vm9, %v11304_v18, %v11185_v10  ;;  %v4114_v27 = vsel %vm2305_vm6, %v11281_v4, %v11453_v25 }
 0x300   :  { %v11912_v33 = vpop.permute.xlu0 %3594  ;;  %8815 = vmatpush1.bf16.msra.mxu0 %v11897_v19  ;;  %17056 = vst [vmem:[#allocation180_spill] sm:$0xff] %v11916_v52  ;;  %17058 = vst [vmem:[#allocation182_spill] sm:$0xff] %v11922_v60  ;;  %v1299_v22 = vld [vmem:[#allocation4 + $0x5b8] sm:$0xff]  ;;  %v3891_v24 = vmul.f32 %v3858_v23, %v11506_v35  ;;  %v11944_v45 = vpack.c.bf16 %v1290_v42, %v1282_v6  ;;  %v1313_v23 = vld [vmem:[#allocation4 + $0x628] sm:$0xff] }
 0x301   :  { %17055 = vst [vmem:[#allocation179_spill] sm:$0xff] %v11912_v33  ;;  %8879 = vmatpush1.bf16.msra.mxu1 %v11901_v47  ;;  %8817 = vmatprep.subr.bf16.mxu0 %v11903_v36  ;;  %17060 = vst [vmem:[#allocation184_spill] sm:$0xff] %v11928_v56  ;;  %v1305_v33 = vld [vmem:[#allocation4 + $0x5e8] sm:$0xff]  ;;  %v1307_v17 = vld [vmem:[#allocation4 + $0x5f8] sm:$0xff]  ;;  %v11952_v25 = vpop.permute.xlu1 %3592 }
 0x302   :  { %3672 = vrot.lane.b32.xlu0 %v3637_v54, %s9867_s29  ;;  %8881 = vmatprep.subr.bf16.mxu1 %v11907_v5  ;;  %v11937_v54 = vpack.c.bf16 %v1288_v13, %v1280_v26  ;;  %17063 = vst [vmem:[#allocation187_spill] sm:$0xff] %v11944_v45  ;;  %v11946_v5 = vpack.c.bf16 %v1305_v33, %v1297_v43  ;;  %v1296_v36 = vld [vmem:[#allocation4 + $0x5a0] sm:$0xff]  ;;  %v1298_v47 = vld [vmem:[#allocation4 + $0x5b0] sm:$0xff]  ;;  %v1321_v4 = vld [vmem:[#allocation4 + $0x668] sm:$0xff] }
 0x303   :  { %v11950_v13 = vpack.c.bf16 %v1307_v17, %v1299_v22  ;;  %v1306_v26 = vld [vmem:[#allocation4 + $0x5f0] sm:$0xff]  ;;  %17066 = vst [vmem:[#allocation190_spill] sm:$0xff] %v11952_v25  ;;  %v4147_v33 = vmul.f32 %v4114_v27, %v11510_v31  ;;  %v11964_v43 = vpack.c.bf16 %v1321_v4, %v1313_v23  ;;  %v1312_v22 = vld [vmem:[#allocation4 + $0x620] sm:$0xff]  ;;  %v3607_v25 = vsel %vm2817_vm8, %v11205_v15, %v11324_v1 }
 0x304   :  { %v11933_v57 = vpop.permute.xlu0 %3848  ;;  %8819 = vmatpush1.bf16.msra.mxu0 %v11916_v52  ;;  %17062 = vst [vmem:[#allocation186_spill] sm:$0xff] %v11937_v54  ;;  %17064 = vst [vmem:[#allocation188_spill] sm:$0xff] %v11946_v5  ;;  %v1315_v52 = vld [vmem:[#allocation4 + $0x638] sm:$0xff]  ;;  %v1320_v17 = vld [vmem:[#allocation4 + $0x660] sm:$0xff]  ;;  %v3640_v4 = vmul.f32 %v3607_v25, %v11833_v40 }
 0x305   :  { %17061 = vst [vmem:[#allocation185_spill] sm:$0xff] %v11933_v57  ;;  %8883 = vmatpush1.bf16.msra.mxu1 %v11920_v44  ;;  %8821 = vmatprep.subr.bf16.mxu0 %v11922_v60  ;;  %v1304_v57 = vld [vmem:[#allocation4 + $0x5e0] sm:$0xff]  ;;  %17065 = vst [vmem:[#allocation189_spill] sm:$0xff] %v11950_v13  ;;  %v1323_v44 = vld [vmem:[#allocation4 + $0x678] sm:$0xff] }
 0x306   :  { %3926 = vrot.lane.b32.xlu0 %v3891_v24, %s9866_s24  ;;  %8885 = vmatprep.subr.bf16.mxu1 %v11928_v56  ;;  %v11958_v42 = vpack.c.bf16 %v1304_v57, %v1296_v36  ;;  %v11962_v24 = vpack.c.bf16 %v1306_v26, %v1298_v47  ;;  %17070 = vst [vmem:[#allocation194_spill] sm:$0xff] %v11964_v43  ;;  %v1314_v56 = vld [vmem:[#allocation4 + $0x630] sm:$0xff]  ;;  %v1329_v36 = vld [vmem:[#allocation4 + $0x6a8] sm:$0xff]  ;;  %v1331_v47 = vld [vmem:[#allocation4 + $0x6b8] sm:$0xff] }
 0x307   :  { %v1322_v27 = vld [vmem:[#allocation4 + $0x670] sm:$0xff]  ;;  %v1337_v57 = vld [vmem:[#allocation4 + $0x6e8] sm:$0xff]  ;;  %v1339_v26 = vld [vmem:[#allocation4 + $0x6f8] sm:$0xff] }
 0x308   :  { %v11954_v6 = vpop.permute.xlu0 %2454  ;;  %8823 = vmatpush1.bf16.msra.mxu0 %v11937_v54  ;;  %17068 = vst [vmem:[#allocation192_spill] sm:$0xff] %v11958_v42  ;;  %17069 = vst [vmem:[#allocation193_spill] sm:$0xff] %v11962_v24  ;;  %v11985_v54 = vpop.permute.xlu1 %3846  ;;  %v11989_v25 = vpack.c.bf16 %v1339_v26, %v1331_v47  ;;  %v1346_v60 = vld [vmem:[#allocation4 + $0x730] sm:$0xff]  ;;  %v1368_v19 = vld [vmem:[#allocation4 + $0x7e0] sm:$0xff] }
 0x309   :  { %17067 = vst [vmem:[#allocation191_spill] sm:$0xff] %v11954_v6  ;;  %8887 = vmatpush1.bf16.msra.mxu1 %v11944_v45  ;;  %8825 = vmatprep.subr.bf16.mxu0 %v11946_v5  ;;  %v11968_v6 = vpack.c.bf16 %v1323_v44, %v1315_v52  ;;  %v11981_v52 = vpack.c.bf16 %v1322_v27, %v1314_v56  ;;  %v1336_v5 = vld [vmem:[#allocation4 + $0x6e0] sm:$0xff]  ;;  %v1330_v45 = vld [vmem:[#allocation4 + $0x6b0] sm:$0xff]  ;;  %17076 = vst [vmem:[#allocation200_spill] sm:$0xff] %v11985_v54 }
 0x30a   :  { %4184 = vrot.lane.b32.xlu0 %v4147_v33, %s9865_s4  ;;  %8889 = vmatprep.subr.bf16.mxu1 %v11950_v13  ;;  %v11977_v33 = vpack.c.bf16 %v1320_v17, %v1312_v22  ;;  %v11983_v44 = vpack.c.bf16 %v1337_v57, %v1329_v36  ;;  %v1328_v13 = vld [vmem:[#allocation4 + $0x6a0] sm:$0xff]  ;;  %17077 = vst [vmem:[#allocation201_spill] sm:$0xff] %v11989_v25  ;;  %v1338_v22 = vld [vmem:[#allocation4 + $0x6f0] sm:$0xff]  ;;  %v1345_v17 = vld [vmem:[#allocation4 + $0x728] sm:$0xff] }
 0x30b   :  { %17071 = vst [vmem:[#allocation195_spill] sm:$0xff] %v11968_v6  ;;  %17074 = vst [vmem:[#allocation198_spill] sm:$0xff] %v11981_v52  ;;  %v1347_v27 = vld [vmem:[#allocation4 + $0x738] sm:$0xff]  ;;  %v12002_v47 = vpack.c.bf16 %v1338_v22, %v1330_v45 }
 0x30c   :  { %v11973_v23 = vpop.permute.xlu0 %4098  ;;  %8827 = vmatpush1.bf16.msra.mxu0 %v11958_v42  ;;  %17073 = vst [vmem:[#allocation197_spill] sm:$0xff] %v11977_v33  ;;  %17075 = vst [vmem:[#allocation199_spill] sm:$0xff] %v11983_v44  ;;  %v1355_v36 = vld [vmem:[#allocation4 + $0x778] sm:$0xff]  ;;  %v1352_v42 = vld [vmem:[#allocation4 + $0x760] sm:$0xff] }
 0x30d   :  { %17072 = vst [vmem:[#allocation196_spill] sm:$0xff] %v11973_v23  ;;  %8891 = vmatpush1.bf16.msra.mxu1 %v11962_v24  ;;  %8829 = vmatprep.subr.bf16.mxu0 %v11964_v43  ;;  %v1353_v23 = vld [vmem:[#allocation4 + $0x768] sm:$0xff]  ;;  %v17078_v24 = vld [vmem:[#allocation29_spill] sm:$0xff]  ;;  %v1363_v45 = vld [vmem:[#allocation4 + $0x7b8] sm:$0xff] }
 0x30e   :  { %3678 = vrot.lane.b32.xlu0 %v3640_v4, %s9867_s29  ;;  %8893 = vmatprep.subr.bf16.mxu1 %v11968_v6  ;;  %v17079_v43 = vld [vmem:[#allocation20_spill] sm:$0xff]  ;;  %v11998_v4 = vpack.c.bf16 %v1336_v5, %v1328_v13  ;;  %v12004_v26 = vpack.c.bf16 %v1353_v23, %v1345_v17  ;;  %v1344_v6 = vld [vmem:[#allocation4 + $0x720] sm:$0xff]  ;;  %v1371_v22 = vld [vmem:[#allocation4 + $0x7f8] sm:$0xff]  ;;  %v12013_v23 = vpop.permute.xlu1 %3596 }
 0x30f   :  { %v3861_v56 = vsel %vm2561_vm9, %v17079_v43, %v17078_v24  ;;  %17081 = vst [vmem:[#allocation20_spill] sm:$0xff] %v12002_v47  ;;  %v1361_v5 = vld [vmem:[#allocation4 + $0x7a8] sm:$0xff] }
 0x310   :  { %v11994_v57 = vpop.permute.xlu0 %2458  ;;  %8831 = vmatpush1.bf16.msra.mxu0 %v11977_v33  ;;  %v3894_v54 = vmul.f32 %v3861_v56, %v11833_v40  ;;  %v1354_v56 = vld [vmem:[#allocation4 + $0x770] sm:$0xff]  ;;  %v1369_v13 = vld [vmem:[#allocation4 + $0x7e8] sm:$0xff]  ;;  %v17082_v33 = vld [vmem:[#allocation38_spill] sm:$0xff] }
 0x311   :  { %17080 = vst [vmem:[#allocation29_spill] sm:$0xff] %v11994_v57  ;;  %8895 = vmatpush1.bf16.msra.mxu1 %v11981_v52  ;;  %8833 = vmatprep.subr.bf16.mxu0 %v11983_v44  ;;  %v12008_v57 = vpack.c.bf16 %v1355_v36, %v1347_v27  ;;  %v17083_v52 = vld [vmem:[#allocation31_spill] sm:$0xff]  ;;  %v12023_v27 = vpack.c.bf16 %v1354_v56, %v1346_v60 }
 0x312   :  { %3932 = vrot.lane.b32.xlu0 %v3894_v54, %s9866_s24  ;;  %8897 = vmatprep.subr.bf16.mxu1 %v11989_v25  ;;  %v2467_v44 = vsel %vm2460_vm2, %v17083_v52, %v17082_v33  ;;  %17084 = vst [vmem:[#allocation31_spill] sm:$0xff] %v12013_v23  ;;  %v12019_v25 = vpack.c.bf16 %v1352_v42, %v1344_v6  ;;  %v1360_v33 = vld [vmem:[#allocation4 + $0x7a0] sm:$0xff]  ;;  %v1362_v23 = vld [vmem:[#allocation4 + $0x7b0] sm:$0xff] }
 0x313   :  { %v2500_v54 = vmul.f32 %v2467_v44, %v11835_v28  ;;  %v12025_v36 = vpack.c.bf16 %v1369_v13, %v1361_v5  ;;  %v1370_v44 = vld [vmem:[#allocation4 + $0x7f0] sm:$0xff]  ;;  %v17086_v6 = vld [vmem:[#allocation47_spill] sm:$0xff]  ;;  %v12038_v56 = vpack.c.bf16 %v1368_v19, %v1360_v33  ;;  %v12044_v13 = vpop.permute.xlu1 %3850  ;;  %v17093_v33 = vld [vmem:[#allocation32_spill] sm:$0xff] }
 0x314   :  { %v12015_v17 = vpop.permute.xlu0 %2712  ;;  %8835 = vmatpush1.bf16.msra.mxu0 %v11998_v4  ;;  %v2721_v42 = vsel %vm2716_vm3, %v11072_v38, %v17086_v6  ;;  %v12042_v5 = vpack.c.bf16 %v1370_v44, %v1362_v23  ;;  %17090 = vst [vmem:[#allocation206_spill] sm:$0xff] %v12044_v13  ;;  %v17091_v38 = vld [vmem:[#allocation53_spill] sm:$0xff]  ;;  %v17096_v44 = vld [vmem:[#allocation26_spill] sm:$0xff]  ;;  %v17122_v6 = vld [vmem:[#allocation55_spill] sm:$0xff] }
 0x315   :  { %17085 = vst [vmem:[#allocation202_spill] sm:$0xff] %v12015_v17  ;;  %8899 = vmatpush1.bf16.msra.mxu1 %v12002_v47  ;;  %8837 = vmatprep.subr.bf16.mxu0 %v12004_v26  ;;  %v12029_v17 = vpack.c.bf16 %v1371_v22, %v1363_v45  ;;  %v2754_v60 = vmul.f32 %v2721_v42, %v11833_v40  ;;  %17088 = vst [vmem:[#allocation204_spill] sm:$0xff] %v12038_v56  ;;  %v17094_v23 = vld [vmem:[#allocation33_spill] sm:$0xff] }
 0x316   :  { %2541 = vrot.lane.b32.xlu0 %v2500_v54, %s9871_s26  ;;  %8901 = vmatprep.subr.bf16.mxu1 %v12008_v57  ;;  %17089 = vst [vmem:[#allocation205_spill] sm:$0xff] %v12042_v5  ;;  %v2977_v45 = vsel %vm2972_vm4, %v11089_v32, %v17091_v38  ;;  %v17095_v54 = vld [vmem:[#allocation74_spill] sm:$0xff] }
 0x317   :  { %v3010_v19 = vmul.f32 %v2977_v45, %v11833_v40  ;;  %v2723_v42 = vsel %vm2716_vm3, %v17096_v44, %v17095_v54  ;;  %v12063_v32 = vpop.permute.xlu1 %2456  ;;  %v17099_v45 = vld [vmem:[#allocation35_spill] sm:$0xff]  ;;  %v17108_v54 = vld [vmem:[#allocation42_spill] sm:$0xff] }
 0x318   :  { %v12034_v47 = vpop.permute.xlu0 %2968  ;;  %8839 = vmatpush1.bf16.msra.mxu0 %v12019_v25  ;;  %17097 = vst [vmem:[#allocation32_spill] sm:$0xff] %v12063_v32  ;;  %v17104_v32 = vld [vmem:[#allocation39_spill] sm:$0xff] }
 0x319   :  { %17087 = vst [vmem:[#allocation203_spill] sm:$0xff] %v12034_v47  ;;  %8903 = vmatpush1.bf16.msra.mxu1 %v12023_v27  ;;  %8841 = vmatprep.subr.bf16.mxu0 %v12025_v36  ;;  %v17100_v47 = vld [vmem:[#allocation101_spill] sm:$0xff] }
 0x31a   :  { %2793 = vrot.lane.b32.xlu0 %v2754_v60, %s9870_s1  ;;  %8905 = vmatprep.subr.bf16.mxu1 %v12029_v17 }
 0x31b   :  { %v12085_v38 = vpop.permute.xlu1 %4100 }
 0x31c   :  { %v12051_v22 = vpop.permute.xlu0 %4104  ;;  %8843 = vmatpush1.bf16.msra.mxu0 %v12038_v56  ;;  %17110 = vst [vmem:[#allocation101_spill] sm:$0xff] %v12085_v38 }
 0x31d   :  { %17092 = vst [vmem:[#allocation207_spill] sm:$0xff] %v12051_v22  ;;  %8907 = vmatpush1.bf16.msra.mxu1 %v12042_v5  ;;  %8909 = vmatprep.subr.bf16.mxu0 %v17093_v33  ;;  %v2756_v33 = vmul.f32 %v2723_v42, %v11835_v28  ;;  %v17103_v22 = vld [vmem:[#allocation28_spill] sm:$0xff] }
 0x31e   :  { %3049 = vrot.lane.b32.xlu0 %v3010_v19, %s9869_s21  ;;  %8973 = vmatprep.subr.bf16.mxu1 %v17094_v23  ;;  %v17101_v19 = vld [vmem:[#allocation37_spill] sm:$0xff]  ;;  %v17102_v23 = vld [vmem:[#allocation75_spill] sm:$0xff] }
 0x31f   :  { %1579 = vmatmul.mubr.f32.vlgmr.msra.gmra.mrb[12].mxu0 %v11712_v49  ;;  %v2979_v13 = vsel %vm2972_vm4, %v17103_v22, %v17102_v23  ;;  %v17112_v23 = vld [vmem:[#allocation105_spill] sm:$0xff]  ;;  %v12103_v5 = vpop.permute.xlu1 %2710 }
 0x320   :  { %1650 = vmatmul.mubr.f32.vlgmr.msra.gmra.mrb[12].mxu1 %v11712_v49  ;;  %v12066_v60 = vpop.permute.xlu0 %2714  ;;  %8911 = vmatpush1.bf16.msra.mxu0 %v17099_v45  ;;  %v17105_v49 = vld [vmem:[#allocation40_spill] sm:$0xff]  ;;  %v17107_v45 = vld [vmem:[#allocation41_spill] sm:$0xff]  ;;  %v3012_v42 = vmul.f32 %v2979_v13, %v11835_v28  ;;  %17120 = vst [vmem:[#allocation37_spill] sm:$0xff] %v12103_v5 }
 0x321   :  { %17098 = vst [vmem:[#allocation33_spill] sm:$0xff] %v12066_v60  ;;  %1726 = vmatprep.mubr.f32.mxu0 %v17100_v47  ;;  %8975 = vmatpush1.bf16.msra.mxu1 %v17101_v19  ;;  %v17109_v19 = vld [vmem:[#allocation43_spill] sm:$0xff] }
 0x322   :  { %1797 = vmatprep.mubr.f32.mxu1 %v17100_v47  ;;  %2797 = vrot.lane.b32.xlu0 %v2756_v33, %s9870_s1  ;;  %v17111_v33 = vld [vmem:[#allocation44_spill] sm:$0xff] }
 0x323   :  { %8913 = vmatprep.subr.bf16.mxu0 %v17104_v32  ;;  %8977 = vmatprep.subr.bf16.mxu1 %v17105_v49  ;;  %v17113_v32 = vld [vmem:[#allocation98_spill] sm:$0xff]  ;;  %v12128_v44 = vpop.permute.xlu1 %2966 }
 0x324   :  { %v12079_v60 = vpop.permute.xlu0 %3344  ;;  %8915 = vmatpush1.bf16.msra.mxu0 %v17107_v45  ;;  %v2210_v49 = vsel %vm2204_vm7, %v17113_v32, %v17112_v23  ;;  %v17115_v45 = vld [vmem:[#allocation49_spill] sm:$0xff]  ;;  %17132 = vst [vmem:[#allocation41_spill] sm:$0xff] %v12128_v44  ;;  %v17176_v44 = vld [vmem:[#allocation112_spill] sm:$0xff] }
 0x325   :  { %17106 = vst [vmem:[#allocation35_spill] sm:$0xff] %v12079_v60  ;;  %8979 = vmatpush1.bf16.msra.mxu1 %v17108_v54  ;;  %8917 = vmatprep.subr.bf16.mxu0 %v17109_v19  ;;  %v17114_v60 = vld [vmem:[#allocation48_spill] sm:$0xff]  ;;  %v2243_v13 = vmul.f32 %v2210_v49, %v11845_v3  ;;  %v17116_v54 = vld [vmem:[#allocation51_spill] sm:$0xff] }
 0x326   :  { %3053 = vrot.lane.b32.xlu0 %v3012_v42, %s9869_s21  ;;  %8981 = vmatprep.subr.bf16.mxu1 %v17111_v33  ;;  %v17117_v19 = vld [vmem:[#allocation52_spill] sm:$0xff]  ;;  %v17118_v42 = vld [vmem:[#allocation115_spill] sm:$0xff]  ;;  %v17119_v33 = vld [vmem:[#allocation110_spill] sm:$0xff] }
 0x327   :  { %v2212_v38 = vsel %vm2204_vm7, %v17119_v33, %v17118_v42 }
 0x328   :  { %v12092_v22 = vpop.permute.xlu0 %2783  ;;  %8919 = vmatpush1.bf16.msra.mxu0 %v17114_v60  ;;  %v2245_v60 = vmul.f32 %v2212_v38, %v11847_v8 }
 0x329   :  { %8983 = vmatpush1.bf16.msra.mxu1 %v17115_v45  ;;  %8921 = vmatprep.subr.bf16.mxu0 %v17116_v54  ;;  %v17123_v45 = vld [vmem:[#allocation58_spill] sm:$0xff]  ;;  %v17124_v54 = vld [vmem:[#allocation67_spill] sm:$0xff] }
 0x32a   :  { %2283 = vrot.lane.b32.xlu0 %v2243_v13, %s9872_s14  ;;  %8985 = vmatprep.subr.bf16.mxu1 %v17117_v19  ;;  %v17125_v13 = vld [vmem:[#allocation65_spill] sm:$0xff] }
 0x32b   :  { %v17126_v19 = vld [vmem:[#allocation21_spill] sm:$0xff] }
 0x32c   :  { %v12105_v56 = vpop.permute.xlu0 %3348  ;;  %8923 = vmatpush1.bf16.msra.mxu0 %v17122_v6  ;;  %v2466_v5 = vsel %vm2460_vm2, %v17126_v19, %v17083_v52  ;;  %v17127_v6 = vld [vmem:[#allocation72_spill] sm:$0xff]  ;;  %v17133_v52 = vld [vmem:[#allocation71_spill] sm:$0xff] }
 0x32d   :  { %17121 = vst [vmem:[#allocation39_spill] sm:$0xff] %v12105_v56  ;;  %v3398_v49 = vmul.f32 0.0, %v12105_v56  ;;  %8987 = vmatpush1.bf16.msra.mxu1 %v17123_v45  ;;  %8925 = vmatprep.subr.bf16.mxu0 %v17124_v54  ;;  %v2205_v38 = vsel %vm2204_vm7, %v17127_v6, %v17024_v50  ;;  %v17129_v56 = vld [vmem:[#allocation68_spill] sm:$0xff]  ;;  %v2499_v45 = vmul.f32 %v2466_v5, %v11845_v3  ;;  %v17130_v54 = vld [vmem:[#allocation69_spill] sm:$0xff] }
 0x32e   :  { %2287 = vrot.lane.b32.xlu0 %v2245_v60, %s9872_s14  ;;  %8989 = vmatprep.subr.bf16.mxu1 %v17125_v13  ;;  %v2238_v60 = vmul.f32 %v2205_v38, %v11495_v34  ;;  %v17131_v13 = vld [vmem:[#allocation70_spill] sm:$0xff]  ;;  %v17134_v50 = vld [vmem:[#allocation24_spill] sm:$0xff] }
 0x32f   :  { %3448 = vrot.lane.b32.xlu1 %v3398_v49, %s9868_s30  ;;  %v3354_v49 = vsel %vm3073_vm5, %v17134_v50, %v11530_v46 }
 0x330   :  { %v12121_v42 = vpop.permute.xlu0 %3600  ;;  %8927 = vmatpush1.bf16.msra.mxu0 %v17129_v56  ;;  %v2207_v56 = vsel %vm2204_vm7, %v17023_v61, %v17032_v39  ;;  %v3387_v6 = vmul.f32 %v3354_v49, %v11845_v3  ;;  %v17143_v49 = vld [vmem:[#allocation81_spill] sm:$0xff] }
 0x331   :  { %17128 = vst [vmem:[#allocation40_spill] sm:$0xff] %v12121_v42  ;;  %8991 = vmatpush1.bf16.msra.mxu1 %v17130_v54  ;;  %8929 = vmatprep.subr.bf16.mxu0 %v17131_v13  ;;  %v2240_v38 = vmul.f32 %v2207_v56, %v11497_v41  ;;  %v12155_v54 = vpop.permute.xlu1 %4102  ;;  %v17141_v13 = vld [vmem:[#allocation79_spill] sm:$0xff]  ;;  %v17144_v56 = vld [vmem:[#allocation18_spill] sm:$0xff]  ;;  %v17169_v42 = vld [vmem:[#allocation104_spill] sm:$0xff] }
 0x332   :  { %2539 = vrot.lane.b32.xlu0 %v2499_v45, %s9871_s26  ;;  %8993 = vmatprep.subr.bf16.mxu1 %v17133_v52  ;;  %v17136_v45 = vld [vmem:[#allocation56_spill] sm:$0xff]  ;;  %17138 = vst [vmem:[#allocation43_spill] sm:$0xff] %v12155_v54  ;;  %v17191_v54 = vld [vmem:[#allocation129_spill] sm:$0xff] }
 0x333   :  { %2273 = vrot.lane.b32.xlu1 %v2238_v60, %s9872_s14  ;;  %v3356_v61 = vsel %vm3073_vm5, %v17136_v45, %v11549_v30  ;;  %v17140_v60 = vld [vmem:[#allocation76_spill] sm:$0xff] }
 0x334   :  { %v12139_v5 = vpop.permute.xlu0 %3854  ;;  %8931 = vmatpush1.bf16.msra.mxu0 %v11484_v59  ;;  %v17137_v59 = vld [vmem:[#allocation134_spill] sm:$0xff]  ;;  %v17142_v52 = vld [vmem:[#allocation80_spill] sm:$0xff] }
 0x335   :  { %17135 = vst [vmem:[#allocation42_spill] sm:$0xff] %v12139_v5  ;;  %8995 = vmatpush1.bf16.msra.mxu1 %v11490_v12  ;;  %8933 = vmatprep.subr.bf16.mxu0 %v11492_v51  ;;  %v2461_v39 = vsel %vm2460_vm2, %v17137_v59, %v11167_v55  ;;  %v3389_v51 = vmul.f32 %v3356_v61, %v11847_v8  ;;  %v17146_v61 = vld [vmem:[#allocation82_spill] sm:$0xff] }
 0x336   :  { %3426 = vrot.lane.b32.xlu0 %v3387_v6, %s9868_s30  ;;  %8997 = vmatprep.subr.bf16.mxu1 %v11500_v16  ;;  %v2494_v16 = vmul.f32 %v2461_v39, %v11495_v34  ;;  %v3608_v55 = vsel %vm2817_vm8, %v11324_v1, %v11566_v0  ;;  %v2719_v6 = vsel %vm2716_vm3, %v17144_v56, %v11234_v2  ;;  %v17147_v39 = vld [vmem:[#allocation84_spill] sm:$0xff]  ;;  %v17149_v1 = vld [vmem:[#allocation86_spill] sm:$0xff] }
 0x337   :  { %2277 = vrot.lane.b32.xlu1 %v2240_v38, %s9872_s14  ;;  %v3641_v59 = vmul.f32 %v3608_v55, %v11845_v3  ;;  %v3862_v2 = vsel %vm2561_vm9, %v17078_v24, %v11585_v37  ;;  %v17152_v55 = vld [vmem:[#allocation89_spill] sm:$0xff]  ;;  %v17155_v24 = vld [vmem:[#allocation92_spill] sm:$0xff]  ;;  %v17167_v5 = vld [vmem:[#allocation102_spill] sm:$0xff] }
 0x338   :  { %v12157_v12 = vpop.permute.xlu0 %3602  ;;  %8935 = vmatpush1.bf16.msra.mxu0 %v17140_v60  ;;  %v2752_v60 = vmul.f32 %v2719_v6, %v11497_v41  ;;  %v3895_v6 = vmul.f32 %v3862_v2, %v11845_v3  ;;  %v17159_v2 = vld [vmem:[#allocation94_spill] sm:$0xff] }
 0x339   :  { %17139 = vst [vmem:[#allocation44_spill] sm:$0xff] %v12157_v12  ;;  %8999 = vmatpush1.bf16.msra.mxu1 %v17141_v13  ;;  %8937 = vmatprep.subr.bf16.mxu0 %v17142_v52  ;;  %v12180_v13 = vpop.permute.xlu1 %2527 }
 0x33a   :  { %3430 = vrot.lane.b32.xlu0 %v3389_v51, %s9868_s30  ;;  %9001 = vmatprep.subr.bf16.mxu1 %v17143_v49  ;;  %v17148_v51 = vld [vmem:[#allocation85_spill] sm:$0xff] }
 0x33b   :  { %2529 = vrot.lane.b32.xlu1 %v2494_v16, %s9871_s26  ;;  %v17150_v16 = vld [vmem:[#allocation9_spill] sm:$0xff] }
 0x33c   :  { %v12173_v38 = vpop.permute.xlu0 %4106  ;;  %8939 = vmatpush1.bf16.msra.mxu0 %v17146_v61  ;;  %v2975_v52 = vsel %vm2972_vm4, %v17150_v16, %v11246_v9  ;;  %v17153_v61 = vld [vmem:[#allocation90_spill] sm:$0xff] }
 0x33d   :  { %17145 = vst [vmem:[#allocation105_spill] sm:$0xff] %v12173_v38  ;;  %9003 = vmatpush1.bf16.msra.mxu1 %v17147_v39  ;;  %8941 = vmatprep.subr.bf16.mxu0 %v17148_v51  ;;  %v17154_v39 = vld [vmem:[#allocation91_spill] sm:$0xff]  ;;  %v17157_v51 = vld [vmem:[#allocation78_spill] sm:$0xff] }
 0x33e   :  { %3680 = vrot.lane.b32.xlu0 %v3641_v59, %s9867_s29  ;;  %9005 = vmatprep.subr.bf16.mxu1 %v17149_v1  ;;  %v3008_v59 = vmul.f32 %v2975_v52, %v11497_v41  ;;  %v12204_v1 = vpop.permute.xlu1 %2970 }
 0x33f   :  { %2789 = vrot.lane.b32.xlu1 %v2752_v60, %s9870_s1  ;;  %v17156_v60 = vld [vmem:[#allocation108_spill] sm:$0xff]  ;;  %17158 = vst [vmem:[#allocation48_spill] sm:$0xff] %v12204_v1 }
 0x340   :  { %v12191_v49 = vpop.permute.xlu0 %4110  ;;  %8943 = vmatpush1.bf16.msra.mxu0 %v17152_v55  ;;  %v3610_v9 = vsel %vm2817_vm8, %v17157_v51, %v17156_v60 }
 0x341   :  { %17151 = vst [vmem:[#allocation98_spill] sm:$0xff] %v12191_v49  ;;  %9007 = vmatpush1.bf16.msra.mxu1 %v17153_v61  ;;  %8945 = vmatprep.subr.bf16.mxu0 %v17154_v39  ;;  %v3643_v52 = vmul.f32 %v3610_v9, %v11847_v8  ;;  %v17160_v61 = vld [vmem:[#allocation96_spill] sm:$0xff]  ;;  %v17163_v49 = vld [vmem:[#allocation99_spill] sm:$0xff] }
 0x342   :  { %3934 = vrot.lane.b32.xlu0 %v3895_v6, %s9866_s24  ;;  %9009 = vmatprep.subr.bf16.mxu1 %v17155_v24  ;;  %v17161_v6 = vld [vmem:[#allocation22_spill] sm:$0xff]  ;;  %v17162_v24 = vld [vmem:[#allocation97_spill] sm:$0xff] }
 0x343   :  { %3045 = vrot.lane.b32.xlu1 %v3008_v59, %s9869_s21  ;;  %v3382_v39 = vmul.f32 %v17161_v6, %v11495_v34  ;;  %v17164_v59 = vld [vmem:[#allocation87_spill] sm:$0xff] }
 0x344   :  { %v12206_v55 = vpop.permute.xlu0 %2533  ;;  %8947 = vmatpush1.bf16.msra.mxu0 %v17159_v2  ;;  %v3864_v38 = vsel %vm2561_vm9, %v17164_v59, %v11621_v14  ;;  %v17165_v2 = vld [vmem:[#allocation16_spill] sm:$0xff] }
 0x345   :  { %9011 = vmatpush1.bf16.msra.mxu1 %v17160_v61  ;;  %8949 = vmatprep.subr.bf16.mxu0 %v17162_v24  ;;  %v3605_v9 = vsel %vm2817_vm8, %v11293_v29, %v17165_v2  ;;  %v12223_v61 = vpop.permute.xlu1 %3346  ;;  %v17168_v24 = vld [vmem:[#allocation103_spill] sm:$0xff] }
 0x346   :  { %3684 = vrot.lane.b32.xlu0 %v3643_v52, %s9867_s29  ;;  %9013 = vmatprep.subr.bf16.mxu1 %v17163_v49  ;;  %17166 = vst [vmem:[#allocation49_spill] sm:$0xff] %v12223_v61  ;;  %v3897_v52 = vmul.f32 %v3864_v38, %v11847_v8  ;;  %v17170_v29 = vld [vmem:[#allocation107_spill] sm:$0xff]  ;;  %v17171_v61 = vld [vmem:[#allocation30_spill] sm:$0xff] }
 0x347   :  { %3416 = vrot.lane.b32.xlu1 %v3382_v39, %s9868_s30  ;;  %v3638_v39 = vmul.f32 %v3605_v9, %v11497_v41  ;;  %v17172_v38 = vld [vmem:[#allocation27_spill] sm:$0xff]  ;;  %v17174_v9 = vld [vmem:[#allocation109_spill] sm:$0xff] }
 0x348   :  { %v12225_v12 = vpop.permute.xlu0 %2785  ;;  %8951 = vmatpush1.bf16.msra.mxu0 %v17167_v5  ;;  %v4116_v5 = vsel %vm2305_vm6, %v17171_v61, %v11662_v58 }
 0x349   :  { %v2818_v49 = vsel %vm2817_vm8, %v12092_v22, %v12225_v12  ;;  %9015 = vmatpush1.bf16.msra.mxu1 %v17168_v24  ;;  %8953 = vmatprep.subr.bf16.mxu0 %v17169_v42  ;;  %v3859_v22 = vsel %vm2561_vm9, %v11185_v10, %v17172_v38  ;;  %v3040_v24 = vpop.permute.xlu1 %3039  ;;  %v4149_v42 = vmul.f32 %v4116_v5, %v11845_v3  ;;  %v17177_v10 = vld [vmem:[#allocation113_spill] sm:$0xff] }
 0x34a   :  { %2850 = vst [vmem:[#allocation2 + $0x100] sm:$0xf] %v2818_v49  ;;  %3938 = vrot.lane.b32.xlu0 %v3897_v52, %s9866_s24  ;;  %9017 = vmatprep.subr.bf16.mxu1 %v17170_v29  ;;  %v17175_v49 = vld [vmem:[#allocation111_spill] sm:$0xff]  ;;  %v3892_v29 = vmul.f32 %v3859_v22, %v11497_v41  ;;  %v17179_v41 = vld [vmem:[#allocation117_spill] sm:$0xff]  ;;  %v17180_v22 = vld [vmem:[#allocation118_spill] sm:$0xff] }
 0x34b   :  { %3674 = vrot.lane.b32.xlu1 %v3638_v39, %s9867_s29  ;;  %v4118_v39 = vsel %vm2305_vm6, %v11654_v21, %v11751_v62 }
 0x34c   :  { %v12244_v1 = vpop.permute.xlu0 %3041  ;;  %8955 = vmatpush1.bf16.msra.mxu0 %v17174_v9  ;;  %v4151_v9 = vmul.f32 %v4118_v39, %v11847_v8 }
 0x34d   :  { %17173 = vst [vmem:[#allocation51_spill] sm:$0xff] %v12244_v1  ;;  %v3074_v52 = vsel %vm3073_vm5, %v3040_v24, %v12244_v1  ;;  %9019 = vmatpush1.bf16.msra.mxu1 %v17175_v49  ;;  %8957 = vmatprep.subr.bf16.mxu0 %v17176_v44  ;;  %v17178_v24 = vld [vmem:[#allocation116_spill] sm:$0xff]  ;;  %v3890_v44 = vmul.f32 %v11304_v18, %v11495_v34  ;;  %v17182_v49 = vld [vmem:[#allocation122_spill] sm:$0xff] }
 0x34e   :  { %3106 = vst [vmem:[#allocation2 + $0x180] sm:$0xf] %v3074_v52  ;;  %4188 = vrot.lane.b32.xlu0 %v4149_v42, %s9865_s4  ;;  %9021 = vmatprep.subr.bf16.mxu1 %v17177_v10  ;;  %v17181_v42 = vld [vmem:[#allocation119_spill] sm:$0xff]  ;;  %v17186_v18 = vld [vmem:[#allocation126_spill] sm:$0xff]  ;;  %v17195_v1 = vld [vmem:[#allocation64_spill] sm:$0xff] }
 0x34f   :  { %3928 = vrot.lane.b32.xlu1 %v3892_v29, %s9866_s24  ;;  %v17183_v29 = vld [vmem:[#allocation123_spill] sm:$0xff] }
 0x350   :  { %v12259_v5 = vpop.permute.xlu0 %3420  ;;  %8959 = vmatpush1.bf16.msra.mxu0 %v17178_v24  ;;  %v17184_v10 = vld [vmem:[#allocation23_spill] sm:$0xff]  ;;  %v17185_v24 = vld [vmem:[#allocation124_spill] sm:$0xff] }
 0x351   :  { %9023 = vmatpush1.bf16.msra.mxu1 %v17179_v41  ;;  %8961 = vmatprep.subr.bf16.mxu0 %v17180_v22  ;;  %v4144_v39 = vmul.f32 %v17184_v10, %v11495_v34  ;;  %v17188_v41 = vld [vmem:[#allocation17_spill] sm:$0xff]  ;;  %v17192_v34 = vld [vmem:[#allocation131_spill] sm:$0xff] }
 0x352   :  { %4192 = vrot.lane.b32.xlu0 %v4151_v9, %s9865_s4  ;;  %9025 = vmatprep.subr.bf16.mxu1 %v17181_v42  ;;  %v17187_v9 = vld [vmem:[#allocation135_spill] sm:$0xff] }
 0x353   :  { %3924 = vrot.lane.b32.xlu1 %v3890_v44, %s9866_s24  ;;  %v2464_v22 = vsel %vm2460_vm2, %v17188_v41, %v17187_v9  ;;  %v17189_v42 = vld [vmem:[#allocation127_spill] sm:$0xff] }
 0x354   :  { %v12270_v52 = vpop.permute.xlu0 %3670  ;;  %8963 = vmatpush1.bf16.msra.mxu0 %v17182_v49  ;;  %v17190_v49 = vld [vmem:[#allocation128_spill] sm:$0xff]  ;;  %v17194_v41 = vld [vmem:[#allocation63_spill] sm:$0xff] }
 0x355   :  { %9027 = vmatpush1.bf16.msra.mxu1 %v17183_v29  ;;  %8965 = vmatprep.subr.bf16.mxu0 %v17185_v24  ;;  %v2497_v29 = vmul.f32 %v2464_v22, %v11510_v31  ;;  %v17197_v22 = vld [vmem:[#allocation137_spill] sm:$0xff] }
 0x356   :  { %9029 = vmatprep.subr.bf16.mxu1 %v17186_v18 }
 0x357   :  { %4178 = vrot.lane.b32.xlu1 %v4144_v39, %s9865_s4  ;;  %v17193_v39 = vld [vmem:[#allocation136_spill] sm:$0xff] }
 0x358   :  { %v12282_v44 = vpop.permute.xlu0 %4182  ;;  %8967 = vmatpush1.bf16.msra.mxu0 %v17189_v42  ;;  %v2718_v24 = vsel %vm2716_vm3, %v17193_v39, %v17144_v56  ;;  %v17200_v39 = vld [vmem:[#allocation139_spill] sm:$0xff] }
 0x359   :  { %9031 = vmatpush1.bf16.msra.mxu1 %v17190_v49  ;;  %8969 = vmatprep.subr.bf16.mxu0 %v17191_v54  ;;  %v2751_v42 = vmul.f32 %v2718_v24, %v11506_v35  ;;  %v17196_v49 = vld [vmem:[#allocation7_spill] sm:$0xff]  ;;  %v17198_v54 = vld [vmem:[#allocation100_spill] sm:$0xff] }
 0x35a   :  { %9033 = vmatprep.subr.bf16.mxu1 %v17192_v34 }
 0x35b   :  { %2535 = vrot.lane.b32.xlu1 %v2497_v29, %s9871_s26  ;;  %v17199_v29 = vld [vmem:[#allocation19_spill] sm:$0xff] }
 0x35c   :  { %v12293_v18 = vpop.permute.xlu0 %2275  ;;  %8971 = vmatpush1.bf16.msra.mxu0 %v17194_v41  ;;  %v2974_v56 = vsel %vm2972_vm4, %v17199_v29, %v17150_v16  ;;  %v17202_v41 = vld [vmem:[#allocation142_spill] sm:$0xff]  ;;  %v17204_v16 = vld [vmem:[#allocation11_spill] sm:$0xff]  ;;  %v17205_v29 = vld [vmem:[#allocation145_spill] sm:$0xff] }
 0x35d   :  { %9035 = vmatpush1.bf16.msra.mxu1 %v17195_v1  ;;  %9037 = vmatprep.subr.bf16.mxu0 %v17196_v49  ;;  %v17201_v1 = vld [vmem:[#allocation140_spill] sm:$0xff]  ;;  %v3007_v24 = vmul.f32 %v2974_v56, %v11506_v35  ;;  %v3350_v49 = vsel %vm3073_vm5, %v17161_v6, %v17204_v16  ;;  %v17210_v16 = vld [vmem:[#allocation151_spill] sm:$0xff] }
 0x35e   :  { %9101 = vmatprep.subr.bf16.mxu1 %v17197_v22  ;;  %v17208_v6 = vld [vmem:[#allocation148_spill] sm:$0xff] }
 0x35f   :  { %2787 = vrot.lane.b32.xlu1 %v2751_v42, %s9870_s1  ;;  %1727 = vmatmul.mubr.f32.vlgmr.msra.gmra.mrb[14].mxu0 %v17198_v54  ;;  %v17203_v42 = vld [vmem:[#allocation143_spill] sm:$0xff] }
 0x360   :  { %1798 = vmatmul.mubr.f32.vlgmr.msra.gmra.mrb[14].mxu1 %v17198_v54  ;;  %v12306_v34 = vpop.permute.xlu0 %2279  ;;  %9039 = vmatpush1.bf16.msra.mxu0 %v17200_v39  ;;  %v17206_v39 = vld [vmem:[#allocation146_spill] sm:$0xff] }
 0x361   :  { %1868 = vmatprep.mubr.f32.mxu0 %v17100_v47  ;;  %9103 = vmatpush1.bf16.msra.mxu1 %v17201_v1  ;;  %v17207_v1 = vld [vmem:[#allocation147_spill] sm:$0xff] }
 0x362   :  { %1939 = vmatprep.mubr.f32.mxu1 %v17100_v47  ;;  %9041 = vmatprep.subr.bf16.mxu0 %v17202_v41  ;;  %v3383_v47 = vmul.f32 %v3350_v49, %v11506_v35  ;;  %v17211_v49 = vld [vmem:[#allocation152_spill] sm:$0xff] }
 0x363   :  { %3043 = vrot.lane.b32.xlu1 %v3007_v24, %s9869_s21  ;;  %9105 = vmatprep.subr.bf16.mxu1 %v17203_v42  ;;  %v3606_v24 = vsel %vm2817_vm8, %v17165_v2, %v11205_v15  ;;  %v17209_v42 = vld [vmem:[#allocation150_spill] sm:$0xff]  ;;  %v3860_v15 = vsel %vm2561_vm9, %v17172_v38, %v17079_v43 }
 0x364   :  { %v12319_v22 = vpop.permute.xlu0 %2531  ;;  %9043 = vmatpush1.bf16.msra.mxu0 %v17205_v29  ;;  %v3639_v29 = vmul.f32 %v3606_v24, %v11510_v31  ;;  %v17216_v24 = vld [vmem:[#allocation157_spill] sm:$0xff]  ;;  %v17218_v43 = vld [vmem:[#allocation158_spill] sm:$0xff] }
 0x365   :  { %v2564_v56 = vsel %vm2561_vm9, %v12319_v22, %v12206_v55  ;;  %9107 = vmatpush1.bf16.msra.mxu1 %v17206_v39  ;;  %9045 = vmatprep.subr.bf16.mxu0 %v17207_v1  ;;  %v17212_v39 = vld [vmem:[#allocation153_spill] sm:$0xff]  ;;  %v3893_v1 = vmul.f32 %v3860_v15, %v11510_v31 }
 0x366   :  { %2596 = vst [vmem:[#allocation2 + $0x90] sm:$0xf] %v2564_v56  ;;  %9109 = vmatprep.subr.bf16.mxu1 %v17208_v6  ;;  %v17213_v56 = vld [vmem:[#allocation77_spill] sm:$0xff]  ;;  %v17215_v6 = vld [vmem:[#allocation155_spill] sm:$0xff] }
 0x367   :  { %3418 = vrot.lane.b32.xlu1 %v3383_v47, %s9868_s30  ;;  %v17214_v47 = vld [vmem:[#allocation154_spill] sm:$0xff]  ;;  %v17221_v15 = vld [vmem:[#allocation161_spill] sm:$0xff] }
 0x368   :  { %v12333_v41 = vpop.permute.xlu0 %2791  ;;  %9047 = vmatpush1.bf16.msra.mxu0 %v17209_v42  ;;  %v17217_v42 = vld [vmem:[#allocation34_spill] sm:$0xff] }
 0x369   :  { %9111 = vmatpush1.bf16.msra.mxu1 %v17210_v16  ;;  %9049 = vmatprep.subr.bf16.mxu0 %v17211_v49  ;;  %v4112_v16 = vsel %vm2305_vm6, %v17184_v10, %v17217_v42  ;;  %v17219_v49 = vld [vmem:[#allocation159_spill] sm:$0xff]  ;;  %v17222_v10 = vld [vmem:[#allocation93_spill] sm:$0xff] }
 0x36a   :  { %9113 = vmatprep.subr.bf16.mxu1 %v17212_v39  ;;  %v4145_v31 = vmul.f32 %v4112_v16, %v11506_v35  ;;  %v17220_v39 = vld [vmem:[#allocation160_spill] sm:$0xff]  ;;  %v17228_v16 = vld [vmem:[#allocation171_spill] sm:$0xff] }
 0x36b   :  { %3676 = vrot.lane.b32.xlu1 %v3639_v29, %s9867_s29 }
 0x36c   :  { %v12344_v2 = vpop.permute.xlu0 %3047  ;;  %9051 = vmatpush1.bf16.msra.mxu0 %v17213_v56  ;;  %v2209_v56 = vsel %vm2204_vm7, %v17222_v10, %v17113_v32  ;;  %v2211_v32 = vsel %vm2204_vm7, %v17112_v23, %v17119_v33  ;;  %v17227_v23 = vld [vmem:[#allocation170_spill] sm:$0xff] }
 0x36d   :  { %9115 = vmatpush1.bf16.msra.mxu1 %v17214_v47  ;;  %9053 = vmatprep.subr.bf16.mxu0 %v17215_v6  ;;  %v2242_v35 = vmul.f32 %v2209_v56, %v11833_v40  ;;  %v17224_v6 = vld [vmem:[#allocation166_spill] sm:$0xff] }
 0x36e   :  { %9117 = vmatprep.subr.bf16.mxu1 %v17216_v24  ;;  %v17234_v10 = vld [vmem:[#allocation66_spill] sm:$0xff] }
 0x36f   :  { %3930 = vrot.lane.b32.xlu1 %v3893_v1, %s9866_s24  ;;  %v4115_v56 = vsel %vm2305_vm6, %v17234_v10, %v17171_v61  ;;  %v17239_v61 = vld [vmem:[#allocation186_spill] sm:$0xff] }
 0x370   :  { %v12355_v29 = vpop.permute.xlu0 %3422  ;;  %9055 = vmatpush1.bf16.msra.mxu0 %v17218_v43  ;;  %v17229_v43 = vld [vmem:[#allocation172_spill] sm:$0xff] }
 0x371   :  { %v3452_v38 = vsel %vm2972_vm4, %v12259_v5, %v12355_v29  ;;  %9119 = vmatpush1.bf16.msra.mxu1 %v17219_v49  ;;  %9057 = vmatprep.subr.bf16.mxu0 %v17220_v39  ;;  %v17231_v49 = vld [vmem:[#allocation176_spill] sm:$0xff]  ;;  %v17232_v39 = vld [vmem:[#allocation177_spill] sm:$0xff] }
 0x372   :  { %3484 = vst [vmem:[#allocation2 + $0x290] sm:$0xf] %v3452_v38  ;;  %9121 = vmatprep.subr.bf16.mxu1 %v17221_v15  ;;  %v17230_v38 = vld [vmem:[#allocation175_spill] sm:$0xff]  ;;  %v17233_v15 = vld [vmem:[#allocation178_spill] sm:$0xff] }
 0x373   :  { %4180 = vrot.lane.b32.xlu1 %v4145_v31, %s9865_s4 }
 0x374   :  { %v12369_v47 = vpop.permute.xlu0 %3672  ;;  %9059 = vmatpush1.bf16.msra.mxu0 %v11824_v63 }
 0x375   :  { %v3704_v1 = vsel %vm2716_vm3, %v12270_v52, %v12369_v47  ;;  %9123 = vmatpush1.bf16.msra.mxu1 %v11828_v11  ;;  %9061 = vmatprep.subr.bf16.mxu0 %v11830_v48  ;;  %v17223_v52 = vld [vmem:[#allocation165_spill] sm:$0xff]  ;;  %v2244_v11 = vmul.f32 %v2211_v32, %v11835_v28  ;;  %v17225_v48 = vld [vmem:[#allocation168_spill] sm:$0xff]  ;;  %v17237_v32 = vld [vmem:[#allocation182_spill] sm:$0xff] }
 0x376   :  { %3736 = vst [vmem:[#allocation2 + $0x300] sm:$0xf] %v3704_v1  ;;  %9125 = vmatprep.subr.bf16.mxu1 %v11838_v20  ;;  %v17226_v20 = vld [vmem:[#allocation13_spill] sm:$0xff] }
 0x377   :  { %2281 = vrot.lane.b32.xlu1 %v2242_v35, %s9872_s14  ;;  %v3353_v24 = vsel %vm3073_vm5, %v17226_v20, %v17134_v50  ;;  %v2465_v50 = vsel %vm2460_vm2, %v17187_v9, %v17126_v19  ;;  %v17235_v19 = vld [vmem:[#allocation180_spill] sm:$0xff]  ;;  %v17236_v9 = vld [vmem:[#allocation181_spill] sm:$0xff]  ;;  %v4148_v35 = vmul.f32 %v4115_v56, %v11833_v40  ;;  %v17251_v56 = vld [vmem:[#allocation199_spill] sm:$0xff] }
 0x378   :  { %v12383_v63 = vpop.permute.xlu0 %3926  ;;  %9063 = vmatpush1.bf16.msra.mxu0 %v11855_v53  ;;  %v3386_v33 = vmul.f32 %v3353_v24, %v11833_v40  ;;  %v2498_v31 = vmul.f32 %v2465_v50, %v11833_v40  ;;  %v17241_v24 = vld [vmem:[#allocation188_spill] sm:$0xff]  ;;  %v17242_v40 = vld [vmem:[#allocation189_spill] sm:$0xff]  ;;  %v17245_v50 = vld [vmem:[#allocation194_spill] sm:$0xff] }
 0x379   :  { %9127 = vmatpush1.bf16.msra.mxu1 %v17223_v52  ;;  %9065 = vmatprep.subr.bf16.mxu0 %v17224_v6  ;;  %v17238_v52 = vld [vmem:[#allocation184_spill] sm:$0xff] }
 0x37a   :  { %9129 = vmatprep.subr.bf16.mxu1 %v17225_v48  ;;  %v17240_v48 = vld [vmem:[#allocation187_spill] sm:$0xff] }
 0x37b   :  { %2285 = vrot.lane.b32.xlu1 %v2244_v11, %s9872_s14  ;;  %v3355_v11 = vsel %vm3073_vm5, %v11530_v46, %v17136_v45  ;;  %v3609_v46 = vsel %vm2817_vm8, %v11566_v0, %v17157_v51  ;;  %v3863_v0 = vsel %vm2561_vm9, %v11585_v37, %v17164_v59  ;;  %v4117_v37 = vsel %vm2305_vm6, %v11662_v58, %v11654_v21 }
 0x37c   :  { %v12394_v42 = vpop.permute.xlu0 %4184  ;;  %9067 = vmatpush1.bf16.msra.mxu0 %v11876_v7  ;;  %v3388_v20 = vmul.f32 %v3355_v11, %v11835_v28  ;;  %v3896_v10 = vmul.f32 %v3863_v0, %v11835_v28  ;;  %v17257_v11 = vld [vmem:[#allocation38_spill] sm:$0xff] }
 0x37d   :  { %v4214_v53 = vsel %vm2204_vm7, %v12282_v44, %v12394_v42  ;;  %9131 = vmatpush1.bf16.msra.mxu1 %v17227_v23  ;;  %9069 = vmatprep.subr.bf16.mxu0 %v17228_v16  ;;  %v17243_v23 = vld [vmem:[#allocation192_spill] sm:$0xff]  ;;  %v17244_v16 = vld [vmem:[#allocation193_spill] sm:$0xff] }
 0x37e   :  { %4246 = vst [vmem:[#allocation2 + $0x410] sm:$0xf] %v4214_v53  ;;  %9133 = vmatprep.subr.bf16.mxu1 %v17229_v43  ;;  %v12437_v53 = vpop.permute.xlu1 %3598  ;;  %v3642_v43 = vmul.f32 %v3609_v46, %v11835_v28  ;;  %v12512_v46 = vld [vmem:[#allocation2] sm:$0xff] }
 0x37f   :  { %3424 = vrot.lane.b32.xlu1 %v3386_v33, %s9868_s30 }
 0x380   :  { %v12408_v7 = vpop.permute.xlu0 %3678  ;;  %9071 = vmatpush1.bf16.msra.mxu0 %v17230_v38  ;;  %v17246_v38 = vld [vmem:[#allocation195_spill] sm:$0xff] }
 0x381   :  { %9135 = vmatpush1.bf16.msra.mxu1 %v17231_v49  ;;  %9073 = vmatprep.subr.bf16.mxu0 %v17232_v39  ;;  %v17248_v49 = vld [vmem:[#allocation197_spill] sm:$0xff] }
 0x382   :  { %9137 = vmatprep.subr.bf16.mxu1 %v17233_v15  ;;  %v17250_v15 = vld [vmem:[#allocation198_spill] sm:$0xff] }
 0x383   :  { %2537 = vrot.lane.b32.xlu1 %v2498_v31, %s9871_s26  ;;  %v12460_v31 = vpop.permute.xlu1 %3852 }
 0x384   :  { %v12419_v1 = vpop.permute.xlu0 %3932  ;;  %9075 = vmatpush1.bf16.msra.mxu0 %v17235_v19  ;;  %17249 = vst [vmem:[#allocation110_spill] sm:$0xff] %v12460_v31  ;;  %v17252_v19 = vld [vmem:[#allocation201_spill] sm:$0xff] }
 0x385   :  { %9139 = vmatpush1.bf16.msra.mxu1 %v17236_v9  ;;  %9077 = vmatprep.subr.bf16.mxu0 %v17237_v32  ;;  %v17254_v9 = vld [vmem:[#allocation20_spill] sm:$0xff] }
 0x386   :  { %9141 = vmatprep.subr.bf16.mxu1 %v17238_v52  ;;  %v17256_v52 = vld [vmem:[#allocation25_spill] sm:$0xff] }
 0x387   :  { %4186 = vrot.lane.b32.xlu1 %v4148_v35, %s9865_s4  ;;  %v4150_v35 = vmul.f32 %v4117_v37, %v11835_v28  ;;  %v12479_v32 = vpop.permute.xlu1 %3856  ;;  %v2468_v21 = vsel %vm2460_vm2, %v17257_v11, %v17256_v52 }
 0x388   :  { %v12430_v6 = vpop.permute.xlu0 %2541  ;;  %9079 = vmatpush1.bf16.msra.mxu0 %v17239_v61  ;;  %17255 = vst [vmem:[#allocation58_spill] sm:$0xff] %v12479_v32  ;;  %v2501_v28 = vmul.f32 %v2468_v21, %v11847_v8  ;;  %v17303_v32 = vld [vmem:[#allocation196_spill] sm:$0xff] }
 0x389   :  { %9143 = vmatpush1.bf16.msra.mxu1 %v17240_v48  ;;  %9081 = vmatprep.subr.bf16.mxu0 %v17241_v24 }
 0x38a   :  { %9145 = vmatprep.subr.bf16.mxu1 %v17242_v40 }
 0x38b   :  { %3428 = vrot.lane.b32.xlu1 %v3388_v20, %s9868_s30  ;;  %v17262_v20 = vld [vmem:[#allocation204_spill] sm:$0xff] }
 0x38c   :  { %v12443_v45 = vpop.permute.xlu0 %2793  ;;  %9083 = vmatpush1.bf16.msra.mxu0 %v17243_v23 }
 0x38d   :  { %v2822_v33 = vsel %vm2817_vm8, %v12333_v41, %v12443_v45  ;;  %9147 = vmatpush1.bf16.msra.mxu1 %v17244_v16  ;;  %9085 = vmatprep.subr.bf16.mxu0 %v17245_v50  ;;  %v17267_v16 = vld [vmem:[#allocation36_spill] sm:$0xff] }
 0x38e   :  { %2854 = vst [vmem:[#allocation2 + $0x120] sm:$0xf] %v2822_v33  ;;  %9149 = vmatprep.subr.bf16.mxu1 %v17246_v38 }
 0x38f   :  { %3682 = vrot.lane.b32.xlu1 %v3642_v43, %s9867_s29  ;;  %v17268_v43 = vld [vmem:[#allocation74_spill] sm:$0xff] }
 0x390   :  { %v12457_v51 = vpop.permute.xlu0 %3049  ;;  %9087 = vmatpush1.bf16.msra.mxu0 %v17248_v49  ;;  %v2724_v50 = vsel %vm2716_vm3, %v17268_v43, %v17267_v16 }
 0x391   :  { %17247 = vst [vmem:[#allocation52_spill] sm:$0xff] %v12457_v51  ;;  %v3078_v39 = vsel %vm3073_vm5, %v12344_v2, %v12457_v51  ;;  %9151 = vmatpush1.bf16.msra.mxu1 %v17250_v15  ;;  %9089 = vmatprep.subr.bf16.mxu0 %v17251_v56  ;;  %v2757_v49 = vmul.f32 %v2724_v50, %v11847_v8  ;;  %v17271_v56 = vld [vmem:[#allocation75_spill] sm:$0xff]  ;;  %v4279_v51 = vld [vmem:[#allocation2 + $0x90] sm:$0xff] }
 0x392   :  { %3110 = vst [vmem:[#allocation2 + $0x1a0] sm:$0xf] %v3078_v39  ;;  %9153 = vmatprep.subr.bf16.mxu1 %v17252_v19  ;;  %v17269_v39 = vld [vmem:[#allocation15_spill] sm:$0xff] }
 0x393   :  { %3936 = vrot.lane.b32.xlu1 %v3896_v10, %s9866_s24  ;;  %v17270_v10 = vld [vmem:[#allocation46_spill] sm:$0xff] }
 0x394   :  { %v12473_v59 = vpop.permute.xlu0 %2797  ;;  %9091 = vmatpush1.bf16.msra.mxu0 %v11998_v4  ;;  %v17260_v4 = vld [vmem:[#allocation26_spill] sm:$0xff]  ;;  %v2980_v19 = vsel %vm2972_vm4, %v17271_v56, %v17270_v10 }
 0x395   :  { %17253 = vst [vmem:[#allocation55_spill] sm:$0xff] %v12473_v59  ;;  %9155 = vmatpush1.bf16.msra.mxu1 %v17254_v9  ;;  %9093 = vmatprep.subr.bf16.mxu0 %v12004_v26  ;;  %v17261_v26 = vld [vmem:[#allocation47_spill] sm:$0xff]  ;;  %v3013_v21 = vmul.f32 %v2980_v19, %v11847_v8 }
 0x396   :  { %9157 = vmatprep.subr.bf16.mxu1 %v12008_v57  ;;  %v12494_v57 = vpop.permute.xlu1 %4108  ;;  %v2722_v61 = vsel %vm2716_vm3, %v17261_v26, %v17260_v4  ;;  %v8056_v9 = vld [vmem:[%s16169_s2 + $0x44] ss:$8 sm:$0xf] }
 0x397   :  { %4190 = vrot.lane.b32.xlu1 %v4150_v35, %s9865_s4  ;;  %17259 = vst [vmem:[#allocation65_spill] sm:$0xff] %v12494_v57  ;;  %v8057_v35 = vld [vmem:[%s16169_s2 + $0x44] ss:$8 sm:$0xf0] }
 0x398   :  { %v12486_v58 = vpop.permute.xlu0 %3053  ;;  %9095 = vmatpush1.bf16.msra.mxu0 %v12019_v25  ;;  %v17263_v25 = vld [vmem:[#allocation205_spill] sm:$0xff]  ;;  %v12551_v26 = vor.u32 %v8057_v35, %v8056_v9 }
 0x399   :  { %17258 = vst [vmem:[#allocation67_spill] sm:$0xff] %v12486_v58  ;;  %9159 = vmatpush1.bf16.msra.mxu1 %v12023_v27  ;;  %9097 = vmatprep.subr.bf16.mxu0 %v12025_v36  ;;  %v2755_v27 = vmul.f32 %v2722_v61, %v11845_v3  ;;  %v17265_v36 = vld [vmem:[#allocation53_spill] sm:$0xff] }
 0x39a   :  { %9161 = vmatprep.subr.bf16.mxu1 %v12029_v17  ;;  %v17264_v17 = vld [vmem:[#allocation28_spill] sm:$0xff] }
 0x39b   :  { %2543 = vrot.lane.b32.xlu1 %v2501_v28, %s9871_s26  ;;  %v2978_v24 = vsel %vm2972_vm4, %v17265_v36, %v17264_v17  ;;  %v17273_v36 = vld [vmem:[#allocation45_spill] sm:$0xff] }
 0x39c   :  { %v12499_v48 = vpop.permute.xlu0 %2283  ;;  %9099 = vmatpush1.bf16.msra.mxu0 %v17262_v20  ;;  %v3011_v33 = vmul.f32 %v2978_v24, %v11845_v3  ;;  %v3175_v24 = vrot.slane %v12551_v26, %v17273_v36 }
 0x39d   :  { %9163 = vmatpush1.bf16.msra.mxu1 %v17263_v25 }
 0x39f   :  { %2795 = vrot.lane.b32.xlu1 %v2755_v27, %s9870_s1  ;;  %1869 = vmatmul.mubr.f32.vlgmr.msra.gmra.mrb[16].mxu0 %v17198_v54 }
 0x3a0   :  { %1940 = vmatmul.mubr.f32.vlgmr.msra.gmra.mrb[16].mxu1 %v17198_v54  ;;  %v12510_v40 = vpop.permute.xlu0 %2287  ;;  %4479 = vmatprep.mubr.f32.mxu0 %v12512_v46 }
 0x3a1   :  { %v12515_v23 = vpop.permute.xlu1 %3448  ;;  %4550 = vmatprep.mubr.f32.mxu1 %v12512_v46 }
 0x3a2   :  { %17266 = vst [vmem:[#allocation21_spill] sm:$0xff] %v12515_v23  ;;  %v17282_v23 = vld [vmem:[#allocation10_spill] sm:$0xff] }
 0x3a3   :  { %3051 = vrot.lane.b32.xlu1 %v3011_v33, %s9869_s21  ;;  %v17274_v33 = vld [vmem:[#allocation59_spill] sm:$0xff] }
 0x3a4   :  { %v12523_v38 = vpop.permute.xlu0 %2539  ;;  %v3171_v43 = vrot.slane %v12551_v26, %v17274_v33  ;;  %v17299_v33 = vld [vmem:[#allocation174_spill] sm:$0xff] }
 0x3a5   :  { %v2568_v54 = vsel %vm2561_vm9, %v12523_v38, %v12430_v6  ;;  %v2274_v0 = vpop.permute.xlu1 %2273 }
 0x3a6   :  { %2600 = vst [vmem:[#allocation2 + $0xb0] sm:$0xf] %v2568_v54  ;;  %v2306_v3 = vsel %vm2305_vm6, %v17269_v39, %v2274_v0  ;;  %v2307_v15 = vsel %vm2305_vm6, %v2274_v0, %v12293_v18  ;;  %v17276_v0 = vld [vmem:[#allocation120_spill] sm:$0xff] }
 0x3a7   :  { %2338 = vst [vmem:[#allocation2] sm:$0xf] %v2306_v3  ;;  %2339 = vst [vmem:[#allocation2 + $0x8] sm:$0xf] %v2307_v15  ;;  %2799 = vrot.lane.b32.xlu1 %v2757_v49, %s9870_s1  ;;  %v17277_v49 = vld [vmem:[#allocation115_spill] sm:$0xff]  ;;  %v17278_v3 = vld [vmem:[#allocation121_spill] sm:$0xff] }
 0x3a8   :  { %v12537_v37 = vpop.permute.xlu0 %3426  ;;  %v2213_v39 = vsel %vm2204_vm7, %v17277_v49, %v17276_v0  ;;  %v2469_v15 = vsel %vm2460_vm2, %v17256_v52, %v17278_v3 }
 0x3a9   :  { %v2278_v11 = vpop.permute.xlu1 %2277 }
 0x3aa   :  { %v2308_v28 = vsel %vm2305_vm6, %v12293_v18, %v2278_v11  ;;  %v2309_v4 = vsel %vm2305_vm6, %v2278_v11, %v12306_v34  ;;  %v17272_v18 = vld [vmem:[#allocation54_spill] sm:$0xff] }
 0x3ab   :  { %2340 = vst [vmem:[#allocation2 + $0x10] sm:$0xf] %v2308_v28  ;;  %2341 = vst [vmem:[#allocation2 + $0x18] sm:$0xf] %v2309_v4  ;;  %3055 = vrot.lane.b32.xlu1 %v3013_v21, %s9869_s21  ;;  %v3167_v27 = vrot.slane %v12551_v26, %v17272_v18 }
 0x3ac   :  { %v12553_v61 = vpop.permute.xlu0 %3430 }
 0x3ad   :  { %v2530_v20 = vpop.permute.xlu1 %2529 }
 0x3ae   :  { %v2562_v25 = vsel %vm2561_vm9, %v12180_v13, %v2530_v20  ;;  %v2563_v8 = vsel %vm2561_vm9, %v2530_v20, %v12319_v22  ;;  %v17275_v22 = vld [vmem:[#allocation60_spill] sm:$0xff] }
 0x3af   :  { %2594 = vst [vmem:[#allocation2 + $0x80] sm:$0xf] %v2562_v25  ;;  %2595 = vst [vmem:[#allocation2 + $0x88] sm:$0xf] %v2563_v8  ;;  %v3179_v54 = vrot.slane %v12551_v26, %v17275_v22 }
 0x3b0   :  { %v12561_v17 = vpop.permute.xlu0 %3680 }
 0x3b1   :  { %v3708_v13 = vsel %vm2716_vm3, %v12408_v7, %v12561_v17  ;;  %v12570_v50 = vpop.permute.xlu1 %2789 }
 0x3b2   :  { %3740 = vst [vmem:[#allocation2 + $0x320] sm:$0xf] %v3708_v13  ;;  %v2821_v56 = vsel %vm2817_vm8, %v12570_v50, %v12333_v41  ;;  %v12583_v19 = vpop.f32.mrb[10].mxu0  ;;  %v17279_v13 = vld [vmem:[#allocation8_spill] sm:$0xff] }
 0x3b3   :  { %2853 = vst [vmem:[#allocation2 + $0x118] sm:$0xf] %v2821_v56  ;;  %v3220_v9 = vmul.f32 %v3167_v27, %v12583_v19  ;;  %v12586_v35 = vpop.f32.mrb[10].mxu1  ;;  %v12588_v11 = vpop.f32.mrb[11].mxu0  ;;  %v2502_v21 = vmul.f32 %v2469_v15, %v12583_v19  ;;  %v2246_v28 = vmul.f32 %v2213_v39, %v12583_v19  ;;  %v4261_v15 = vld [vmem:[#allocation2] sm:$0xff] }
 0x3b4   :  { %v3222_v52 = vmul.f32 %v3175_v24, %v12586_v35  ;;  %v3221_v4 = vmul.f32 %v3171_v43, %v12588_v11  ;;  %v12594_v20 = vpop.f32.mrb[11].mxu1  ;;  %v12596_v41 = vpop.permute.xlu0 %3934  ;;  %v4262_v24 = vld [vmem:[#allocation2 + $0x8] sm:$0xff]  ;;  %v17280_v43 = vld [vmem:[#allocation114_spill] sm:$0xff] }
 0x3b5   :  { %3236 = vst [vmem:[#allocation2 + $0x240] sm:$0xf] %v3220_v9  ;;  %v3223_v25 = vmul.f32 %v3179_v54, %v12594_v20  ;;  %v3962_v8 = vsel %vm2460_vm2, %v12419_v1, %v12596_v41  ;;  %v12602_v27 = vpop.permute.xlu1 %3045  ;;  %2545 = vrot.lane.b32.xlu0 %v2502_v21, %s9871_s26  ;;  %2289 = vrot.lane.b32.xlu1 %v2246_v28, %s9872_s14  ;;  %v17281_v9 = vld [vmem:[#allocation125_spill] sm:$0xff] }
 0x3b6   :  { %v2471_v49 = vsel %vm2460_vm2, %v17280_v43, %v17279_v13  ;;  %3238 = vst [vmem:[#allocation2 + $0x250] sm:$0xf] %v3222_v52  ;;  %3237 = vst [vmem:[#allocation2 + $0x248] sm:$0xf] %v3221_v4  ;;  %v3077_v54 = vsel %vm3073_vm5, %v12602_v27, %v12344_v2  ;;  %v4278_v39 = vld [vmem:[#allocation2 + $0x88] sm:$0xff]  ;;  %v4277_v56 = vld [vmem:[#allocation2 + $0x80] sm:$0xff]  ;;  %v2215_v21 = vsel %vm2204_vm7, %v17282_v23, %v17281_v9 }
 0x3b7   :  { %3994 = vst [vmem:[#allocation2 + $0x3a0] sm:$0xf] %v3962_v8  ;;  %3239 = vst [vmem:[#allocation2 + $0x258] sm:$0xf] %v3223_v25  ;;  %v9164_v28 = vpack.c.bf16 %v4278_v39, %v4262_v24  ;;  %v2504_v36 = vmul.f32 %v2471_v49, %v12586_v35  ;;  %v9166_v18 = vpack.c.bf16 %v4277_v56, %v4261_v15  ;;  %v17283_v2 = vld [vmem:[#allocation138_spill] sm:$0xff]  ;;  %v17284_v25 = vld [vmem:[#allocation73_spill] sm:$0xff] }
 0x3b8   :  { %3109 = vst [vmem:[#allocation2 + $0x198] sm:$0xf] %v3077_v54  ;;  %v2248_v52 = vmul.f32 %v2215_v21, %v12586_v35  ;;  %v2725_v8 = vsel %vm2716_vm3, %v17267_v16, %v17283_v2  ;;  %v3357_v24 = vsel %vm3073_vm5, %v11549_v30, %v17284_v25 }
 0x3b9   :  { %v12617_v4 = vpop.permute.xlu1 %3416  ;;  %9165 = vmatprep.subr.bf16.mxu0 %v9164_v28  ;;  %2549 = vrot.lane.b32.xlu0 %v2504_v36, %s9871_s26  ;;  %v2758_v49 = vmul.f32 %v2725_v8, %v12583_v19  ;;  %v3390_v54 = vmul.f32 %v3357_v24, %v12583_v19  ;;  %v17285_v36 = vld [vmem:[#allocation144_spill] sm:$0xff] }
 0x3ba   :  { %2293 = vrot.lane.b32.xlu1 %v2248_v52, %s9872_s14  ;;  %9167 = vmatpush1.bf16.msra.mxu0 %v9166_v18  ;;  %v2981_v15 = vsel %vm2972_vm4, %v17270_v10, %v17285_v36  ;;  %v17286_v18 = vld [vmem:[#allocation95_spill] sm:$0xff]  ;;  %v17288_v52 = vld [vmem:[#allocation141_spill] sm:$0xff]  ;;  %v4296_v59 = vld [vmem:[#allocation2 + $0x118] sm:$0xff] }
 0x3bb   :  { %v3611_v30 = vsel %vm2817_vm8, %v17156_v60, %v17286_v18  ;;  %v3014_v56 = vmul.f32 %v2981_v15, %v12583_v19  ;;  %v17287_v10 = vld [vmem:[#allocation83_spill] sm:$0xff]  ;;  %v17289_v60 = vld [vmem:[#allocation106_spill] sm:$0xff] }
 0x3bc   :  { %v3644_v21 = vmul.f32 %v3611_v30, %v12583_v19  ;;  %v2727_v8 = vsel %vm2716_vm3, %v17288_v52, %v17287_v10  ;;  %v3865_v24 = vsel %vm2561_vm9, %v11621_v14, %v17289_v60  ;;  %v17291_v30 = vld [vmem:[#allocation149_spill] sm:$0xff] }
 0x3bd   :  { %v12629_v39 = vpop.permute.xlu1 %3674  ;;  %2801 = vrot.lane.b32.xlu0 %v2758_v49, %s9870_s1  ;;  %v2760_v49 = vmul.f32 %v2727_v8, %v12586_v35 }
 0x3be   :  { %v3705_v16 = vsel %vm2716_vm3, %v12369_v47, %v12629_v39  ;;  %3432 = vrot.lane.b32.xlu1 %v3390_v54, %s9868_s30  ;;  %v3898_v54 = vmul.f32 %v3865_v24, %v12583_v19 }
 0x3bf   :  { %3737 = vst [vmem:[#allocation2 + $0x308] sm:$0xf] %v3705_v16  ;;  %v17290_v16 = vld [vmem:[#allocation88_spill] sm:$0xff] }
 0x3c1   :  { %v12644_v28 = vpop.permute.xlu1 %3928  ;;  %3057 = vrot.lane.b32.xlu0 %v3014_v56, %s9869_s21  ;;  %v2983_v56 = vsel %vm2972_vm4, %v17291_v30, %v17290_v16 }
 0x3c2   :  { %v3959_v47 = vsel %vm2460_vm2, %v12383_v63, %v12644_v28  ;;  %3686 = vrot.lane.b32.xlu1 %v3644_v21, %s9867_s29  ;;  %v17292_v21 = vld [vmem:[#allocation156_spill] sm:$0xff]  ;;  %v3016_v8 = vmul.f32 %v2983_v56, %v12586_v35 }
 0x3c3   :  { %3991 = vst [vmem:[#allocation2 + $0x388] sm:$0xf] %v3959_v47  ;;  %v4119_v14 = vsel %vm2305_vm6, %v11751_v62, %v17292_v21 }
 0x3c4   :  { %v4152_v47 = vmul.f32 %v4119_v14, %v12583_v19  ;;  %v17295_v19 = vld [vmem:[#allocation12_spill] sm:$0xff] }
 0x3c5   :  { %v3925_v15 = vpop.permute.xlu1 %3924  ;;  %2805 = vrot.lane.b32.xlu0 %v2760_v49, %s9870_s1  ;;  %v2214_v49 = vsel %vm2204_vm7, %v17276_v0, %v17282_v23  ;;  %v2216_v14 = vsel %vm2204_vm7, %v17281_v9, %v17295_v19  ;;  %v17296_v0 = vld [vmem:[#allocation190_spill] sm:$0xff] }
 0x3c6   :  { %v3958_v22 = vsel %vm2460_vm2, %v3925_v15, %v12383_v63  ;;  %3940 = vrot.lane.b32.xlu1 %v3898_v54, %s9866_s24  ;;  %v17293_v63 = vld [vmem:[#allocation173_spill] sm:$0xff]  ;;  %v17294_v54 = vld [vmem:[#allocation163_spill] sm:$0xff]  ;;  %v2247_v62 = vmul.f32 %v2214_v49, %v12588_v11  ;;  %v2249_v49 = vmul.f32 %v2216_v14, %v12594_v20 }
 0x3c7   :  { %3990 = vst [vmem:[#allocation2 + $0x380] sm:$0xf] %v3958_v22  ;;  %v3359_v15 = vsel %vm3073_vm5, %v17294_v54, %v17293_v63  ;;  %v3358_v9 = vsel %vm3073_vm5, %v17284_v25, %v17294_v54  ;;  %v4263_v25 = vld [vmem:[#allocation2 + $0x10] sm:$0xff]  ;;  %v17301_v54 = vld [vmem:[#allocation51_spill] sm:$0xff] }
 0x3c8   :  { %v3392_v22 = vmul.f32 %v3359_v15, %v12586_v35  ;;  %v9182_v31 = vpack.c.bf16 %v4279_v51, %v4263_v25  ;;  %v2470_v51 = vsel %vm2460_vm2, %v17278_v3, %v17280_v43  ;;  %v17304_v25 = vld [vmem:[#allocation132_spill] sm:$0xff] }
 0x3c9   :  { %v12671_v24 = vpop.permute.xlu1 %4178  ;;  %3061 = vrot.lane.b32.xlu0 %v3016_v8, %s9869_s21  ;;  %v17297_v8 = vld [vmem:[#allocation169_spill] sm:$0xff] }
 0x3ca   :  { %4194 = vrot.lane.b32.xlu1 %v4152_v47, %s9865_s4  ;;  %v3613_v47 = vsel %vm2817_vm8, %v17297_v8, %v17296_v0 }
 0x3cb   :  { %v3646_v15 = vmul.f32 %v3613_v47, %v12586_v35  ;;  %v3391_v47 = vmul.f32 %v3358_v9, %v12588_v11 }
 0x3cd   :  { %v12683_v56 = vpop.permute.xlu1 %2535  ;;  %2291 = vrot.lane.b32.xlu0 %v2247_v62, %s9872_s14 }
 0x3ce   :  { %v2565_v23 = vsel %vm2561_vm9, %v12206_v55, %v12683_v56  ;;  %3436 = vrot.lane.b32.xlu1 %v3392_v22, %s9868_s30 }
 0x3cf   :  { %2597 = vst [vmem:[#allocation2 + $0x98] sm:$0xf] %v2565_v23  ;;  %v17298_v23 = vld [vmem:[#allocation200_spill] sm:$0xff] }
 0x3d0   :  { %v3867_v14 = vsel %vm2561_vm9, %v17299_v33, %v17298_v23 }
 0x3d1   :  { %v2788_v62 = vpop.permute.xlu1 %2787  ;;  %2295 = vrot.lane.b32.xlu0 %v2249_v49, %s9872_s14  ;;  %v3900_v49 = vmul.f32 %v3867_v14, %v12586_v35  ;;  %v17302_v14 = vld [vmem:[#allocation101_spill] sm:$0xff] }
 0x3d2   :  { %v2819_v55 = vsel %vm2817_vm8, %v12225_v12, %v2788_v62  ;;  %v2820_v22 = vsel %vm2817_vm8, %v2788_v62, %v12570_v50  ;;  %3690 = vrot.lane.b32.xlu1 %v3646_v15, %s9867_s29  ;;  %v17300_v12 = vld [vmem:[#allocation164_spill] sm:$0xff] }
 0x3d3   :  { %2851 = vst [vmem:[#allocation2 + $0x108] sm:$0xf] %v2819_v55  ;;  %2852 = vst [vmem:[#allocation2 + $0x110] sm:$0xf] %v2820_v22  ;;  %v3360_v50 = vsel %vm3073_vm5, %v17293_v63, %v17300_v12  ;;  %v4264_v55 = vld [vmem:[#allocation2 + $0x18] sm:$0xff] }
 0x3d4   :  { %v4312_v22 = vld [vmem:[#allocation2 + $0x198] sm:$0xff]  ;;  %v3393_v63 = vmul.f32 %v3360_v50, %v12594_v20 }
 0x3d5   :  { %v3044_v57 = vpop.permute.xlu1 %3043  ;;  %3434 = vrot.lane.b32.xlu0 %v3391_v47, %s9868_s30  ;;  %v4121_v47 = vsel %vm2305_vm6, %v17303_v32, %v17302_v14 }
 0x3d6   :  { %v3075_v15 = vsel %vm3073_vm5, %v17301_v54, %v3044_v57  ;;  %v3076_v62 = vsel %vm3073_vm5, %v3044_v57, %v12602_v27  ;;  %3944 = vrot.lane.b32.xlu1 %v3900_v49, %s9866_s24  ;;  %v4280_v9 = vld [vmem:[#allocation2 + $0x98] sm:$0xff]  ;;  %v4154_v54 = vmul.f32 %v4121_v47, %v12586_v35  ;;  %v9184_v27 = vpack.c.bf16 %v4312_v22, %v4296_v59  ;;  %v4293_v47 = vld [vmem:[#allocation2 + $0x100] sm:$0xff] }
 0x3d7   :  { %3107 = vst [vmem:[#allocation2 + $0x188] sm:$0xf] %v3075_v15  ;;  %3108 = vst [vmem:[#allocation2 + $0x190] sm:$0xf] %v3076_v62  ;;  %v9180_v58 = vpack.c.bf16 %v4280_v9, %v4264_v55  ;;  %v3612_v49 = vsel %vm2817_vm8, %v17286_v18, %v17297_v8  ;;  %v4309_v18 = vld [vmem:[#allocation2 + $0x180] sm:$0xff]  ;;  %v2472_v62 = vsel %vm2460_vm2, %v17279_v13, %v17304_v25 }
 0x3d8   :  { %v3645_v59 = vmul.f32 %v3612_v49, %v12588_v11  ;;  %v3866_v55 = vsel %vm2561_vm9, %v17289_v60, %v17299_v33  ;;  %v2505_v22 = vmul.f32 %v2472_v62, %v12594_v20  ;;  %v4326_v60 = vld [vmem:[#allocation2 + $0x208] sm:$0xff] }
 0x3d9   :  { %v3419_v57 = vpop.permute.xlu1 %3418  ;;  %9181 = vmatprep.subr.bf16.mxu1 %v9180_v58  ;;  %3438 = vrot.lane.b32.xlu0 %v3393_v63, %s9868_s30  ;;  %v2503_v58 = vmul.f32 %v2470_v51, %v12588_v11 }
 0x3da   :  { %v3450_v15 = vsel %vm2972_vm4, %v12617_v4, %v3419_v57  ;;  %v3451_v50 = vsel %vm2972_vm4, %v3419_v57, %v12259_v5  ;;  %4198 = vrot.lane.b32.xlu1 %v4154_v54, %s9865_s4  ;;  %9183 = vmatpush1.bf16.msra.mxu1 %v9182_v31  ;;  %v4294_v4 = vld [vmem:[#allocation2 + $0x108] sm:$0xff]  ;;  %v4295_v43 = vld [vmem:[#allocation2 + $0x110] sm:$0xff]  ;;  %v9170_v54 = vpack.c.bf16 %v4309_v18, %v4293_v47  ;;  %v4325_v57 = vld [vmem:[#allocation2 + $0x200] sm:$0xff] }
 0x3db   :  { %3482 = vst [vmem:[#allocation2 + $0x280] sm:$0xf] %v3450_v15  ;;  %3483 = vst [vmem:[#allocation2 + $0x288] sm:$0xf] %v3451_v50  ;;  %9185 = vmatprep.subr.bf16.mxu1 %v9184_v27  ;;  %v2726_v15 = vsel %vm2716_vm3, %v17283_v2, %v17288_v52  ;;  %v17305_v50 = vld [vmem:[#allocation179_spill] sm:$0xff]  ;;  %v4358_v18 = vld [vmem:[#allocation2 + $0x308] sm:$0xff] }
 0x3dc   :  { %v3614_v51 = vsel %vm2817_vm8, %v17296_v0, %v17305_v50 }
 0x3dd   :  { %v3677_v35 = vpop.permute.xlu1 %3676  ;;  %3688 = vrot.lane.b32.xlu0 %v3645_v59, %s9867_s29  ;;  %v4374_v59 = vld [vmem:[#allocation2 + $0x388] sm:$0xff] }
 0x3de   :  { %v3706_v5 = vsel %vm2716_vm3, %v12629_v39, %v3677_v35  ;;  %v3707_v31 = vsel %vm2716_vm3, %v3677_v35, %v12408_v7  ;;  %2547 = vrot.lane.b32.xlu1 %v2503_v58, %s9871_s26  ;;  %v4310_v3 = vld [vmem:[#allocation2 + $0x188] sm:$0xff]  ;;  %v4311_v8 = vld [vmem:[#allocation2 + $0x190] sm:$0xff]  ;;  %v3899_v7 = vmul.f32 %v3866_v55, %v12588_v11  ;;  %v2759_v58 = vmul.f32 %v2726_v15, %v12588_v11 }
 0x3df   :  { %3738 = vst [vmem:[#allocation2 + $0x310] sm:$0xf] %v3706_v5  ;;  %3739 = vst [vmem:[#allocation2 + $0x318] sm:$0xf] %v3707_v31  ;;  %v9168_v9 = vpack.c.bf16 %v4310_v3, %v4294_v4  ;;  %v9186_v39 = vpack.c.bf16 %v4311_v8, %v4295_v43  ;;  %v3647_v35 = vmul.f32 %v3614_v51, %v12594_v20  ;;  %v4373_v5 = vld [vmem:[#allocation2 + $0x380] sm:$0xff]  ;;  %v17306_v3 = vld [vmem:[#allocation185_spill] sm:$0xff] }
 0x3e0   :  { %v9176_v0 = vpack.c.bf16 %v4374_v59, %v4358_v18  ;;  %v2982_v31 = vsel %vm2972_vm4, %v17285_v36, %v17291_v30  ;;  %v3868_v43 = vsel %vm2561_vm9, %v17298_v23, %v17306_v3  ;;  %v4357_v8 = vld [vmem:[#allocation2 + $0x300] sm:$0xff]  ;;  %v17307_v30 = vld [vmem:[#allocation162_spill] sm:$0xff]  ;;  %v17311_v15 = vld [vmem:[#allocation57_spill] sm:$0xff] }
 0x3e1   :  { %v3931_v63 = vpop.permute.xlu1 %3930  ;;  %9169 = vmatprep.subr.bf16.mxu0 %v9168_v9  ;;  %9187 = vmatpush1.bf16.msra.mxu1 %v9186_v39  ;;  %v9178_v55 = vpack.c.bf16 %v4373_v5, %v4357_v8  ;;  %v2728_v23 = vsel %vm2716_vm3, %v17287_v10, %v17307_v30  ;;  %v4120_v39 = vsel %vm2305_vm6, %v17292_v21, %v17303_v32 }
 0x3e2   :  { %v3960_v13 = vsel %vm2460_vm2, %v12644_v28, %v3931_v63  ;;  %v3961_v33 = vsel %vm2460_vm2, %v3931_v63, %v12419_v1  ;;  %2551 = vrot.lane.b32.xlu1 %v2505_v22, %s9871_s26  ;;  %3942 = vrot.lane.b32.xlu0 %v3899_v7, %s9866_s24  ;;  %v4342_v27 = vld [vmem:[#allocation2 + $0x288] sm:$0xff]  ;;  %v4341_v49 = vld [vmem:[#allocation2 + $0x280] sm:$0xff]  ;;  %v12794_v22 = vpop.permute.xlu0 %3684  ;;  %v4153_v7 = vmul.f32 %v4120_v39, %v12588_v11  ;;  %v17318_v39 = vld [vmem:[#allocation29_spill] sm:$0xff] }
 0x3e3   :  { %3992 = vst [vmem:[#allocation2 + $0x390] sm:$0xf] %v3960_v13  ;;  %3993 = vst [vmem:[#allocation2 + $0x398] sm:$0xf] %v3961_v33  ;;  %9171 = vmatpush1.bf16.msra.mxu0 %v9170_v54  ;;  %v9172_v28 = vpack.c.bf16 %v4342_v27, %v4326_v60  ;;  %v9174_v1 = vpack.c.bf16 %v4341_v49, %v4325_v57  ;;  %v12807_v54 = vld [vmem:[%s16174_s7] sm:$0xff]  ;;  %v17310_v33 = vld [vmem:[#allocation50_spill] sm:$0xff]  ;;  %v3191_v51 = vrot.slane %v12551_v26, %v17311_v15 }
 0x3e4   :  { %v3183_v60 = vrot.slane %v12551_v26, %v17310_v33 }
 0x3e5   :  { %v4181_v4 = vpop.permute.xlu1 %4180  ;;  %9173 = vmatprep.subr.bf16.mxu0 %v9172_v28  ;;  %v17312_v28 = vld [vmem:[#allocation61_spill] sm:$0xff] }
 0x3e6   :  { %v4212_v2 = vsel %vm2204_vm7, %v12671_v24, %v4181_v4  ;;  %v4213_v52 = vsel %vm2204_vm7, %v4181_v4, %v12282_v44  ;;  %2803 = vrot.lane.b32.xlu1 %v2759_v58, %s9870_s1  ;;  %3692 = vrot.lane.b32.xlu0 %v3647_v35, %s9867_s29  ;;  %v3015_v44 = vmul.f32 %v2982_v31, %v12588_v11  ;;  %v17308_v11 = vld [vmem:[#allocation167_spill] sm:$0xff]  ;;  %v17314_v58 = vld [vmem:[#allocation62_spill] sm:$0xff]  ;;  %v12833_v18 = vpop.permute.xlu0 %3938 }
 0x3e7   :  { %4244 = vst [vmem:[#allocation2 + $0x400] sm:$0xf] %v4212_v2  ;;  %4245 = vst [vmem:[#allocation2 + $0x408] sm:$0xf] %v4213_v52  ;;  %9175 = vmatpush1.bf16.msra.mxu0 %v9174_v1  ;;  %v3901_v24 = vmul.f32 %v3868_v43, %v12594_v20  ;;  %v2984_v57 = vsel %vm2972_vm4, %v17290_v16, %v17308_v11  ;;  %v3187_v16 = vrot.slane %v12551_v26, %v17312_v28  ;;  %v17313_v1 = vld [vmem:[#allocation130_spill] sm:$0xff]  ;;  %v17315_v4 = vld [vmem:[#allocation191_spill] sm:$0xff] }
 0x3e8   :  { %9177 = vmatprep.subr.bf16.mxu0 %v9176_v0  ;;  %v3017_v27 = vmul.f32 %v2984_v57, %v12594_v20  ;;  %v3195_v35 = vrot.slane %v12551_v26, %v17314_v58 }
 0x3e9   :  { %v2282_v62 = vpop.permute.xlu1 %2281 }
 0x3ea   :  { %v2310_v9 = vsel %vm2305_vm6, %v12306_v34, %v2282_v62  ;;  %v2311_v36 = vsel %vm2305_vm6, %v2282_v62, %v12499_v48  ;;  %3059 = vrot.lane.b32.xlu1 %v3015_v44, %s9869_s21  ;;  %3946 = vrot.lane.b32.xlu0 %v3901_v24, %s9866_s24  ;;  %v2761_v34 = vmul.f32 %v2728_v23, %v12594_v20 }
 0x3eb   :  { %2342 = vst [vmem:[#allocation2 + $0x20] sm:$0xf] %v2310_v9  ;;  %2343 = vst [vmem:[#allocation2 + $0x28] sm:$0xf] %v2311_v36  ;;  %9179 = vmatpush1.bf16.msra.mxu0 %v9178_v55  ;;  %v17316_v9 = vld [vmem:[#allocation133_spill] sm:$0xff]  ;;  %v17317_v36 = vld [vmem:[#allocation14_spill] sm:$0xff] }
 0x3ec   :  { %v2219_v23 = vsel %vm2204_vm7, %v17317_v36, %v17316_v9 }
 0x3ed   :  { %v2286_v47 = vpop.permute.xlu1 %2285 }
 0x3ee   :  { %v2312_v63 = vsel %vm2305_vm6, %v12499_v48, %v2286_v47  ;;  %v2313_v10 = vsel %vm2305_vm6, %v2286_v47, %v12510_v40  ;;  %2807 = vrot.lane.b32.xlu1 %v2761_v34, %s9870_s1  ;;  %4196 = vrot.lane.b32.xlu0 %v4153_v7, %s9865_s4  ;;  %v4390_v32 = vld [vmem:[#allocation2 + $0x408] sm:$0xff]  ;;  %v4389_v21 = vld [vmem:[#allocation2 + $0x400] sm:$0xff] }
 0x3ef   :  { %v17309_v48 = vld [vmem:[#allocation43_spill] sm:$0xff]  ;;  %2344 = vst [vmem:[#allocation2 + $0x30] sm:$0xf] %v2312_v63  ;;  %2345 = vst [vmem:[#allocation2 + $0x38] sm:$0xf] %v2313_v10  ;;  %4431 = vmatprep.subr.mxu0 %v4390_v32  ;;  %v17319_v34 = vld [vmem:[#allocation32_spill] sm:$0xff] }
 0x3f0   :  { %v4122_v13 = vsel %vm2305_vm6, %v17302_v14, %v17309_v48  ;;  %4432 = vmatpush1.msra.mxu0 %v4389_v21  ;;  %v2217_v14 = vsel %vm2204_vm7, %v17295_v19, %v17313_v1  ;;  %v2475_v7 = vsel %vm2460_vm2, %v17319_v34, %v17318_v39  ;;  %v4328_v21 = vld [vmem:[#allocation2 + $0x218] sm:$0xff] }
 0x3f1   :  { %v4155_v49 = vmul.f32 %v4122_v13, %v12594_v20  ;;  %v3425_v59 = vpop.permute.xlu1 %3424  ;;  %8074 = vmatmul.mubr.msk.f32.vlgmr.msra.gmra.mrb[18].mxu0 %vm4411_vm10, %v12807_v54  ;;  %v2473_v20 = vsel %vm2460_vm2, %v17304_v25, %v17315_v4  ;;  %v4343_v13 = vld [vmem:[#allocation2 + $0x290] sm:$0xff] }
 0x3f2   :  { %v3453_v2 = vsel %vm2972_vm4, %v12355_v29, %v3425_v59  ;;  %v3454_v52 = vsel %vm2972_vm4, %v3425_v59, %v12537_v37  ;;  %3063 = vrot.lane.b32.xlu1 %v3017_v27, %s9869_s21  ;;  %v12841_v19 = vpop.f32.mrb[12].mxu0  ;;  %4621 = vmatprep.mubr.f32.mxu0 %v12512_v46 }
 0x3f3   :  { %4200 = vrot.lane.b32.xlu0 %v4155_v49, %s9865_s4  ;;  %3485 = vst [vmem:[#allocation2 + $0x298] sm:$0xf] %v3453_v2  ;;  %3486 = vst [vmem:[#allocation2 + $0x2a0] sm:$0xf] %v3454_v52  ;;  %v3224_v26 = vmul.f32 %v3183_v60, %v12841_v19  ;;  %v12844_v0 = vpop.f32.mrb[12].mxu1  ;;  %v12846_v25 = vpop.f32.mrb[13].mxu0  ;;  %v2250_v5 = vmul.f32 %v2217_v14, %v12841_v19  ;;  %v2506_v29 = vmul.f32 %v2473_v20, %v12841_v19 }
 0x3f4   :  { %v3226_v31 = vmul.f32 %v3191_v51, %v12844_v0  ;;  %v3225_v43 = vmul.f32 %v3187_v16, %v12846_v25  ;;  %v12853_v44 = vpop.f32.mrb[13].mxu1  ;;  %v2508_v47 = vmul.f32 %v2475_v7, %v12844_v0  ;;  %v17320_v60 = vld [vmem:[#allocation183_spill] sm:$0xff]  ;;  %v17321_v49 = vld [vmem:[#allocation37_spill] sm:$0xff]  ;;  %v4376_v16 = vld [vmem:[#allocation2 + $0x398] sm:$0xff] }
 0x3f5   :  { %3240 = vst [vmem:[#allocation2 + $0x260] sm:$0xf] %v3224_v26  ;;  %v3227_v24 = vmul.f32 %v3195_v35, %v12853_v44  ;;  %v2538_v8 = vpop.permute.xlu1 %2537  ;;  %v3361_v27 = vsel %vm3073_vm5, %v17300_v12, %v17320_v60  ;;  %v2729_v51 = vsel %vm2716_vm3, %v17307_v30, %v17321_v49  ;;  %v4327_v35 = vld [vmem:[#allocation2 + $0x210] sm:$0xff]  ;;  %v4360_v52 = vld [vmem:[#allocation2 + $0x318] sm:$0xff]  ;;  %v4266_v26 = vld [vmem:[#allocation2 + $0x28] sm:$0xff] }
 0x3f6   :  { %3242 = vst [vmem:[#allocation2 + $0x270] sm:$0xf] %v3226_v31  ;;  %3241 = vst [vmem:[#allocation2 + $0x268] sm:$0xf] %v3225_v43  ;;  %v2566_v62 = vsel %vm2561_vm9, %v12683_v56, %v2538_v8  ;;  %v2567_v55 = vsel %vm2561_vm9, %v2538_v8, %v12523_v38  ;;  %2297 = vrot.lane.b32.xlu1 %v2250_v5, %s9872_s14  ;;  %v2252_v56 = vmul.f32 %v2219_v23, %v12844_v0  ;;  %v12870_v38 = vpop.permute.xlu0 %4188  ;;  %v4375_v5 = vld [vmem:[#allocation2 + $0x390] sm:$0xff]  ;;  %v4265_v43 = vld [vmem:[#allocation2 + $0x20] sm:$0xff] }
 0x3f7   :  { %2553 = vrot.lane.b32.xlu0 %v2506_v29, %s9871_s26  ;;  %3243 = vst [vmem:[#allocation2 + $0x278] sm:$0xf] %v3227_v24  ;;  %2598 = vst [vmem:[#allocation2 + $0xa0] sm:$0xf] %v2566_v62  ;;  %v3394_v14 = vmul.f32 %v3361_v27, %v12841_v19  ;;  %v2762_v59 = vmul.f32 %v2729_v51, %v12841_v19  ;;  %v9190_v2 = vpack.c.bf16 %v4343_v13, %v4327_v35  ;;  %v17322_v8 = vld [vmem:[#allocation31_spill] sm:$0xff]  ;;  %v17325_v27 = vld [vmem:[#allocation33_spill] sm:$0xff] }
 0x3f8   :  { %2599 = vst [vmem:[#allocation2 + $0xa8] sm:$0xf] %v2567_v55  ;;  %v9192_v29 = vpack.c.bf16 %v4376_v16, %v4360_v52  ;;  %v3615_v62 = vsel %vm2817_vm8, %v17305_v50, %v17322_v8  ;;  %v17323_v55 = vld [vmem:[#allocation41_spill] sm:$0xff]  ;;  %v17326_v51 = vld [vmem:[#allocation202_spill] sm:$0xff]  ;;  %v17328_v52 = vld [vmem:[#allocation48_spill] sm:$0xff] }
 0x3f9   :  { %v4187_v63 = vpop.permute.xlu1 %4186  ;;  %v2985_v23 = vsel %vm2972_vm4, %v17308_v11, %v17323_v55  ;;  %v4391_v35 = vld [vmem:[#allocation2 + $0x410] sm:$0xff] }
 0x3fa   :  { %v4215_v10 = vsel %vm2204_vm7, %v12394_v42, %v4187_v63  ;;  %v4216_v32 = vsel %vm2204_vm7, %v4187_v63, %v12870_v38  ;;  %2301 = vrot.lane.b32.xlu1 %v2252_v56, %s9872_s14  ;;  %v4344_v57 = vld [vmem:[#allocation2 + $0x298] sm:$0xff]  ;;  %v3648_v56 = vmul.f32 %v3615_v62, %v12841_v19  ;;  %v4359_v63 = vld [vmem:[#allocation2 + $0x310] sm:$0xff] }
 0x3fb   :  { %2557 = vrot.lane.b32.xlu0 %v2508_v47, %s9871_s26  ;;  %4247 = vst [vmem:[#allocation2 + $0x418] sm:$0xf] %v4215_v10  ;;  %4248 = vst [vmem:[#allocation2 + $0x420] sm:$0xf] %v4216_v32  ;;  %v9188_v42 = vpack.c.bf16 %v4344_v57, %v4328_v21  ;;  %v3018_v47 = vmul.f32 %v2985_v23, %v12841_v19  ;;  %v9194_v32 = vpack.c.bf16 %v4375_v5, %v4359_v63  ;;  %v17324_v57 = vld [vmem:[#allocation206_spill] sm:$0xff] }
 0x3fc   :  { %v3869_v13 = vsel %vm2561_vm9, %v17306_v3, %v17324_v57 }
 0x3fd   :  { %v3429_v20 = vpop.permute.xlu1 %3428  ;;  %9189 = vmatprep.subr.bf16.mxu1 %v9188_v42  ;;  %v2731_v42 = vsel %vm2716_vm3, %v17326_v51, %v17325_v27 }
 0x3fe   :  { %v3455_v12 = vsel %vm2972_vm4, %v12537_v37, %v3429_v20  ;;  %v3456_v30 = vsel %vm2972_vm4, %v3429_v20, %v12553_v61  ;;  %3440 = vrot.lane.b32.xlu1 %v3394_v14, %s9868_s30  ;;  %v4281_v24 = vld [vmem:[#allocation2 + $0xa0] sm:$0xff]  ;;  %9191 = vmatpush1.bf16.msra.mxu1 %v9190_v2  ;;  %v2764_v16 = vmul.f32 %v2731_v42, %v12844_v0  ;;  %v17336_v42 = vld [vmem:[#allocation52_spill] sm:$0xff] }
 0x3ff   :  { %2809 = vrot.lane.b32.xlu0 %v2762_v59, %s9870_s1  ;;  %v4282_v31 = vld [vmem:[#allocation2 + $0xa8] sm:$0xff]  ;;  %3487 = vst [vmem:[#allocation2 + $0x2a8] sm:$0xf] %v3455_v12  ;;  %3488 = vst [vmem:[#allocation2 + $0x2b0] sm:$0xf] %v3456_v30  ;;  %v9198_v7 = vpack.c.bf16 %v4281_v24, %v4265_v43  ;;  %9193 = vmatprep.subr.bf16.mxu1 %v9192_v29  ;;  %v17327_v20 = vld [vmem:[#allocation207_spill] sm:$0xff]  ;;  %v12930_v30 = vpop.permute.xlu0 %4192 }
 0x400   :  { %v9196_v37 = vpack.c.bf16 %v4282_v31, %v4266_v26  ;;  %v4123_v2 = vsel %vm2305_vm6, %v17309_v48, %v17327_v20  ;;  %v17329_v26 = vld [vmem:[#allocation203_spill] sm:$0xff]  ;;  %v17330_v43 = vld [vmem:[#allocation49_spill] sm:$0xff] }
 0x401   :  { %v3683_v10 = vpop.permute.xlu1 %3682  ;;  %v2987_v5 = vsel %vm2972_vm4, %v17329_v26, %v17328_v52  ;;  %v17331_v24 = vld [vmem:[#allocation35_spill] sm:$0xff] }
 0x402   :  { %9197 = vmatprep.subr.bf16.mxu0 %v9196_v37  ;;  %v3709_v50 = vsel %vm2716_vm3, %v12561_v17, %v3683_v10  ;;  %v3710_v11 = vsel %vm2716_vm3, %v3683_v10, %v12794_v22  ;;  %3694 = vrot.lane.b32.xlu1 %v3648_v56, %s9867_s29  ;;  %v4392_v21 = vld [vmem:[#allocation2 + $0x418] sm:$0xff]  ;;  %v3902_v17 = vmul.f32 %v3869_v13, %v12841_v19  ;;  %v17333_v10 = vld [vmem:[#allocation55_spill] sm:$0xff] }
 0x403   :  { %3065 = vrot.lane.b32.xlu0 %v3018_v47, %s9869_s21  ;;  %3741 = vst [vmem:[#allocation2 + $0x328] sm:$0xf] %v3709_v50  ;;  %3742 = vst [vmem:[#allocation2 + $0x330] sm:$0xf] %v3710_v11  ;;  %9195 = vmatpush1.bf16.msra.mxu1 %v9194_v32  ;;  %v3020_v12 = vmul.f32 %v2987_v5, %v12844_v0  ;;  %v3363_v62 = vsel %vm3073_vm5, %v17331_v24, %v17330_v43  ;;  %v17334_v50 = vld [vmem:[#allocation42_spill] sm:$0xff] }
 0x404   :  { %9199 = vmatpush1.bf16.msra.mxu0 %v9198_v7  ;;  %4502 = vmatprep.subr.mxu1 %v4392_v21  ;;  %v2253_v56 = vmul.f32 %v17316_v9, %v12853_v44  ;;  %v3362_v32 = vsel %vm3073_vm5, %v17320_v60, %v17331_v24  ;;  %v17335_v11 = vld [vmem:[#allocation110_spill] sm:$0xff] }
 0x405   :  { %v3937_v14 = vpop.permute.xlu1 %3936  ;;  %v3871_v21 = vsel %vm2561_vm9, %v17335_v11, %v17334_v50  ;;  %v4268_v60 = vld [vmem:[#allocation2 + $0x38] sm:$0xff] }
 0x406   :  { %v3963_v59 = vsel %vm2460_vm2, %v12596_v41, %v3937_v14  ;;  %v3964_v3 = vsel %vm2460_vm2, %v3937_v14, %v12833_v18  ;;  %3948 = vrot.lane.b32.xlu1 %v3902_v17, %s9866_s24  ;;  %v4156_v41 = vmul.f32 %v4123_v2, %v12841_v19  ;;  %v2218_v19 = vsel %vm2204_vm7, %v17313_v1, %v17317_v36  ;;  %v17332_v1 = vld [vmem:[#allocation40_spill] sm:$0xff]  ;;  %v17338_v2 = vld [vmem:[#allocation39_spill] sm:$0xff] }
 0x407   :  { %2813 = vrot.lane.b32.xlu0 %v2764_v16, %s9870_s1  ;;  %3995 = vst [vmem:[#allocation2 + $0x3a8] sm:$0xf] %v3963_v59  ;;  %3996 = vst [vmem:[#allocation2 + $0x3b0] sm:$0xf] %v3964_v3  ;;  %4503 = vmatpush1.msra.mxu1 %v4391_v35  ;;  %v3617_v36 = vsel %vm2817_vm8, %v12437_v53, %v17332_v1  ;;  %v3904_v9 = vmul.f32 %v3871_v21, %v12844_v0  ;;  %v17337_v16 = vld [vmem:[#allocation67_spill] sm:$0xff]  ;;  %v4267_v3 = vld [vmem:[#allocation2 + $0x30] sm:$0xff] }
 0x408   :  { %8075 = vmatmul.mubr.msk.f32.vlgmr.msra.gmra.mrb[18].mxu1 %vm4411_vm10, %v12807_v54  ;;  %v3650_v7 = vmul.f32 %v3617_v36, %v12844_v0  ;;  %v2474_v35 = vsel %vm2460_vm2, %v17315_v4, %v17319_v34  ;;  %v3364_v5 = vsel %vm3073_vm5, %v17330_v43, %v17338_v2  ;;  %v3616_v34 = vsel %vm2817_vm8, %v17322_v8, %v12437_v53  ;;  %v4313_v53 = vld [vmem:[#allocation2 + $0x1a0] sm:$0xff] }
 0x409   :  { %v4191_v29 = vpop.permute.xlu1 %4190  ;;  %4692 = vmatprep.mubr.f32.mxu1 %v12512_v46  ;;  %v3396_v46 = vmul.f32 %v3363_v62, %v12844_v0  ;;  %v2509_v43 = vmul.f32 %v17318_v39, %v12853_v44  ;;  %v3649_v24 = vmul.f32 %v3616_v34, %v12846_v25  ;;  %v2730_v8 = vsel %vm2716_vm3, %v17321_v49, %v17326_v51  ;;  %v4345_v51 = vld [vmem:[#allocation2 + $0x2a0] sm:$0xff] }
 0x40a   :  { %v4217_v48 = vsel %vm2204_vm7, %v12870_v38, %v4191_v29  ;;  %v4218_v31 = vsel %vm2204_vm7, %v4191_v29, %v12930_v30  ;;  %4202 = vrot.lane.b32.xlu1 %v4156_v41, %s9865_s4  ;;  %v2251_v38 = vmul.f32 %v2218_v19, %v12846_v25  ;;  %v3397_v29 = vmul.f32 %v3364_v5, %v12853_v44 }
 0x40b   :  { %3069 = vrot.lane.b32.xlu0 %v3020_v12, %s9869_s21  ;;  %4249 = vst [vmem:[#allocation2 + $0x428] sm:$0xf] %v4217_v48  ;;  %4250 = vst [vmem:[#allocation2 + $0x430] sm:$0xf] %v4218_v31  ;;  %v2507_v12 = vmul.f32 %v2474_v35, %v12846_v25  ;;  %v4283_v48 = vld [vmem:[#allocation2 + $0xb0] sm:$0xff]  ;;  %v3870_v39 = vsel %vm2561_vm9, %v17324_v57, %v17335_v11  ;;  %v2986_v57 = vsel %vm2972_vm4, %v17323_v55, %v17329_v26 }
 0x40c   :  { %v9214_v19 = vpack.c.bf16 %v4283_v48, %v4267_v3 }
 0x40d   :  { %v12947_v23 = vpop.permute.xlu1 %2543 }
 0x40e   :  { %v2569_v37 = vsel %vm2561_vm9, %v12430_v6, %v12947_v23  ;;  %3444 = vrot.lane.b32.xlu1 %v3396_v46, %s9868_s30  ;;  %v4378_v21 = vld [vmem:[#allocation2 + $0x3a8] sm:$0xff] }
 0x40f   :  { %2299 = vrot.lane.b32.xlu0 %v2251_v38, %s9872_s14  ;;  %2601 = vst [vmem:[#allocation2 + $0xb8] sm:$0xf] %v2569_v37 }
 0x411   :  { %v2796_v47 = vpop.permute.xlu1 %2795 }
 0x412   :  { %v2823_v63 = vsel %vm2817_vm8, %v12443_v45, %v2796_v47  ;;  %v2824_v6 = vsel %vm2817_vm8, %v2796_v47, %v17333_v10  ;;  %3698 = vrot.lane.b32.xlu1 %v3650_v7, %s9867_s29  ;;  %v3395_v45 = vmul.f32 %v3362_v32, %v12846_v25  ;;  %v4346_v7 = vld [vmem:[#allocation2 + $0x2a8] sm:$0xff]  ;;  %v3903_v47 = vmul.f32 %v3870_v39, %v12846_v25 }
 0x413   :  { %2303 = vrot.lane.b32.xlu0 %v2253_v56, %s9872_s14  ;;  %2855 = vst [vmem:[#allocation2 + $0x128] sm:$0xf] %v2823_v63  ;;  %2856 = vst [vmem:[#allocation2 + $0x130] sm:$0xf] %v2824_v6  ;;  %v2763_v56 = vmul.f32 %v2730_v8, %v12846_v25  ;;  %v4297_v63 = vld [vmem:[#allocation2 + $0x120] sm:$0xff]  ;;  %v4330_v6 = vld [vmem:[#allocation2 + $0x228] sm:$0xff] }
 0x414   :  { %v9204_v49 = vpack.c.bf16 %v4346_v7, %v4330_v6  ;;  %v17339_v32 = vld [vmem:[#allocation44_spill] sm:$0xff] }
 0x415   :  { %v3052_v13 = vpop.permute.xlu1 %3051  ;;  %v3618_v11 = vsel %vm2817_vm8, %v17332_v1, %v17339_v32  ;;  %v17340_v1 = vld [vmem:[#allocation58_spill] sm:$0xff]  ;;  %v3652_v39 = vmul.f32 0.0, %v17339_v32 }
 0x416   :  { %v3079_v17 = vsel %vm3073_vm5, %v17336_v42, %v3052_v13  ;;  %v3080_v14 = vsel %vm3073_vm5, %v3052_v13, %v17337_v16  ;;  %3952 = vrot.lane.b32.xlu1 %v3904_v9, %s9866_s24  ;;  %v4284_v59 = vld [vmem:[#allocation2 + $0xb8] sm:$0xff]  ;;  %v3019_v9 = vmul.f32 %v2986_v57, %v12846_v25  ;;  %v4329_v13 = vld [vmem:[#allocation2 + $0x220] sm:$0xff] }
 0x417   :  { %3442 = vrot.lane.b32.xlu0 %v3395_v45, %s9868_s30  ;;  %3111 = vst [vmem:[#allocation2 + $0x1a8] sm:$0xf] %v3079_v17  ;;  %3112 = vst [vmem:[#allocation2 + $0x1b0] sm:$0xf] %v3080_v14  ;;  %v9212_v41 = vpack.c.bf16 %v4284_v59, %v4268_v60  ;;  %v3651_v45 = vmul.f32 %v3618_v11, %v12853_v44  ;;  %v9206_v42 = vpack.c.bf16 %v4345_v51, %v4329_v13  ;;  %v4362_v17 = vld [vmem:[#allocation2 + $0x328] sm:$0xff]  ;;  %v4332_v32 = vld [vmem:[#allocation2 + $0x238] sm:$0xff] }
 0x418   :  { %v9208_v55 = vpack.c.bf16 %v4378_v21, %v4362_v17  ;;  %v3872_v59 = vsel %vm2561_vm9, %v17334_v50, %v17340_v1 }
 0x419   :  { %v12988_v31 = vpop.permute.xlu1 %2799  ;;  %9213 = vmatprep.subr.bf16.mxu1 %v9212_v41  ;;  %v3905_v50 = vmul.f32 %v3872_v59, %v12853_v44 }
 0x41a   :  { %v2825_v4 = vsel %vm2817_vm8, %v17333_v10, %v12988_v31  ;;  %2555 = vrot.lane.b32.xlu1 %v2507_v12, %s9871_s26  ;;  %9215 = vmatpush1.bf16.msra.mxu1 %v9214_v19  ;;  %v4298_v38 = vld [vmem:[#allocation2 + $0x128] sm:$0xff]  ;;  %v9202_v10 = vpack.c.bf16 %v4313_v53, %v4297_v63  ;;  %v2765_v12 = vmul.f32 %v17325_v27, %v12853_v44  ;;  %v4299_v48 = vld [vmem:[#allocation2 + $0x130] sm:$0xff] }
 0x41b   :  { %3446 = vrot.lane.b32.xlu0 %v3397_v29, %s9868_s30  ;;  %2857 = vst [vmem:[#allocation2 + $0x138] sm:$0xf] %v2825_v4  ;;  %v4361_v29 = vld [vmem:[#allocation2 + $0x320] sm:$0xff]  ;;  %v4394_v27 = vld [vmem:[#allocation2 + $0x428] sm:$0xff] }
 0x41d   :  { %v13001_v62 = vpop.permute.xlu1 %3055 }
 0x41e   :  { %v3081_v46 = vsel %vm3073_vm5, %v17337_v16, %v13001_v62  ;;  %2559 = vrot.lane.b32.xlu1 %v2509_v43, %s9871_s26  ;;  %v4314_v37 = vld [vmem:[#allocation2 + $0x1a8] sm:$0xff]  ;;  %v4377_v16 = vld [vmem:[#allocation2 + $0x3a0] sm:$0xff]  ;;  %v4315_v60 = vld [vmem:[#allocation2 + $0x1b0] sm:$0xff] }
 0x41f   :  { %3696 = vrot.lane.b32.xlu0 %v3649_v24, %s9867_s29  ;;  %3113 = vst [vmem:[#allocation2 + $0x1b8] sm:$0xf] %v3081_v46  ;;  %v9200_v36 = vpack.c.bf16 %v4314_v37, %v4298_v38  ;;  %v9210_v19 = vpack.c.bf16 %v4377_v16, %v4361_v29  ;;  %v9218_v4 = vpack.c.bf16 %v4315_v60, %v4299_v48  ;;  %v4393_v38 = vld [vmem:[#allocation2 + $0x420] sm:$0xff]  ;;  %v17342_v37 = vld [vmem:[#allocation98_spill] sm:$0xff]  ;;  %v4379_v60 = vld [vmem:[#allocation2 + $0x3b0] sm:$0xff] }
 0x420   :  { %v3021_v24 = vmul.f32 %v17328_v52, %v12853_v44  ;;  %v5076_v16 = vld [vmem:[%s16177_s10] sm:$0xff] }
 0x421   :  { %9201 = vmatprep.subr.bf16.mxu0 %v9200_v36 }
 0x422   :  { %2811 = vrot.lane.b32.xlu1 %v2763_v56, %s9870_s1  ;;  %9203 = vmatpush1.bf16.msra.mxu0 %v9202_v10  ;;  %v4300_v26 = vld [vmem:[#allocation2 + $0x138] sm:$0xff]  ;;  %v13075_v56 = vld [vmem:[#allocation2 + $0x48] sm:$0xff] }
 0x423   :  { %3950 = vrot.lane.b32.xlu0 %v3903_v47, %s9866_s24  ;;  %9205 = vmatprep.subr.bf16.mxu0 %v9204_v49  ;;  %17344 = vst [vmem:[#allocation72_spill] sm:$0xff] %v13075_v56 }
 0x426   :  { %3067 = vrot.lane.b32.xlu1 %v3019_v9, %s9869_s21  ;;  %v4316_v14 = vld [vmem:[#allocation2 + $0x1b8] sm:$0xff]  ;;  %9207 = vmatpush1.bf16.msra.mxu0 %v9206_v42  ;;  %v4331_v9 = vld [vmem:[#allocation2 + $0x230] sm:$0xff]  ;;  %v4160_v42 = vmul.f32 0.0, %v17342_v37 }
 0x427   :  { %3700 = vrot.lane.b32.xlu0 %v3651_v45, %s9867_s29  ;;  %v13031_v3 = vpop.permute.xlu1 %2289  ;;  %v13033_v35 = vpop.permute.xlu0 %2545  ;;  %v9216_v2 = vpack.c.bf16 %v4316_v14, %v4300_v26  ;;  %9209 = vmatprep.subr.bf16.mxu0 %v9208_v55 }
 0x428   :  { %v2314_v5 = vsel %vm2305_vm6, %v12510_v40, %v13031_v3  ;;  %v2570_v41 = vsel %vm2561_vm9, %v12947_v23, %v13033_v35  ;;  %v17341_v40 = vld [vmem:[#allocation105_spill] sm:$0xff] }
 0x429   :  { %2346 = vst [vmem:[#allocation2 + $0x40] sm:$0xf] %v2314_v5  ;;  %2602 = vst [vmem:[#allocation2 + $0xc0] sm:$0xf] %v2570_v41  ;;  %9217 = vmatprep.subr.bf16.mxu1 %v9216_v2  ;;  %v4124_v23 = vsel %vm2305_vm6, %v17327_v20, %v17341_v40  ;;  %v17343_v20 = vld [vmem:[#allocation65_spill] sm:$0xff] }
 0x42a   :  { %2815 = vrot.lane.b32.xlu1 %v2765_v12, %s9870_s1  ;;  %9211 = vmatpush1.bf16.msra.mxu0 %v9210_v19  ;;  %v4157_v46 = vmul.f32 %v4124_v23, %v12846_v25  ;;  %v4126_v53 = vsel %vm2305_vm6, %v17343_v20, %v17342_v37  ;;  %v4125_v6 = vsel %vm2305_vm6, %v17341_v40, %v17343_v20  ;;  %v4363_v2 = vld [vmem:[#allocation2 + $0x330] sm:$0xff] }
 0x42b   :  { %3954 = vrot.lane.b32.xlu0 %v3905_v50, %s9866_s24  ;;  %9219 = vmatpush1.bf16.msra.mxu1 %v9218_v4  ;;  %v13049_v34 = vpop.permute.xlu0 %2549  ;;  %v4159_v36 = vmul.f32 %v4126_v53, %v12853_v44  ;;  %v4405_v44 = vld [vmem:[%s16175_s8] sm:$0xff]  ;;  %v4158_v57 = vmul.f32 %v4125_v6, %v12844_v0  ;;  %v9226_v41 = vpack.c.bf16 %v4379_v60, %v4363_v2  ;;  %v4395_v40 = vld [vmem:[#allocation2 + $0x430] sm:$0xff] }
 0x42c   :  { %4573 = vmatprep.subr.mxu0 %v4394_v27  ;;  %v13051_v43 = vpop.permute.xlu1 %2293  ;;  %v17345_v2 = vld [vmem:[#allocation59_spill] sm:$0xff] }
 0x42e   :  { %3071 = vrot.lane.b32.xlu1 %v3021_v24, %s9869_s21  ;;  %4574 = vmatpush1.msra.mxu0 %v4393_v38 }
 0x42f   :  { %4204 = vrot.lane.b32.xlu0 %v4157_v46, %s9865_s4  ;;  %v13061_v8 = vpop.permute.xlu0 %2801  ;;  %8076 = vmatmul.mubr.msk.f32.vlgmr.msra.gmra.mrb[20].mxu0 %vm4411_vm10, %v12807_v54 }
 0x430   :  { %v13066_v52 = vpop.permute.xlu1 %3432  ;;  %v2826_v25 = vsel %vm2817_vm8, %v12988_v31, %v13061_v8  ;;  %4763 = vmatprep.mubr.f32.mxu0 %v13075_v56  ;;  %v3906_v31 = vmul.f32 0.0, %v17340_v1 }
 0x431   :  { %v3457_v7 = vsel %vm2972_vm4, %v12553_v61, %v13066_v52  ;;  %2858 = vst [vmem:[#allocation2 + $0x140] sm:$0xf] %v2826_v25 }
 0x432   :  { %3489 = vst [vmem:[#allocation2 + $0x2b8] sm:$0xf] %v3457_v7  ;;  %3702 = vrot.lane.b32.xlu1 %v3652_v39, %s9867_s29 }
 0x433   :  { %4208 = vrot.lane.b32.xlu0 %v4159_v36, %s9865_s4  ;;  %v13080_v47 = vpop.permute.xlu0 %3057 }
 0x434   :  { %v13086_v63 = vpop.permute.xlu1 %3686  ;;  %v3082_v61 = vsel %vm3073_vm5, %v13001_v62, %v13080_v47  ;;  %v4347_v62 = vld [vmem:[#allocation2 + $0x2b0] sm:$0xff] }
 0x435   :  { %v3711_v10 = vsel %vm2716_vm3, %v12794_v22, %v13086_v63  ;;  %3114 = vst [vmem:[#allocation2 + $0x1c0] sm:$0xf] %v3082_v61  ;;  %v9222_v13 = vpack.c.bf16 %v4347_v62, %v4331_v9 }
 0x436   :  { %3743 = vst [vmem:[#allocation2 + $0x338] sm:$0xf] %v3711_v10  ;;  %3956 = vrot.lane.b32.xlu1 %v3906_v31, %s9866_s24  ;;  %v4269_v31 = vld [vmem:[#allocation2 + $0x40] sm:$0xff] }
 0x437   :  { %4408 = vperm.xlu0 %9546, %v4405_v44   ;;  %v13098_v49 = vpop.permute.xlu0 %2805 }
 0x438   :  { %v13100_v51 = vpop.permute.xlu1 %3940 }
 0x439   :  { %v3965_v22 = vsel %vm2460_vm2, %v12833_v18, %v13100_v51  ;;  %v4348_v11 = vld [vmem:[#allocation2 + $0x2b8] sm:$0xff] }
 0x43a   :  { %3997 = vst [vmem:[#allocation2 + $0x3b8] sm:$0xf] %v3965_v22  ;;  %4206 = vrot.lane.b32.xlu1 %v4158_v57, %s9865_s4  ;;  %v9220_v21 = vpack.c.bf16 %v4348_v11, %v4332_v32 }
 0x43b   :  { %v13107_v45 = vpop.permute.xlu0 %3061 }
 0x43c   :  { %v13110_v17 = vpop.permute.xlu1 %4194  ;;  %9221 = vmatprep.subr.bf16.mxu1 %v9220_v21 }
 0x43d   :  { %v4219_v0 = vsel %vm2204_vm7, %v12930_v30, %v13110_v17  ;;  %9223 = vmatpush1.bf16.msra.mxu1 %v9222_v13  ;;  %v4364_v30 = vld [vmem:[#allocation2 + $0x338] sm:$0xff] }
 0x43e   :  { %4251 = vst [vmem:[#allocation2 + $0x438] sm:$0xf] %v4219_v0  ;;  %4210 = vrot.lane.b32.xlu1 %v4160_v42, %s9865_s4 }
 0x43f   :  { %v2292_v18 = vpop.permute.xlu0 %2291 }
 0x440   :  { %v3437_v55 = vpop.permute.xlu1 %3436  ;;  %v2315_v26 = vsel %vm2305_vm6, %v13031_v3, %v2292_v18  ;;  %v2316_v14 = vsel %vm2305_vm6, %v2292_v18, %v13051_v43 }
 0x441   :  { %2347 = vst [vmem:[#allocation2 + $0x48] sm:$0xf] %v2315_v26  ;;  %2348 = vst [vmem:[#allocation2 + $0x50] sm:$0xf] %v2316_v14  ;;  %v4380_v1 = vld [vmem:[#allocation2 + $0x3b8] sm:$0xff] }
 0x442   :  { %5079 = vperm.xlu1 %9545, %v5076_v16   ;;  %v9224_v59 = vpack.c.bf16 %v4380_v1, %v4364_v30  ;;  %v5114_v16 = vld [vmem:[%s16169_s2] ss:$8 sm:$0xf] }
 0x443   :  { %v13123_v5 = vpop.permute.xlu0 %2295 }
 0x444   :  { %v3691_v12 = vpop.permute.xlu1 %3690  ;;  %9225 = vmatprep.subr.bf16.mxu1 %v9224_v59  ;;  %v2317_v3 = vsel %vm2305_vm6, %v13051_v43, %v13123_v5 }
 0x445   :  { %2349 = vst [vmem:[#allocation2 + $0x58] sm:$0xf] %v2317_v3  ;;  %9227 = vmatpush1.bf16.msra.mxu1 %v9226_v41  ;;  %v4396_v50 = vld [vmem:[#allocation2 + $0x438] sm:$0xff] }
 0x446   :  { %4644 = vmatprep.subr.mxu1 %v4396_v50 }
 0x447   :  { %v3435_v29 = vpop.permute.xlu0 %3434 }
 0x448   :  { %v3945_v48 = vpop.permute.xlu1 %3944  ;;  %v3458_v19 = vsel %vm2972_vm4, %v13066_v52, %v3435_v29  ;;  %v3459_v4 = vsel %vm2972_vm4, %v3435_v29, %v3437_v55  ;;  %v4270_v6 = vld [vmem:[#allocation2 + $0x48] sm:$0xff]  ;;  %v4271_v0 = vld [vmem:[#allocation2 + $0x50] sm:$0xff] }
 0x449   :  { %3490 = vst [vmem:[#allocation2 + $0x2c0] sm:$0xf] %v3458_v19  ;;  %3491 = vst [vmem:[#allocation2 + $0x2c8] sm:$0xf] %v3459_v4  ;;  %4645 = vmatpush1.msra.mxu1 %v4395_v40 }
 0x44a   :  { %8077 = vmatmul.mubr.msk.f32.vlgmr.msra.gmra.mrb[20].mxu1 %vm4411_vm10, %v12807_v54 }
 0x44b   :  { %v13133_v23 = vpop.permute.xlu0 %3438  ;;  %4834 = vmatprep.mubr.f32.mxu1 %v13075_v56 }
 0x44c   :  { %v13136_v27 = vpop.permute.xlu1 %4198  ;;  %v3460_v43 = vsel %vm2972_vm4, %v3437_v55, %v13133_v23  ;;  %v4272_v13 = vld [vmem:[#allocation2 + $0x58] sm:$0xff] }
 0x44d   :  { %3492 = vst [vmem:[#allocation2 + $0x2d0] sm:$0xf] %v3460_v43 }
 0x44f   :  { %v3689_v24 = vpop.permute.xlu0 %3688 }
 0x450   :  { %v2548_v46 = vpop.permute.xlu1 %2547  ;;  %v3712_v38 = vsel %vm2716_vm3, %v13086_v63, %v3689_v24  ;;  %v3713_v37 = vsel %vm2716_vm3, %v3689_v24, %v3691_v12  ;;  %v4285_v63 = vld [vmem:[#allocation2 + $0xc0] sm:$0xff]  ;;  %v4350_v40 = vld [vmem:[#allocation2 + $0x2c8] sm:$0xff] }
 0x451   :  { %v2571_v20 = vsel %vm2561_vm9, %v13033_v35, %v2548_v46  ;;  %v2572_v53 = vsel %vm2561_vm9, %v2548_v46, %v13049_v34  ;;  %3744 = vst [vmem:[#allocation2 + $0x340] sm:$0xf] %v3712_v38  ;;  %3745 = vst [vmem:[#allocation2 + $0x348] sm:$0xf] %v3713_v37  ;;  %v9230_v62 = vpack.c.bf16 %v4285_v63, %v4269_v31  ;;  %v4301_v24 = vld [vmem:[#allocation2 + $0x140] sm:$0xff]  ;;  %v4334_v38 = vld [vmem:[#allocation2 + $0x248] sm:$0xff] }
 0x452   :  { %2603 = vst [vmem:[#allocation2 + $0xc8] sm:$0xf] %v2571_v20  ;;  %2604 = vst [vmem:[#allocation2 + $0xd0] sm:$0xf] %v2572_v53  ;;  %v4349_v37 = vld [vmem:[#allocation2 + $0x2c0] sm:$0xff] }
 0x453   :  { %v4333_v31 = vld [vmem:[#allocation2 + $0x240] sm:$0xff] }
 0x454   :  { %v13147_v39 = vpop.permute.xlu1 %2551  ;;  %v3943_v52 = vpop.permute.xlu0 %3942  ;;  %v9238_v63 = vpack.c.bf16 %v4349_v37, %v4333_v31 }
 0x455   :  { %v2573_v25 = vsel %vm2561_vm9, %v13049_v34, %v13147_v39  ;;  %v3966_v36 = vsel %vm2460_vm2, %v13100_v51, %v3943_v52  ;;  %v3967_v7 = vsel %vm2460_vm2, %v3943_v52, %v3945_v48  ;;  %v8082_v52 = vld [vmem:[%s16169_s2 + $0x40] ss:$8 sm:$0xf] }
 0x456   :  { %2605 = vst [vmem:[#allocation2 + $0xd8] sm:$0xf] %v2573_v25  ;;  %3998 = vst [vmem:[#allocation2 + $0x3c0] sm:$0xf] %v3966_v36 }
 0x457   :  { %3999 = vst [vmem:[#allocation2 + $0x3c8] sm:$0xf] %v3967_v7  ;;  %v8083_v25 = vld [vmem:[%s16169_s2 + $0x40] ss:$8 sm:$0xf0] }
 0x458   :  { %v2804_v35 = vpop.permute.xlu1 %2803  ;;  %v13155_v44 = vpop.permute.xlu0 %3692 }
 0x459   :  { %v2827_v61 = vsel %vm2817_vm8, %v13061_v8, %v2804_v35  ;;  %v2828_v10 = vsel %vm2817_vm8, %v2804_v35, %v13098_v49  ;;  %v3714_v34 = vsel %vm2716_vm3, %v3691_v12, %v13155_v44  ;;  %v4286_v51 = vld [vmem:[#allocation2 + $0xc8] sm:$0xff]  ;;  %v4287_v11 = vld [vmem:[#allocation2 + $0xd0] sm:$0xff] }
 0x45a   :  { %2859 = vst [vmem:[#allocation2 + $0x148] sm:$0xf] %v2827_v61  ;;  %2860 = vst [vmem:[#allocation2 + $0x150] sm:$0xf] %v2828_v10  ;;  %v9228_v57 = vpack.c.bf16 %v4286_v51, %v4270_v6  ;;  %v9246_v55 = vpack.c.bf16 %v4287_v11, %v4271_v0  ;;  %v17346_v12 = vld [vmem:[#allocation60_spill] sm:$0xff] }
 0x45b   :  { %3746 = vst [vmem:[#allocation2 + $0x350] sm:$0xf] %v3714_v34  ;;  %v4366_v61 = vld [vmem:[#allocation2 + $0x348] sm:$0xff]  ;;  %v13225_v34 = vor.u32 %v8083_v25, %v8082_v52 }
 0x45c   :  { %v3060_v22 = vpop.permute.xlu1 %3059  ;;  %9229 = vmatprep.subr.bf16.mxu0 %v9228_v57  ;;  %v13163_v32 = vpop.permute.xlu0 %3946 }
 0x45d   :  { %v3083_v8 = vsel %vm3073_vm5, %v13080_v47, %v3060_v22  ;;  %v3084_v21 = vsel %vm3073_vm5, %v3060_v22, %v13107_v45  ;;  %v3968_v9 = vsel %vm2460_vm2, %v3945_v48, %v13163_v32  ;;  %9231 = vmatpush1.bf16.msra.mxu0 %v9230_v62  ;;  %v4288_v42 = vld [vmem:[#allocation2 + $0xd8] sm:$0xff]  ;;  %v4381_v51 = vld [vmem:[#allocation2 + $0x3c0] sm:$0xff] }
 0x45e   :  { %3115 = vst [vmem:[#allocation2 + $0x1c8] sm:$0xf] %v3083_v8  ;;  %3116 = vst [vmem:[#allocation2 + $0x1d0] sm:$0xf] %v3084_v21  ;;  %v9244_v18 = vpack.c.bf16 %v4288_v42, %v4272_v13  ;;  %v4382_v35 = vld [vmem:[#allocation2 + $0x3c8] sm:$0xff]  ;;  %v4365_v8 = vld [vmem:[#allocation2 + $0x340] sm:$0xff]  ;;  %v5161_v42 = vrot.slane %v13225_v34, %v17345_v2 }
 0x45f   :  { %4000 = vst [vmem:[#allocation2 + $0x3d0] sm:$0xf] %v3968_v9  ;;  %v5115_v47 = vld [vmem:[%s16169_s2] ss:$8 sm:$0xf0]  ;;  %v9242_v9 = vpack.c.bf16 %v4381_v51, %v4365_v8 }
 0x460   :  { %v13177_v26 = vor.u32 %v5115_v47, %v5114_v16  ;;  %v13179_v14 = vpop.permute.xlu1 %2807  ;;  %9245 = vmatprep.subr.bf16.mxu1 %v9244_v18  ;;  %v4197_v60 = vpop.permute.xlu0 %4196 }
 0x461   :  { %v2829_v30 = vsel %vm2817_vm8, %v13098_v49, %v13179_v14  ;;  %v4220_v1 = vsel %vm2204_vm7, %v13110_v17, %v4197_v60  ;;  %v4221_v59 = vsel %vm2204_vm7, %v4197_v60, %v13136_v27  ;;  %9247 = vmatpush1.bf16.msra.mxu1 %v9246_v55  ;;  %v4317_v17 = vld [vmem:[#allocation2 + $0x1c0] sm:$0xff]  ;;  %v4302_v19 = vld [vmem:[#allocation2 + $0x148] sm:$0xff]  ;;  %v4303_v21 = vld [vmem:[#allocation2 + $0x150] sm:$0xff]  ;;  %v5169_v60 = vrot.slane %v13225_v34, %v17346_v12 }
 0x462   :  { %v5129_v41 = vrot.slane %v13177_v26, %v17345_v2  ;;  %2861 = vst [vmem:[#allocation2 + $0x158] sm:$0xf] %v2829_v30  ;;  %4252 = vst [vmem:[#allocation2 + $0x440] sm:$0xf] %v4220_v1  ;;  %v5137_v3 = vrot.slane %v13177_v26, %v17346_v12  ;;  %v9234_v46 = vpack.c.bf16 %v4317_v17, %v4301_v24 }
 0x463   :  { %4253 = vst [vmem:[#allocation2 + $0x448] sm:$0xf] %v4221_v59  ;;  %v5145_v20 = vrot.slane %v13177_v26, %v17312_v28  ;;  %v5153_v10 = vrot.slane %v13177_v26, %v17314_v58  ;;  %v5185_v24 = vrot.slane %v13225_v34, %v17314_v58 }
 0x464   :  { %5188 = vrot.lane.b32.xlu0 %v5129_v41, %s9865_s4  ;;  %v13193_v50 = vpop.permute.xlu1 %3063  ;;  %v4351_v41 = vld [vmem:[#allocation2 + $0x2d0] sm:$0xff] }
 0x465   :  { %v13195_v49 = vpop.permute.xlu0 %4200  ;;  %v3085_v29 = vsel %vm3073_vm5, %v13107_v45, %v13193_v50  ;;  %v4318_v4 = vld [vmem:[#allocation2 + $0x1c8] sm:$0xff]  ;;  %v4319_v57 = vld [vmem:[#allocation2 + $0x1d0] sm:$0xff] }
 0x466   :  { %v4222_v48 = vsel %vm2204_vm7, %v13136_v27, %v13195_v49  ;;  %3117 = vst [vmem:[#allocation2 + $0x1d8] sm:$0xf] %v3085_v29  ;;  %v9232_v43 = vpack.c.bf16 %v4318_v4, %v4302_v19  ;;  %v9236_v27 = vpack.c.bf16 %v4350_v40, %v4334_v38  ;;  %v9250_v13 = vpack.c.bf16 %v4319_v57, %v4303_v21  ;;  %v4335_v40 = vld [vmem:[#allocation2 + $0x250] sm:$0xff] }
 0x467   :  { %4254 = vst [vmem:[#allocation2 + $0x450] sm:$0xf] %v4222_v48  ;;  %v4336_v48 = vld [vmem:[#allocation2 + $0x258] sm:$0xff] }
 0x468   :  { %5192 = vrot.lane.b32.xlu0 %v5137_v3, %s9865_s4  ;;  %v13206_v45 = vpop.permute.xlu1 %2297  ;;  %9233 = vmatprep.subr.bf16.mxu0 %v9232_v43  ;;  %v5177_v3 = vrot.slane %v13225_v34, %v17312_v28  ;;  %v9254_v43 = vpack.c.bf16 %v4351_v41, %v4335_v40 }
 0x469   :  { %v13208_v53 = vpop.permute.xlu0 %2553  ;;  %v2318_v36 = vsel %vm2305_vm6, %v13123_v5, %v13206_v45  ;;  %9235 = vmatpush1.bf16.msra.mxu0 %v9234_v46  ;;  %v4304_v62 = vld [vmem:[#allocation2 + $0x158] sm:$0xff] }
 0x46a   :  { %v2574_v7 = vsel %vm2561_vm9, %v13147_v39, %v13208_v53  ;;  %2350 = vst [vmem:[#allocation2 + $0x60] sm:$0xf] %v2318_v36  ;;  %9237 = vmatprep.subr.bf16.mxu0 %v9236_v27  ;;  %v9240_v39 = vpack.c.bf16 %v4382_v35, %v4366_v61  ;;  %v4398_v55 = vld [vmem:[#allocation2 + $0x448] sm:$0xff]  ;;  %v4383_v36 = vld [vmem:[#allocation2 + $0x3d0] sm:$0xff] }
 0x46b   :  { %2606 = vst [vmem:[#allocation2 + $0xe0] sm:$0xf] %v2574_v7  ;;  %v4367_v61 = vld [vmem:[#allocation2 + $0x350] sm:$0xff] }
 0x46c   :  { %5196 = vrot.lane.b32.xlu0 %v5145_v20, %s9865_s4  ;;  %v13227_v5 = vpop.permute.xlu1 %2301  ;;  %v17347_v20 = vld [vmem:[#allocation54_spill] sm:$0xff] }
 0x46d   :  { %v13229_v6 = vpop.permute.xlu0 %2557  ;;  %9239 = vmatpush1.bf16.msra.mxu0 %v9238_v63  ;;  %v4320_v22 = vld [vmem:[#allocation2 + $0x1d8] sm:$0xff] }
 0x46e   :  { %9241 = vmatprep.subr.bf16.mxu0 %v9240_v39  ;;  %v9248_v11 = vpack.c.bf16 %v4320_v22, %v4304_v62  ;;  %v17348_v39 = vld [vmem:[#allocation45_spill] sm:$0xff] }
 0x470   :  { %5200 = vrot.lane.b32.xlu0 %v5153_v10, %s9865_s4  ;;  %v13234_v0 = vpop.permute.xlu1 %3440  ;;  %9249 = vmatprep.subr.bf16.mxu1 %v9248_v11  ;;  %v9258_v10 = vpack.c.bf16 %v4383_v36, %v4367_v61  ;;  %v4399_v11 = vld [vmem:[#allocation2 + $0x450] sm:$0xff] }
 0x471   :  { %v13236_v18 = vpop.permute.xlu0 %2809  ;;  %v3461_v16 = vsel %vm2972_vm4, %v13133_v23, %v13234_v0  ;;  %9243 = vmatpush1.bf16.msra.mxu0 %v9242_v9  ;;  %9251 = vmatpush1.bf16.msra.mxu1 %v9250_v13  ;;  %v4397_v23 = vld [vmem:[#allocation2 + $0x440] sm:$0xff] }
 0x472   :  { %v2830_v47 = vsel %vm2817_vm8, %v13179_v14, %v13236_v18  ;;  %3493 = vst [vmem:[#allocation2 + $0x2d8] sm:$0xf] %v3461_v16  ;;  %4715 = vmatprep.subr.mxu0 %v4398_v55  ;;  %v8086_v13 = vld [vmem:[%s16169_s2 + $0x41] ss:$8 sm:$0xf] }
 0x473   :  { %2862 = vst [vmem:[#allocation2 + $0x160] sm:$0xf] %v2830_v47  ;;  %v13321_v55 = vld [vmem:[%s16174_s7] sm:$0xff] }
 0x474   :  { %5204 = vrot.lane.b32.xlu0 %v5161_v42, %s9865_s4  ;;  %v13247_v30 = vpop.permute.xlu1 %3694  ;;  %v5125_v42 = vrot.slane %v13177_v26, %v17347_v20 }
 0x475   :  { %v13249_v1 = vpop.permute.xlu0 %3065  ;;  %v3715_v14 = vsel %vm2716_vm3, %v13155_v44, %v13247_v30  ;;  %4716 = vmatpush1.msra.mxu0 %v4397_v23 }
 0x476   :  { %v3086_v59 = vsel %vm3073_vm5, %v13193_v50, %v13249_v1  ;;  %3747 = vst [vmem:[#allocation2 + $0x358] sm:$0xf] %v3715_v14  ;;  %8078 = vmatmul.mubr.msk.f32.vlgmr.msra.gmra.mrb[22].mxu0 %vm4411_vm10, %v12807_v54  ;;  %v8084_v50 = vld [vmem:[%s16169_s2 + $0x1] ss:$8 sm:$0xf]  ;;  %5186 = vrot.lane.b32.xlu1 %v5125_v42, %s9865_s4 }
 0x477   :  { %3118 = vst [vmem:[#allocation2 + $0x1e0] sm:$0xf] %v3086_v59  ;;  %4905 = vmatprep.mubr.f32.mxu0 %v13075_v56  ;;  %v8085_v54 = vld [vmem:[%s16169_s2 + $0x1] ss:$8 sm:$0xf0] }
 0x478   :  { %5208 = vrot.lane.b32.xlu0 %v5169_v60, %s9865_s4  ;;  %v13263_v17 = vpop.permute.xlu1 %3948  ;;  %v13279_v46 = vor.u32 %v8085_v54, %v8084_v50  ;;  %v5133_v60 = vrot.slane %v13177_v26, %v17348_v39  ;;  %v17349_v54 = vld [vmem:[#allocation21_spill] sm:$0xff] }
 0x479   :  { %v13265_v44 = vpop.permute.xlu0 %2813  ;;  %v3969_v29 = vsel %vm2460_vm2, %v13163_v32, %v13263_v17  ;;  %v4352_v19 = vld [vmem:[#allocation2 + $0x2d8] sm:$0xff] }
 0x47a   :  { %4001 = vst [vmem:[#allocation2 + $0x3d8] sm:$0xf] %v3969_v29  ;;  %v9252_v4 = vpack.c.bf16 %v4352_v19, %v4336_v48  ;;  %v5377_v27 = vrot.slane %v13279_v46, %v17347_v20  ;;  %v5385_v51 = vrot.slane %v13279_v46, %v17348_v39  ;;  %v5393_v8 = vrot.slane %v13279_v46, %v17310_v33 }
 0x47b   :  { %5190 = vrot.lane.b32.xlu1 %v5133_v60, %s9865_s4  ;;  %v5141_v48 = vrot.slane %v13177_v26, %v17310_v33 }
 0x47c   :  { %5212 = vrot.lane.b32.xlu0 %v5177_v3, %s9865_s4  ;;  %v13281_v38 = vpop.permute.xlu1 %4202  ;;  %9253 = vmatprep.subr.bf16.mxu1 %v9252_v4 }
 0x47d   :  { %v13283_v37 = vpop.permute.xlu0 %3069  ;;  %v4223_v32 = vsel %vm2204_vm7, %v13195_v49, %v13281_v38  ;;  %9255 = vmatpush1.bf16.msra.mxu1 %v9254_v43  ;;  %v4368_v31 = vld [vmem:[#allocation2 + $0x358] sm:$0xff] }
 0x47e   :  { %4255 = vst [vmem:[#allocation2 + $0x458] sm:$0xf] %v4223_v32  ;;  %v5149_v32 = vrot.slane %v13177_v26, %v17311_v15 }
 0x47f   :  { %5194 = vrot.lane.b32.xlu1 %v5141_v48, %s9865_s4 }
 0x480   :  { %5216 = vrot.lane.b32.xlu0 %v5185_v24, %s9865_s4  ;;  %v3445_v52 = vpop.permute.xlu1 %3444 }
 0x481   :  { %v2300_v25 = vpop.permute.xlu0 %2299  ;;  %v4384_v63 = vld [vmem:[#allocation2 + $0x3d8] sm:$0xff] }
 0x482   :  { %v2319_v7 = vsel %vm2305_vm6, %v13206_v45, %v2300_v25  ;;  %v2320_v35 = vsel %vm2305_vm6, %v2300_v25, %v13227_v5  ;;  %v9256_v49 = vpack.c.bf16 %v4384_v63, %v4368_v31  ;;  %v4273_v25 = vld [vmem:[#allocation2 + $0x60] sm:$0xff] }
 0x483   :  { %2351 = vst [vmem:[#allocation2 + $0x68] sm:$0xf] %v2319_v7  ;;  %2352 = vst [vmem:[#allocation2 + $0x70] sm:$0xf] %v2320_v35  ;;  %5198 = vrot.lane.b32.xlu1 %v5149_v32, %s9865_s4 }
 0x484   :  { %5438 = vrot.lane.b32.xlu0 %v5377_v27, %s9866_s24  ;;  %v13298_v57 = vpop.permute.xlu1 %3698  ;;  %9257 = vmatprep.subr.bf16.mxu1 %v9256_v49 }
 0x485   :  { %v2304_v62 = vpop.permute.xlu0 %2303  ;;  %9259 = vmatpush1.bf16.msra.mxu1 %v9258_v10  ;;  %v4400_v22 = vld [vmem:[#allocation2 + $0x458] sm:$0xff] }
 0x486   :  { %v2321_v45 = vsel %vm2305_vm6, %v13227_v5, %v2304_v62  ;;  %4786 = vmatprep.subr.mxu1 %v4400_v22  ;;  %v8087_v5 = vld [vmem:[%s16169_s2 + $0x41] ss:$8 sm:$0xf0] }
 0x487   :  { %2353 = vst [vmem:[#allocation2 + $0x78] sm:$0xf] %v2321_v45  ;;  %v13332_v23 = vor.u32 %v8087_v5, %v8086_v13  ;;  %v8089_v45 = vld [vmem:[%s16169_s2 + $0x2] ss:$8 sm:$0xf0] }
 0x488   :  { %5442 = vrot.lane.b32.xlu0 %v5385_v51, %s9866_s24  ;;  %v13305_v21 = vpop.permute.xlu1 %3952 }
 0x489   :  { %v3443_v9 = vpop.permute.xlu0 %3442  ;;  %4787 = vmatpush1.msra.mxu1 %v4399_v11  ;;  %v5417_v27 = vrot.slane %v13332_v23, %v17348_v39 }
 0x48a   :  { %v3462_v16 = vsel %vm2972_vm4, %v13234_v0, %v3443_v9  ;;  %v3463_v47 = vsel %vm2972_vm4, %v3443_v9, %v3445_v52  ;;  %8079 = vmatmul.mubr.msk.f32.vlgmr.msra.gmra.mrb[22].mxu1 %vm4411_vm10, %v13321_v55  ;;  %v5401_v0 = vrot.slane %v13279_v46, %v17311_v15  ;;  %v4274_v31 = vld [vmem:[#allocation2 + $0x68] sm:$0xff]  ;;  %v4275_v42 = vld [vmem:[#allocation2 + $0x70] sm:$0xff] }
 0x48b   :  { %3494 = vst [vmem:[#allocation2 + $0x2e0] sm:$0xf] %v3462_v16  ;;  %3495 = vst [vmem:[#allocation2 + $0x2e8] sm:$0xf] %v3463_v47  ;;  %4976 = vmatprep.mubr.f32.mxu1 %v13075_v56 }
 0x48c   :  { %5446 = vrot.lane.b32.xlu0 %v5393_v8, %s9866_s24  ;;  %v2556_v14 = vpop.permute.xlu1 %2555 }
 0x48d   :  { %v3447_v59 = vpop.permute.xlu0 %3446  ;;  %v2575_v41 = vsel %vm2561_vm9, %v13208_v53, %v2556_v14  ;;  %v2576_v3 = vsel %vm2561_vm9, %v2556_v14, %v13229_v6  ;;  %v5409_v53 = vrot.slane %v13332_v23, %v17347_v20 }
 0x48e   :  { %v3464_v50 = vsel %vm2972_vm4, %v3445_v52, %v3447_v59  ;;  %v3465_v29 = vsel %vm2972_vm4, %v3447_v59, %v17349_v54  ;;  %2607 = vst [vmem:[#allocation2 + $0xe8] sm:$0xf] %v2575_v41  ;;  %2608 = vst [vmem:[#allocation2 + $0xf0] sm:$0xf] %v2576_v3  ;;  %v4276_v9 = vld [vmem:[#allocation2 + $0x78] sm:$0xff]  ;;  %v5157_v54 = vrot.slane %v13225_v34, %v17347_v20 }
 0x48f   :  { %3496 = vst [vmem:[#allocation2 + $0x2f0] sm:$0xf] %v3464_v50  ;;  %3497 = vst [vmem:[#allocation2 + $0x2f8] sm:$0xf] %v3465_v29  ;;  %v4321_v50 = vld [vmem:[#allocation2 + $0x1e0] sm:$0xff] }
 0x490   :  { %5450 = vrot.lane.b32.xlu0 %v5401_v0, %s9866_s24  ;;  %v2560_v19 = vpop.permute.xlu1 %2559  ;;  %5202 = vrot.lane.b32.xlu1 %v5157_v54, %s9865_s4  ;;  %v5381_v54 = vrot.slane %v13279_v46, %v17345_v2 }
 0x491   :  { %v3697_v4 = vpop.permute.xlu0 %3696  ;;  %v2577_v40 = vsel %vm2561_vm9, %v13229_v6, %v2560_v19 }
 0x492   :  { %v3716_v43 = vsel %vm2716_vm3, %v13247_v30, %v3697_v4  ;;  %v3717_v24 = vsel %vm2716_vm3, %v3697_v4, %v13298_v57  ;;  %2609 = vst [vmem:[#allocation2 + $0xf8] sm:$0xf] %v2577_v40  ;;  %v4289_v30 = vld [vmem:[#allocation2 + $0xe0] sm:$0xff]  ;;  %v5165_v40 = vrot.slane %v13225_v34, %v17348_v39 }
 0x493   :  { %3748 = vst [vmem:[#allocation2 + $0x360] sm:$0xf] %v3716_v43  ;;  %3749 = vst [vmem:[#allocation2 + $0x368] sm:$0xf] %v3717_v24  ;;  %v9262_v61 = vpack.c.bf16 %v4289_v30, %v4273_v25  ;;  %v4305_v4 = vld [vmem:[#allocation2 + $0x160] sm:$0xff]  ;;  %v4338_v24 = vld [vmem:[#allocation2 + $0x268] sm:$0xff] }
 0x494   :  { %5454 = vrot.lane.b32.xlu0 %v5409_v53, %s9866_s24  ;;  %v2812_v6 = vpop.permute.xlu1 %2811  ;;  %v4354_v53 = vld [vmem:[#allocation2 + $0x2e8] sm:$0xff]  ;;  %v9266_v43 = vpack.c.bf16 %v4321_v50, %v4305_v4  ;;  %v4353_v32 = vld [vmem:[#allocation2 + $0x2e0] sm:$0xff]  ;;  %5206 = vrot.lane.b32.xlu1 %v5165_v40, %s9865_s4  ;;  %v4339_v50 = vld [vmem:[#allocation2 + $0x270] sm:$0xff] }
 0x495   :  { %v3951_v52 = vpop.permute.xlu0 %3950  ;;  %v2831_v36 = vsel %vm2817_vm8, %v13236_v18, %v2812_v6  ;;  %v2832_v7 = vsel %vm2817_vm8, %v2812_v6, %v13265_v44  ;;  %v4290_v63 = vld [vmem:[#allocation2 + $0xe8] sm:$0xff]  ;;  %v5425_v18 = vrot.slane %v13332_v23, %v17310_v33  ;;  %v4291_v62 = vld [vmem:[#allocation2 + $0xf0] sm:$0xff] }
 0x496   :  { %v3970_v35 = vsel %vm2460_vm2, %v13263_v17, %v3951_v52  ;;  %v3971_v26 = vsel %vm2460_vm2, %v3951_v52, %v13305_v21  ;;  %2863 = vst [vmem:[#allocation2 + $0x168] sm:$0xf] %v2831_v36  ;;  %2864 = vst [vmem:[#allocation2 + $0x170] sm:$0xf] %v2832_v7  ;;  %v9260_v49 = vpack.c.bf16 %v4290_v63, %v4274_v31  ;;  %v4337_v36 = vld [vmem:[#allocation2 + $0x260] sm:$0xff] }
 0x497   :  { %4002 = vst [vmem:[#allocation2 + $0x3e0] sm:$0xf] %v3970_v35  ;;  %4003 = vst [vmem:[#allocation2 + $0x3e8] sm:$0xf] %v3971_v26  ;;  %v9278_v16 = vpack.c.bf16 %v4291_v62, %v4275_v42  ;;  %v5173_v7 = vrot.slane %v13225_v34, %v17310_v33  ;;  %v9270_v35 = vpack.c.bf16 %v4353_v32, %v4337_v36  ;;  %v4340_v42 = vld [vmem:[#allocation2 + $0x278] sm:$0xff] }
 0x498   :  { %5458 = vrot.lane.b32.xlu0 %v5417_v27, %s9866_s24  ;;  %v8088_v17 = vld [vmem:[%s16169_s2 + $0x2] ss:$8 sm:$0xf]  ;;  %v3068_v10 = vpop.permute.xlu1 %3067  ;;  %9261 = vmatprep.subr.bf16.mxu0 %v9260_v49  ;;  %v9268_v27 = vpack.c.bf16 %v4354_v53, %v4338_v24  ;;  %v8092_v6 = vld [vmem:[%s16169_s2 + $0x3] ss:$8 sm:$0xf]  ;;  %v5389_v24 = vrot.slane %v13279_v46, %v17346_v12 }
 0x499   :  { %v3701_v51 = vpop.permute.xlu0 %3700  ;;  %v3087_v22 = vsel %vm3073_vm5, %v13249_v1, %v3068_v10  ;;  %v3088_v11 = vsel %vm3073_vm5, %v3068_v10, %v13283_v37  ;;  %9263 = vmatpush1.bf16.msra.mxu0 %v9262_v61  ;;  %v4292_v13 = vld [vmem:[#allocation2 + $0xf8] sm:$0xff]  ;;  %v5433_v1 = vrot.slane %v13332_v23, %v17311_v15  ;;  %v13386_v47 = vor.u32 %v8089_v45, %v8088_v17 }
 0x49a   :  { %v3718_v8 = vsel %vm2716_vm3, %v13298_v57, %v3701_v51  ;;  %3119 = vst [vmem:[#allocation2 + $0x1e8] sm:$0xf] %v3087_v22  ;;  %3120 = vst [vmem:[#allocation2 + $0x1f0] sm:$0xf] %v3088_v11  ;;  %v9276_v5 = vpack.c.bf16 %v4292_v13, %v4276_v9  ;;  %v4370_v26 = vld [vmem:[#allocation2 + $0x368] sm:$0xff]  ;;  %v4356_v45 = vld [vmem:[#allocation2 + $0x2f8] sm:$0xff]  ;;  %5210 = vrot.lane.b32.xlu1 %v5173_v7, %s9865_s4  ;;  %v5181_v9 = vrot.slane %v13225_v34, %v17311_v15 }
 0x49b   :  { %3750 = vst [vmem:[#allocation2 + $0x370] sm:$0xf] %v3718_v8  ;;  %v5629_v59 = vrot.slane %v13386_v47, %v17347_v20  ;;  %v8093_v52 = vld [vmem:[%s16169_s2 + $0x3] ss:$8 sm:$0xf0]  ;;  %v5645_v31 = vrot.slane %v13386_v47, %v17310_v33 }
 0x49c   :  { %5462 = vrot.lane.b32.xlu0 %v5425_v18, %s9866_s24  ;;  %v2816_v60 = vpop.permute.xlu1 %2815  ;;  %9277 = vmatprep.subr.bf16.mxu1 %v9276_v5  ;;  %v13423_v63 = vor.u32 %v8093_v52, %v8092_v6  ;;  %v4369_v11 = vld [vmem:[#allocation2 + $0x360] sm:$0xff]  ;;  %v5397_v6 = vrot.slane %v13279_v46, %v17312_v28 }
 0x49d   :  { %v3955_v0 = vpop.permute.xlu0 %3954  ;;  %v2833_v57 = vsel %vm2817_vm8, %v13265_v44, %v2816_v60  ;;  %9279 = vmatpush1.bf16.msra.mxu1 %v9278_v16  ;;  %v4306_v29 = vld [vmem:[#allocation2 + $0x168] sm:$0xff]  ;;  %v4307_v8 = vld [vmem:[#allocation2 + $0x170] sm:$0xff] }
 0x49e   :  { %v3972_v14 = vsel %vm2460_vm2, %v13305_v21, %v3955_v0  ;;  %2865 = vst [vmem:[#allocation2 + $0x178] sm:$0xf] %v2833_v57  ;;  %v4386_v30 = vld [vmem:[#allocation2 + $0x3e8] sm:$0xff]  ;;  %v4385_v18 = vld [vmem:[#allocation2 + $0x3e0] sm:$0xff]  ;;  %v4355_v16 = vld [vmem:[#allocation2 + $0x2f0] sm:$0xff]  ;;  %v9284_v57 = vpack.c.bf16 %v4356_v45, %v4340_v42  ;;  %5214 = vrot.lane.b32.xlu1 %v5181_v9, %s9865_s4  ;;  %v5429_v45 = vrot.slane %v13332_v23, %v17312_v28 }
 0x49f   :  { %4004 = vst [vmem:[#allocation2 + $0x3f0] sm:$0xf] %v3972_v14  ;;  %v9272_v61 = vpack.c.bf16 %v4386_v30, %v4370_v26  ;;  %v9274_v13 = vpack.c.bf16 %v4385_v18, %v4369_v11  ;;  %v8100_v14 = vld [vmem:[%s16169_s2 + $0x5] ss:$8 sm:$0xf]  ;;  %v5421_v18 = vrot.slane %v13332_v23, %v17346_v12  ;;  %v5633_v9 = vrot.slane %v13386_v47, %v17345_v2 }
 0x4a0   :  { %5466 = vrot.lane.b32.xlu0 %v5433_v1, %s9866_s24  ;;  %v3072_v41 = vpop.permute.xlu1 %3071  ;;  %v5885_v1 = vrot.slane %v13423_v63, %v17345_v2  ;;  %v8101_v34 = vld [vmem:[%s16169_s2 + $0x5] ss:$8 sm:$0xf0]  ;;  %v8105_v30 = vld [vmem:[%s16169_s2 + $0x6] ss:$8 sm:$0xf0] }
 0x4a1   :  { %v13395_v3 = vpop.permute.xlu0 %4204  ;;  %v3089_v44 = vsel %vm3073_vm5, %v13283_v37, %v3072_v41  ;;  %v4322_v48 = vld [vmem:[#allocation2 + $0x1e8] sm:$0xff]  ;;  %v4323_v17 = vld [vmem:[#allocation2 + $0x1f0] sm:$0xff] }
 0x4a2   :  { %v4224_v21 = vsel %vm2204_vm7, %v13281_v38, %v13395_v3  ;;  %3121 = vst [vmem:[#allocation2 + $0x1f8] sm:$0xf] %v3089_v44  ;;  %v9264_v19 = vpack.c.bf16 %v4322_v48, %v4306_v29  ;;  %v5637_v38 = vrot.slane %v13386_v47, %v17348_v39  ;;  %v9282_v5 = vpack.c.bf16 %v4323_v17, %v4307_v8 }
 0x4a3   :  { %4256 = vst [vmem:[#allocation2 + $0x460] sm:$0xf] %v4224_v21  ;;  %v9286_v44 = vpack.c.bf16 %v4355_v16, %v4339_v50  ;;  %v5893_v21 = vrot.slane %v13423_v63, %v17346_v12  ;;  %5440 = vrot.lane.b32.xlu1 %v5381_v54, %s9866_s24  ;;  %v5437_v8 = vrot.slane %v13332_v23, %v17314_v58 }
 0x4a4   :  { %5690 = vrot.lane.b32.xlu0 %v5629_v59, %s9867_s29  ;;  %v3703_v37 = vpop.permute.xlu1 %3702  ;;  %9265 = vmatprep.subr.bf16.mxu0 %v9264_v19  ;;  %v5897_v50 = vrot.slane %v13423_v63, %v17310_v33 }
 0x4a5   :  { %v3719_v25 = vsel %vm2716_vm3, %v3701_v51, %v3703_v37  ;;  %9267 = vmatpush1.bf16.msra.mxu0 %v9266_v43  ;;  %v4308_v51 = vld [vmem:[#allocation2 + $0x178] sm:$0xff]  ;;  %v4209_v60 = vpop.permute.xlu0 %4208  ;;  %v4371_v43 = vld [vmem:[#allocation2 + $0x370] sm:$0xff] }
 0x4a6   :  { %3751 = vst [vmem:[#allocation2 + $0x378] sm:$0xf] %v3719_v25  ;;  %9269 = vmatprep.subr.bf16.mxu0 %v9268_v27  ;;  %v4387_v48 = vld [vmem:[#allocation2 + $0x3f0] sm:$0xff] }
 0x4a7   :  { %v9290_v32 = vpack.c.bf16 %v4387_v48, %v4371_v43  ;;  %5444 = vrot.lane.b32.xlu1 %v5389_v24, %s9866_s24  ;;  %v8104_v25 = vld [vmem:[%s16169_s2 + $0x6] ss:$8 sm:$0xf] }
 0x4a8   :  { %5694 = vrot.lane.b32.xlu0 %v5637_v38, %s9867_s29  ;;  %v3957_v49 = vpop.permute.xlu1 %3956 }
 0x4a9   :  { %v3973_v10 = vsel %vm2460_vm2, %v3955_v0, %v3957_v49  ;;  %9271 = vmatpush1.bf16.msra.mxu0 %v9270_v35  ;;  %v4324_v62 = vld [vmem:[#allocation2 + $0x1f8] sm:$0xff]  ;;  %v5405_v35 = vrot.slane %v13279_v46, %v17314_v58  ;;  %v5413_v49 = vrot.slane %v13332_v23, %v17345_v2  ;;  %v5641_v23 = vrot.slane %v13386_v47, %v17346_v12 }
 0x4aa   :  { %4005 = vst [vmem:[#allocation2 + $0x3f8] sm:$0xf] %v3973_v10  ;;  %9273 = vmatprep.subr.bf16.mxu0 %v9272_v61  ;;  %v9280_v22 = vpack.c.bf16 %v4324_v62, %v4308_v51  ;;  %v4401_v27 = vld [vmem:[#allocation2 + $0x460] sm:$0xff] }
 0x4ab   :  { %5448 = vrot.lane.b32.xlu1 %v5397_v6, %s9866_s24  ;;  %v8108_v61 = vld [vmem:[%s16169_s2 + $0x7] ss:$8 sm:$0xf] }
 0x4ac   :  { %5698 = vrot.lane.b32.xlu0 %v5645_v31, %s9867_s29  ;;  %v4207_v0 = vpop.permute.xlu1 %4206  ;;  %9281 = vmatprep.subr.bf16.mxu1 %v9280_v22  ;;  %v13477_v31 = vor.u32 %v8105_v30, %v8104_v25 }
 0x4ad   :  { %v4225_v59 = vsel %vm2204_vm7, %v13395_v3, %v4207_v0  ;;  %v4226_v41 = vsel %vm2204_vm7, %v4207_v0, %v4209_v60  ;;  %9275 = vmatpush1.bf16.msra.mxu0 %v9274_v13  ;;  %9283 = vmatpush1.bf16.msra.mxu1 %v9282_v5  ;;  %v13447_v3 = vor.u32 %v8101_v34, %v8100_v14  ;;  %v4372_v19 = vld [vmem:[#allocation2 + $0x378] sm:$0xff] }
 0x4ae   :  { %4257 = vst [vmem:[#allocation2 + $0x468] sm:$0xf] %v4225_v59  ;;  %4258 = vst [vmem:[#allocation2 + $0x470] sm:$0xf] %v4226_v41  ;;  %9285 = vmatprep.subr.bf16.mxu1 %v9284_v57  ;;  %v6509_v46 = vrot.slane %v13477_v31, %v17345_v2  ;;  %v6517_v17 = vrot.slane %v13477_v31, %v17346_v12  ;;  %v5889_v57 = vrot.slane %v13423_v63, %v17348_v39 }
 0x4af   :  { %v6253_v38 = vrot.slane %v13447_v3, %v17347_v20  ;;  %v6261_v52 = vrot.slane %v13447_v3, %v17348_v39  ;;  %v6269_v26 = vrot.slane %v13447_v3, %v17310_v33  ;;  %5452 = vrot.lane.b32.xlu1 %v5405_v35, %s9866_s24  ;;  %v8112_v13 = vld [vmem:[%s16169_s2 + $0x80] ss:$8 sm:$0xf]  ;;  %v5649_v34 = vrot.slane %v13386_v47, %v17312_v28 }
 0x4b0   :  { %5944 = vrot.lane.b32.xlu0 %v5885_v1, %s9868_s30  ;;  %v4211_v29 = vpop.permute.xlu1 %4210  ;;  %v8113_v5 = vld [vmem:[%s16169_s2 + $0x80] ss:$8 sm:$0xf0]  ;;  %v5657_v41 = vrot.slane %v13386_v47, %v17314_v58  ;;  %v6257_v54 = vrot.slane %v13447_v3, %v17345_v2  ;;  %v6505_v48 = vrot.slane %v13477_v31, %v17347_v20  ;;  %v6525_v43 = vrot.slane %v13477_v31, %v17312_v28 }
 0x4b1   :  { %v4227_v53 = vsel %vm2204_vm7, %v4209_v60, %v4211_v29  ;;  %9287 = vmatpush1.bf16.msra.mxu1 %v9286_v44  ;;  %v4388_v4 = vld [vmem:[#allocation2 + $0x3f8] sm:$0xff]  ;;  %v13530_v16 = vor.u32 %v8113_v5, %v8112_v13  ;;  %v5881_v60 = vrot.slane %v13423_v63, %v17347_v20  ;;  %v5901_v44 = vrot.slane %v13423_v63, %v17312_v28 }
 0x4b2   :  { %4259 = vst [vmem:[#allocation2 + $0x478] sm:$0xf] %v4227_v53  ;;  %v9288_v40 = vpack.c.bf16 %v4388_v4, %v4372_v19  ;;  %v5909_v29 = vrot.slane %v13423_v63, %v17314_v58  ;;  %v6273_v53 = vrot.slane %v13447_v3, %v17312_v28  ;;  %v6513_v19 = vrot.slane %v13477_v31, %v17348_v39 }
 0x4b3   :  { %5456 = vrot.lane.b32.xlu1 %v5413_v49, %s9866_s24  ;;  %v7013_v1 = vrot.slane %v13530_v16, %v17345_v2  ;;  %v7021_v0 = vrot.slane %v13530_v16, %v17346_v12  ;;  %v6281_v4 = vrot.slane %v13447_v3, %v17314_v58  ;;  %v7029_v35 = vrot.slane %v13530_v16, %v17312_v28  ;;  %v8091_v49 = vld [vmem:[%s16169_s2 + $0x42] ss:$8 sm:$0xf0] }
 0x4b4   :  { %5948 = vrot.lane.b32.xlu0 %v5893_v21, %s9868_s30  ;;  %9289 = vmatprep.subr.bf16.mxu1 %v9288_v40  ;;  %v6265_v21 = vrot.slane %v13447_v3, %v17346_v12  ;;  %v6521_v40 = vrot.slane %v13477_v31, %v17310_v33 }
 0x4b5   :  { %9291 = vmatpush1.bf16.msra.mxu1 %v9290_v32  ;;  %v4402_v37 = vld [vmem:[#allocation2 + $0x468] sm:$0xff]  ;;  %v4403_v7 = vld [vmem:[#allocation2 + $0x470] sm:$0xff] }
 0x4b6   :  { %4857 = vmatprep.subr.mxu0 %v4402_v37 }
 0x4b7   :  { %4858 = vmatpush1.msra.mxu0 %v4401_v27  ;;  %5460 = vrot.lane.b32.xlu1 %v5421_v18, %s9866_s24  ;;  %v6533_v27 = vrot.slane %v13477_v31, %v17314_v58  ;;  %v13613_v18 = vpop.permute.xlu0 %4408 }
 0x4b8   :  { %6314 = vrot.lane.b32.xlu0 %v6253_v38, %s9869_s21  ;;  %8080 = vmatmul.mubr.msk.f32.vlgmr.msra.gmra.mrb[24].mxu0 %vm4411_vm10, %v13321_v55 }
 0x4b9   :  { %v4404_v36 = vld [vmem:[#allocation2 + $0x478] sm:$0xff]  ;;  %7468 = vmatprep.mubr.f32.mxu0 %v13075_v56 }
 0x4ba   :  { %4928 = vmatprep.subr.mxu1 %v4404_v36 }
 0x4bb   :  { %4929 = vmatpush1.msra.mxu1 %v4403_v7  ;;  %5464 = vrot.lane.b32.xlu1 %v5429_v45, %s9866_s24 }
 0x4bc   :  { %6318 = vrot.lane.b32.xlu0 %v6261_v52, %s9869_s21  ;;  %8081 = vmatmul.mubr.msk.f32.vlgmr.msra.gmra.mrb[24].mxu1 %vm4411_vm10, %v13321_v55  ;;  %v8109_v55 = vld [vmem:[%s16169_s2 + $0x7] ss:$8 sm:$0xf0] }
 0x4bd   :  { %7539 = vmatprep.mubr.f32.mxu1 %v13075_v56  ;;  %v13500_v10 = vor.u32 %v8109_v55, %v8108_v61 }
 0x4bf   :  { %v6757_v22 = vrot.slane %v13500_v10, %v17347_v20  ;;  %v6765_v11 = vrot.slane %v13500_v10, %v17348_v39  ;;  %5468 = vrot.lane.b32.xlu1 %v5437_v8, %s9866_s24  ;;  %v6773_v42 = vrot.slane %v13500_v10, %v17310_v33  ;;  %v6777_v6 = vrot.slane %v13500_v10, %v17312_v28 }
 0x4c0   :  { %6322 = vrot.lane.b32.xlu0 %v6269_v26, %s9869_s21  ;;  %v6785_v30 = vrot.slane %v13500_v10, %v17314_v58  ;;  %v8090_v26 = vld [vmem:[%s16169_s2 + $0x42] ss:$8 sm:$0xf] }
 0x4c1   :  { %v13608_v61 = vor.u32 %v8091_v49, %v8090_v26 }
 0x4c3   :  { %5692 = vrot.lane.b32.xlu1 %v5633_v9, %s9867_s29  ;;  %v5665_v55 = vrot.slane %v13608_v61, %v17345_v2  ;;  %v5673_v8 = vrot.slane %v13608_v61, %v17346_v12 }
 0x4c4   :  { %6568 = vrot.lane.b32.xlu0 %v6509_v46, %s9870_s1  ;;  %v13502_v51 = vpop.f32.mrb[18].mxu0  ;;  %v7037_v46 = vrot.slane %v13530_v16, %v17314_v58 }
 0x4c5   :  { %v13504_v62 = vpop.f32.mrb[19].mxu0 }
 0x4c6   :  { %v13622_v45 = vadd.f32 %v13504_v62, %v13613_v18 }
 0x4c7   :  { %5696 = vrot.lane.b32.xlu1 %v5641_v23, %s9867_s29 }
 0x4c8   :  { %6572 = vrot.lane.b32.xlu0 %v6517_v17, %s9870_s1  ;;  %v13618_v17 = vadd.f32 %v13502_v51, %v13613_v18 }
 0x4ca   :  { %v4983_v62 = vadd.f32 %v13622_v45, %v13618_v17 }
 0x4cb   :  { %5942 = vrot.lane.b32.xlu1 %v5881_v60, %s9868_s30  ;;  %v8103_v60 = vld [vmem:[%s16169_s2 + $0x45] ss:$8 sm:$0xf0] }
 0x4cc   :  { %6818 = vrot.lane.b32.xlu0 %v6757_v22, %s9871_s26  ;;  %v8094_v22 = vld [vmem:[%s16169_s2 + $0x43] ss:$8 sm:$0xf] }
 0x4cf   :  { %5946 = vrot.lane.b32.xlu1 %v5889_v57, %s9868_s30 }
 0x4d0   :  { %6822 = vrot.lane.b32.xlu0 %v6765_v11, %s9871_s26  ;;  %v8095_v11 = vld [vmem:[%s16169_s2 + $0x43] ss:$8 sm:$0xf0] }
 0x4d1   :  { %v13635_v51 = vor.u32 %v8095_v11, %v8094_v22 }
 0x4d3   :  { %5950 = vrot.lane.b32.xlu1 %v5897_v50, %s9868_s30  ;;  %v5917_v13 = vrot.slane %v13635_v51, %v17345_v2 }
 0x4d4   :  { %6826 = vrot.lane.b32.xlu0 %v6773_v42, %s9871_s26 }
 0x4d7   :  { %6316 = vrot.lane.b32.xlu1 %v6257_v54, %s9869_s21 }
 0x4d8   :  { %7072 = vrot.lane.b32.xlu0 %v7013_v1, %s9872_s14  ;;  %v8102_v1 = vld [vmem:[%s16169_s2 + $0x45] ss:$8 sm:$0xf] }
 0x4db   :  { %v4552_v14 = vpop.f32.mrb[18].mxu1  ;;  %6320 = vrot.lane.b32.xlu1 %v6265_v21, %s9869_s21 }
 0x4dc   :  { %7076 = vrot.lane.b32.xlu0 %v7021_v0, %s9872_s14  ;;  %v4554_v59 = vpop.f32.mrb[19].mxu1  ;;  %v13633_v9 = vadd.f32 %v4552_v14, %v13613_v18  ;;  %v5925_v0 = vrot.slane %v13635_v51, %v17346_v12  ;;  %v13659_v14 = vor.u32 %v8103_v60, %v8102_v1 }
 0x4dd   :  { %v13644_v42 = vadd.f32 %v4554_v59, %v13613_v18 }
 0x4de   :  { %v4984_v5 = vadd.f32 %v4983_v62, %v13633_v9 }
 0x4df   :  { %6566 = vrot.lane.b32.xlu1 %v6505_v48, %s9870_s1  ;;  %v8106_v48 = vld [vmem:[%s16169_s2 + $0x46] ss:$8 sm:$0xf] }
 0x4e0   :  { %5700 = vrot.lane.b32.xlu0 %v5649_v34, %s9867_s29  ;;  %v4985_v57 = vadd.f32 %v4984_v5, %v13644_v42 }
 0x4e3   :  { %6570 = vrot.lane.b32.xlu1 %v6513_v19, %s9870_s1  ;;  %v6297_v19 = vrot.slane %v13659_v14, %v17346_v12 }
 0x4e4   :  { %5704 = vrot.lane.b32.xlu0 %v5657_v41, %s9867_s29  ;;  %v6289_v41 = vrot.slane %v13659_v14, %v17345_v2 }
 0x4e7   :  { %6574 = vrot.lane.b32.xlu1 %v6521_v40, %s9870_s1  ;;  %v13689_v40 = vpop.permute.xlu0 %5188 }
 0x4e8   :  { %5952 = vrot.lane.b32.xlu0 %v5901_v44, %s9868_s30 }
 0x4ec   :  { %5956 = vrot.lane.b32.xlu0 %v5909_v29, %s9868_s30 }
 0x4f0   :  { %6324 = vrot.lane.b32.xlu0 %v6273_v53, %s9869_s21  ;;  %v8107_v53 = vld [vmem:[%s16169_s2 + $0x46] ss:$8 sm:$0xf0] }
 0x4f4   :  { %6328 = vrot.lane.b32.xlu0 %v6281_v4, %s9869_s21 }
 0x4f8   :  { %6576 = vrot.lane.b32.xlu0 %v6525_v43, %s9870_s1  ;;  %v13691_v43 = vor.u32 %v8107_v53, %v8106_v48 }
 0x4fc   :  { %6580 = vrot.lane.b32.xlu0 %v6533_v27, %s9870_s1  ;;  %v13703_v27 = vpop.permute.xlu1 %5079 }
 0x4fd   :  { %17350 = vst [vmem:[#allocation68_spill] sm:$0xff] %v13703_v27 }
 0x500   :  { %6828 = vrot.lane.b32.xlu0 %v6777_v6, %s9871_s26  ;;  %v13721_v49 = vpop.permute.xlu1 %5186 }
 0x502   :  { %v4623_v24 = vpop.f32.mrb[20].mxu0 }
 0x503   :  { %v4625_v32 = vpop.f32.mrb[21].mxu0  ;;  %v13648_v23 = vadd.f32 %v4623_v24, %v13613_v18 }
 0x504   :  { %6832 = vrot.lane.b32.xlu0 %v6785_v30, %s9871_s26  ;;  %v13664_v59 = vadd.f32 %v4625_v32, %v13613_v18  ;;  %v13713_v30 = vpop.permute.xlu0 %5192  ;;  %v13739_v1 = vpop.permute.xlu1 %5190 }
 0x505   :  { %v4986_v34 = vadd.f32 %v4985_v57, %v13648_v23 }
 0x507   :  { %v4987_v54 = vadd.f32 %v4986_v34, %v13664_v59 }
 0x508   :  { %7080 = vrot.lane.b32.xlu0 %v7029_v35, %s9872_s14  ;;  %v13750_v48 = vpop.permute.xlu1 %5194 }
 0x50c   :  { %7084 = vrot.lane.b32.xlu0 %v7037_v46, %s9872_s14  ;;  %v13752_v53 = vpop.permute.xlu1 %5198 }
 0x510   :  { %5708 = vrot.lane.b32.xlu0 %v5665_v55, %s9867_s29 }
 0x514   :  { %5712 = vrot.lane.b32.xlu0 %v5673_v8, %s9867_s29 }
 0x518   :  { %5960 = vrot.lane.b32.xlu0 %v5917_v13, %s9868_s30  ;;  %v13732_v13 = vpop.permute.xlu0 %5196 }
 0x51c   :  { %5964 = vrot.lane.b32.xlu0 %v5925_v0, %s9868_s30 }
 0x51d   :  { %v4694_v38 = vpop.f32.mrb[20].mxu1 }
 0x51e   :  { %v4696_v37 = vpop.f32.mrb[21].mxu1  ;;  %v13669_v50 = vadd.f32 %v4694_v38, %v13613_v18  ;;  %v6541_v38 = vrot.slane %v13691_v43, %v17345_v2 }
 0x51f   :  { %v13675_v21 = vadd.f32 %v4696_v37, %v13613_v18 }
 0x520   :  { %6332 = vrot.lane.b32.xlu0 %v6289_v41, %s9869_s21  ;;  %v4988_v44 = vadd.f32 %v4987_v54, %v13669_v50 }
 0x522   :  { %v4989_v4 = vadd.f32 %v4988_v44, %v13675_v21 }
 0x524   :  { %6336 = vrot.lane.b32.xlu0 %v6297_v19, %s9869_s21  ;;  %v13754_v19 = vpop.permute.xlu1 %5202 }
 0x528   :  { %6584 = vrot.lane.b32.xlu0 %v6541_v38, %s9870_s1  ;;  %v13764_v38 = vpop.permute.xlu0 %5200 }
 0x549   :  { %v4765_v52 = vpop.f32.mrb[22].mxu0 }
 0x54a   :  { %v4767_v25 = vpop.f32.mrb[23].mxu0  ;;  %v13678_v29 = vadd.f32 %v4765_v52, %v13613_v18  ;;  %v8110_v52 = vld [vmem:[%s16169_s2 + $0x47] ss:$8 sm:$0xf] }
 0x54b   :  { %v13696_v32 = vadd.f32 %v4767_v25, %v13613_v18  ;;  %v8111_v25 = vld [vmem:[%s16169_s2 + $0x47] ss:$8 sm:$0xf0] }
 0x54c   :  { %v4990_v24 = vadd.f32 %v4989_v4, %v13678_v29  ;;  %v13723_v46 = vor.u32 %v8111_v25, %v8110_v52  ;;  %v8114_v4 = vld [vmem:[%s16169_s2 + $0xc0] ss:$8 sm:$0xf] }
 0x54e   :  { %v4991_v6 = vadd.f32 %v4990_v24, %v13696_v32  ;;  %v6793_v22 = vrot.slane %v13723_v46, %v17345_v2  ;;  %v6761_v24 = vrot.slane %v13500_v10, %v17345_v2  ;;  %v6801_v52 = vrot.slane %v13723_v46, %v17346_v12 }
 0x55d   :  { %v4836_v36 = vpop.f32.mrb[22].mxu1 }
 0x55e   :  { %v4838_v7 = vpop.f32.mrb[23].mxu1  ;;  %v13701_v37 = vadd.f32 %v4836_v36, %v13613_v18  ;;  %v6549_v36 = vrot.slane %v13691_v43, %v17346_v12 }
 0x55f   :  { %v13719_v26 = vadd.f32 %v4838_v7, %v13613_v18 }
 0x560   :  { %v4992_v35 = vadd.f32 %v4991_v6, %v13701_v37  ;;  %6588 = vrot.lane.b32.xlu0 %v6549_v36, %s9870_s1  ;;  %v13773_v36 = vpop.permute.xlu1 %5206 }
 0x562   :  { %v4993_v11 = vadd.f32 %v4992_v35, %v13719_v26  ;;  %v6769_v35 = vrot.slane %v13500_v10, %v17346_v12 }
 0x564   :  { %6836 = vrot.lane.b32.xlu0 %v6793_v22, %s9871_s26  ;;  %v7009_v22 = vrot.slane %v13530_v16, %v17347_v20 }
 0x568   :  { %6840 = vrot.lane.b32.xlu0 %v6801_v52, %s9871_s26 }
 0x58b   :  { %v4907_v55 = vpop.f32.mrb[24].mxu0 }
 0x58c   :  { %v13730_v8 = vadd.f32 %v4907_v55, %v13613_v18  ;;  %v4909_v62 = vpop.f32.mrb[25].mxu0  ;;  %v13778_v55 = vpop.permute.xlu0 %5204 }
 0x58d   :  { %v13735_v7 = vadd.f32 %v4909_v62, %v13613_v18  ;;  %v7017_v62 = vrot.slane %v13530_v16, %v17348_v39 }
 0x58e   :  { %v4994_v5 = vadd.f32 %v4993_v11, %v13730_v8  ;;  %v13784_v11 = vpop.permute.xlu1 %5210 }
 0x58f   :  { %v4978_v60 = vpop.f32.mrb[24].mxu1 }
 0x590   :  { %v4995_v0 = vadd.f32 %v4994_v5, %v13735_v7  ;;  %v13743_v57 = vadd.f32 %v4978_v60, %v13613_v18  ;;  %v4980_v34 = vpop.f32.mrb[25].mxu1  ;;  %v7025_v60 = vrot.slane %v13530_v16, %v17310_v33 }
 0x591   :  { %v13746_v41 = vadd.f32 %v4980_v34, %v13613_v18  ;;  %v8115_v18 = vld [vmem:[%s16169_s2 + $0xc0] ss:$8 sm:$0xf0] }
 0x592   :  { %v4996_v54 = vadd.f32 %v4995_v0, %v13743_v57  ;;  %v13766_v6 = vor.u32 %v8115_v18, %v8114_v4  ;;  %v13789_v5 = vpop.permute.xlu1 %5214  ;;  %v5653_v0 = vrot.slane %v13386_v47, %v17311_v15  ;;  %v5905_v18 = vrot.slane %v13423_v63, %v17311_v15 }
 0x593   :  { %v5913_v47 = vrot.slane %v13635_v51, %v17347_v20  ;;  %v6285_v63 = vrot.slane %v13659_v14, %v17347_v20 }
 0x594   :  { %v4997_v44 = vadd.f32 %v4996_v54, %v13746_v41  ;;  %v7045_v25 = vrot.slane %v13766_v6, %v17345_v2  ;;  %v5661_v54 = vrot.slane %v13608_v61, %v17347_v20  ;;  %v5669_v2 = vrot.slane %v13608_v61, %v17348_v39 }
 0x596   :  { %4998 = vadd.xlane.f32.xlu1 %v4997_v44  ;;  %7088 = vrot.lane.b32.xlu0 %v7045_v25, %s9872_s14  ;;  %v13797_v34 = vpop.permute.xlu1 %5440  ;;  %v13802_v44 = vpop.permute.xlu0 %5208  ;;  %v6277_v25 = vrot.slane %v13447_v3, %v17311_v15  ;;  %v6537_v3 = vrot.slane %v13691_v43, %v17347_v20 }
 0x59a   :  { %v13804_v4 = vpop.permute.xlu1 %5444 }
 0x59e   :  { %v13814_v52 = vpop.permute.xlu1 %5448 }
 0x5a7   :  { %6820 = vrot.lane.b32.xlu1 %v6761_v24, %s9871_s26  ;;  %v13809_v24 = vpop.permute.xlu0 %5212 }
 0x5ab   :  { %6824 = vrot.lane.b32.xlu1 %v6769_v35, %s9871_s26  ;;  %v13819_v35 = vpop.permute.xlu0 %5216 }
 0x5ac   :  { %17351 = vst [vmem:[#allocation69_spill] sm:$0xff] %v13819_v35 }
 0x5af   :  { %7070 = vrot.lane.b32.xlu1 %v7009_v22, %s9872_s14  ;;  %v13821_v22 = vpop.permute.xlu1 %5452 }
 0x5b3   :  { %7074 = vrot.lane.b32.xlu1 %v7017_v62, %s9872_s14  ;;  %v13826_v62 = vpop.permute.xlu0 %5438 }
 0x5b7   :  { %7078 = vrot.lane.b32.xlu1 %v7025_v60, %s9872_s14  ;;  %v6529_v60 = vrot.slane %v13477_v31, %v17311_v15  ;;  %v6789_v31 = vrot.slane %v13723_v46, %v17347_v20 }
 0x5bb   :  { %5702 = vrot.lane.b32.xlu1 %v5653_v0, %s9867_s29  ;;  %v13831_v0 = vpop.permute.xlu1 %5456 }
 0x5bf   :  { %5706 = vrot.lane.b32.xlu1 %v5661_v54, %s9867_s29  ;;  %v13836_v54 = vpop.permute.xlu0 %5442 }
 0x5c3   :  { %5954 = vrot.lane.b32.xlu1 %v5905_v18, %s9868_s30  ;;  %v13838_v18 = vpop.permute.xlu1 %5460 }
 0x5c4   :  { %17352 = vst [vmem:[#allocation70_spill] sm:$0xff] %v13838_v18 }
 0x5c7   :  { %5958 = vrot.lane.b32.xlu1 %v5913_v47, %s9868_s30  ;;  %v6781_v47 = vrot.slane %v13500_v10, %v17311_v15  ;;  %v7041_v10 = vrot.slane %v13766_v6, %v17347_v20  ;;  %v5921_v20 = vrot.slane %v13635_v51, %v17348_v39 }
 0x5cb   :  { %6326 = vrot.lane.b32.xlu1 %v6277_v25, %s9869_s21  ;;  %v13843_v25 = vpop.permute.xlu0 %5446 }
 0x5cf   :  { %6330 = vrot.lane.b32.xlu1 %v6285_v63, %s9869_s21  ;;  %v13848_v63 = vpop.permute.xlu1 %5464  ;;  %v13853_v56 = vpop.permute.xlu0 %5450 }
 0x5d0   :  { %17353 = vst [vmem:[#allocation71_spill] sm:$0xff] %v13848_v63  ;;  %v6301_v63 = vrot.slane %v13659_v14, %v17310_v33 }
 0x5d3   :  { %6578 = vrot.lane.b32.xlu1 %v6529_v60, %s9870_s1  ;;  %v7033_v60 = vrot.slane %v13530_v16, %v17311_v15  ;;  %v5677_v16 = vrot.slane %v13608_v61, %v17310_v33 }
 0x5d7   :  { %6582 = vrot.lane.b32.xlu1 %v6537_v3, %s9870_s1  ;;  %v13855_v3 = vpop.permute.xlu1 %5468 }
 0x5d8   :  { %17354 = vst [vmem:[#allocation24_spill] sm:$0xff] %v13855_v3  ;;  %v6293_v3 = vrot.slane %v13659_v14, %v17348_v39 }
 0x5db   :  { %6830 = vrot.lane.b32.xlu1 %v6781_v47, %s9871_s26  ;;  %v13860_v47 = vpop.permute.xlu0 %5454 }
 0x5df   :  { %6834 = vrot.lane.b32.xlu1 %v6789_v31, %s9871_s26  ;;  %v13865_v31 = vpop.permute.xlu1 %5692  ;;  %v13870_v27 = vpop.permute.xlu0 %5458 }
 0x5e0   :  { %17355 = vst [vmem:[#allocation56_spill] sm:$0xff] %v13865_v31  ;;  %17356 = vst [vmem:[#allocation134_spill] sm:$0xff] %v13870_v27  ;;  %v5929_v31 = vrot.slane %v13635_v51, %v17310_v33 }
 0x5e3   :  { %7082 = vrot.lane.b32.xlu1 %v7033_v60, %s9872_s14  ;;  %v13872_v60 = vpop.permute.xlu1 %5696 }
 0x5e4   :  { %17357 = vst [vmem:[#allocation76_spill] sm:$0xff] %v13872_v60 }
 0x5e7   :  { %7086 = vrot.lane.b32.xlu1 %v7041_v10, %s9872_s14  ;;  %v13877_v10 = vpop.permute.xlu0 %5462 }
 0x5e8   :  { %17358 = vst [vmem:[#allocation79_spill] sm:$0xff] %v13877_v10  ;;  %v6797_v10 = vrot.slane %v13723_v46, %v17348_v39 }
 0x5eb   :  { %5710 = vrot.lane.b32.xlu1 %v5669_v2, %s9867_s29  ;;  %v13882_v2 = vpop.permute.xlu1 %5942  ;;  %v13887_v60 = vpop.permute.xlu0 %5466 }
 0x5ec   :  { %17359 = vst [vmem:[#allocation80_spill] sm:$0xff] %v13882_v2  ;;  %17360 = vst [vmem:[#allocation81_spill] sm:$0xff] %v13887_v60  ;;  %v6545_v2 = vrot.slane %v13691_v43, %v17348_v39  ;;  %v6553_v60 = vrot.slane %v13691_v43, %v17310_v33 }
 0x5ef   :  { %5714 = vrot.lane.b32.xlu1 %v5677_v16, %s9867_s29  ;;  %v13889_v16 = vpop.permute.xlu1 %5946 }
 0x5f0   :  { %17361 = vst [vmem:[#allocation18_spill] sm:$0xff] %v13889_v16 }
 0x5f3   :  { %5962 = vrot.lane.b32.xlu1 %v5921_v20, %s9868_s30  ;;  %v13894_v20 = vpop.permute.xlu0 %5690 }
 0x5f7   :  { %5966 = vrot.lane.b32.xlu1 %v5929_v31, %s9868_s30  ;;  %v13899_v31 = vpop.permute.xlu1 %5950  ;;  %v13904_v16 = vpop.permute.xlu0 %5694 }
 0x5f8   :  { %17362 = vst [vmem:[#allocation82_spill] sm:$0xff] %v13899_v31  ;;  %17363 = vst [vmem:[#allocation84_spill] sm:$0xff] %v13904_v16  ;;  %v6805_v31 = vrot.slane %v13723_v46, %v17310_v33  ;;  %v7049_v16 = vrot.slane %v13766_v6, %v17348_v39  ;;  %v5933_v39 = vrot.slane %v13635_v51, %v17312_v28 }
 0x5fb   :  { %6334 = vrot.lane.b32.xlu1 %v6293_v3, %s9869_s21  ;;  %v13906_v3 = vpop.permute.xlu1 %6316 }
 0x5fc   :  { %17364 = vst [vmem:[#allocation85_spill] sm:$0xff] %v13906_v3 }
 0x5ff   :  { %6338 = vrot.lane.b32.xlu1 %v6301_v63, %s9869_s21  ;;  %v13911_v63 = vpop.permute.xlu0 %5698 }
 0x600   :  { %17365 = vst [vmem:[#allocation86_spill] sm:$0xff] %v13911_v63  ;;  %v7057_v63 = vrot.slane %v13766_v6, %v17310_v33  ;;  %v5941_v33 = vrot.slane %v13635_v51, %v17314_v58 }
 0x603   :  { %6586 = vrot.lane.b32.xlu1 %v6545_v2, %s9870_s1  ;;  %v13916_v2 = vpop.permute.xlu1 %6320  ;;  %v13921_v3 = vpop.permute.xlu0 %5944 }
 0x604   :  { %17366 = vst [vmem:[#allocation9_spill] sm:$0xff] %v13916_v2  ;;  %17367 = vst [vmem:[#allocation89_spill] sm:$0xff] %v13921_v3  ;;  %v5685_v2 = vrot.slane %v13608_v61, %v17311_v15 }
 0x607   :  { %6590 = vrot.lane.b32.xlu1 %v6553_v60, %s9870_s1  ;;  %v13923_v60 = vpop.permute.xlu1 %6566 }
 0x608   :  { %17368 = vst [vmem:[#allocation90_spill] sm:$0xff] %v13923_v60 }
 0x60b   :  { %6838 = vrot.lane.b32.xlu1 %v6797_v10, %s9871_s26  ;;  %v13928_v10 = vpop.permute.xlu0 %5948 }
 0x60c   :  { %17369 = vst [vmem:[#allocation91_spill] sm:$0xff] %v13928_v10 }
 0x60f   :  { %6842 = vrot.lane.b32.xlu1 %v6805_v31, %s9871_s26  ;;  %v13933_v31 = vpop.permute.xlu1 %6570  ;;  %v13938_v60 = vpop.permute.xlu0 %6314 }
 0x610   :  { %17370 = vst [vmem:[#allocation92_spill] sm:$0xff] %v13933_v31  ;;  %17371 = vst [vmem:[#allocation108_spill] sm:$0xff] %v13938_v60 }
 0x613   :  { %7090 = vrot.lane.b32.xlu1 %v7049_v16, %s9872_s14  ;;  %v13940_v16 = vpop.permute.xlu1 %6574 }
 0x614   :  { %17372 = vst [vmem:[#allocation78_spill] sm:$0xff] %v13940_v16 }
 0x617   :  { %7094 = vrot.lane.b32.xlu1 %v7057_v63, %s9872_s14  ;;  %v13945_v63 = vpop.permute.xlu0 %6318 }
 0x618   :  { %17373 = vst [vmem:[#allocation94_spill] sm:$0xff] %v13945_v63 }
 0x61b   :  { %5718 = vrot.lane.b32.xlu1 %v5685_v2, %s9867_s29  ;;  %v6309_v2 = vrot.slane %v13659_v14, %v17311_v15 }
 0x61f   :  { %5968 = vrot.lane.b32.xlu1 %v5933_v39, %s9868_s30  ;;  %v13957_v39 = vpop.permute.xlu0 %6322 }
 0x620   :  { %17376 = vst [vmem:[#allocation97_spill] sm:$0xff] %v13957_v39 }
 0x623   :  { %v4999_v10 = vpop.xlane.xlu1 %4998  ;;  %5972 = vrot.lane.b32.xlu1 %v5941_v33, %s9868_s30 }
 0x624   :  { %v5000_v31 = vmul.f32 0.00048828125, %v4999_v10 }
 0x626   :  { %v13951_v3 = vsub.f32 %v13618_v17, %v5000_v31  ;;  %v13954_v60 = vsub.f32 %v13622_v45, %v5000_v31  ;;  %v13960_v16 = vsub.f32 %v13633_v9, %v5000_v31  ;;  %v13967_v10 = vsub.f32 %v13644_v42, %v5000_v31  ;;  %v13969_v17 = vpop.permute.xlu0 %6568 }
 0x627   :  { %6342 = vrot.lane.b32.xlu1 %v6309_v2, %s9869_s21  ;;  %17378 = vst [vmem:[#allocation87_spill] sm:$0xff] %v13969_v17  ;;  %v13972_v45 = vsub.f32 %v13648_v23, %v5000_v31  ;;  %v13977_v9 = vsub.f32 %v13664_v59, %v5000_v31  ;;  %v13989_v27 = vsub.f32 %v13675_v21, %v5000_v31 }
 0x628   :  { %17374 = vst [vmem:[#allocation96_spill] sm:$0xff] %v13951_v3  ;;  %17375 = vst [vmem:[#allocation22_spill] sm:$0xff] %v13954_v60  ;;  %v5017_v33 = vmul.f32 %v13951_v3, %v13951_v3  ;;  %v5018_v63 = vmul.f32 %v13954_v60, %v13954_v60  ;;  %v5019_v2 = vmul.f32 %v13960_v16, %v13960_v16 }
 0x629   :  { %17377 = vst [vmem:[#allocation99_spill] sm:$0xff] %v13967_v10  ;;  %17379 = vst [vmem:[#allocation16_spill] sm:$0xff] %v13972_v45  ;;  %v5020_v3 = vmul.f32 %v13967_v10, %v13967_v10  ;;  %v13982_v60 = vsub.f32 %v13669_v50, %v5000_v31  ;;  %v5021_v42 = vmul.f32 %v13972_v45, %v13972_v45 }
 0x62a   :  { %v5033_v39 = vadd.f32 %v5018_v63, %v5017_v33  ;;  %v13986_v23 = vpop.permute.xlu0 %6572  ;;  %17381 = vst [vmem:[#allocation103_spill] sm:$0xff] %v13989_v27  ;;  %v5022_v59 = vmul.f32 %v13977_v9, %v13977_v9  ;;  %v13994_v33 = vsub.f32 %v13678_v29, %v5000_v31  ;;  %v14006_v45 = vsub.f32 %v13701_v37, %v5000_v31 }
 0x62b   :  { %17380 = vst [vmem:[#allocation102_spill] sm:$0xff] %v13982_v60  ;;  %v5023_v50 = vmul.f32 %v13982_v60, %v13982_v60 }
 0x62c   :  { %v5034_v18 = vadd.f32 %v5033_v39, %v5019_v2  ;;  %17382 = vst [vmem:[#allocation104_spill] sm:$0xff] %v13994_v33  ;;  %v13999_v2 = vsub.f32 %v13696_v32, %v5000_v31  ;;  %17385 = vst [vmem:[#allocation27_spill] sm:$0xff] %v14006_v45  ;;  %v5025_v29 = vmul.f32 %v13994_v33, %v13994_v33 }
 0x62e   :  { %v5035_v17 = vadd.f32 %v5034_v18, %v5020_v3  ;;  %17383 = vst [vmem:[#allocation107_spill] sm:$0xff] %v13999_v2  ;;  %v5024_v18 = vmul.f32 %v13989_v27, %v13989_v27  ;;  %v14003_v21 = vpop.permute.xlu0 %6818  ;;  %v5026_v32 = vmul.f32 %v13999_v2, %v13999_v2 }
 0x62f   :  { %17384 = vst [vmem:[#allocation30_spill] sm:$0xff] %v14003_v21  ;;  %v14023_v21 = vsub.f32 %v13735_v7, %v5000_v31 }
 0x630   :  { %v5036_v63 = vadd.f32 %v5035_v17, %v5021_v42  ;;  %v14011_v42 = vsub.f32 %v13719_v26, %v5000_v31 }
 0x631   :  { %17389 = vst [vmem:[#allocation113_spill] sm:$0xff] %v14023_v21 }
 0x632   :  { %v5037_v39 = vadd.f32 %v5036_v63, %v5022_v59  ;;  %17386 = vst [vmem:[#allocation109_spill] sm:$0xff] %v14011_v42  ;;  %v14016_v63 = vsub.f32 %v13730_v8, %v5000_v31  ;;  %v14020_v37 = vpop.permute.xlu0 %6822  ;;  %v5028_v26 = vmul.f32 %v14011_v42, %v14011_v42 }
 0x633   :  { %17388 = vst [vmem:[#allocation112_spill] sm:$0xff] %v14020_v37 }
 0x634   :  { %v5038_v3 = vadd.f32 %v5037_v39, %v5023_v50  ;;  %17387 = vst [vmem:[#allocation111_spill] sm:$0xff] %v14016_v63  ;;  %v5027_v50 = vmul.f32 %v14006_v45, %v14006_v45  ;;  %v5029_v8 = vmul.f32 %v14016_v63, %v14016_v63 }
 0x636   :  { %v5039_v17 = vadd.f32 %v5038_v3, %v5024_v18  ;;  %v14028_v3 = vsub.f32 %v13743_v57, %v5000_v31  ;;  %v14037_v7 = vpop.permute.xlu0 %6826 }
 0x637   :  { %17392 = vst [vmem:[#allocation118_spill] sm:$0xff] %v14037_v7 }
 0x638   :  { %v5040_v59 = vadd.f32 %v5039_v17, %v5025_v29  ;;  %17390 = vst [vmem:[#allocation116_spill] sm:$0xff] %v14028_v3  ;;  %v14033_v17 = vsub.f32 %v13746_v41, %v5000_v31  ;;  %v5031_v42 = vmul.f32 %v14028_v3, %v14028_v3 }
 0x63a   :  { %v5041_v39 = vadd.f32 %v5040_v59, %v5026_v32  ;;  %17391 = vst [vmem:[#allocation117_spill] sm:$0xff] %v14033_v17  ;;  %v5030_v32 = vmul.f32 %v14023_v21, %v14023_v21  ;;  %v5032_v57 = vmul.f32 %v14033_v17, %v14033_v17  ;;  %v14043_v63 = vpop.permute.xlu0 %7072 }
 0x63b   :  { %17393 = vst [vmem:[#allocation119_spill] sm:$0xff] %v14043_v63 }
 0x63c   :  { %v5042_v18 = vadd.f32 %v5041_v39, %v5027_v50 }
 0x63e   :  { %v5043_v29 = vadd.f32 %v5042_v18, %v5028_v26  ;;  %v14045_v41 = vpop.permute.xlu0 %7076  ;;  %v7053_v18 = vrot.slane %v13766_v6, %v17346_v12 }
 0x63f   :  { %17394 = vst [vmem:[#allocation122_spill] sm:$0xff] %v14045_v41 }
 0x640   :  { %v5044_v59 = vadd.f32 %v5043_v29, %v5029_v8  ;;  %v6557_v8 = vrot.slane %v13691_v43, %v17312_v28 }
 0x642   :  { %v5045_v50 = vadd.f32 %v5044_v59, %v5030_v32  ;;  %v14047_v31 = vpop.permute.xlu0 %5700  ;;  %6592 = vrot.lane.b32.xlu1 %v6557_v8, %s9870_s1  ;;  %v6813_v32 = vrot.slane %v13723_v46, %v17311_v15  ;;  %v5689_v59 = vrot.slane %v13608_v61, %v17314_v58  ;;  %v6313_v8 = vrot.slane %v13659_v14, %v17314_v58 }
 0x644   :  { %v5046_v39 = vadd.f32 %v5045_v50, %v5031_v42  ;;  %v6565_v42 = vrot.slane %v13691_v43, %v17314_v58 }
 0x646   :  { %v5047_v33 = vadd.f32 %v5046_v39, %v5032_v57  ;;  %v14049_v26 = vpop.permute.xlu0 %5704  ;;  %6596 = vrot.lane.b32.xlu1 %v6565_v42, %s9870_s1  ;;  %v5937_v57 = vrot.slane %v13635_v51, %v17311_v15  ;;  %v7065_v39 = vrot.slane %v13766_v6, %v17311_v15  ;;  %v6561_v51 = vrot.slane %v13691_v43, %v17311_v15 }
 0x648   :  { %5048 = vadd.xlane.f32.xlu0 %v5047_v33  ;;  %v5681_v33 = vrot.slane %v13608_v61, %v17312_v28  ;;  %v6305_v61 = vrot.slane %v13659_v14, %v17312_v28  ;;  %v6817_v14 = vrot.slane %v13723_v46, %v17314_v58 }
 0x64a   :  { %v14061_v29 = vpop.permute.xlu0 %5952  ;;  %6846 = vrot.lane.b32.xlu1 %v6813_v32, %s9871_s26  ;;  %v6809_v32 = vrot.slane %v13723_v46, %v17312_v28 }
 0x64e   :  { %v14069_v50 = vpop.permute.xlu0 %5956  ;;  %7098 = vrot.lane.b32.xlu1 %v7065_v39, %s9872_s14  ;;  %v7069_v39 = vrot.slane %v13766_v6, %v17314_v58 }
 0x65e   :  { %7092 = vrot.lane.b32.xlu0 %v7053_v18, %s9872_s14  ;;  %v14078_v18 = vpop.permute.xlu0 %6324 }
 0x662   :  { %5716 = vrot.lane.b32.xlu0 %v5681_v33, %s9867_s29  ;;  %v14086_v42 = vpop.permute.xlu0 %6328 }
 0x666   :  { %5720 = vrot.lane.b32.xlu0 %v5689_v59, %s9867_s29  ;;  %v14091_v33 = vpop.permute.xlu0 %6576 }
 0x667   :  { %17395 = vst [vmem:[#allocation123_spill] sm:$0xff] %v14091_v33 }
 0x66a   :  { %5970 = vrot.lane.b32.xlu0 %v5937_v57, %s9868_s30  ;;  %v14096_v59 = vpop.permute.xlu0 %6580  ;;  %v7061_v57 = vrot.slane %v13766_v6, %v17312_v28 }
 0x66e   :  { %6340 = vrot.lane.b32.xlu0 %v6305_v61, %s9869_s21  ;;  %v14104_v43 = vpop.permute.xlu0 %6828 }
 0x66f   :  { %17396 = vst [vmem:[#allocation23_spill] sm:$0xff] %v14104_v43 }
 0x672   :  { %6344 = vrot.lane.b32.xlu0 %v6313_v8, %s9869_s21  ;;  %v14109_v61 = vpop.permute.xlu0 %6832 }
 0x673   :  { %17397 = vst [vmem:[#allocation124_spill] sm:$0xff] %v14109_v61 }
 0x676   :  { %6594 = vrot.lane.b32.xlu0 %v6561_v51, %s9870_s1  ;;  %v14112_v8 = vpop.permute.xlu0 %7080 }
 0x677   :  { %17398 = vst [vmem:[#allocation126_spill] sm:$0xff] %v14112_v8 }
 0x67a   :  { %6844 = vrot.lane.b32.xlu0 %v6809_v32, %s9871_s26  ;;  %v14114_v51 = vpop.permute.xlu0 %7084 }
 0x67b   :  { %17399 = vst [vmem:[#allocation135_spill] sm:$0xff] %v14114_v51 }
 0x67e   :  { %6848 = vrot.lane.b32.xlu0 %v6817_v14, %s9871_s26  ;;  %v14116_v46 = vpop.permute.xlu0 %5708 }
 0x682   :  { %7096 = vrot.lane.b32.xlu0 %v7061_v57, %s9872_s14  ;;  %v14118_v32 = vpop.permute.xlu0 %5712 }
 0x683   :  { %17400 = vst [vmem:[#allocation17_spill] sm:$0xff] %v14118_v32 }
 0x686   :  { %7100 = vrot.lane.b32.xlu0 %v7069_v39, %s9872_s14  ;;  %v14120_v14 = vpop.permute.xlu0 %5960  ;;  %v14132_v39 = vpop.permute.xlu1 %6820 }
 0x687   :  { %17404 = vst [vmem:[#allocation131_spill] sm:$0xff] %v14132_v39 }
 0x68a   :  { %v14122_v15 = vpop.permute.xlu0 %5964  ;;  %v14136_v51 = vpop.permute.xlu1 %6824 }
 0x68b   :  { %17401 = vst [vmem:[#allocation127_spill] sm:$0xff] %v14122_v15 }
 0x68e   :  { %v14124_v57 = vpop.permute.xlu0 %6332  ;;  %v14140_v41 = vpop.permute.xlu1 %7070 }
 0x68f   :  { %17407 = vst [vmem:[#allocation64_spill] sm:$0xff] %v14140_v41 }
 0x692   :  { %v14126_v28 = vpop.permute.xlu0 %6336  ;;  %v14144_v15 = vpop.permute.xlu1 %7074 }
 0x693   :  { %17402 = vst [vmem:[#allocation128_spill] sm:$0xff] %v14126_v28  ;;  %17409 = vst [vmem:[#allocation137_spill] sm:$0xff] %v14144_v15 }
 0x696   :  { %v14128_v6 = vpop.permute.xlu0 %6584  ;;  %v14148_v17 = vpop.permute.xlu1 %7078 }
 0x697   :  { %17411 = vst [vmem:[#allocation19_spill] sm:$0xff] %v14148_v17 }
 0x69a   :  { %v14130_v58 = vpop.permute.xlu0 %6588  ;;  %v14152_v39 = vpop.permute.xlu1 %5702 }
 0x69b   :  { %17403 = vst [vmem:[#allocation129_spill] sm:$0xff] %v14130_v58 }
 0x69e   :  { %v14134_v12 = vpop.permute.xlu0 %6836  ;;  %v14158_v41 = vpop.permute.xlu1 %5706 }
 0x69f   :  { %17405 = vst [vmem:[#allocation136_spill] sm:$0xff] %v14134_v12 }
 0x6a2   :  { %v14138_v8 = vpop.permute.xlu0 %6840  ;;  %v14162_v15 = vpop.permute.xlu1 %5954 }
 0x6a3   :  { %17406 = vst [vmem:[#allocation63_spill] sm:$0xff] %v14138_v8 }
 0x6a6   :  { %v14142_v63 = vpop.permute.xlu0 %7088 }
 0x6a7   :  { %17408 = vst [vmem:[#allocation7_spill] sm:$0xff] %v14142_v63 }
 0x6d5   :  { %v5049_v32 = vpop.xlane.xlu0 %5048 }
 0x6d6   :  { %v5050_v58 = vmul.f32 0.00048828125, %v5049_v32 }
 0x6d8   :  { %v5052_v12 = vadd.f32 1e-05, %v5050_v58  ;;  %v5051_v58 = vld [vmem:[%s16176_s9] sm:$0xff] }
 0x6d9   :  { %v14146_v28 = vpop.permute.xlu0 %7092 }
 0x6da   :  { %17410 = vst [vmem:[#allocation100_spill] sm:$0xff] %v14146_v28  ;;  %9831 = vrsqrt.f32 %v5052_v12  ;;  %v14171_v12 = vpop.permute.xlu1 %5958 }
 0x6dd   :  { %v14150_v61 = vpop.permute.xlu0 %5716 }
 0x6de   :  { %17412 = vst [vmem:[#allocation139_spill] sm:$0xff] %v14150_v61 }
 0x6e1   :  { %v14154_v3 = vpop.permute.xlu0 %5720 }
 0x6e2   :  { %17413 = vst [vmem:[#allocation140_spill] sm:$0xff] %v14154_v3  ;;  %v14173_v3 = vpop.permute.xlu1 %6326 }
 0x6e4   :  { %v9832_v17 = vpop.eup %9831 }
 0x6e5   :  { %v14156_v8 = vpop.permute.xlu0 %5970 }
 0x6e6   :  { %17414 = vst [vmem:[#allocation142_spill] sm:$0xff] %v14156_v8  ;;  %v5054_v8 = vmul.f32 %v9832_v17, %v5051_v58 }
 0x6e9   :  { %v14160_v63 = vpop.permute.xlu0 %6340 }
 0x6ea   :  { %17415 = vst [vmem:[#allocation143_spill] sm:$0xff] %v14160_v63  ;;  %v14175_v63 = vpop.permute.xlu1 %6330 }
 0x6ed   :  { %v14164_v28 = vpop.permute.xlu0 %6344 }
 0x6ee   :  { %17416 = vst [vmem:[#allocation11_spill] sm:$0xff] %v14164_v28  ;;  %v6394_v32 = vmul.f32 0.0, %v14164_v28  ;;  %v14177_v61 = vpop.permute.xlu1 %6578 }
 0x6f0   :  { %6444 = vrot.lane.b32.xlu0 %v6394_v32, %s9868_s30 }
 0x6f2   :  { %v14179_v21 = vpop.permute.xlu1 %6582 }
 0x6f4   :  { %5057 = vperm.xlu0 %9546, %v5054_v8  }
 0x6f6   :  { %v14181_v28 = vpop.permute.xlu1 %6830 }
 0x6f7   :  { %17417 = vst [vmem:[#allocation145_spill] sm:$0xff] %v14181_v28  ;;  %v14203_v28 = vpop.permute.xlu0 %6594 }
 0x6f8   :  { %17425 = vst [vmem:[#allocation77_spill] sm:$0xff] %v14203_v28  ;;  %v14224_v28 = vmul.f32 0.0, %v13721_v49 }
 0x6fa   :  { %v14183_v43 = vpop.permute.xlu1 %6834 }
 0x6fb   :  { %17418 = vst [vmem:[#allocation146_spill] sm:$0xff] %v14183_v43 }
 0x6fe   :  { %v14185_v27 = vpop.permute.xlu1 %7082 }
 0x6ff   :  { %17419 = vst [vmem:[#allocation147_spill] sm:$0xff] %v14185_v27  ;;  %v14207_v27 = vpop.permute.xlu0 %6844 }
 0x700   :  { %17427 = vst [vmem:[#allocation155_spill] sm:$0xff] %v14207_v27  ;;  %v14229_v27 = vsel %vm2204_vm7, %v13689_v40, %v13739_v1 }
 0x702   :  { %v14187_v45 = vpop.permute.xlu1 %7086 }
 0x703   :  { %17420 = vst [vmem:[#allocation148_spill] sm:$0xff] %v14187_v45 }
 0x706   :  { %v14189_v32 = vpop.permute.xlu1 %5710 }
 0x707   :  { %17421 = vst [vmem:[#allocation150_spill] sm:$0xff] %v14189_v32  ;;  %v14211_v32 = vpop.permute.xlu0 %6848 }
 0x708   :  { %17428 = vst [vmem:[#allocation157_spill] sm:$0xff] %v14211_v32  ;;  %v14236_v32 = vsel %vm2204_vm7, %v13739_v1, %v13713_v30  ;;  %v14258_v1 = vsel %vm2204_vm7, %v13752_v53, %v13764_v38 }
 0x70a   :  { %v14191_v17 = vpop.permute.xlu1 %5714 }
 0x70b   :  { %17422 = vst [vmem:[#allocation151_spill] sm:$0xff] %v14191_v17 }
 0x70e   :  { %v14193_v8 = vpop.permute.xlu1 %5962 }
 0x712   :  { %v14195_v58 = vpop.permute.xlu1 %5966 }
 0x713   :  { %17423 = vst [vmem:[#allocation152_spill] sm:$0xff] %v14195_v58  ;;  %v14216_v58 = vmul.f32 0.0, %v13826_v62 }
 0x716   :  { %v14197_v2 = vpop.permute.xlu1 %6334 }
 0x71a   :  { %v14199_v10 = vpop.permute.xlu1 %6338 }
 0x71b   :  { %17424 = vst [vmem:[#allocation153_spill] sm:$0xff] %v14199_v10  ;;  %v14221_v10 = vsel %vm2204_vm7, %v13721_v49, %v13689_v40  ;;  %v14246_v49 = vsel %vm2204_vm7, %v13750_v48, %v13732_v13  ;;  %v14251_v40 = vsel %vm2204_vm7, %v13732_v13, %v13752_v53  ;;  %v14271_v13 = vsel %vm2204_vm7, %v13754_v19, %v13778_v55 }
 0x71c   :  { %v14281_v53 = vsel %vm2204_vm7, %v13773_v36, %v13802_v44 }
 0x71e   :  { %v14201_v60 = vpop.permute.xlu1 %6586 }
 0x722   :  { %v14205_v43 = vpop.permute.xlu1 %6590 }
 0x723   :  { %17426 = vst [vmem:[#allocation154_spill] sm:$0xff] %v14205_v43  ;;  %v14231_v43 = vpop.permute.xlu0 %7096 }
 0x724   :  { %17430 = vst [vmem:[#allocation158_spill] sm:$0xff] %v14231_v43 }
 0x726   :  { %v14209_v45 = vpop.permute.xlu1 %6838 }
 0x72a   :  { %v14213_v17 = vpop.permute.xlu1 %6842 }
 0x72b   :  { %17429 = vst [vmem:[#allocation34_spill] sm:$0xff] %v14213_v17  ;;  %v14241_v17 = vsel %vm2204_vm7, %v13713_v30, %v13750_v48  ;;  %v14261_v30 = vmul.f32 0.0, %v13894_v20  ;;  %v14266_v48 = vsel %vm2204_vm7, %v13764_v38, %v13754_v19  ;;  %v14286_v38 = vsel %vm2204_vm7, %v13802_v44, %v13784_v11 }
 0x72c   :  { %v14291_v19 = vsel %vm2204_vm7, %v13784_v11, %v13809_v24  ;;  %v14306_v44 = vsel %vm2460_vm2, %v13826_v62, %v13797_v34  ;;  %v14311_v11 = vsel %vm2460_vm2, %v13797_v34, %v13836_v54  ;;  %v14326_v62 = vsel %vm2460_vm2, %v13843_v25, %v13814_v52 }
 0x72d   :  { %17432 = vst [vmem:[#allocation160_spill] sm:$0xff] %v14261_v30  ;;  %v14331_v34 = vsel %vm2460_vm2, %v13814_v52, %v13853_v56 }
 0x72e   :  { %v14253_v43 = vpop.permute.xlu1 %7090  ;;  %17433 = vst [vmem:[#allocation161_spill] sm:$0xff] %v14331_v34  ;;  %v17441_v34 = vld [vmem:[#allocation70_spill] sm:$0xff] }
 0x72f   :  { %17431 = vst [vmem:[#allocation159_spill] sm:$0xff] %v14253_v43  ;;  %v14276_v43 = vsel %vm2204_vm7, %v13778_v55, %v13773_v36  ;;  %v14296_v55 = vsel %vm2204_vm7, %v13809_v24, %v13789_v5  ;;  %v14301_v36 = vsel %vm2204_vm7, %v13789_v5, %v13819_v35  ;;  %v14316_v24 = vsel %vm2460_vm2, %v13836_v54, %v13804_v4  ;;  %v17438_v35 = vld [vmem:[#allocation134_spill] sm:$0xff] }
 0x730   :  { %v14321_v5 = vsel %vm2460_vm2, %v13804_v4, %v13843_v25  ;;  %v14338_v54 = vsel %vm2460_vm2, %v13853_v56, %v13821_v22  ;;  %v14343_v4 = vsel %vm2460_vm2, %v13821_v22, %v13860_v47  ;;  %v14348_v25 = vsel %vm2460_vm2, %v13860_v47, %v13831_v0 }
 0x731   :  { %17435 = vst [vmem:[#allocation165_spill] sm:$0xff] %v14338_v54  ;;  %17436 = vst [vmem:[#allocation166_spill] sm:$0xff] %v14343_v4  ;;  %v14353_v52 = vsel %vm2460_vm2, %v13831_v0, %v17438_v35  ;;  %v14360_v56 = vsel %vm2460_vm2, %v17438_v35, %v17441_v34  ;;  %v17443_v54 = vld [vmem:[#allocation79_spill] sm:$0xff] }
 0x732   :  { %v14333_v30 = vpop.permute.xlu1 %7094  ;;  %17437 = vst [vmem:[#allocation168_spill] sm:$0xff] %v14348_v25  ;;  %17439 = vst [vmem:[#allocation13_spill] sm:$0xff] %v14353_v52  ;;  %v14365_v22 = vsel %vm2460_vm2, %v17441_v34, %v17443_v54  ;;  %v17445_v4 = vld [vmem:[#allocation71_spill] sm:$0xff]  ;;  %v17447_v25 = vld [vmem:[#allocation81_spill] sm:$0xff] }
 0x733   :  { %17434 = vst [vmem:[#allocation93_spill] sm:$0xff] %v14333_v30  ;;  %v14355_v30 = vpop.permute.xlu0 %7100  ;;  %17442 = vst [vmem:[#allocation171_spill] sm:$0xff] %v14360_v56  ;;  %v14370_v47 = vsel %vm2460_vm2, %v17443_v54, %v17445_v4  ;;  %v14375_v0 = vsel %vm2460_vm2, %v17445_v4, %v17447_v25  ;;  %v17451_v56 = vld [vmem:[#allocation56_spill] sm:$0xff] }
 0x734   :  { %17440 = vst [vmem:[#allocation170_spill] sm:$0xff] %v14355_v30  ;;  %17444 = vst [vmem:[#allocation172_spill] sm:$0xff] %v14365_v22  ;;  %v17449_v30 = vld [vmem:[#allocation24_spill] sm:$0xff]  ;;  %v14385_v34 = vsel %vm2716_vm3, %v13894_v20, %v17451_v56 }
 0x735   :  { %17446 = vst [vmem:[#allocation175_spill] sm:$0xff] %v14370_v47  ;;  %17448 = vst [vmem:[#allocation176_spill] sm:$0xff] %v14375_v0  ;;  %v14380_v35 = vsel %vm2460_vm2, %v17447_v25, %v17449_v30  ;;  %v17453_v52 = vld [vmem:[#allocation84_spill] sm:$0xff]  ;;  %v17457_v0 = vld [vmem:[#allocation86_spill] sm:$0xff] }
 0x736   :  { %17450 = vst [vmem:[#allocation177_spill] sm:$0xff] %v14380_v35  ;;  %17452 = vst [vmem:[#allocation178_spill] sm:$0xff] %v14385_v34  ;;  %v14390_v54 = vsel %vm2716_vm3, %v17451_v56, %v17453_v52  ;;  %v17455_v47 = vld [vmem:[#allocation76_spill] sm:$0xff]  ;;  %v17459_v30 = vld [vmem:[#allocation89_spill] sm:$0xff] }
 0x737   :  { %17454 = vst [vmem:[#allocation66_spill] sm:$0xff] %v14390_v54  ;;  %v14395_v4 = vsel %vm2716_vm3, %v17453_v52, %v17455_v47  ;;  %v14400_v25 = vsel %vm2716_vm3, %v17455_v47, %v17457_v0  ;;  %v17460_v35 = vld [vmem:[#allocation80_spill] sm:$0xff]  ;;  %v17462_v34 = vld [vmem:[#allocation18_spill] sm:$0xff]  ;;  %v17464_v54 = vld [vmem:[#allocation91_spill] sm:$0xff]  ;;  %v14420_v47 = vsel %vm2716_vm3, %v17457_v0, %v14047_v31 }
 0x738   :  { %17456 = vst [vmem:[#allocation180_spill] sm:$0xff] %v14395_v4  ;;  %17458 = vst [vmem:[#allocation181_spill] sm:$0xff] %v14400_v25  ;;  %v14405_v20 = vsel %vm2972_vm4, %v17460_v35, %v17459_v30  ;;  %v14410_v56 = vsel %vm2972_vm4, %v17459_v30, %v17462_v34  ;;  %v14415_v52 = vsel %vm2972_vm4, %v17462_v34, %v17464_v54  ;;  %v17466_v25 = vld [vmem:[#allocation82_spill] sm:$0xff]  ;;  %v17469_v22 = vld [vmem:[#allocation108_spill] sm:$0xff] }
 0x739   :  { %17461 = vst [vmem:[#allocation182_spill] sm:$0xff] %v14405_v20  ;;  %17463 = vst [vmem:[#allocation184_spill] sm:$0xff] %v14410_v56  ;;  %v14425_v4 = vsel %vm2972_vm4, %v17464_v54, %v17466_v25  ;;  %v17468_v20 = vld [vmem:[#allocation85_spill] sm:$0xff]  ;;  %v17471_v56 = vld [vmem:[#allocation94_spill] sm:$0xff]  ;;  %v14440_v0 = vsel %vm2972_vm4, %v17466_v25, %v14061_v29 }
 0x73a   :  { %17465 = vst [vmem:[#allocation186_spill] sm:$0xff] %v14420_v47  ;;  %17467 = vst [vmem:[#allocation187_spill] sm:$0xff] %v14425_v4  ;;  %v14430_v30 = vsel %vm3073_vm5, %v17469_v22, %v17468_v20  ;;  %v14435_v34 = vsel %vm3073_vm5, %v17468_v20, %v17471_v56  ;;  %v17474_v47 = vld [vmem:[#allocation9_spill] sm:$0xff]  ;;  %v17478_v25 = vld [vmem:[#allocation92_spill] sm:$0xff] }
 0x73b   :  { %17470 = vst [vmem:[#allocation188_spill] sm:$0xff] %v14430_v30  ;;  %17472 = vst [vmem:[#allocation189_spill] sm:$0xff] %v14435_v34  ;;  %v14445_v54 = vsel %vm3073_vm5, %v17471_v56, %v17474_v47  ;;  %v17475_v4 = vld [vmem:[#allocation97_spill] sm:$0xff]  ;;  %v14457_v34 = vpop.permute.xlu1 %5718  ;;  %v14462_v30 = vsel %vm2817_vm8, %v17478_v25, %v13986_v23  ;;  %v14484_v25 = vsel %vm2716_vm3, %v14047_v31, %v14152_v39 }
 0x73c   :  { %17473 = vst [vmem:[#allocation192_spill] sm:$0xff] %v14440_v0  ;;  %v14450_v22 = vsel %vm3073_vm5, %v17474_v47, %v17475_v4  ;;  %v14455_v20 = vsel %vm3073_vm5, %v17475_v4, %v14078_v18  ;;  %17479 = vst [vmem:[#allocation195_spill] sm:$0xff] %v14462_v30  ;;  %v17480_v0 = vld [vmem:[#allocation78_spill] sm:$0xff]  ;;  %v14472_v47 = vsel %vm2561_vm9, %v14020_v37, %v14136_v51  ;;  %v17500_v30 = vld [vmem:[#allocation99_spill] sm:$0xff] }
 0x73d   :  { %17476 = vst [vmem:[#allocation193_spill] sm:$0xff] %v14450_v22  ;;  %17477 = vst [vmem:[#allocation194_spill] sm:$0xff] %v14455_v20  ;;  %v14467_v56 = vsel %vm2817_vm8, %v13986_v23, %v17480_v0  ;;  %v14477_v4 = vsel %vm2561_vm9, %v14136_v51, %v14037_v7  ;;  %v14489_v23 = vsel %vm2716_vm3, %v14152_v39, %v14049_v26 }
 0x73e   :  { %17481 = vst [vmem:[#allocation197_spill] sm:$0xff] %v14467_v56  ;;  %17482 = vst [vmem:[#allocation198_spill] sm:$0xff] %v14472_v47  ;;  %v14494_v0 = vsel %vm2716_vm3, %v14049_v26, %v14158_v41  ;;  %v14499_v51 = vsel %vm2716_vm3, %v14158_v41, %v14116_v46  ;;  %v14504_v31 = vsel %vm2972_vm4, %v14061_v29, %v14162_v15  ;;  %v17499_v56 = vld [vmem:[#allocation102_spill] sm:$0xff] }
 0x73f   :  { %17483 = vst [vmem:[#allocation199_spill] sm:$0xff] %v14477_v4  ;;  %17485 = vst [vmem:[#allocation20_spill] sm:$0xff] %v14494_v0  ;;  %v14509_v39 = vsel %vm2972_vm4, %v14162_v15, %v14069_v50  ;;  %v14514_v26 = vsel %vm2972_vm4, %v14069_v50, %v14171_v12  ;;  %v14519_v41 = vsel %vm2972_vm4, %v14171_v12, %v14120_v14  ;;  %v14563_v37 = vpop.permute.xlu1 %5968  ;;  %v17498_v4 = vld [vmem:[#allocation96_spill] sm:$0xff] }
 0x740   :  { %17486 = vst [vmem:[#allocation25_spill] sm:$0xff] %v14499_v51  ;;  %17487 = vst [vmem:[#allocation38_spill] sm:$0xff] %v14514_v26  ;;  %v14524_v29 = vsel %vm3073_vm5, %v14078_v18, %v14173_v3  ;;  %v14529_v15 = vsel %vm3073_vm5, %v14173_v3, %v14086_v42  ;;  %v14534_v50 = vsel %vm3073_vm5, %v14086_v42, %v14175_v63  ;;  %v17504_v51 = vld [vmem:[#allocation27_spill] sm:$0xff] }
 0x741   :  { %17488 = vst [vmem:[#allocation26_spill] sm:$0xff] %v14519_v41  ;;  %17489 = vst [vmem:[#allocation47_spill] sm:$0xff] %v14524_v29  ;;  %v14539_v12 = vsel %vm3073_vm5, %v14175_v63, %v14124_v57  ;;  %v14544_v18 = vsel %vm2817_vm8, %v14091_v33, %v14177_v61  ;;  %v14549_v3 = vsel %vm2817_vm8, %v14177_v61, %v14096_v59  ;;  %v17497_v33 = vld [vmem:[#allocation22_spill] sm:$0xff]  ;;  %v17503_v41 = vld [vmem:[#allocation68_spill] sm:$0xff] }
 0x742   :  { %17490 = vst [vmem:[#allocation204_spill] sm:$0xff] %v14529_v15  ;;  %17491 = vst [vmem:[#allocation205_spill] sm:$0xff] %v14534_v50  ;;  %v14554_v42 = vsel %vm2817_vm8, %v14096_v59, %v14179_v21  ;;  %v14559_v63 = vsel %vm2817_vm8, %v14179_v21, %v14128_v6  ;;  %v17502_v50 = vld [vmem:[#allocation107_spill] sm:$0xff]  ;;  %v17512_v29 = vld [vmem:[#allocation104_spill] sm:$0xff] }
 0x743   :  { %17492 = vst [vmem:[#allocation28_spill] sm:$0xff] %v14539_v12  ;;  %17493 = vst [vmem:[#allocation53_spill] sm:$0xff] %v14544_v18  ;;  %v17510_v18 = vld [vmem:[#allocation23_spill] sm:$0xff] }
 0x744   :  { %17494 = vst [vmem:[#allocation36_spill] sm:$0xff] %v14549_v3  ;;  %17495 = vst [vmem:[#allocation74_spill] sm:$0xff] %v14554_v42  ;;  %v17501_v42 = vld [vmem:[#allocation16_spill] sm:$0xff] }
 0x745   :  { %17496 = vst [vmem:[#allocation15_spill] sm:$0xff] %v14559_v63 }
 0x762   :  { %v14479_v20 = vpop.permute.xlu0 %6444 }
 0x763   :  { %17484 = vst [vmem:[#allocation201_spill] sm:$0xff] %v14479_v20 }
 0x773   :  { %v14561_v20 = vpop.permute.xlu0 %5057 }
 0x774   :  { %v5061_v7 = vmul.f32 %v14561_v20, %v17497_v33  ;;  %v5062_v61 = vmul.f32 %v14561_v20, %v13960_v16  ;;  %v5060_v47 = vmul.f32 %v14561_v20, %v17498_v4  ;;  %v5065_v59 = vmul.f32 %v14561_v20, %v13977_v9 }
 0x775   :  { %v5066_v21 = vmul.f32 %v14561_v20, %v17499_v56  ;;  %v5063_v63 = vmul.f32 %v14561_v20, %v17500_v30  ;;  %v5064_v12 = vmul.f32 %v14561_v20, %v17501_v42  ;;  %v5069_v33 = vmul.f32 %v14561_v20, %v17502_v50 }
 0x776   :  { %v5083_v16 = vadd.f32 %v17503_v41, %v5061_v7  ;;  %v5084_v22 = vadd.f32 %v17503_v41, %v5062_v61  ;;  %v5082_v4 = vadd.f32 %v17503_v41, %v5060_v47  ;;  %v5087_v9 = vadd.f32 %v17503_v41, %v5065_v59 }
 0x777   :  { %v5088_v26 = vadd.f32 %v17503_v41, %v5066_v21  ;;  %v5085_v56 = vadd.f32 %v17503_v41, %v5063_v63  ;;  %v5086_v30 = vadd.f32 %v17503_v41, %v5064_v12  ;;  %v5070_v42 = vmul.f32 %v14561_v20, %v17504_v51  ;;  %v14605_v12 = vpop.permute.xlu1 %5972 }
 0x778   :  { %v14590_v0 = vmax.f32 %v5083_v16, 0.0  ;;  %v14592_v50 = vmax.f32 %v5084_v22, 0.0  ;;  %v14594_v7 = vmax.f32 %v5082_v4, 0.0  ;;  %v14596_v61 = vmax.f32 %v5087_v9, 0.0  ;;  %17506 = vst [vmem:[#allocation75_spill] sm:$0xff] %v14605_v12 }
 0x779   :  { %v14598_v47 = vmax.f32 %v5088_v26, 0.0  ;;  %v14600_v59 = vmax.f32 %v5085_v56, 0.0  ;;  %v14602_v21 = vmax.f32 %v5086_v30, 0.0  ;;  %v5091_v63 = vadd.f32 %v17503_v41, %v5069_v33 }
 0x77a   :  { %17505 = vst [vmem:[#allocation46_spill] sm:$0xff] %v14592_v50  ;;  %v5252_v51 = vmul.f32 %v14229_v27, %v14590_v0  ;;  %v5253_v22 = vmul.f32 %v14236_v32, %v14592_v50  ;;  %v5251_v16 = vmul.f32 %v14221_v10, %v14594_v7  ;;  %v5256_v26 = vmul.f32 %v14251_v40, %v14596_v61  ;;  %v17508_v10 = vld [vmem:[#allocation103_spill] sm:$0xff]  ;;  %v17509_v40 = vld [vmem:[#allocation145_spill] sm:$0xff] }
 0x77b   :  { %v5257_v4 = vmul.f32 %v14258_v1, %v14598_v47  ;;  %v5254_v33 = vmul.f32 %v14241_v17, %v14600_v59  ;;  %v5255_v9 = vmul.f32 %v14246_v49, %v14602_v21  ;;  %v5092_v27 = vadd.f32 %v17503_v41, %v5070_v42 }
 0x77c   :  { %v9552_v56 = vpack.i.bf16 %v5253_v22, %v5252_v51  ;;  %v9547_v32 = vpack.i.bf16 %v5251_v16, %v14224_v28  ;;  %v14623_v30 = vmax.f32 %v5091_v63, 0.0  ;;  %v5067_v3 = vmul.f32 %v14561_v20, %v17508_v10  ;;  %v17513_v51 = vld [vmem:[#allocation113_spill] sm:$0xff]  ;;  %v17517_v10 = vld [vmem:[#allocation124_spill] sm:$0xff] }
 0x77d   :  { %v14630_v1 = vsel %vm2561_vm9, %v17510_v18, %v17509_v40  ;;  %v9562_v15 = vpack.i.bf16 %v5257_v4, %v5256_v26  ;;  %v14632_v17 = vmax.f32 %v5092_v27, 0.0  ;;  %v5068_v49 = vmul.f32 %v14561_v20, %v17512_v29  ;;  %v17514_v4 = vld [vmem:[#allocation116_spill] sm:$0xff]  ;;  %v17518_v18 = vld [vmem:[#allocation146_spill] sm:$0xff] }
 0x77e   :  { %17507 = vst [vmem:[#allocation120_spill] sm:$0xff] %v14623_v30  ;;  %v14637_v42 = vmul.f32 0.0, %v17460_v35  ;;  %9553 = vrot.lane.b32.xlu0 %v9552_v56, %s9872_s14  ;;  %9548 = vrot.lane.b32.xlu1 %v9547_v32, %s9872_s14  ;;  %v9557_v28 = vpack.i.bf16 %v5255_v9, %v5254_v33  ;;  %v5089_v63 = vadd.f32 %v17503_v41, %v5067_v3  ;;  %v17515_v35 = vld [vmem:[#allocation109_spill] sm:$0xff]  ;;  %v14651_v56 = vpop.permute.xlu1 %6342  ;;  %v17516_v32 = vld [vmem:[#allocation111_spill] sm:$0xff] }
 0x77f   :  { %17511 = vst [vmem:[#allocation115_spill] sm:$0xff] %v14632_v17  ;;  %v5073_v22 = vmul.f32 %v14561_v20, %v17513_v51  ;;  %v5260_v16 = vmul.f32 %v14276_v43, %v14623_v30  ;;  %v5090_v26 = vadd.f32 %v17503_v41, %v5068_v49  ;;  %v5074_v29 = vmul.f32 %v14561_v20, %v17514_v4 }
 0x780   :  { %v5071_v27 = vmul.f32 %v14561_v20, %v17515_v35  ;;  %v5261_v33 = vmul.f32 %v14281_v53, %v14632_v17  ;;  %v14655_v3 = vmax.f32 %v5089_v63, 0.0  ;;  %v5072_v43 = vmul.f32 %v14561_v20, %v17516_v32  ;;  %v17523_v32 = vld [vmem:[#allocation117_spill] sm:$0xff] }
 0x781   :  { %v5095_v9 = vadd.f32 %v17503_v41, %v5073_v22  ;;  %v14663_v49 = vsel %vm2561_vm9, %v17509_v40, %v17517_v10  ;;  %v14665_v51 = vmax.f32 %v5090_v26, 0.0  ;;  %v5096_v4 = vadd.f32 %v17503_v41, %v5074_v29 }
 0x782   :  { %v5093_v35 = vadd.f32 %v17503_v41, %v5071_v27  ;;  %v14672_v53 = vsel %vm2561_vm9, %v17517_v10, %v17518_v18  ;;  %9563 = vrot.lane.b32.xlu0 %v9562_v15, %s9872_s14  ;;  %9558 = vrot.lane.b32.xlu1 %v9557_v28, %s9872_s14  ;;  %v5258_v63 = vmul.f32 %v14266_v48, %v14655_v3  ;;  %v17524_v15 = vld [vmem:[#allocation136_spill] sm:$0xff]  ;;  %v6593_v48 = vpop.permute.xlu1 %6592 }
 0x783   :  { %17519 = vst [vmem:[#allocation121_spill] sm:$0xff] %v14672_v53  ;;  %v14678_v40 = vmax.f32 %v5095_v9, 0.0  ;;  %v5094_v22 = vadd.f32 %v17503_v41, %v5072_v43  ;;  %v5259_v26 = vmul.f32 %v14271_v13, %v14665_v51  ;;  %v14683_v29 = vmax.f32 %v5096_v4, 0.0 }
 0x784   :  { %v14685_v27 = vmax.f32 %v5093_v35, 0.0  ;;  %v5075_v10 = vmul.f32 %v14561_v20, %v17523_v32  ;;  %v14692_v28 = vsel %vm2561_vm9, %v17518_v18, %v17524_v15  ;;  %v9572_v9 = vpack.i.bf16 %v5261_v33, %v5260_v16  ;;  %v17526_v32 = vld [vmem:[#allocation150_spill] sm:$0xff]  ;;  %v17527_v16 = vld [vmem:[#allocation17_spill] sm:$0xff]  ;;  %v17528_v33 = vld [vmem:[#allocation151_spill] sm:$0xff] }
 0x785   :  { %17520 = vst [vmem:[#allocation8_spill] sm:$0xff] %v14678_v40  ;;  %17521 = vst [vmem:[#allocation114_spill] sm:$0xff] %v14683_v29  ;;  %v5264_v43 = vmul.f32 %v14296_v55, %v14678_v40  ;;  %v14696_v53 = vmax.f32 %v5094_v22, 0.0  ;;  %v9567_v13 = vpack.i.bf16 %v5259_v26, %v5258_v63  ;;  %v5265_v4 = vmul.f32 %v14301_v36, %v14683_v29  ;;  %v17529_v36 = vld [vmem:[#allocation127_spill] sm:$0xff]  ;;  %v17530_v22 = vld [vmem:[#allocation152_spill] sm:$0xff] }
 0x786   :  { %17522 = vst [vmem:[#allocation125_spill] sm:$0xff] %v14685_v27  ;;  %v5262_v35 = vmul.f32 %v14286_v38, %v14685_v27  ;;  %v5097_v20 = vadd.f32 %v17503_v41, %v5075_v10  ;;  %v14706_v18 = vsel %vm2716_vm3, %v14116_v46, %v17526_v32  ;;  %v14711_v55 = vsel %vm2716_vm3, %v17526_v32, %v17527_v16 }
 0x787   :  { %17525 = vst [vmem:[#allocation10_spill] sm:$0xff] %v14696_v53  ;;  %v14716_v63 = vsel %vm2716_vm3, %v17527_v16, %v17528_v33  ;;  %9573 = vrot.lane.b32.xlu0 %v9572_v9, %s9872_s14  ;;  %v5263_v38 = vmul.f32 %v14291_v19, %v14696_v53  ;;  %v14724_v46 = vsel %vm2972_vm4, %v14120_v14, %v14193_v8  ;;  %v17532_v19 = vld [vmem:[#allocation128_spill] sm:$0xff]  ;;  %v17533_v9 = vld [vmem:[#allocation153_spill] sm:$0xff] }
 0x788   :  { %v14729_v41 = vsel %vm2972_vm4, %v14193_v8, %v17529_v36  ;;  %v14734_v26 = vsel %vm2972_vm4, %v17529_v36, %v17530_v22  ;;  %v14739_v10 = vsel %vm3073_vm5, %v14124_v57, %v14197_v2  ;;  %9568 = vrot.lane.b32.xlu1 %v9567_v13, %s9872_s14  ;;  %v14745_v14 = vsel %vm3073_vm5, %v14197_v2, %v17532_v19  ;;  %v17534_v13 = vld [vmem:[#allocation129_spill] sm:$0xff] }
 0x789   :  { %17531 = vst [vmem:[#allocation138_spill] sm:$0xff] %v14734_v26  ;;  %v14750_v8 = vsel %vm3073_vm5, %v17532_v19, %v17533_v9  ;;  %v9582_v32 = vpack.i.bf16 %v5265_v4, %v5264_v43  ;;  %v5503_v16 = vmul.f32 %v14306_v44, %v14594_v7  ;;  %v14757_v57 = vsel %vm2817_vm8, %v14128_v6, %v14201_v60  ;;  %v17536_v4 = vld [vmem:[#allocation63_spill] sm:$0xff] }
 0x78a   :  { %v14762_v36 = vsel %vm2817_vm8, %v14201_v60, %v17534_v13  ;;  %v9577_v2 = vpack.i.bf16 %v5263_v38, %v5262_v35  ;;  %v14764_v26 = vmax.f32 %v5097_v20, 0.0  ;;  %v14769_v43 = vsel %vm2561_vm9, %v17524_v15, %v14209_v45  ;;  %v17537_v60 = vld [vmem:[#allocation154_spill] sm:$0xff]  ;;  %v14785_v20 = vpop.permute.xlu1 %6596  ;;  %v17540_v19 = vld [vmem:[#allocation139_spill] sm:$0xff] }
 0x78b   :  { %v14774_v44 = vsel %vm2561_vm9, %v14209_v45, %v17536_v4  ;;  %v14779_v6 = vsel %vm2972_vm4, %v17530_v22, %v14563_v37  ;;  %v14783_v35 = vsel %vm2817_vm8, %v17537_v60, %v6593_v48  ;;  %17539 = vst [vmem:[#allocation95_spill] sm:$0xff] %v14785_v20  ;;  %9583 = vrot.lane.b32.xlu0 %v9582_v32, %s9872_s14  ;;  %v17547_v13 = vld [vmem:[#allocation143_spill] sm:$0xff]  ;;  %v17555_v60 = vld [vmem:[#allocation166_spill] sm:$0xff] }
 0x78c   :  { %17535 = vst [vmem:[#allocation73_spill] sm:$0xff] %v14764_v26  ;;  %17538 = vst [vmem:[#allocation144_spill] sm:$0xff] %v14783_v35  ;;  %9578 = vrot.lane.b32.xlu1 %v9577_v2, %s9872_s14  ;;  %v5506_v15 = vmul.f32 %v14321_v5, %v14600_v59  ;;  %v5507_v45 = vmul.f32 %v14326_v62, %v14602_v21  ;;  %v5504_v38 = vmul.f32 %v14311_v11, %v14590_v0  ;;  %v17542_v5 = vld [vmem:[#allocation140_spill] sm:$0xff]  ;;  %v17544_v2 = vld [vmem:[#allocation142_spill] sm:$0xff] }
 0x78d   :  { %v5505_v22 = vmul.f32 %v14316_v24, %v14592_v50  ;;  %v14800_v4 = vsel %vm2716_vm3, %v17528_v33, %v17540_v19  ;;  %v14805_v32 = vsel %vm2716_vm3, %v17540_v19, %v14457_v34  ;;  %v14810_v62 = vsel %vm2716_vm3, %v14457_v34, %v17542_v5  ;;  %v17548_v34 = vld [vmem:[#allocation69_spill] sm:$0xff] }
 0x78e   :  { %17541 = vst [vmem:[#allocation83_spill] sm:$0xff] %v14805_v32  ;;  %17543 = vst [vmem:[#allocation141_spill] sm:$0xff] %v14810_v62  ;;  %v9587_v11 = vpack.i.bf16 %v5503_v16, %v14216_v58  ;;  %v14816_v24 = vsel %vm2972_vm4, %v14563_v37, %v17544_v2  ;;  %v14821_v33 = vsel %vm2972_vm4, %v17544_v2, %v14605_v12  ;;  %v17550_v37 = vld [vmem:[#allocation11_spill] sm:$0xff]  ;;  %v17552_v2 = vld [vmem:[#allocation77_spill] sm:$0xff] }
 0x78f   :  { %17545 = vst [vmem:[#allocation106_spill] sm:$0xff] %v14816_v24  ;;  %17546 = vst [vmem:[#allocation88_spill] sm:$0xff] %v14821_v33  ;;  %v14826_v19 = vsel %vm3073_vm5, %v17533_v9, %v17547_v13  ;;  %v5266_v5 = vmul.f32 %v17548_v34, %v14764_v26  ;;  %v14833_v58 = vsel %vm3073_vm5, %v17547_v13, %v14651_v56  ;;  %v17566_v62 = vld [vmem:[#allocation177_spill] sm:$0xff] }
 0x790   :  { %17549 = vst [vmem:[#allocation149_spill] sm:$0xff] %v14833_v58  ;;  %v14838_v16 = vsel %vm3073_vm5, %v14651_v56, %v17550_v37  ;;  %v14842_v12 = vsel %vm2817_vm8, %v6593_v48, %v17552_v2  ;;  %v14847_v9 = vsel %vm2817_vm8, %v17552_v2, %v14785_v20  ;;  %9588 = vrot.lane.b32.xlu0 %v9587_v11, %s9871_s26  ;;  %v17556_v56 = vld [vmem:[#allocation168_spill] sm:$0xff]  ;;  %v17557_v48 = vld [vmem:[#allocation161_spill] sm:$0xff] }
 0x791   :  { %17551 = vst [vmem:[#allocation156_spill] sm:$0xff] %v14838_v16  ;;  %17553 = vst [vmem:[#allocation173_spill] sm:$0xff] %v14842_v12  ;;  %5316 = vrot.lane.b32.xlu1 %v5266_v5, %s9872_s14  ;;  %v9597_v13 = vpack.i.bf16 %v5507_v45, %v5506_v15  ;;  %v9592_v34 = vpack.i.bf16 %v5505_v22, %v5504_v38  ;;  %v5510_v35 = vmul.f32 %v17555_v60, %v14655_v3  ;;  %v6847_v16 = vpop.permute.xlu1 %6846  ;;  %v17558_v58 = vld [vmem:[#allocation165_spill] sm:$0xff]  ;;  %v17559_v20 = vld [vmem:[#allocation172_spill] sm:$0xff] }
 0x792   :  { %17554 = vst [vmem:[#allocation163_spill] sm:$0xff] %v14847_v9  ;;  %v5511_v37 = vmul.f32 %v17556_v56, %v14665_v51  ;;  %v5508_v12 = vmul.f32 %v17557_v48, %v14596_v61  ;;  %v5509_v2 = vmul.f32 %v17558_v58, %v14598_v47  ;;  %v5514_v11 = vmul.f32 %v17559_v20, %v14685_v27  ;;  %v17560_v5 = vld [vmem:[#allocation175_spill] sm:$0xff]  ;;  %v17561_v45 = vld [vmem:[#allocation13_spill] sm:$0xff]  ;;  %v17563_v56 = vld [vmem:[#allocation180_spill] sm:$0xff] }
 0x793   :  { %v5515_v15 = vmul.f32 %v17560_v5, %v14696_v53  ;;  %v5512_v38 = vmul.f32 %v17561_v45, %v14623_v30  ;;  %v17562_v60 = vld [vmem:[#allocation171_spill] sm:$0xff]  ;;  %v5757_v33 = vmul.f32 %v17563_v56, %v14592_v50  ;;  %v17564_v48 = vld [vmem:[#allocation181_spill] sm:$0xff]  ;;  %v17565_v58 = vld [vmem:[#allocation176_spill] sm:$0xff]  ;;  %v5517_v5 = vmul.f32 %v17566_v62, %v14683_v29 }
 0x794   :  { %v5513_v22 = vmul.f32 %v17562_v60, %v14632_v17  ;;  %v5758_v24 = vmul.f32 %v17564_v48, %v14600_v59  ;;  %9598 = vrot.lane.b32.xlu0 %v9597_v13, %s9871_s26  ;;  %v5516_v20 = vmul.f32 %v17565_v58, %v14678_v40  ;;  %v14878_v45 = vmul.f32 %v14415_v52, %v14592_v50  ;;  %v17567_v60 = vld [vmem:[#allocation187_spill] sm:$0xff]  ;;  %v17569_v9 = vld [vmem:[#allocation34_spill] sm:$0xff]  ;;  %v17572_v58 = vld [vmem:[#allocation157_spill] sm:$0xff] }
 0x795   :  { %v14882_v32 = vmul.f32 %v17567_v60, %v14600_v59  ;;  %v17568_v56 = vld [vmem:[#allocation155_spill] sm:$0xff]  ;;  %v14895_v62 = vsel %vm2561_vm9, %v6847_v16, %v17572_v58  ;;  %v14898_v52 = vmul.f32 0.0, %v17572_v58  ;;  %9593 = vrot.lane.b32.xlu1 %v9592_v34, %s9871_s26  ;;  %v17575_v60 = vld [vmem:[#allocation158_spill] sm:$0xff]  ;;  %v17576_v29 = vld [vmem:[#allocation93_spill] sm:$0xff] }
 0x796   :  { %v14887_v48 = vsel %vm2561_vm9, %v17569_v9, %v17568_v56  ;;  %v14891_v13 = vsel %vm2561_vm9, %v17568_v56, %v6847_v16  ;;  %17573 = vst [vmem:[#allocation169_spill] sm:$0xff] %v14895_v62  ;;  %v14904_v26 = vsel %vm2305_vm6, %v17576_v29, %v17575_v60  ;;  %v9607_v9 = vpack.i.bf16 %v5511_v37, %v5510_v35  ;;  %v17579_v56 = vld [vmem:[#allocation66_spill] sm:$0xff] }
 0x797   :  { %17570 = vst [vmem:[#allocation12_spill] sm:$0xff] %v14887_v48  ;;  %17571 = vst [vmem:[#allocation190_spill] sm:$0xff] %v14891_v13  ;;  %v17578_v48 = vld [vmem:[#allocation178_spill] sm:$0xff]  ;;  %v14912_v13 = vmul.f32 %v17579_v56, %v14590_v0  ;;  %v9602_v16 = vpack.i.bf16 %v5509_v2, %v5508_v12  ;;  %v9617_v62 = vpack.i.bf16 %v5515_v15, %v5514_v11  ;;  %v17582_v11 = vld [vmem:[#allocation184_spill] sm:$0xff] }
 0x798   :  { %17574 = vst [vmem:[#allocation200_spill] sm:$0xff] %v14898_v52  ;;  %17577 = vst [vmem:[#allocation174_spill] sm:$0xff] %v14904_v26  ;;  %v14908_v50 = vmul.f32 %v17578_v48, %v14594_v7  ;;  %v9612_v58 = vpack.i.bf16 %v5513_v22, %v5512_v38  ;;  %v17580_v52 = vld [vmem:[#allocation192_spill] sm:$0xff]  ;;  %9608 = vrot.lane.b32.xlu0 %v9607_v9, %s9871_s26  ;;  %v9632_v29 = vpack.i.bf16 %v5758_v24, %v5757_v33  ;;  %v17581_v12 = vld [vmem:[#allocation182_spill] sm:$0xff] }
 0x799   :  { %v14916_v34 = vmul.f32 %v17580_v52, %v14602_v21  ;;  %v9622_v26 = vpack.i.bf16 %v5517_v5, %v5516_v20  ;;  %v9642_v35 = vpack.i.bf16 %v14882_v32, %v14878_v45  ;;  %v14923_v37 = vmul.f32 %v14484_v25, %v14596_v61  ;;  %9603 = vrot.lane.b32.xlu1 %v9602_v16, %s9871_s26  ;;  %v17583_v38 = vld [vmem:[#allocation47_spill] sm:$0xff]  ;;  %v17586_v45 = vld [vmem:[#allocation36_spill] sm:$0xff]  ;;  %v17588_v52 = vld [vmem:[#allocation25_spill] sm:$0xff] }
 0x79a   :  { %v14928_v2 = vmul.f32 %v17581_v12, %v14594_v7  ;;  %v14932_v15 = vmul.f32 %v17582_v11, %v14590_v0  ;;  %v14936_v24 = vmul.f32 %v14489_v23, %v14598_v47  ;;  %v14940_v32 = vmul.f32 %v14504_v31, %v14596_v61  ;;  %v17589_v12 = vld [vmem:[#allocation38_spill] sm:$0xff] }
 0x79b   :  { %v9627_v25 = vpack.i.bf16 %v14912_v13, %v14908_v50  ;;  %v14946_v33 = vmul.f32 %v14445_v54, %v14600_v59  ;;  %v14950_v9 = vmul.f32 %v14509_v39, %v14598_v47  ;;  %v14954_v22 = vmul.f32 %v17583_v38, %v14598_v47  ;;  %v17584_v50 = vld [vmem:[#allocation204_spill] sm:$0xff]  ;;  %v17585_v54 = vld [vmem:[#allocation53_spill] sm:$0xff]  ;;  %v17596_v39 = vld [vmem:[#allocation15_spill] sm:$0xff] }
 0x79c   :  { %v9652_v23 = vpack.i.bf16 %v14916_v34, %v14637_v42  ;;  %v14962_v20 = vmul.f32 %v17584_v50, %v14655_v3  ;;  %v14966_v5 = vmul.f32 %v17585_v54, %v14598_v47  ;;  %9618 = vrot.lane.b32.xlu0 %v9617_v62, %s9871_s26  ;;  %v14973_v48 = vmul.f32 %v17586_v45, %v14655_v3  ;;  %v17587_v42 = vld [vmem:[#allocation20_spill] sm:$0xff]  ;;  %v17590_v38 = vld [vmem:[#allocation193_spill] sm:$0xff]  ;;  %v17595_v54 = vld [vmem:[#allocation74_spill] sm:$0xff] }
 0x79d   :  { %v14977_v13 = vmul.f32 %v17587_v42, %v14655_v3  ;;  %v14981_v56 = vmul.f32 %v17588_v52, %v14665_v51  ;;  %9613 = vrot.lane.b32.xlu1 %v9612_v58, %s9871_s26  ;;  %v14988_v16 = vmul.f32 %v14630_v1, %v14598_v47  ;;  %v14992_v34 = vmul.f32 %v14663_v49, %v14655_v3  ;;  %v17591_v1 = vld [vmem:[#allocation26_spill] sm:$0xff]  ;;  %v17594_v58 = vld [vmem:[#allocation28_spill] sm:$0xff] }
 0x79e   :  { %v14996_v11 = vmul.f32 %v17589_v12, %v14655_v3  ;;  %v15000_v50 = vmul.f32 %v17590_v38, %v14602_v21  ;;  %v15008_v45 = vmul.f32 %v17591_v1, %v14665_v51  ;;  %v17592_v49 = vld [vmem:[#allocation186_spill] sm:$0xff]  ;;  %v17593_v12 = vld [vmem:[#allocation205_spill] sm:$0xff]  ;;  %v15022_v62 = vmul.f32 %v17594_v58, %v14623_v30 }
 0x79f   :  { %v15012_v42 = vmul.f32 %v17592_v49, %v14602_v21  ;;  %v15018_v38 = vmul.f32 %v17593_v12, %v14665_v51  ;;  %v15029_v49 = vmul.f32 %v17595_v54, %v14665_v51  ;;  %v15033_v52 = vmul.f32 %v17596_v39, %v14623_v30  ;;  %v17597_v54 = vld [vmem:[#allocation121_spill] sm:$0xff] }
 0x7a0   :  { %9633 = vrot.lane.b32.xlu0 %v9632_v29, %s9870_s1  ;;  %v15037_v12 = vmul.f32 %v14706_v18, %v14623_v30  ;;  %v15044_v58 = vmul.f32 %v14711_v55, %v14632_v17  ;;  %v15048_v1 = vmul.f32 %v17597_v54, %v14665_v51  ;;  %v15052_v39 = vmul.f32 %v14692_v28, %v14623_v30  ;;  %v17598_v18 = vld [vmem:[#allocation195_spill] sm:$0xff]  ;;  %v15093_v28 = vpop.permute.xlu1 %7098 }
 0x7a1   :  { %9623 = vrot.lane.b32.xlu1 %v9622_v26, %s9871_s26  ;;  %v15056_v31 = vmul.f32 %v17598_v18, %v14600_v59  ;;  %v15062_v29 = vmul.f32 %v14724_v46, %v14623_v30  ;;  %v15066_v55 = vmul.f32 %v14729_v41, %v14632_v17  ;;  %v15074_v18 = vmul.f32 %v14739_v10, %v14632_v17  ;;  %v17599_v46 = vld [vmem:[#allocation197_spill] sm:$0xff] }
 0x7a2   :  { %v15078_v26 = vmul.f32 %v14745_v14, %v14685_v27  ;;  %v6634_v41 = vmul.f32 %v17599_v46, %v14602_v21  ;;  %v15087_v54 = vmul.f32 %v14757_v57, %v14632_v17  ;;  %v15091_v10 = vmul.f32 %v14762_v36, %v14685_v27  ;;  %17600 = vst [vmem:[#allocation164_spill] sm:$0xff] %v15093_v28  ;;  %v17603_v14 = vld [vmem:[#allocation138_spill] sm:$0xff] }
 0x7a3   :  { %v15104_v46 = vmul.f32 %v14800_v4, %v14696_v53  ;;  %v15108_v57 = vmul.f32 %v14769_v43, %v14632_v17  ;;  %v15118_v30 = vmul.f32 %v17603_v14, %v14685_v27  ;;  %v9637_v4 = vpack.i.bf16 %v14932_v15, %v14928_v2  ;;  %v17609_v43 = vld [vmem:[#allocation160_spill] sm:$0xff]  ;;  %v17612_v15 = vld [vmem:[#allocation198_spill] sm:$0xff] }
 0x7a4   :  { %9643 = vrot.lane.b32.xlu0 %v9642_v35, %s9869_s21  ;;  %v15100_v35 = vmul.f32 %v14716_v63, %v14685_v27  ;;  %v15122_v63 = vmul.f32 %v14779_v6, %v14696_v53  ;;  %v15130_v36 = vmul.f32 %v14750_v8, %v14696_v53  ;;  %v7115_v14 = vsel %vm2305_vm6, %v17575_v60, %v15093_v28  ;;  %v17608_v6 = vld [vmem:[#allocation188_spill] sm:$0xff]  ;;  %v17610_v60 = vld [vmem:[#allocation46_spill] sm:$0xff]  ;;  %v17611_v28 = vld [vmem:[#allocation189_spill] sm:$0xff] }
 0x7a5   :  { %9628 = vrot.lane.b32.xlu1 %v9627_v25, %s9870_s1  ;;  %17601 = vst [vmem:[#allocation51_spill] sm:$0xff] %v15108_v57  ;;  %v15114_v25 = vmul.f32 %v14774_v44, %v14685_v27  ;;  %17604 = vst [vmem:[#allocation196_spill] sm:$0xff] %v15118_v30  ;;  %v15134_v44 = vmul.f32 %v14826_v19, %v14678_v40  ;;  %v6379_v2 = vmul.f32 %v17608_v6, %v14590_v0  ;;  %v17613_v8 = vld [vmem:[#allocation199_spill] sm:$0xff]  ;;  %v17614_v30 = vld [vmem:[#allocation73_spill] sm:$0xff] }
 0x7a6   :  { %17605 = vst [vmem:[#allocation132_spill] sm:$0xff] %v15122_v63  ;;  %17606 = vst [vmem:[#allocation179_spill] sm:$0xff] %v15130_v36  ;;  %v9662_v19 = vpack.i.bf16 %v15000_v50, %v14946_v33  ;;  %v9647_v27 = vpack.i.bf16 %v15012_v42, %v17609_v43  ;;  %v9677_v53 = vpack.i.bf16 %v6634_v41, %v15056_v31  ;;  %v17615_v63 = vld [vmem:[#allocation163_spill] sm:$0xff]  ;;  %v17620_v43 = vld [vmem:[#allocation141_spill] sm:$0xff] }
 0x7a7   :  { %17602 = vst [vmem:[#allocation101_spill] sm:$0xff] %v15114_v25  ;;  %17607 = vst [vmem:[#allocation185_spill] sm:$0xff] %v15134_v44  ;;  %v6885_v17 = vmul.f32 %v17612_v15, %v14600_v59  ;;  %v15162_v33 = vmul.f32 %v17615_v63, %v17614_v30  ;;  %v17617_v50 = vld [vmem:[#allocation83_spill] sm:$0xff]  ;;  %v17622_v31 = vld [vmem:[#allocation169_spill] sm:$0xff] }
 0x7a8   :  { %9653 = vrot.lane.b32.xlu0 %v9652_v23, %s9869_s21  ;;  %v6380_v23 = vmul.f32 %v17611_v28, %v17610_v60  ;;  %v15166_v42 = vmul.f32 %v17617_v50, %v14678_v40  ;;  %v17619_v28 = vld [vmem:[#allocation114_spill] sm:$0xff]  ;;  %v15174_v41 = vmul.f32 %v17622_v31, %v17614_v30  ;;  %v17626_v63 = vld [vmem:[#allocation108_spill] sm:$0xff]  ;;  %v17629_v36 = vld [vmem:[#allocation149_spill] sm:$0xff] }
 0x7a9   :  { %9638 = vrot.lane.b32.xlu1 %v9637_v4, %s9869_s21  ;;  %v6886_v4 = vmul.f32 %v17613_v8, %v14602_v21  ;;  %17616 = vst [vmem:[#allocation162_spill] sm:$0xff] %v15162_v33  ;;  %v15170_v57 = vmul.f32 %v17620_v43, %v17619_v28  ;;  %v17624_v15 = vld [vmem:[#allocation106_spill] sm:$0xff]  ;;  %v6378_v8 = vmul.f32 %v17626_v63, %v14594_v7  ;;  %v17627_v50 = vld [vmem:[#allocation88_spill] sm:$0xff] }
 0x7aa   :  { %17618 = vst [vmem:[#allocation167_spill] sm:$0xff] %v15166_v42  ;;  %17623 = vst [vmem:[#allocation130_spill] sm:$0xff] %v15174_v41  ;;  %v15178_v6 = vmul.f32 %v17624_v15, %v14678_v40  ;;  %v15185_v33 = vmul.f32 %v17627_v50, %v17619_v28  ;;  %v15188_v43 = vmul.f32 %v7115_v14, %v17619_v28  ;;  %v17631_v63 = vld [vmem:[#allocation156_spill] sm:$0xff]  ;;  %v17637_v44 = vld [vmem:[#allocation190_spill] sm:$0xff] }
 0x7ab   :  { %17621 = vst [vmem:[#allocation43_spill] sm:$0xff] %v15170_v57  ;;  %v15192_v31 = vmul.f32 %v17629_v36, %v17619_v28  ;;  %v15201_v25 = vmul.f32 %v17631_v63, %v17614_v30  ;;  %v17632_v50 = vld [vmem:[#allocation144_spill] sm:$0xff]  ;;  %v15219_v41 = vmul.f32 %v17637_v44, %v17619_v28  ;;  %v9657_v63 = vpack.i.bf16 %v6380_v23, %v6379_v2  ;;  %v17640_v36 = vld [vmem:[#allocation174_spill] sm:$0xff] }
 0x7ac   :  { %17625 = vst [vmem:[#allocation191_spill] sm:$0xff] %v15178_v6  ;;  %9663 = vrot.lane.b32.xlu0 %v9662_v19, %s9868_s30  ;;  %17628 = vst [vmem:[#allocation133_spill] sm:$0xff] %v15188_v43  ;;  %v15205_v14 = vmul.f32 %v17632_v50, %v14678_v40  ;;  %v17634_v43 = vld [vmem:[#allocation173_spill] sm:$0xff]  ;;  %v17635_v15 = vld [vmem:[#allocation12_spill] sm:$0xff]  ;;  %v15227_v6 = vmul.f32 %v17640_v36, %v14678_v40 }
 0x7ad   :  { %9648 = vrot.lane.b32.xlu1 %v9647_v27, %s9870_s1  ;;  %v15211_v27 = vmul.f32 %v17634_v43, %v17619_v28  ;;  %v15215_v42 = vmul.f32 %v17635_v15, %v14678_v40  ;;  %17638 = vst [vmem:[#allocation32_spill] sm:$0xff] %v15219_v41  ;;  %v17639_v19 = vld [vmem:[#allocation194_spill] sm:$0xff]  ;;  %v17642_v15 = vld [vmem:[#allocation87_spill] sm:$0xff]  ;;  %v17646_v36 = vld [vmem:[#allocation92_spill] sm:$0xff]  ;;  %v9687_v40 = vpack.i.bf16 %v6886_v4, %v6885_v17 }
 0x7ae   :  { %17633 = vst [vmem:[#allocation14_spill] sm:$0xff] %v15205_v14  ;;  %v6383_v50 = vmul.f32 %v17639_v19, %v14596_v61  ;;  %17641 = vst [vmem:[#allocation183_spill] sm:$0xff] %v15227_v6  ;;  %v17643_v2 = vld [vmem:[#allocation90_spill] sm:$0xff]  ;;  %v17644_v19 = vld [vmem:[#allocation23_spill] sm:$0xff] }
 0x7af   :  { %17636 = vst [vmem:[#allocation29_spill] sm:$0xff] %v15215_v42  ;;  %v6598_v23 = vsel %vm2817_vm8, %v17643_v2, %v17642_v15  ;;  %v17645_v28 = vld [vmem:[#allocation118_spill] sm:$0xff] }
 0x7b0   :  { %9678 = vrot.lane.b32.xlu0 %v9677_v53, %s9867_s29  ;;  %v6854_v57 = vsel %vm2561_vm9, %v17645_v28, %v17644_v19  ;;  %v6599_v53 = vsel %vm2817_vm8, %v17642_v15, %v17646_v36  ;;  %v17647_v43 = vld [vmem:[#allocation30_spill] sm:$0xff]  ;;  %v9667_v42 = vpack.i.bf16 %v6383_v50, %v6378_v8  ;;  %v6631_v41 = vmul.f32 %v6598_v23, %v14590_v0  ;;  %v17648_v28 = vld [vmem:[#allocation131_spill] sm:$0xff]  ;;  %v17649_v15 = vld [vmem:[#allocation112_spill] sm:$0xff] }
 0x7b1   :  { %9658 = vrot.lane.b32.xlu1 %v9657_v63, %s9868_s30  ;;  %v6882_v6 = vmul.f32 %v17647_v43, %v14594_v7  ;;  %v6887_v44 = vmul.f32 %v6854_v57, %v14596_v61  ;;  %v6632_v14 = vmul.f32 %v6599_v53, %v17610_v60  ;;  %v6850_v63 = vsel %vm2561_vm9, %v17647_v43, %v17648_v28  ;;  %v17650_v50 = vld [vmem:[#allocation137_spill] sm:$0xff]  ;;  %v17652_v23 = vld [vmem:[#allocation123_spill] sm:$0xff]  ;;  %v17653_v43 = vld [vmem:[#allocation78_spill] sm:$0xff] }
 0x7b2   :  { %v6851_v17 = vsel %vm2561_vm9, %v17648_v28, %v17649_v15  ;;  %v6883_v57 = vmul.f32 %v6850_v63, %v14590_v0  ;;  %v6602_v36 = vsel %vm2817_vm8, %v17653_v43, %v17652_v23  ;;  %v17655_v28 = vld [vmem:[#allocation122_spill] sm:$0xff]  ;;  %v17658_v23 = vpack.i.bf16 %v14950_v9, %v14940_v32 }
 0x7b3   :  { %v9697_v4 = vpack.i.bf16 %v6887_v44, %v6882_v6  ;;  %v9672_v19 = vpack.i.bf16 %v6632_v14, %v6631_v41  ;;  %v6884_v8 = vmul.f32 %v6851_v17, %v17610_v60  ;;  %v6630_v41 = vmul.f32 %v17643_v2, %v14594_v7  ;;  %v17654_v44 = vld [vmem:[#allocation19_spill] sm:$0xff] }
 0x7b4   :  { %9688 = vrot.lane.b32.xlu0 %v9687_v40, %s9866_s24  ;;  %v17651_v40 = vld [vmem:[#allocation119_spill] sm:$0xff]  ;;  %v6635_v14 = vmul.f32 %v6602_v36, %v14596_v61  ;;  %v7105_v63 = vsel %vm2305_vm6, %v17655_v28, %v17654_v44  ;;  %v17661_v32 = vpack.i.bf16 %v14981_v56, %v14977_v13  ;;  %v17662_v9 = vpack.i.bf16 %v14992_v34, %v14988_v16 }
 0x7b5   :  { %9668 = vrot.lane.b32.xlu1 %v9667_v42, %s9868_s30  ;;  %v7103_v42 = vsel %vm2305_vm6, %v17651_v40, %v17650_v50  ;;  %v9682_v6 = vpack.i.bf16 %v6884_v8, %v6883_v57  ;;  %v7138_v15 = vmul.f32 %v7105_v63, %v14602_v21  ;;  %v17657_v57 = vpack.i.bf16 %v14936_v24, %v14923_v37  ;;  %v17666_v13 = vld [vmem:[#allocation147_spill] sm:$0xff] }
 0x7b6   :  { %v7136_v53 = vmul.f32 %v7103_v42, %v17610_v60  ;;  %v9692_v17 = vpack.i.bf16 %v6635_v14, %v6630_v41  ;;  %v7104_v8 = vsel %vm2305_vm6, %v17650_v50, %v17655_v28  ;;  %v17659_v37 = vpack.i.bf16 %v14962_v20, %v14954_v22  ;;  %v17663_v50 = vld [vmem:[#allocation126_spill] sm:$0xff]  ;;  %v17677_v36 = vld [vmem:[#allocation51_spill] sm:$0xff]  ;;  %v17685_v28 = vld [vmem:[#allocation185_spill] sm:$0xff] }
 0x7b7   :  { %v7137_v42 = vmul.f32 %v7104_v8, %v14600_v59  ;;  %v17660_v24 = vpack.i.bf16 %v14973_v48, %v14966_v5  ;;  %v7106_v22 = vsel %vm2305_vm6, %v17654_v44, %v17663_v50  ;;  %v17664_v20 = vpack.i.bf16 %v15008_v45, %v14996_v11  ;;  %v17665_v48 = vld [vmem:[#allocation135_spill] sm:$0xff] }
 0x7b8   :  { %9698 = vrot.lane.b32.xlu0 %v9697_v4, %s9866_s24  ;;  %v17656_v4 = vld [vmem:[#allocation64_spill] sm:$0xff]  ;;  %v7139_v5 = vmul.f32 %v7106_v22, %v14596_v61  ;;  %v7108_v56 = vsel %vm2305_vm6, %v17666_v13, %v17665_v48  ;;  %v17667_v16 = vpack.i.bf16 %v15022_v62, %v15018_v38  ;;  %v17668_v11 = vpack.i.bf16 %v15033_v52, %v15029_v49  ;;  %v17686_v63 = vld [vmem:[#allocation179_spill] sm:$0xff] }
 0x7b9   :  { %9673 = vrot.lane.b32.xlu1 %v9672_v19, %s9867_s29  ;;  %v7102_v2 = vsel %vm2305_vm6, %v17656_v4, %v17651_v40  ;;  %v7134_v40 = vmul.f32 %v17656_v4, %v14594_v7  ;;  %v7141_v34 = vmul.f32 %v7108_v56, %v14655_v3  ;;  %v17669_v45 = vpack.i.bf16 %v15044_v58, %v15037_v12  ;;  %v17672_v49 = vld [vmem:[#allocation148_spill] sm:$0xff]  ;;  %v17689_v4 = vld [vmem:[#allocation129_spill] sm:$0xff]  ;;  %v17690_v8 = vld [vmem:[#allocation115_spill] sm:$0xff] }
 0x7ba   :  { %v7135_v19 = vmul.f32 %v7102_v2, %v14590_v0  ;;  %v17670_v43 = vpack.i.bf16 %v15052_v39, %v15048_v1  ;;  %v7107_v62 = vsel %vm2305_vm6, %v17663_v50, %v17666_v13  ;;  %v17671_v52 = vpack.i.bf16 %v15066_v55, %v15062_v29  ;;  %v17676_v55 = vld [vmem:[#allocation101_spill] sm:$0xff] }
 0x7bb   :  { %v7140_v38 = vmul.f32 %v7107_v62, %v14598_v47  ;;  %v7109_v12 = vsel %vm2305_vm6, %v17665_v48, %v17672_v49  ;;  %v17673_v58 = vpack.i.bf16 %v15078_v26, %v15074_v18  ;;  %v17674_v29 = vpack.i.bf16 %v15091_v10, %v15087_v54  ;;  %v17679_v26 = vld [vmem:[#allocation132_spill] sm:$0xff] }
 0x7bc   :  { %7172 = vrot.lane.b32.xlu0 %v7136_v53, %s9865_s4  ;;  %v7142_v1 = vmul.f32 %v7109_v12, %v14665_v51  ;;  %v17675_v39 = vpack.i.bf16 %v15104_v46, %v15100_v35  ;;  %v17678_v53 = vpack.i.bf16 %v17676_v55, %v17677_v36  ;;  %v17680_v18 = vld [vmem:[#allocation196_spill] sm:$0xff]  ;;  %v17683_v35 = vld [vmem:[#allocation159_spill] sm:$0xff] }
 0x7bd   :  { %9683 = vrot.lane.b32.xlu1 %v9682_v6, %s9866_s24  ;;  %v17681_v6 = vpack.i.bf16 %v17679_v26, %v17680_v18  ;;  %v17682_v54 = vld [vmem:[#allocation24_spill] sm:$0xff]  ;;  %v17684_v46 = vld [vmem:[#allocation7_spill] sm:$0xff] }
 0x7be   :  { %v5518_v10 = vmul.f32 %v17682_v54, %v17614_v30  ;;  %v7111_v44 = vsel %vm2305_vm6, %v17684_v46, %v17683_v35  ;;  %v17698_v26 = vld [vmem:[#allocation95_spill] sm:$0xff] }
 0x7bf   :  { %v6646_v18 = vmul.f32 0.0, %v17698_v26  ;;  %v17703_v26 = vld [vmem:[#allocation167_spill] sm:$0xff] }
 0x7c0   :  { %7176 = vrot.lane.b32.xlu0 %v7138_v15, %s9865_s4  ;;  %v17687_v15 = vpack.i.bf16 %v17685_v28, %v17686_v63  ;;  %v17700_v63 = vld [vmem:[#allocation125_spill] sm:$0xff] }
 0x7c1   :  { %9693 = vrot.lane.b32.xlu1 %v9692_v17, %s9867_s29  ;;  %v17688_v17 = vld [vmem:[#allocation154_spill] sm:$0xff] }
 0x7c2   :  { %v6609_v2 = vsel %vm2817_vm8, %v17689_v4, %v17688_v17 }
 0x7c4   :  { %9703 = vrot.lane.b32.xlu0 %v17657_v57, %s9870_s1 }
 0x7c5   :  { %7170 = vrot.lane.b32.xlu1 %v7135_v19, %s9865_s4 }
 0x7c8   :  { %9713 = vrot.lane.b32.xlu0 %v17658_v23, %s9869_s21 }
 0x7c9   :  { %7174 = vrot.lane.b32.xlu1 %v7137_v42, %s9865_s4  ;;  %v7144_v42 = vmul.f32 %v7111_v44, %v17690_v8 }
 0x7cc   :  { %9723 = vrot.lane.b32.xlu0 %v17659_v37, %s9868_s30  ;;  %v17691_v37 = vld [vmem:[#allocation10_spill] sm:$0xff] }
 0x7cd   :  { %7168 = vrot.lane.b32.xlu1 %v7134_v40, %s9865_s4 }
 0x7d0   :  { %9733 = vrot.lane.b32.xlu0 %v17660_v24, %s9867_s29  ;;  %v6642_v24 = vmul.f32 %v6609_v2, %v17691_v37 }
 0x7d1   :  { %9708 = vrot.lane.b32.xlu1 %v17661_v32, %s9870_s1  ;;  %v17692_v32 = vld [vmem:[#allocation93_spill] sm:$0xff] }
 0x7d4   :  { %9743 = vrot.lane.b32.xlu0 %v17662_v9, %s9866_s24  ;;  %v17693_v9 = vld [vmem:[#allocation100_spill] sm:$0xff] }
 0x7d5   :  { %9718 = vrot.lane.b32.xlu1 %v17664_v20, %s9869_s21  ;;  %v7113_v50 = vsel %vm2305_vm6, %v17693_v9, %v17692_v32  ;;  %v17694_v20 = vld [vmem:[#allocation34_spill] sm:$0xff] }
 0x7d6   :  { %v7146_v56 = vmul.f32 %v7113_v50, %v17691_v37 }
 0x7d8   :  { %7178 = vrot.lane.b32.xlu0 %v7139_v5, %s9865_s4  ;;  %v17695_v5 = vld [vmem:[#allocation63_spill] sm:$0xff] }
 0x7d9   :  { %9728 = vrot.lane.b32.xlu1 %v17667_v16, %s9868_s30  ;;  %v6861_v48 = vsel %vm2561_vm9, %v17695_v5, %v17694_v20 }
 0x7dc   :  { %7182 = vrot.lane.b32.xlu0 %v7141_v34, %s9865_s4 }
 0x7dd   :  { %9738 = vrot.lane.b32.xlu1 %v17668_v11, %s9867_s29  ;;  %v6894_v11 = vmul.f32 %v6861_v48, %v17691_v37 }
 0x7e0   :  { %9753 = vrot.lane.b32.xlu0 %v17669_v45, %s9870_s1 }
 0x7e1   :  { %9748 = vrot.lane.b32.xlu1 %v17670_v43, %s9866_s24  ;;  %v7110_v43 = vsel %vm2305_vm6, %v17672_v49, %v17684_v46 }
 0x7e4   :  { %9763 = vrot.lane.b32.xlu0 %v17671_v52, %s9869_s21 }
 0x7e5   :  { %7180 = vrot.lane.b32.xlu1 %v7140_v38, %s9865_s4  ;;  %v17696_v38 = vld [vmem:[#allocation140_spill] sm:$0xff] }
 0x7e6   :  { %v5770_v52 = vmul.f32 %v17696_v38, %v17614_v30 }
 0x7e8   :  { %9773 = vrot.lane.b32.xlu0 %v17673_v58, %s9868_s30 }
 0x7e9   :  { %7184 = vrot.lane.b32.xlu1 %v7142_v1, %s9865_s4 }
 0x7ec   :  { %9783 = vrot.lane.b32.xlu0 %v17674_v29, %s9867_s29  ;;  %v17697_v29 = vld [vmem:[#allocation120_spill] sm:$0xff] }
 0x7ed   :  { %9758 = vrot.lane.b32.xlu1 %v17675_v39, %s9870_s1  ;;  %v7143_v39 = vmul.f32 %v7110_v43, %v17697_v29 }
 0x7f0   :  { %9788 = vrot.lane.b32.xlu0 %v17678_v53, %s9866_s24  ;;  %v15380_v41 = vpop.permute.xlu0 %9553  ;;  %v15382_v14 = vpop.permute.xlu1 %9548  ;;  %v7112_v53 = vsel %vm2305_vm6, %v17683_v35, %v17693_v9 }
 0x7f1   :  { %9768 = vrot.lane.b32.xlu1 %v17681_v6, %s9869_s21  ;;  %v9556_v17 = vunpack.i.h.bf16 %v15380_v41  ;;  %v9555_v4 = vunpack.i.l.bf16 %v15380_v41  ;;  %v17701_v41 = vld [vmem:[#allocation162_spill] sm:$0xff] }
 0x7f2   :  { %v9812_v5 = vpack.i.bf16 %v6646_v18, %v17701_v41 }
 0x7f4   :  { %5568 = vrot.lane.b32.xlu0 %v5518_v10, %s9871_s26  ;;  %v15397_v19 = vpop.permute.xlu0 %9563  ;;  %v15399_v57 = vpop.permute.xlu1 %9558  ;;  %v17699_v10 = vld [vmem:[#allocation75_spill] sm:$0xff] }
 0x7f5   :  { %9778 = vrot.lane.b32.xlu1 %v17687_v15, %s9868_s30  ;;  %v16658_v23 = vunpack.i.l.bf16 %v15397_v19  ;;  %v16654_v40 = vunpack.i.h.bf16 %v15399_v57  ;;  %v6022_v46 = vmul.f32 %v17699_v10, %v17614_v30  ;;  %v7145_v15 = vmul.f32 %v7112_v53, %v17700_v63  ;;  %v17702_v53 = vld [vmem:[#allocation43_spill] sm:$0xff] }
 0x7f6   :  { %v16652_v50 = vunpack.i.l.bf16 %v15399_v57 }
 0x7f7   :  { %v15415_v22 = vsel %vm2305_vm6, %v16654_v40, %v16658_v23  ;;  %v17723_v40 = vld [vmem:[#allocation183_spill] sm:$0xff] }
 0x7f8   :  { %7188 = vrot.lane.b32.xlu0 %v7144_v42, %s9865_s4  ;;  %v9551_v42 = vunpack.i.h.bf16 %v15382_v14 }
 0x7f9   :  { %6688 = vrot.lane.b32.xlu1 %v6642_v24, %s9867_s29  ;;  %v15420_v13 = vpop.permute.xlu0 %9573  ;;  %v9550_v24 = vunpack.i.l.bf16 %v15382_v14 }
 0x7fa   :  { %v9575_v16 = vunpack.i.l.bf16 %v15420_v13  ;;  %v15424_v34 = vpop.permute.xlu1 %9568  ;;  %v9576_v55 = vunpack.i.h.bf16 %v15420_v13  ;;  %v5319_v18 = vsel %vm2305_vm6, %v9551_v42, %v9555_v4 }
 0x7fb   :  { %v9571_v45 = vunpack.i.h.bf16 %v15424_v34  ;;  %v5318_v14 = vsel %vm2305_vm6, %v9550_v24, %v9551_v42 }
 0x7fc   :  { %7192 = vrot.lane.b32.xlu0 %v7146_v56, %s9865_s4 }
 0x7fd   :  { %6940 = vrot.lane.b32.xlu1 %v6894_v11, %s9866_s24  ;;  %v15433_v62 = vpop.permute.xlu0 %9583  ;;  %v15440_v12 = vsel %vm2305_vm6, %v9571_v45, %v9575_v16  ;;  %v5320_v11 = vsel %vm2305_vm6, %v9555_v4, %v9556_v17 }
 0x7fe   :  { %v9585_v1 = vunpack.i.l.bf16 %v15433_v62  ;;  %v15443_v58 = vpop.permute.xlu1 %9578  ;;  %v9586_v6 = vunpack.i.h.bf16 %v15433_v62 }
 0x7ff   :  { %v9581_v49 = vunpack.i.h.bf16 %v15443_v58  ;;  %v9580_v36 = vunpack.i.l.bf16 %v15443_v58 }
 0x800   :  { %5820 = vrot.lane.b32.xlu0 %v5770_v52, %s9870_s1  ;;  %v16657_v52 = vunpack.i.l.bf16 %v15424_v34 }
 0x801   :  { %7186 = vrot.lane.b32.xlu1 %v7143_v39, %s9865_s4  ;;  %v15463_v44 = vsel %vm2305_vm6, %v9576_v55, %v9580_v36  ;;  %v15470_v35 = vsel %vm2305_vm6, %v9581_v49, %v9585_v1 }
 0x802   :  { %v9589_v54 = vpop.permute.xlu0 %9588 }
 0x803   :  { %v5317_v28 = vpop.permute.xlu1 %5316  ;;  %v9591_v32 = vunpack.i.h.bf16 %v9589_v54  ;;  %v9590_v9 = vunpack.i.l.bf16 %v9589_v54  ;;  %v17704_v54 = vpack.i.bf16 %v17702_v53, %v17703_v26  ;;  %v17705_v53 = vld [vmem:[#allocation200_spill] sm:$0xff] }
 0x804   :  { %v15478_v2 = vsel %vm2305_vm6, %v9586_v6, %v5317_v28  ;;  %6072 = vrot.lane.b32.xlu0 %v6022_v46, %s9869_s21 }
 0x805   :  { %7190 = vrot.lane.b32.xlu1 %v7145_v15, %s9865_s4  ;;  %v5570_v39 = vsel %vm2561_vm9, %v9590_v9, %v9591_v32  ;;  %v5321_v15 = vsel %vm2305_vm6, %v9556_v17, %v16652_v50  ;;  %v15520_v17 = vsel %vm2305_vm6, %v16657_v52, %v9571_v45 }
 0x806   :  { %v15485_v20 = vpop.permute.xlu0 %9598 }
 0x807   :  { %v16656_v48 = vunpack.i.l.bf16 %v15485_v20  ;;  %v9594_v56 = vpop.permute.xlu1 %9593 }
 0x808   :  { %v9596_v43 = vunpack.i.h.bf16 %v9594_v56  ;;  %v9595_v38 = vunpack.i.l.bf16 %v9594_v56  ;;  %9813 = vrot.lane.b32.xlu0 %v9812_v5, %s9867_s29  ;;  %v9294_v56 = vpack.c.bf16 %v5570_v39, %v5318_v14 }
 0x809   :  { %9793 = vrot.lane.b32.xlu1 %v17704_v54, %s9870_s1 }
 0x80a   :  { %v5572_v10 = vsel %vm2561_vm9, %v9595_v38, %v9596_v43  ;;  %v15500_v46 = vpop.permute.xlu0 %9608  ;;  %v5571_v28 = vsel %vm2561_vm9, %v9591_v32, %v9595_v38  ;;  %v5573_v24 = vsel %vm2561_vm9, %v9596_v43, %v16656_v48  ;;  %v17706_v32 = vld [vmem:[#allocation130_spill] sm:$0xff]  ;;  %v17708_v43 = vld [vmem:[#allocation191_spill] sm:$0xff] }
 0x80b   :  { %v9310_v9 = vpack.c.bf16 %v5572_v10, %v5320_v11  ;;  %v9611_v41 = vunpack.i.h.bf16 %v15500_v46  ;;  %v16659_v5 = vunpack.i.l.bf16 %v15500_v46  ;;  %v15511_v4 = vpop.permute.xlu1 %9603  ;;  %v9292_v42 = vpack.c.bf16 %v5571_v28, %v5319_v18 }
 0x80c   :  { %v17707_v38 = vpack.i.bf16 %v17705_v53, %v17706_v32  ;;  %v9308_v26 = vpack.c.bf16 %v5573_v24, %v5321_v15  ;;  %v17709_v14 = vpack.i.bf16 %v15185_v33, %v17708_v43  ;;  %v17710_v24 = vld [vmem:[#allocation133_spill] sm:$0xff]  ;;  %v17711_v53 = vld [vmem:[#allocation170_spill] sm:$0xff]  ;;  %v15541_v33 = vsel %vm2305_vm6, %v9575_v16, %v9576_v55 }
 0x80d   :  { %v15525_v11 = vsel %vm2561_vm9, %v16659_v5, %v9611_v41  ;;  %9293 = vmatprep.subr.bf16.mxu0 %v9292_v42  ;;  %v7150_v32 = vmul.f32 0.0, %v17711_v53 }
 0x80e   :  { %9823 = vrot.lane.b32.xlu0 %v17707_v38, %s9866_s24  ;;  %9798 = vrot.lane.b32.xlu1 %v17709_v14, %s9869_s21  ;;  %v9619_v54 = vpop.permute.xlu0 %9618 }
 0x80f   :  { %9309 = vmatprep.subr.bf16.mxu1 %v9308_v26  ;;  %9295 = vmatpush1.bf16.msra.mxu0 %v9294_v56  ;;  %v9621_v45 = vunpack.i.h.bf16 %v9619_v54  ;;  %v9620_v18 = vunpack.i.l.bf16 %v9619_v54  ;;  %v9614_v10 = vpop.permute.xlu1 %9613  ;;  %v17713_v56 = vpack.i.bf16 %v15201_v25, %v15192_v31  ;;  %v17714_v54 = vld [vmem:[#allocation14_spill] sm:$0xff] }
 0x810   :  { %9311 = vmatpush1.bf16.msra.mxu1 %v9310_v9  ;;  %v9616_v28 = vunpack.i.h.bf16 %v9614_v10  ;;  %v9615_v15 = vunpack.i.l.bf16 %v9614_v10  ;;  %v15548_v9 = vsel %vm2305_vm6, %v9580_v36, %v9581_v49  ;;  %v8096_v10 = vld [vmem:[%s16169_s2 + $0x4] ss:$8 sm:$0xf] }
 0x811   :  { %17712 = vst [vmem:[#allocation37_spill] sm:$0xff] %v15548_v9  ;;  %v15551_v42 = vsel %vm2561_vm9, %v9620_v18, %v9621_v45  ;;  %v17719_v36 = vld [vmem:[#allocation29_spill] sm:$0xff] }
 0x812   :  { %7196 = vrot.lane.b32.xlu0 %v17710_v24, %s9865_s4  ;;  %9803 = vrot.lane.b32.xlu1 %v17713_v56, %s9868_s30  ;;  %v15560_v16 = vsel %vm2561_vm9, %v9615_v15, %v9616_v28  ;;  %v15562_v55 = vpop.permute.xlu0 %9633  ;;  %v15565_v58 = vsel %vm2561_vm9, %v9611_v41, %v9615_v15  ;;  %v15568_v49 = vsel %vm2561_vm9, %v9616_v28, %v9620_v18  ;;  %v8097_v28 = vld [vmem:[%s16169_s2 + $0x4] ss:$8 sm:$0xf0] }
 0x813   :  { %v15572_v38 = vpop.permute.xlu1 %9623  ;;  %v16653_v43 = vunpack.i.h.bf16 %v15562_v55  ;;  %v9635_v14 = vunpack.i.l.bf16 %v15562_v55  ;;  %v17715_v18 = vpack.i.bf16 %v15211_v27, %v17714_v54  ;;  %v15598_v15 = vsel %vm2305_vm6, %v9585_v1, %v9586_v6 }
 0x814   :  { %v16651_v31 = vunpack.i.h.bf16 %v15572_v38  ;;  %v9625_v26 = vunpack.i.l.bf16 %v15572_v38  ;;  %17716 = vst [vmem:[#allocation31_spill] sm:$0xff] %v15598_v15  ;;  %v15616_v6 = vor.u32 %v8097_v28, %v8096_v10  ;;  %v17721_v28 = vld [vmem:[#allocation164_spill] sm:$0xff] }
 0x815   :  { %v7116_v25 = vsel %vm2305_vm6, %v17721_v28, %v17711_v53 }
 0x816   :  { %7200 = vrot.lane.b32.xlu0 %v7150_v32, %s9865_s4  ;;  %9808 = vrot.lane.b32.xlu1 %v17715_v18, %s9867_s29  ;;  %v15603_v27 = vsel %vm2561_vm9, %v9625_v26, %v16651_v31  ;;  %v15605_v24 = vpop.permute.xlu0 %9643  ;;  %v15608_v32 = vsel %vm2561_vm9, %v9621_v45, %v9625_v26  ;;  %v17718_v31 = vld [vmem:[#allocation32_spill] sm:$0xff]  ;;  %v5825_v45 = vsel %vm2817_vm8, %v9635_v14, %v16653_v43 }
 0x817   :  { %17717 = vst [vmem:[#allocation41_spill] sm:$0xff] %v15603_v27  ;;  %v16655_v54 = vunpack.i.h.bf16 %v15605_v24  ;;  %v9645_v62 = vunpack.i.l.bf16 %v15605_v24  ;;  %v9629_v18 = vpop.permute.xlu1 %9628  ;;  %v17720_v41 = vpack.i.bf16 %v17718_v31, %v17719_v36  ;;  %v17722_v31 = vld [vmem:[#allocation60_spill] sm:$0xff] }
 0x818   :  { %v9631_v13 = vunpack.i.h.bf16 %v9629_v18  ;;  %v9630_v56 = vunpack.i.l.bf16 %v9629_v18  ;;  %v7149_v18 = vmul.f32 %v7116_v25, %v17614_v30 }
 0x819   :  { %v6077_v26 = vsel %vm3073_vm5, %v9645_v62, %v16655_v54 }
 0x81a   :  { %9818 = vrot.lane.b32.xlu1 %v17720_v41, %s9866_s24  ;;  %v15628_v39 = vpop.permute.xlu0 %9653  ;;  %v9312_v1 = vpack.c.bf16 %v6077_v26, %v5825_v45  ;;  %v6145_v41 = vrot.slane %v15616_v6, %v17722_v31  ;;  %v5824_v43 = vsel %vm2817_vm8, %v9631_v13, %v9635_v14  ;;  %v5823_v53 = vsel %vm2817_vm8, %v9630_v56, %v9631_v13 }
 0x81b   :  { %v9639_v10 = vpop.permute.xlu1 %9638  ;;  %v9655_v45 = vunpack.i.l.bf16 %v15628_v39 }
 0x81c   :  { %v9641_v50 = vunpack.i.h.bf16 %v9639_v10  ;;  %v9640_v36 = vunpack.i.l.bf16 %v9639_v10  ;;  %9313 = vmatprep.subr.bf16.mxu1 %v9312_v1  ;;  %v6213_v52 = vmul.f32 %v6145_v41, %v14600_v59  ;;  %v7395_v59 = vld [vmem:[%s16179_s12] sm:$0xff] }
 0x81e   :  { %7194 = vrot.lane.b32.xlu1 %v17723_v40, %s9865_s4  ;;  %v6076_v26 = vsel %vm3073_vm5, %v9641_v50, %v9645_v62  ;;  %v15641_v54 = vpop.permute.xlu0 %9663  ;;  %v6075_v1 = vsel %vm3073_vm5, %v9640_v36, %v9641_v50  ;;  %v17724_v62 = vld [vmem:[#allocation45_spill] sm:$0xff]  ;;  %v6074_v23 = vsel %vm3073_vm5, %v9655_v45, %v9640_v36 }
 0x81f   :  { %v9314_v10 = vpack.c.bf16 %v6076_v26, %v5824_v43  ;;  %v16661_v28 = vunpack.i.h.bf16 %v15641_v54  ;;  %v9665_v14 = vunpack.i.l.bf16 %v15641_v54  ;;  %v15647_v48 = vpop.permute.xlu1 %9648  ;;  %v9296_v40 = vpack.c.bf16 %v6075_v1, %v5823_v53  ;;  %v17725_v43 = vld [vmem:[#allocation59_spill] sm:$0xff] }
 0x820   :  { %v9650_v25 = vunpack.i.l.bf16 %v15647_v48  ;;  %v6141_v13 = vrot.slane %v15616_v6, %v17724_v62  ;;  %v6137_v26 = vrot.slane %v15616_v6, %v17725_v43  ;;  %v9651_v27 = vunpack.i.h.bf16 %v15647_v48 }
 0x821   :  { %9297 = vmatprep.subr.bf16.mxu0 %v9296_v40  ;;  %v6449_v50 = vsel %vm2972_vm4, %v9665_v14, %v16661_v28  ;;  %9315 = vmatpush1.bf16.msra.mxu1 %v9314_v10  ;;  %v17726_v28 = vld [vmem:[#allocation54_spill] sm:$0xff]  ;;  %v17735_v48 = vunpack.i.l.bf16 %v15399_v57 }
 0x822   :  { %7198 = vrot.lane.b32.xlu1 %v7149_v18, %s9865_s4  ;;  %v5822_v53 = vsel %vm2817_vm8, %v9650_v25, %v9630_v56  ;;  %v15661_v1 = vpop.permute.xlu0 %9678  ;;  %v9316_v41 = vpack.c.bf16 %v6449_v50, %v6213_v52  ;;  %v6133_v37 = vrot.slane %v15616_v6, %v17726_v28  ;;  %v6212_v45 = vmul.f32 %v6141_v13, %v17610_v60 }
 0x823   :  { %v9298_v18 = vpack.c.bf16 %v6074_v23, %v5822_v53  ;;  %v9659_v40 = vpop.permute.xlu1 %9658  ;;  %v9680_v56 = vunpack.i.l.bf16 %v15661_v1  ;;  %v6211_v10 = vmul.f32 %v6137_v26, %v14590_v0  ;;  %v17727_v0 = vunpack.i.h.bf16 %v15661_v1 }
 0x824   :  { %v9661_v5 = vunpack.i.h.bf16 %v9659_v40  ;;  %v9660_v30 = vunpack.i.l.bf16 %v9659_v40  ;;  %9317 = vmatprep.subr.bf16.mxu1 %v9316_v41  ;;  %v6210_v13 = vmul.f32 %v6133_v37, %v14594_v7 }
 0x825   :  { %9299 = vmatpush1.bf16.msra.mxu0 %v9298_v18 }
 0x826   :  { %7398 = vperm.xlu1 %9545, %v7395_v59   ;;  %v6448_v52 = vsel %vm2972_vm4, %v9661_v5, %v9665_v14  ;;  %v15673_v23 = vpop.permute.xlu0 %9688  ;;  %v6447_v25 = vsel %vm2972_vm4, %v9660_v30, %v9661_v5  ;;  %v6701_v14 = vsel %vm2716_vm3, %v9680_v56, %v17727_v0 }
 0x827   :  { %v9318_v50 = vpack.c.bf16 %v6448_v52, %v6212_v45  ;;  %v16664_v53 = vunpack.i.h.bf16 %v15673_v23  ;;  %v9690_v41 = vunpack.i.l.bf16 %v15673_v23  ;;  %v15678_v40 = vpop.permute.xlu1 %9668  ;;  %v9300_v36 = vpack.c.bf16 %v6447_v25, %v6211_v10 }
 0x828   :  { %v9670_v60 = vunpack.i.l.bf16 %v15678_v40 }
 0x829   :  { %9301 = vmatprep.subr.bf16.mxu0 %v9300_v36  ;;  %9319 = vmatpush1.bf16.msra.mxu1 %v9318_v50  ;;  %v6953_v5 = vsel %vm2460_vm2, %v9690_v41, %v16664_v53 }
 0x82a   :  { %v6446_v26 = vsel %vm2972_vm4, %v9670_v60, %v9660_v30  ;;  %v15689_v59 = vpop.permute.xlu0 %9698  ;;  %v9320_v18 = vpack.c.bf16 %v6953_v5, %v6701_v14 }
 0x82b   :  { %v9302_v45 = vpack.c.bf16 %v6446_v26, %v6210_v13  ;;  %v9674_v10 = vpop.permute.xlu1 %9673  ;;  %v9700_v26 = vunpack.i.l.bf16 %v15689_v59 }
 0x82c   :  { %9321 = vmatprep.subr.bf16.mxu1 %v9320_v18  ;;  %v9676_v7 = vunpack.i.h.bf16 %v9674_v10  ;;  %v9675_v37 = vunpack.i.l.bf16 %v9674_v10 }
 0x82d   :  { %9303 = vmatpush1.bf16.msra.mxu0 %v9302_v45 }
 0x82e   :  { %v7173_v36 = vpop.permute.xlu0 %7172  ;;  %v6700_v0 = vsel %vm2716_vm3, %v9676_v7, %v9680_v56  ;;  %v6699_v30 = vsel %vm2716_vm3, %v9675_v37, %v9676_v7  ;;  %v9606_v56 = vunpack.i.h.bf16 %v15511_v4  ;;  %v9605_v7 = vunpack.i.l.bf16 %v15511_v4 }
 0x82f   :  { %v9684_v52 = vpop.permute.xlu1 %9683 }
 0x830   :  { %v9686_v25 = vunpack.i.h.bf16 %v9684_v52  ;;  %v9685_v50 = vunpack.i.l.bf16 %v9684_v52 }
 0x832   :  { %v6952_v15 = vsel %vm2460_vm2, %v9686_v25, %v9690_v41  ;;  %v15693_v53 = vpop.permute.xlu0 %7176  ;;  %v6951_v60 = vsel %vm2460_vm2, %v9685_v50, %v9686_v25  ;;  %v6950_v41 = vsel %vm2460_vm2, %v9700_v26, %v9685_v50  ;;  %v9566_v25 = vunpack.i.h.bf16 %v15397_v19 }
 0x833   :  { %v9322_v13 = vpack.c.bf16 %v6952_v15, %v6700_v0  ;;  %v15697_v14 = vpop.permute.xlu1 %9693  ;;  %v9304_v5 = vpack.c.bf16 %v6951_v60, %v6699_v30  ;;  %v9601_v30 = vunpack.i.h.bf16 %v15485_v20  ;;  %v17728_v50 = vunpack.i.l.bf16 %v15500_v46  ;;  %v15726_v46 = vld [vmem:[%s16178_s11] sm:$0xff] }
 0x834   :  { %v9695_v18 = vunpack.i.l.bf16 %v15697_v14  ;;  %v17729_v26 = vunpack.i.l.bf16 %v15397_v19 }
 0x835   :  { %9305 = vmatprep.subr.bf16.mxu0 %v9304_v5  ;;  %9323 = vmatpush1.bf16.msra.mxu1 %v9322_v13  ;;  %v5576_v13 = vsel %vm2561_vm9, %v9605_v7, %v9606_v56 }
 0x836   :  { %v6698_v45 = vsel %vm2716_vm3, %v9695_v18, %v9675_v37  ;;  %v15704_v10 = vpop.permute.xlu0 %9703  ;;  %v5577_v37 = vsel %vm2561_vm9, %v9606_v56, %v17728_v50  ;;  %v5324_v18 = vsel %vm2305_vm6, %v17729_v26, %v9566_v25  ;;  %v17731_v26 = vunpack.i.l.bf16 %v15485_v20  ;;  %v17733_v20 = vld [vmem:[#allocation61_spill] sm:$0xff] }
 0x837   :  { %v9306_v15 = vpack.c.bf16 %v6950_v41, %v6698_v45  ;;  %v7171_v52 = vpop.permute.xlu1 %7170  ;;  %v9705_v19 = vunpack.i.l.bf16 %v15704_v10  ;;  %v9342_v4 = vpack.c.bf16 %v5576_v13, %v5324_v18 }
 0x838   :  { %v7203_v0 = vsel %vm2204_vm7, %v7171_v52, %v7173_v36 }
 0x839   :  { %9307 = vmatpush1.bf16.msra.mxu0 %v9306_v15  ;;  %v17730_v15 = vunpack.i.l.bf16 %v15424_v34 }
 0x83a   :  { %7420 = vmatprep.subr.mxu0 %v7203_v0  ;;  %v15710_v60 = vpop.permute.xlu0 %9713  ;;  %v9656_v0 = vunpack.i.h.bf16 %v15628_v39 }
 0x83b   :  { %v7175_v5 = vpop.permute.xlu1 %7174  ;;  %v5325_v56 = vsel %vm2305_vm6, %v9566_v25, %v17730_v15  ;;  %v17732_v39 = vunpack.i.l.bf16 %v15710_v60 }
 0x83c   :  { %v7204_v41 = vsel %vm2204_vm7, %v7173_v36, %v7175_v5  ;;  %v7205_v45 = vsel %vm2204_vm7, %v7175_v5, %v15693_v53  ;;  %v9340_v50 = vpack.c.bf16 %v5577_v37, %v5325_v56  ;;  %v5575_v36 = vsel %vm2561_vm9, %v9601_v30, %v9605_v7 }
 0x83d   :  { %7491 = vmatprep.subr.mxu1 %v7205_v45  ;;  %v5574_v5 = vsel %vm2561_vm9, %v17731_v26, %v9601_v30  ;;  %v6079_v7 = vsel %vm3073_vm5, %v9656_v0, %v17732_v39  ;;  %v6153_v30 = vrot.slane %v15616_v6, %v17733_v20  ;;  %v17734_v37 = vunpack.i.h.bf16 %v15399_v57  ;;  %v17736_v45 = vld [vmem:[#allocation72_spill] sm:$0xff]  ;;  %v17738_v39 = vld [vmem:[#allocation50_spill] sm:$0xff] }
 0x83e   :  { %7492 = vmatpush1.msra.mxu1 %v7204_v41  ;;  %v15738_v9 = vpop.permute.xlu0 %9723  ;;  %v9324_v41 = vpack.c.bf16 %v5575_v36, %v15415_v22  ;;  %v9671_v56 = vunpack.i.h.bf16 %v15678_v40  ;;  %v17737_v26 = vunpack.i.h.bf16 %v15562_v55  ;;  %v17739_v55 = vunpack.i.h.bf16 %v15605_v24 }
 0x83f   :  { %v9725_v34 = vunpack.i.l.bf16 %v15738_v9  ;;  %v7169_v25 = vpop.permute.xlu1 %7168  ;;  %8117 = vmatmul.mubr.msk.f32.vlgmr.msra.gmra.mrb[6].mxu1 %vm4411_vm10, %v15726_v46  ;;  %9341 = vmatprep.subr.bf16.mxu1 %v9340_v50  ;;  %v5322_v13 = vsel %vm2305_vm6, %v17735_v48, %v17734_v37  ;;  %v5827_v50 = vsel %vm2817_vm8, %v9651_v27, %v9705_v19  ;;  %v17740_v37 = vunpack.i.h.bf16 %v15641_v54 }
 0x840   :  { %v7202_v18 = vsel %vm2204_vm7, %v7169_v25, %v7171_v52  ;;  %9343 = vmatpush1.bf16.msra.mxu1 %v9342_v4  ;;  %7681 = vmatprep.mubr.f32.mxu1 %v17736_v45  ;;  %v9326_v15 = vpack.c.bf16 %v5574_v5, %v5322_v13  ;;  %v5826_v57 = vsel %vm2817_vm8, %v17737_v26, %v9651_v27  ;;  %v9716_v48 = vunpack.i.h.bf16 %v15710_v60  ;;  %v17741_v26 = vld [vmem:[#allocation57_spill] sm:$0xff] }
 0x841   :  { %7421 = vmatpush1.msra.mxu0 %v7202_v18  ;;  %v6149_v52 = vrot.slane %v15616_v6, %v17738_v39  ;;  %v9328_v4 = vpack.c.bf16 %v6079_v7, %v5827_v50  ;;  %v6451_v36 = vsel %vm2972_vm4, %v9671_v56, %v9725_v34  ;;  %v6078_v27 = vsel %vm3073_vm5, %v17739_v55, %v9656_v0 }
 0x842   :  { %8116 = vmatmul.mubr.msk.f32.vlgmr.msra.gmra.mrb[6].mxu0 %vm4411_vm10, %v15726_v46  ;;  %9325 = vmatprep.subr.bf16.mxu0 %v9324_v41  ;;  %v15767_v22 = vpop.permute.xlu0 %9733  ;;  %v6215_v5 = vmul.f32 %v6153_v30, %v14596_v61  ;;  %v9330_v25 = vpack.c.bf16 %v6078_v27, %v5826_v57  ;;  %v6450_v7 = vsel %vm2972_vm4, %v17740_v37, %v9671_v56  ;;  %v9696_v41 = vunpack.i.h.bf16 %v15697_v14  ;;  %v17742_v14 = vld [vmem:[#allocation62_spill] sm:$0xff] }
 0x843   :  { %v15769_v40 = vpop.permute.xlu1 %9708  ;;  %9327 = vmatpush1.bf16.msra.mxu0 %v9326_v15  ;;  %7610 = vmatprep.mubr.f32.mxu0 %v17736_v45  ;;  %v9735_v13 = vunpack.i.l.bf16 %v15767_v22  ;;  %v6214_v18 = vmul.f32 %v6149_v52, %v14602_v21  ;;  %v9701_v50 = vunpack.i.h.bf16 %v15689_v59  ;;  %v9706_v61 = vunpack.i.h.bf16 %v15704_v10 }
 0x844   :  { %9329 = vmatprep.subr.bf16.mxu0 %v9328_v4  ;;  %v9710_v24 = vunpack.i.l.bf16 %v15769_v40  ;;  %v9332_v0 = vpack.c.bf16 %v6451_v36, %v6215_v5  ;;  %v6157_v57 = vrot.slane %v15616_v6, %v17741_v26  ;;  %v6161_v52 = vrot.slane %v15616_v6, %v17742_v14 }
 0x845   :  { %v9334_v56 = vpack.c.bf16 %v6450_v7, %v6214_v18  ;;  %v17743_v4 = vunpack.i.l.bf16 %v15710_v60  ;;  %v9726_v36 = vunpack.i.h.bf16 %v15738_v9  ;;  %v6703_v55 = vsel %vm2716_vm3, %v9696_v41, %v9735_v13  ;;  %v8098_v9 = vld [vmem:[%s16169_s2 + $0x44] ss:$8 sm:$0xf] }
 0x846   :  { %v9744_v15 = vpop.permute.xlu0 %9743  ;;  %v17744_v5 = vunpack.i.h.bf16 %v15661_v1  ;;  %v5829_v6 = vsel %vm2817_vm8, %v9706_v61, %v9710_v24  ;;  %v5828_v18 = vsel %vm2817_vm8, %v9705_v19, %v9706_v61  ;;  %v6217_v10 = vmul.f32 %v6161_v52, %v14655_v3 }
 0x847   :  { %v9745_v30 = vunpack.i.l.bf16 %v9744_v15  ;;  %v15789_v54 = vpop.permute.xlu1 %9718  ;;  %9331 = vmatpush1.bf16.msra.mxu0 %v9330_v25  ;;  %v6080_v59 = vsel %vm3073_vm5, %v17743_v4, %v9716_v48  ;;  %v6216_v19 = vmul.f32 %v6157_v57, %v14598_v47  ;;  %v8099_v47 = vld [vmem:[%s16169_s2 + $0x44] ss:$8 sm:$0xf0]  ;;  %v9736_v57 = vunpack.i.h.bf16 %v15767_v22 }
 0x848   :  { %v9720_v21 = vunpack.i.l.bf16 %v15789_v54  ;;  %9333 = vmatprep.subr.bf16.mxu0 %v9332_v0  ;;  %v6702_v25 = vsel %vm2716_vm3, %v17744_v5, %v9696_v41  ;;  %v17745_v41 = vunpack.i.h.bf16 %v15673_v23 }
 0x849   :  { %v6955_v27 = vsel %vm2460_vm2, %v9701_v50, %v9745_v30 }
 0x84a   :  { %v7179_v37 = vpop.permute.xlu0 %7178  ;;  %v9336_v7 = vpack.c.bf16 %v6955_v27, %v6703_v55  ;;  %v6081_v60 = vsel %vm3073_vm5, %v9716_v48, %v9720_v21  ;;  %v6954_v4 = vsel %vm2460_vm2, %v17745_v41, %v9701_v50  ;;  %v9346_v55 = vpack.c.bf16 %v6080_v59, %v5828_v18 }
 0x84b   :  { %v15816_v0 = vpop.permute.xlu1 %9728  ;;  %9335 = vmatpush1.bf16.msra.mxu0 %v9334_v56  ;;  %v9344_v1 = vpack.c.bf16 %v6081_v60, %v5829_v6  ;;  %v9338_v5 = vpack.c.bf16 %v6954_v4, %v6702_v25  ;;  %v6452_v48 = vsel %vm2972_vm4, %v9725_v34, %v9726_v36  ;;  %v9746_v25 = vunpack.i.h.bf16 %v9744_v15 }
 0x84c   :  { %v9730_v27 = vunpack.i.l.bf16 %v15816_v0  ;;  %9337 = vmatprep.subr.bf16.mxu0 %v9336_v7  ;;  %v9350_v59 = vpack.c.bf16 %v6452_v48, %v6216_v19  ;;  %v9711_v60 = vunpack.i.h.bf16 %v15769_v40  ;;  %v6704_v4 = vsel %vm2716_vm3, %v9735_v13, %v9736_v57 }
 0x84d   :  { %9345 = vmatprep.subr.bf16.mxu1 %v9344_v1  ;;  %v6956_v7 = vsel %vm2460_vm2, %v9745_v30, %v9746_v25  ;;  %v9721_v30 = vunpack.i.h.bf16 %v15789_v54  ;;  %v17747_v54 = vpack.c.bf16 %v15525_v11, %v15520_v17  ;;  %v17748_v40 = vpack.c.bf16 %v15568_v49, %v15463_v44 }
 0x84e   :  { %9347 = vmatpush1.bf16.msra.mxu1 %v9346_v55  ;;  %v7183_v61 = vpop.permute.xlu0 %7182  ;;  %v6453_v23 = vsel %vm2972_vm4, %v9726_v36, %v9730_v27  ;;  %v15844_v36 = vor.u32 %v8099_v47, %v8098_v9  ;;  %v9731_v9 = vunpack.i.h.bf16 %v15816_v0  ;;  %v17746_v47 = vpack.c.bf16 %v15565_v58, %v15440_v12 }
 0x84f   :  { %v15830_v50 = vpop.permute.xlu1 %9738  ;;  %9339 = vmatpush1.bf16.msra.mxu0 %v9338_v5  ;;  %v9348_v56 = vpack.c.bf16 %v6453_v23, %v6217_v10  ;;  %v9354_v10 = vpack.c.bf16 %v6956_v7, %v6704_v4 }
 0x850   :  { %v9740_v3 = vunpack.i.l.bf16 %v15830_v50  ;;  %v6169_v23 = vrot.slane %v15844_v36, %v17725_v43  ;;  %v6082_v43 = vsel %vm3073_vm5, %v9720_v21, %v9721_v30  ;;  %v9741_v44 = vunpack.i.h.bf16 %v15830_v50 }
 0x851   :  { %9349 = vmatprep.subr.bf16.mxu1 %v9348_v56  ;;  %v7206_v56 = vsel %vm2204_vm7, %v15693_v53, %v7179_v37 }
 0x852   :  { %9351 = vmatpush1.bf16.msra.mxu1 %v9350_v59  ;;  %v15839_v34 = vpop.permute.xlu0 %9753  ;;  %v6705_v1 = vsel %vm2716_vm3, %v9736_v57, %v9740_v3  ;;  %v6165_v57 = vrot.slane %v15844_v36, %v17726_v28  ;;  %v6219_v7 = vmul.f32 %v6169_v23, %v17697_v29  ;;  %v6454_v29 = vsel %vm2972_vm4, %v9730_v27, %v9731_v9 }
 0x853   :  { %v15842_v52 = vpop.permute.xlu1 %9748  ;;  %v9755_v6 = vunpack.i.l.bf16 %v15839_v34 }
 0x854   :  { %v9750_v15 = vunpack.i.l.bf16 %v15842_v52 }
 0x855   :  { %v5831_v22 = vsel %vm2817_vm8, %v9711_v60, %v9755_v6 }
 0x856   :  { %v15850_v18 = vpop.permute.xlu0 %9763  ;;  %v6957_v41 = vsel %vm2460_vm2, %v9746_v25, %v9750_v15 }
 0x857   :  { %v9765_v55 = vunpack.i.l.bf16 %v15850_v18  ;;  %v7181_v5 = vpop.permute.xlu1 %7180  ;;  %v9352_v48 = vpack.c.bf16 %v6957_v41, %v6705_v1  ;;  %v5830_v1 = vsel %vm2817_vm8, %v9710_v24, %v9711_v60  ;;  %v6218_v24 = vmul.f32 %v6165_v57, %v14665_v51 }
 0x858   :  { %v7207_v19 = vsel %vm2204_vm7, %v7179_v37, %v7181_v5  ;;  %v7208_v12 = vsel %vm2204_vm7, %v7181_v5, %v7183_v61  ;;  %v9362_v28 = vpack.c.bf16 %v6082_v43, %v5830_v1  ;;  %v17749_v60 = vpack.c.bf16 %v15560_v16, %v15541_v33 }
 0x859   :  { %7562 = vmatprep.subr.mxu0 %v7207_v19  ;;  %9353 = vmatprep.subr.bf16.mxu1 %v9352_v48  ;;  %v6083_v13 = vsel %vm3073_vm5, %v9721_v30, %v9765_v55  ;;  %v9766_v0 = vunpack.i.h.bf16 %v15850_v18  ;;  %v9366_v4 = vpack.c.bf16 %v6454_v29, %v6218_v24  ;;  %v9756_v30 = vunpack.i.h.bf16 %v15839_v34 }
 0x85a   :  { %7563 = vmatpush1.msra.mxu0 %v7206_v56  ;;  %9355 = vmatpush1.bf16.msra.mxu1 %v9354_v10  ;;  %v15872_v59 = vpop.permute.xlu0 %9773  ;;  %v9360_v25 = vpack.c.bf16 %v6083_v13, %v5831_v22  ;;  %v6173_v16 = vrot.slane %v15844_v36, %v17724_v62  ;;  %v6177_v10 = vrot.slane %v15844_v36, %v17722_v31 }
 0x85b   :  { %v9775_v53 = vunpack.i.l.bf16 %v15872_v59  ;;  %v15879_v37 = vpop.permute.xlu1 %7184  ;;  %8118 = vmatmul.mubr.msk.f32.vlgmr.msra.gmra.mrb[8].mxu0 %vm4411_vm10, %v15726_v46  ;;  %9357 = vmatprep.subr.bf16.mxu0 %v17746_v47  ;;  %v6084_v19 = vsel %vm3073_vm5, %v9765_v55, %v9766_v0  ;;  %v9776_v23 = vunpack.i.h.bf16 %v15872_v59  ;;  %v5832_v55 = vsel %vm2817_vm8, %v9755_v6, %v9756_v30 }
 0x85c   :  { %9359 = vmatpush1.bf16.msra.mxu0 %v17747_v54  ;;  %v7209_v21 = vsel %vm2204_vm7, %v7183_v61, %v15879_v37  ;;  %7752 = vmatprep.mubr.f32.mxu0 %v17736_v45  ;;  %v9751_v61 = vunpack.i.h.bf16 %v15842_v52  ;;  %v6706_v52 = vsel %vm2716_vm3, %v9740_v3, %v9741_v44  ;;  %v6221_v34 = vmul.f32 %v6177_v10, %v17700_v63 }
 0x85d   :  { %7633 = vmatprep.subr.mxu1 %v7209_v21  ;;  %9361 = vmatprep.subr.bf16.mxu0 %v9360_v25  ;;  %v6455_v58 = vsel %vm2972_vm4, %v9731_v9, %v9775_v53  ;;  %v17750_v25 = vunpack.i.h.bf16 %v15572_v38  ;;  %v9378_v9 = vpack.c.bf16 %v6084_v19, %v5832_v55  ;;  %v6456_v54 = vsel %vm2972_vm4, %v9775_v53, %v9776_v23  ;;  %v17758_v55 = vld [vmem:[#allocation114_spill] sm:$0xff] }
 0x85e   :  { %7634 = vmatpush1.msra.mxu1 %v7208_v12  ;;  %v15900_v17 = vpop.permute.xlu0 %9783  ;;  %v9364_v11 = vpack.c.bf16 %v6455_v58, %v6219_v7  ;;  %v6958_v33 = vsel %vm2460_vm2, %v9750_v15, %v9751_v61  ;;  %v6220_v6 = vmul.f32 %v6173_v16, %v17690_v8  ;;  %v6185_v10 = vrot.slane %v15844_v36, %v17733_v20 }
 0x85f   :  { %v15905_v41 = vpop.permute.xlu1 %9758  ;;  %8119 = vmatmul.mubr.msk.f32.vlgmr.msra.gmra.mrb[8].mxu1 %vm4411_vm10, %v15726_v46  ;;  %9373 = vmatprep.subr.bf16.mxu1 %v17748_v40  ;;  %v9785_v27 = vunpack.i.l.bf16 %v15900_v17  ;;  %v9370_v59 = vpack.c.bf16 %v6958_v33, %v6706_v52  ;;  %v9786_v58 = vunpack.i.h.bf16 %v15900_v17 }
 0x860   :  { %9363 = vmatpush1.bf16.msra.mxu0 %v9362_v28  ;;  %9375 = vmatpush1.bf16.msra.mxu1 %v17749_v60  ;;  %v9760_v49 = vunpack.i.l.bf16 %v15905_v41  ;;  %v9382_v12 = vpack.c.bf16 %v6456_v54, %v6220_v6  ;;  %v9761_v16 = vunpack.i.h.bf16 %v15905_v41 }
 0x861   :  { %9365 = vmatprep.subr.bf16.mxu0 %v9364_v11  ;;  %7823 = vmatprep.mubr.f32.mxu1 %v17736_v45  ;;  %v6707_v56 = vsel %vm2716_vm3, %v9741_v44, %v9785_v27  ;;  %v6708_v29 = vsel %vm2716_vm3, %v9785_v27, %v9786_v58  ;;  %v17751_v27 = vpack.c.bf16 %v15608_v32, %v15470_v35 }
 0x862   :  { %v9789_v51 = vpop.permute.xlu0 %9788  ;;  %v5833_v13 = vsel %vm2817_vm8, %v9756_v30, %v9760_v49  ;;  %v17752_v30 = vld [vmem:[#allocation37_spill] sm:$0xff]  ;;  %v6181_v35 = vrot.slane %v15844_v36, %v17738_v39 }
 0x863   :  { %v9790_v5 = vunpack.i.l.bf16 %v9789_v51  ;;  %v15923_v48 = vpop.permute.xlu1 %9768  ;;  %v9791_v7 = vunpack.i.h.bf16 %v9789_v51 }
 0x864   :  { %v9770_v18 = vunpack.i.l.bf16 %v15923_v48  ;;  %9367 = vmatpush1.bf16.msra.mxu0 %v9366_v4  ;;  %v9771_v19 = vunpack.i.h.bf16 %v15923_v48 }
 0x865   :  { %v6959_v22 = vsel %vm2460_vm2, %v9751_v61, %v9790_v5  ;;  %v6960_v63 = vsel %vm2460_vm2, %v9790_v5, %v9791_v7  ;;  %v17753_v5 = vpack.c.bf16 %v15551_v42, %v17752_v30  ;;  %v6189_v42 = vrot.slane %v15844_v36, %v17741_v26 }
 0x866   :  { %v5569_v15 = vpop.permute.xlu0 %5568  ;;  %v9368_v62 = vpack.c.bf16 %v6959_v22, %v6707_v56  ;;  %v6085_v31 = vsel %vm3073_vm5, %v9766_v0, %v9770_v18  ;;  %v9386_v24 = vpack.c.bf16 %v6960_v63, %v6708_v29  ;;  %v17755_v56 = vld [vmem:[#allocation31_spill] sm:$0xff]  ;;  %v5834_v26 = vsel %vm2817_vm8, %v9760_v49, %v9761_v16  ;;  %v17760_v29 = vld [vmem:[#allocation73_spill] sm:$0xff] }
 0x867   :  { %v5585_v50 = vsel %vm2561_vm9, %v17750_v25, %v5569_v15  ;;  %v15952_v3 = vpop.permute.xlu1 %9778  ;;  %v9376_v43 = vpack.c.bf16 %v6085_v31, %v5833_v13  ;;  %v17757_v13 = vld [vmem:[#allocation10_spill] sm:$0xff]  ;;  %v17759_v25 = vld [vmem:[#allocation8_spill] sm:$0xff] }
 0x868   :  { %v9404_v47 = vpack.c.bf16 %v5585_v50, %v15478_v2  ;;  %v9780_v57 = vunpack.i.l.bf16 %v15952_v3  ;;  %9369 = vmatprep.subr.bf16.mxu0 %v9368_v62  ;;  %v6193_v62 = vrot.slane %v15844_v36, %v17742_v14  ;;  %v6222_v20 = vmul.f32 %v6181_v35, %v17757_v13 }
 0x869   :  { %9377 = vmatprep.subr.bf16.mxu1 %v9376_v43  ;;  %9371 = vmatpush1.bf16.msra.mxu0 %v9370_v59  ;;  %v6224_v59 = vmul.f32 %v6189_v42, %v17758_v55  ;;  %v6223_v50 = vmul.f32 %v6185_v10, %v17759_v25  ;;  %v9781_v43 = vunpack.i.h.bf16 %v15952_v3 }
 0x86a   :  { %9379 = vmatpush1.bf16.msra.mxu1 %v9378_v9  ;;  %v7189_v38 = vpop.permute.xlu0 %7188  ;;  %v6457_v21 = vsel %vm2972_vm4, %v9776_v23, %v9780_v57  ;;  %v17754_v23 = vld [vmem:[#allocation41_spill] sm:$0xff] }
 0x86b   :  { %v15962_v1 = vpop.permute.xlu1 %6688  ;;  %v9380_v2 = vpack.c.bf16 %v6457_v21, %v6221_v34  ;;  %v17756_v22 = vpack.c.bf16 %v17754_v23, %v17755_v56 }
 0x86c   :  { %v6709_v28 = vsel %vm2716_vm3, %v9786_v58, %v15962_v1 }
 0x86d   :  { %9381 = vmatprep.subr.bf16.mxu1 %v9380_v2 }
 0x86e   :  { %9383 = vmatpush1.bf16.msra.mxu1 %v9382_v12  ;;  %v15965_v53 = vpop.permute.xlu0 %7192 }
 0x86f   :  { %v15968_v8 = vpop.permute.xlu1 %6940 }
 0x870   :  { %v6961_v11 = vsel %vm2460_vm2, %v9791_v7, %v15968_v8 }
 0x871   :  { %v9384_v40 = vpack.c.bf16 %v6961_v11, %v6709_v28  ;;  %v6458_v11 = vsel %vm2972_vm4, %v9780_v57, %v9781_v43 }
 0x872   :  { %v5821_v61 = vpop.permute.xlu0 %5820  ;;  %v9398_v57 = vpack.c.bf16 %v6458_v11, %v6222_v20  ;;  %v9463_v11 = vld [vmem:[%s16180_s13 + $0x38] sm:$0xff] }
 0x873   :  { %v7187_v17 = vpop.permute.xlu1 %7186  ;;  %9385 = vmatprep.subr.bf16.mxu1 %v9384_v40  ;;  %v6225_v40 = vmul.f32 %v6193_v62, %v17760_v29 }
 0x874   :  { %v7210_v60 = vsel %vm2204_vm7, %v15879_v37, %v7187_v17  ;;  %9387 = vmatpush1.bf16.msra.mxu1 %v9386_v24  ;;  %v7211_v0 = vsel %vm2204_vm7, %v7187_v17, %v7189_v38 }
 0x875   :  { %7704 = vmatprep.subr.mxu0 %v7211_v0 }
 0x876   :  { %7705 = vmatpush1.msra.mxu0 %v7210_v60  ;;  %v6073_v4 = vpop.permute.xlu0 %6072  ;;  %v17761_v60 = vld [vmem:[#allocation201_spill] sm:$0xff] }
 0x877   :  { %v7191_v44 = vpop.permute.xlu1 %7190  ;;  %8120 = vmatmul.mubr.msk.f32.vlgmr.msra.gmra.mrb[14].mxu0 %vm4411_vm10, %v15726_v46  ;;  %9389 = vmatprep.subr.bf16.mxu0 %v17751_v27 }
 0x878   :  { %v7212_v51 = vsel %vm2204_vm7, %v7189_v38, %v7191_v44  ;;  %9391 = vmatpush1.bf16.msra.mxu0 %v17753_v5  ;;  %v7213_v37 = vsel %vm2204_vm7, %v7191_v44, %v15965_v53  ;;  %7894 = vmatprep.mubr.f32.mxu0 %v17736_v45 }
 0x879   :  { %7775 = vmatprep.subr.mxu1 %v7213_v37 }
 0x87a   :  { %7776 = vmatpush1.msra.mxu1 %v7212_v51  ;;  %v15990_v33 = vpop.permute.xlu0 %9813 }
 0x87b   :  { %v9794_v32 = vpop.permute.xlu1 %9793  ;;  %8121 = vmatmul.mubr.msk.f32.vlgmr.msra.gmra.mrb[14].mxu1 %vm4411_vm10, %v15726_v46  ;;  %9405 = vmatprep.subr.bf16.mxu1 %v9404_v47  ;;  %v9816_v12 = vunpack.i.h.bf16 %v15990_v33  ;;  %v9815_v58 = vunpack.i.l.bf16 %v15990_v33 }
 0x87c   :  { %9407 = vmatpush1.bf16.msra.mxu1 %v17756_v22  ;;  %7965 = vmatprep.mubr.f32.mxu1 %v17736_v45  ;;  %v9796_v39 = vunpack.i.h.bf16 %v9794_v32  ;;  %v9795_v52 = vunpack.i.l.bf16 %v9794_v32  ;;  %v6086_v45 = vsel %vm3073_vm5, %v9770_v18, %v9771_v19 }
 0x87d   :  { %v9394_v38 = vpack.c.bf16 %v6086_v45, %v5834_v26  ;;  %v6713_v51 = vsel %vm2716_vm3, %v9815_v58, %v9816_v12 }
 0x87e   :  { %v5836_v14 = vsel %vm2817_vm8, %v9795_v52, %v9796_v39  ;;  %v5835_v49 = vsel %vm2817_vm8, %v9761_v16, %v9795_v52  ;;  %v5837_v6 = vsel %vm2817_vm8, %v9796_v39, %v5821_v61 }
 0x880   :  { %v9824_v15 = vpop.permute.xlu0 %9823  ;;  %v9799_v31 = vpop.permute.xlu1 %9798 }
 0x881   :  { %v9801_v9 = vunpack.i.h.bf16 %v9799_v31  ;;  %v9800_v47 = vunpack.i.l.bf16 %v9799_v31  ;;  %v9826_v36 = vunpack.i.h.bf16 %v9824_v15  ;;  %v9825_v41 = vunpack.i.l.bf16 %v9824_v15 }
 0x883   :  { %v6088_v54 = vsel %vm3073_vm5, %v9800_v47, %v9801_v9  ;;  %v6087_v34 = vsel %vm3073_vm5, %v9771_v19, %v9800_v47  ;;  %v6089_v48 = vsel %vm3073_vm5, %v9801_v9, %v6073_v4  ;;  %v6965_v24 = vsel %vm2460_vm2, %v9825_v41, %v9826_v36  ;;  %v9427_v36 = vld [vmem:[%s16180_s13 + $0x8] sm:$0xff] }
 0x884   :  { %v9410_v18 = vpack.c.bf16 %v6088_v54, %v5836_v14  ;;  %v9804_v21 = vpop.permute.xlu1 %9803  ;;  %v9392_v7 = vpack.c.bf16 %v6087_v34, %v5835_v49  ;;  %v9408_v2 = vpack.c.bf16 %v6089_v48, %v5837_v6  ;;  %v9416_v37 = vpack.c.bf16 %v6965_v24, %v6713_v51  ;;  %v7197_v32 = vpop.permute.xlu0 %7196  ;;  %v9445_v48 = vld [vmem:[%s16180_s13 + $0x20] sm:$0xff] }
 0x885   :  { %v9806_v63 = vunpack.i.h.bf16 %v9804_v21  ;;  %v9805_v28 = vunpack.i.l.bf16 %v9804_v21 }
 0x886   :  { %9393 = vmatprep.subr.bf16.mxu0 %v9392_v7  ;;  %9409 = vmatprep.subr.bf16.mxu1 %v9408_v2 }
 0x887   :  { %v6460_v61 = vsel %vm2972_vm4, %v9805_v28, %v9806_v63  ;;  %9395 = vmatpush1.bf16.msra.mxu0 %v9394_v38  ;;  %9411 = vmatpush1.bf16.msra.mxu1 %v9410_v18  ;;  %v6459_v17 = vsel %vm2972_vm4, %v9781_v43, %v9805_v28  ;;  %v6461_v0 = vsel %vm2972_vm4, %v9806_v63, %v17761_v60  ;;  %v9451_v18 = vld [vmem:[%s16180_s13 + $0x28] sm:$0xff]  ;;  %v9457_v63 = vld [vmem:[%s16180_s13 + $0x30] sm:$0xff]  ;;  %v9469_v60 = vld [vmem:[%s16180_s13 + $0x40] sm:$0xff] }
 0x888   :  { %v9414_v4 = vpack.c.bf16 %v6460_v61, %v6224_v59  ;;  %v9809_v44 = vpop.permute.xlu1 %9808  ;;  %v9396_v3 = vpack.c.bf16 %v6459_v17, %v6223_v50  ;;  %v9412_v27 = vpack.c.bf16 %v6461_v0, %v6225_v40  ;;  %v7201_v13 = vpop.permute.xlu0 %7200  ;;  %v9433_v59 = vld [vmem:[%s16180_s13 + $0x10] sm:$0xff] }
 0x889   :  { %v9811_v30 = vunpack.i.h.bf16 %v9809_v44  ;;  %v9810_v5 = vunpack.i.l.bf16 %v9809_v44 }
 0x88a   :  { %9397 = vmatprep.subr.bf16.mxu0 %v9396_v3  ;;  %9413 = vmatprep.subr.bf16.mxu1 %v9412_v27 }
 0x88b   :  { %9399 = vmatpush1.bf16.msra.mxu0 %v9398_v57  ;;  %9415 = vmatpush1.bf16.msra.mxu1 %v9414_v4  ;;  %v6712_v42 = vsel %vm2716_vm3, %v9811_v30, %v9815_v58  ;;  %v6710_v10 = vsel %vm2716_vm3, %v15962_v1, %v9810_v5  ;;  %v6711_v56 = vsel %vm2716_vm3, %v9810_v5, %v9811_v30  ;;  %v9475_v4 = vld [vmem:[%s16180_s13 + $0x48] sm:$0xff]  ;;  %v9481_v30 = vld [vmem:[%s16180_s13 + $0x50] sm:$0xff] }
 0x88c   :  { %v9819_v33 = vpop.permute.xlu1 %9818  ;;  %9417 = vmatprep.subr.bf16.mxu1 %v9416_v37  ;;  %v9487_v37 = vld [vmem:[%s16180_s13 + $0x58] sm:$0xff] }
 0x88d   :  { %v9821_v16 = vunpack.i.h.bf16 %v9819_v33  ;;  %v9820_v35 = vunpack.i.l.bf16 %v9819_v33 }
 0x88f   :  { %v6964_v19 = vsel %vm2460_vm2, %v9821_v16, %v9825_v41  ;;  %v6962_v23 = vsel %vm2460_vm2, %v15968_v8, %v9820_v35  ;;  %v6963_v22 = vsel %vm2460_vm2, %v9820_v35, %v9821_v16 }
 0x890   :  { %v9402_v39 = vpack.c.bf16 %v6962_v23, %v6710_v10  ;;  %v9418_v52 = vpack.c.bf16 %v6964_v19, %v6712_v42  ;;  %v7195_v15 = vpop.permute.xlu1 %7194  ;;  %v9400_v62 = vpack.c.bf16 %v6963_v22, %v6711_v56  ;;  %v9493_v10 = vld [vmem:[%s16180_s13 + $0x60] sm:$0xff]  ;;  %v9505_v19 = vld [vmem:[%s16180_s13 + $0x70] sm:$0xff]  ;;  %v9499_v22 = vld [vmem:[%s16180_s13 + $0x68] sm:$0xff] }
 0x891   :  { %v7215_v26 = vsel %vm2204_vm7, %v7195_v15, %v7197_v32  ;;  %v7214_v31 = vsel %vm2204_vm7, %v15965_v53, %v7195_v15  ;;  %v9439_v53 = vld [vmem:[%s16180_s13 + $0x18] sm:$0xff] }
 0x892   :  { %9401 = vmatprep.subr.bf16.mxu0 %v9400_v62  ;;  %9419 = vmatpush1.bf16.msra.mxu1 %v9418_v52 }
 0x893   :  { %9403 = vmatpush1.bf16.msra.mxu0 %v9402_v39  ;;  %v9511_v39 = vld [vmem:[%s16180_s13 + $0x78] sm:$0xff] }
 0x894   :  { %v7199_v1 = vpop.permute.xlu1 %7198  ;;  %7846 = vmatprep.subr.mxu0 %v7215_v26 }
 0x895   :  { %v7216_v20 = vsel %vm2204_vm7, %v7197_v32, %v7199_v1  ;;  %v7217_v8 = vsel %vm2204_vm7, %v7199_v1, %v7201_v13 }
 0x896   :  { %7917 = vmatprep.subr.mxu1 %v7217_v8 }
 0x897   :  { %7847 = vmatpush1.msra.mxu0 %v7214_v31  ;;  %7918 = vmatpush1.msra.mxu1 %v7216_v20 }
 0x898   :  { %8122 = vmatmul.mubr.msk.f32.vlgmr.msra.gmra.mrb[16].mxu0 %vm4411_vm10, %v15726_v46  ;;  %8123 = vmatmul.mubr.msk.f32.vlgmr.msra.gmra.mrb[16].mxu1 %vm4411_vm10, %v15726_v46  ;;  %v9421_v46 = vld [vmem:[%s16180_s13] sm:$0xff] }
 0x8a5   :  { %v16053_v55 = vpop.permute.xlu1 %7398 }
 0x8a6   :  { %v9434_v25 = vadd.f32 %v9433_v59, %v16053_v55  ;;  %v9440_v45 = vadd.f32 %v9439_v53, %v16053_v55  ;;  %v9422_v14 = vadd.f32 %v9421_v46, %v16053_v55  ;;  %v9428_v49 = vadd.f32 %v9427_v36, %v16053_v55 }
 0x8a7   :  { %v9446_v38 = vadd.f32 %v9445_v48, %v16053_v55  ;;  %v9452_v7 = vadd.f32 %v9451_v18, %v16053_v55  ;;  %v9458_v28 = vadd.f32 %v9457_v63, %v16053_v55  ;;  %v9464_v40 = vadd.f32 %v9463_v11, %v16053_v55 }
 0x8a8   :  { %v9470_v0 = vadd.f32 %v9469_v60, %v16053_v55  ;;  %v9476_v3 = vadd.f32 %v9475_v4, %v16053_v55  ;;  %v9482_v5 = vadd.f32 %v9481_v30, %v16053_v55  ;;  %v9488_v16 = vadd.f32 %v9487_v37, %v16053_v55 }
 0x8a9   :  { %v9494_v23 = vadd.f32 %v9493_v10, %v16053_v55  ;;  %v9506_v56 = vadd.f32 %v9505_v19, %v16053_v55  ;;  %v9500_v62 = vadd.f32 %v9499_v22, %v16053_v55  ;;  %v9512_v26 = vadd.f32 %v9511_v39, %v16053_v55 }
 0x912   :  { %v7541_v50 = vpop.f32.mrb[6].mxu1 }
 0x913   :  { %v9437_v43 = vadd.f32 %v9434_v25, %v7541_v50  ;;  %v7543_v9 = vpop.f32.mrb[7].mxu1 }
 0x914   :  { %v9443_v47 = vadd.f32 %v9440_v45, %v7543_v9 }
 0x915   :  { %7990 = vst [vmem:[%s16180_s13 + $0x10] sm:$0xff] %v9437_v43  ;;  %v7470_v41 = vpop.f32.mrb[6].mxu0 }
 0x916   :  { %7991 = vst [vmem:[%s16180_s13 + $0x18] sm:$0xff] %v9443_v47  ;;  %v9425_v54 = vadd.f32 %v9422_v14, %v7470_v41  ;;  %v7472_v34 = vpop.f32.mrb[7].mxu0 }
 0x917   :  { %v9431_v6 = vadd.f32 %v9428_v49, %v7472_v34 }
 0x918   :  { %7988 = vst [vmem:[%s16180_s13] sm:$0xff] %v9425_v54 }
 0x919   :  { %7989 = vst [vmem:[%s16180_s13 + $0x8] sm:$0xff] %v9431_v6 }
 0x92e   :  { %v7612_v21 = vpop.f32.mrb[8].mxu0 }
 0x92f   :  { %v9449_v2 = vadd.f32 %v9446_v38, %v7612_v21  ;;  %v7614_v12 = vpop.f32.mrb[9].mxu0 }
 0x930   :  { %v9455_v58 = vadd.f32 %v9452_v7, %v7614_v12 }
 0x931   :  { %7992 = vst [vmem:[%s16180_s13 + $0x20] sm:$0xff] %v9449_v2 }
 0x932   :  { %7993 = vst [vmem:[%s16180_s13 + $0x28] sm:$0xff] %v9455_v58  ;;  %v7683_v29 = vpop.f32.mrb[8].mxu1 }
 0x933   :  { %v9461_v24 = vadd.f32 %v9458_v28, %v7683_v29  ;;  %v7685_v61 = vpop.f32.mrb[9].mxu1 }
 0x934   :  { %v9467_v17 = vadd.f32 %v9464_v40, %v7685_v61 }
 0x935   :  { %7994 = vst [vmem:[%s16180_s13 + $0x30] sm:$0xff] %v9461_v24 }
 0x936   :  { %7995 = vst [vmem:[%s16180_s13 + $0x38] sm:$0xff] %v9467_v17 }
 0x94a   :  { %v7754_v44 = vpop.f32.mrb[14].mxu0 }
 0x94b   :  { %v9473_v27 = vadd.f32 %v9470_v0, %v7754_v44  ;;  %v7756_v57 = vpop.f32.mrb[15].mxu0 }
 0x94c   :  { %v9479_v51 = vadd.f32 %v9476_v3, %v7756_v57 }
 0x94d   :  { %8132 = vst [vmem:[%s16180_s13 + $0x40] sm:$0xff] %v9473_v27 }
 0x94e   :  { %8133 = vst [vmem:[%s16180_s13 + $0x48] sm:$0xff] %v9479_v51  ;;  %v7825_v33 = vpop.f32.mrb[14].mxu1 }
 0x94f   :  { %v9485_v35 = vadd.f32 %v9482_v5, %v7825_v33  ;;  %v7827_v32 = vpop.f32.mrb[15].mxu1 }
 0x950   :  { %v9491_v42 = vadd.f32 %v9488_v16, %v7827_v32 }
 0x951   :  { %8134 = vst [vmem:[%s16180_s13 + $0x50] sm:$0xff] %v9485_v35 }
 0x952   :  { %8135 = vst [vmem:[%s16180_s13 + $0x58] sm:$0xff] %v9491_v42 }
 0x96b   :  { %v7896_v52 = vpop.f32.mrb[16].mxu0  ;;  %v7967_v15 = vpop.f32.mrb[16].mxu1 }
 0x96c   :  { %v9497_v13 = vadd.f32 %v9494_v23, %v7896_v52  ;;  %v9509_v1 = vadd.f32 %v9506_v56, %v7967_v15  ;;  %v7898_v20 = vpop.f32.mrb[17].mxu0  ;;  %v7969_v8 = vpop.f32.mrb[17].mxu1 }
 0x96d   :  { %v9503_v31 = vadd.f32 %v9500_v62, %v7898_v20  ;;  %v9515_v59 = vadd.f32 %v9512_v26, %v7969_v8 }
 0x96e   :  { %8136 = vst [vmem:[%s16180_s13 + $0x60] sm:$0xff] %v9497_v13  ;;  %8138 = vst [vmem:[%s16180_s13 + $0x70] sm:$0xff] %v9509_v1 }
 0x96f   :  { %8137 = vst [vmem:[%s16180_s13 + $0x68] sm:$0xff] %v9503_v31  ;;  %8139 = vst [vmem:[%s16180_s13 + $0x78] sm:$0xff] %v9515_v59 }
 0x970   :  { %8024 = vsyncpa [#allocation5], 1 }

</bundles_post_ra>
